<compile_context>
chip_gen: v7x
topology: tpu7x:2x2x1
jax: 0.10.0
libtpu: 0.0.40
codegen_flags: <defaults>
</compile_context>

<pallas_src>
import functools
import math

import jax
import jax.numpy as jnp
from jax.experimental import pallas as pl
from jax.experimental.pallas import tpu as pltpu

_LANE = 128
_SQRT_2_OVER_PI = math.sqrt(2.0 / math.pi)
# 3x3 tap order shared by the kernel loop and the wrapper-side mask packing.
_TAPS = tuple((dy, dx) for dy in range(3) for dx in range(3) if (dy, dx) != (1, 1))


def _gelu_tanh(x):
    # tanh-approx GELU: ~8 VALU ops + 1 EUP tanh per element (vs 20+ VALU ops
    # for the A&S erf polynomial).  |gelu_tanh - gelu_erf| <~ 3e-3.
    inner = _SQRT_2_OVER_PI * (x + 0.044715 * (x * x * x))
    return 0.5 * x * (1.0 + jnp.tanh(inner))


def _mbconv_kernel(x_ref, vp_ref, bred_ref, wdw_ref, wpw_ref, wredt_ref,
                   wexp_ref, wproj_ref, mask_ref, o_ref, *, W, HW, TB):
    x = x_ref[0]                               # (TB*HW, Cp) f32, TB packed images
    THW = TB * HW

    scale0, bias0 = vp_ref[0], vp_ref[1]       # folded norm_layer BatchNorm2d
    bias1 = vp_ref[2]                          # BN1 bias (scale folded into w_dw)
    bias02 = vp_ref[3]                         # bias0 + bias2 (BN2 scale folded into w_pw)
    b_exp, b_proj = vp_ref[4], vp_ref[5]       # SE expand bias, final proj bias

    # --- norm_layer(in_channels): folded BatchNorm2d (inference) ---
    h = x * scale0 + bias0

    # --- depthwise 3x3 conv, stride 1, padding 1 (BN1 scale pre-folded) ------
    # Row-flattened layout: tap (dy, dx) of pixel (y, x) lives at flat index
    # i + (dy-1)*W + (dx-1).  pltpu.roll (XLU sublane rotate) brings it into
    # place; one pre-combined mask per tap zeroes taps outside the image (this
    # also makes the TB>1 image packing exact across image boundaries).
    acc = h * wdw_ref[1, 1]                    # centre tap: no roll, no mask
    for idx, (dy, dx) in enumerate(_TAPS):
        off = (dy - 1) * W + (dx - 1)
        tap = pltpu.roll(h, (-off) % THW, axis=0)
        acc = acc + (tap * wdw_ref[dy, dx]) * mask_ref[idx]

    # --- BN1 bias + tanh-approx GELU ---
    h = _gelu_tanh(acc + bias1)

    # --- pointwise 1x1 conv (bf16 MXU, f32 acc; BN2 scale folded into columns)
    #     + combined biases + DWSepConv residual (shortcut recomputed, no
    #     long-lived shortcut buffer) ---
    h = jnp.dot(h.astype(jnp.bfloat16), wpw_ref[...],
                preferred_element_type=jnp.float32)
    h = h + bias02 + x * scale0

    # --- per-image SqueezeExcite (rd_ratio=0.25) + 1x1 projection + residual ---
    out_rows = []
    for t in range(TB):
        sl = slice(t * HW, (t + 1) * HW)       # static, sublane-tile aligned
        ht = h[sl, :]
        se = jnp.sum(ht, axis=0, keepdims=True) * (1.0 / HW)              # (1, Cp)
        red = jnp.sum(se * wredt_ref[...], axis=1, keepdims=True) + bred_ref[...]
        red = jnp.maximum(red, 0.0)                                       # (rd, 1)
        gate = jax.nn.sigmoid(
            jnp.sum(red * wexp_ref[...], axis=0, keepdims=True) + b_exp)  # (1, Cp)
        hg = ht * gate
        proj = jnp.dot(hg.astype(jnp.bfloat16), wproj_ref[...],
                       preferred_element_type=jnp.float32)
        out_rows.append((proj + b_proj + x[sl, :]).astype(o_ref.dtype))
    o_ref[0] = out_rows[0] if TB == 1 else jnp.concatenate(out_rows, axis=0)


def _vmem_limit_bytes():
    """Generation-dependent scoped-VMEM budget (~75% of per-core VMEM, clipped
    to [32, 100] MiB): ~96 MiB on v5e/v6e (128 MiB parts), ~48 MiB on v7x."""
    cap = 64 * 1024 * 1024
    try:
        cap = int(pltpu.get_tpu_info().vmem_capacity_bytes)
    except Exception:
        pass
    return int(min(100 * 1024 * 1024, max(32 * 1024 * 1024, int(cap * 0.75))))


def mbconv_pallas(x_nchw, params):
    """x_nchw: (B, C, H, W) float32 — same convention as the PyTorch module."""
    vec_params, b_red, w_dw, w_pw, w_red_t, w_exp, w_proj = params
    B, C, H, W = x_nchw.shape
    rd = w_red_t.shape[0]
    HW = H * W
    Cp = max(_LANE, ((C + _LANE - 1) // _LANE) * _LANE)   # lane-dense channels
    pc = Cp - C

    # Grid-step batching: pack TB images per grid step for small images to
    # amortize the ~0.35 us per-step overhead and fatten the MXU M dimension.
    img_bytes = HW * Cp * 4
    TB = 1
    if img_bytes < (1 << 20):
        TB = int(max(1, min(B, 8, (1 << 20) // img_bytes)))
    Bp = ((B + TB - 1) // TB) * TB
    grid_b = Bp // TB
    THW = TB * HW

    # Fold BatchNorm scales into conv weights (in f32, BEFORE any bf16 cast):
    #   * BN1 scale -> depthwise weight (exact: the per-channel scale commutes
    #     with the masked tap sum);
    #   * BN2 scale -> columns of the pointwise 1x1 weight.
    # bias0 cannot be folded into w_dw (the edge masks make its contribution
    # pixel-dependent), so norm_layer stays scale+bias in-kernel.
    s0, b0, s1, b1, s2, b2, b_exp, b_proj = (vec_params[i] for i in range(8))
    w_dw_f = w_dw * s1[None, None, :]
    w_pw_f = w_pw * s2[None, :]
    bias02 = b0 + b2                     # combined pw-BN bias + DWSep shortcut bias
    vp = jnp.stack([s0, b0, b1, bias02, b_exp, b_proj], axis=0)      # (6, C)

    # NCHW -> NHWC, zero-pad channels to a lane-dense multiple of 128, pad the
    # batch to a multiple of TB, then row-flatten TB images per grid step.
    # Padded lanes stay exactly zero through every stage (all padded weight
    # rows/cols and biases are zero; the SE mean divides by the true H*W).
    # TODO(synk): in a full model, keep activations in this padded (HW, Cp)
    # NHWC layout across layers instead of transposing around every block.
    x = jnp.transpose(x_nchw, (0, 2, 3, 1)).astype(jnp.float32)
    x = jnp.pad(x, ((0, Bp - B), (0, 0), (0, 0), (0, pc)))
    x = x.reshape(grid_b, THW, Cp)

    vp = jnp.pad(vp, ((0, 0), (0, pc)))
    wdw = jnp.pad(w_dw_f, ((0, 0), (0, 0), (0, pc)))
    wpw = jnp.pad(w_pw_f, ((0, pc), (0, pc))).astype(jnp.bfloat16)
    wredt = jnp.pad(w_red_t, ((0, 0), (0, pc)))
    wexp = jnp.pad(w_exp, ((0, 0), (0, pc)))
    wproj = jnp.pad(w_proj, ((0, pc), (0, pc))).astype(jnp.bfloat16)

    # Pre-combined per-tap edge/image-boundary validity masks (one multiply per
    # non-centre tap).  Built over the full flattened TB*HW index so taps that
    # would bleed across packed-image boundaries are zeroed as well.
    ii = jnp.arange(THW, dtype=jnp.int32)
    yy = (ii // W) % H
    xx = ii % W
    ones = jnp.ones((THW,), jnp.bool_)
    vy = {0: yy >= 1, 1: ones, 2: yy <= H - 2}
    vx = {0: xx >= 1, 1: ones, 2: xx <= W - 2}
    masks = jnp.stack([(vy[dy] & vx[dx]).astype(jnp.float32) for dy, dx in _TAPS],
                      axis=0).reshape(8, THW, 1)

    kernel = functools.partial(_mbconv_kernel, W=W, HW=HW, TB=TB)
    out = pl.pallas_call(
        kernel,
        out_shape=jax.ShapeDtypeStruct((grid_b, THW, Cp), jnp.float32),
        grid_spec=pltpu.PrefetchScalarGridSpec(
            num_scalar_prefetch=0,
            grid=(grid_b,),
            in_specs=[
                pl.BlockSpec((1, THW, Cp), lambda b: (b, 0, 0)),   # x (TB images, row-flattened)
                pl.BlockSpec((6, Cp), lambda b: (0, 0)),           # packed per-channel params
                pl.BlockSpec((rd, 1), lambda b: (0, 0)),           # SE reduce bias
                pl.BlockSpec((3, 3, Cp), lambda b: (0, 0, 0)),     # depthwise weight (BN1 scale folded)
                pl.BlockSpec((Cp, Cp), lambda b: (0, 0)),          # pointwise weight (BN2 scale folded, bf16)
                pl.BlockSpec((rd, Cp), lambda b: (0, 0)),          # SE reduce weight
                pl.BlockSpec((rd, Cp), lambda b: (0, 0)),          # SE expand weight
                pl.BlockSpec((Cp, Cp), lambda b: (0, 0)),          # projection weight (bf16)
                pl.BlockSpec((8, THW, 1), lambda b: (0, 0, 0)),    # pre-combined per-tap masks
            ],
            out_specs=pl.BlockSpec((1, THW, Cp), lambda b: (b, 0, 0)),
        ),
        compiler_params=pltpu.CompilerParams(
            dimension_semantics=("parallel",),
            vmem_limit_bytes=_vmem_limit_bytes(),
        ),
    )(x, vp, b_red, wdw, wpw, wredt, wexp, wproj, masks)

    out = out.reshape(Bp, H, W, Cp)[:B, ..., :C]
    return jnp.transpose(out, (0, 3, 1, 2))   # back to NCHW


def make_params(key, channels):
    """Deterministic synthetic parameters (BatchNorms folded, inference mode)."""
    C = channels
    rd = max(int(round(C * 0.25)), 1)   # SqueezeExcite rd_ratio=0.25
    eps = 1e-5
    ks = jax.random.split(key, 8)

    def bn_fold(k):
        kg, kb, km, kv = jax.random.split(k, 4)
        gamma = 1.0 + 0.1 * jax.random.normal(kg, (C,), jnp.float32)
        beta = 0.1 * jax.random.normal(kb, (C,), jnp.float32)
        mean = 0.1 * jax.random.normal(km, (C,), jnp.float32)
        var = 1.0 + 0.1 * jax.random.uniform(kv, (C,), jnp.float32)
        scale = gamma / jnp.sqrt(var + eps)
        bias = beta - mean * scale
        return scale, bias

    s0, b0 = bn_fold(ks[0])
    s1, b1 = bn_fold(ks[1])
    s2, b2 = bn_fold(ks[2])

    w_dw = 0.2 * jax.random.normal(ks[3], (3, 3, C), jnp.float32)        # depthwise 3x3
    w_pw = 0.3 * jax.random.normal(ks[4], (C, C), jnp.float32)           # 1x1, (Cin, Cout)

    k0, k1, k2, k3 = jax.random.split(ks[5], 4)
    w_red_t = 0.3 * jax.random.normal(k0, (rd, C), jnp.float32)          # SE reduce, (rd, C)
    b_red = 0.1 * jax.random.normal(k1, (rd, 1), jnp.float32)
    w_exp = 0.3 * jax.random.normal(k2, (rd, C), jnp.float32)            # SE expand, (rd, C)
    b_exp = 0.1 * jax.random.normal(k3, (C,), jnp.float32)

    kp0, kp1 = jax.random.split(ks[6], 2)
    w_proj = 0.3 * jax.random.normal(kp0, (C, C), jnp.float32)           # 1x1, (Cin, Cout)
    b_proj = 0.1 * jax.random.normal(kp1, (C,), jnp.float32)

    vec_params = jnp.stack([s0, b0, s1, b1, s2, b2, b_exp, b_proj], axis=0)  # (8, C)
    return (vec_params, b_red, w_dw, w_pw, w_red_t, w_exp, w_proj)


def mbconv_reference(x_nchw, params):
    """Pure-JAX (f32, exact GELU) reference of the same forward pass."""
    vec_params, b_red, w_dw, w_pw, w_red_t, w_exp, w_proj = params
    s0, b0, s1, b1, s2, b2, b_exp, b_proj = [vec_params[i] for i in range(8)]
    x = jnp.transpose(x_nchw, (0, 2, 3, 1)).astype(jnp.float32)  # NHWC
    B, H, W, C = x.shape
    hi = jax.lax.Precision.HIGHEST

    h = x * s0 + b0
    shortcut = h
    dw_k = w_dw[:, :, None, :]  # HWIO with I=1, feature_group_count=C -> depthwise
    h2 = jax.lax.conv_general_dilated(
        h, dw_k, window_strides=(1, 1), padding="SAME",
        dimension_numbers=("NHWC", "HWIO", "NHWC"),
        feature_group_count=C, precision=hi)
    h2 = jax.nn.gelu(h2 * s1 + b1, approximate=False)
    h3 = jnp.einsum("bhwc,cd->bhwd", h2, w_pw, precision=hi) * s2 + b2
    h3 = h3 + shortcut

    se = h3.mean(axis=(1, 2))                                           # (B, C)
    se_r = jnp.maximum(jnp.einsum("bc,rc->br", se, w_red_t, precision=hi)
                       + b_red[:, 0], 0.0)                              # (B, rd)
    gate = jax.nn.sigmoid(jnp.einsum("br,rc->bc", se_r, w_exp, precision=hi)
                          + b_exp)                                      # (B, C)
    h4 = h3 * gate[:, None, None, :]

    out = jnp.einsum("bhwc,cd->bhwd", h4, w_proj, precision=hi) + b_proj + x
    return jnp.transpose(out, (0, 3, 1, 2))


if __name__ == "__main__":
    key = jax.random.PRNGKey(0)
    kx, kp = jax.random.split(key)
    B, C, H, W = 2, 4, 16, 16
    x = jax.random.normal(kx, (B, C, H, W), jnp.float32)
    params = make_params(kp, C)

    out = jax.block_until_ready(mbconv_pallas(x, params))
    assert out.shape == (B, C, H, W)

    ref = mbconv_reference(x, params)
    max_err = float(jnp.max(jnp.abs(out - ref)))
    # Kernel runs the two 1x1 convs with bf16 MXU operands (f32 accumulation)
    # and a tanh-approximation GELU; tolerance vs. the pure-f32 / exact-GELU
    # reference is sized for that (expected max error ~1e-2).
    assert max_err < 5e-2, f"max abs error {max_err}"

    print("KERNEL_OK")
</pallas_src>

<mosaic_0001>
module attributes {stable_mosaic.version = 11 : i64} {
  func.func @_mbconv_kernel(%arg0: i32, %arg1: memref<1x512x128xf32, #tpu.memory_space<vmem>>, %arg2: memref<6x128xf32, #tpu.memory_space<vmem>>, %arg3: memref<1x1xf32, #tpu.memory_space<vmem>>, %arg4: memref<3x3x128xf32, #tpu.memory_space<vmem>>, %arg5: memref<128x128xbf16, #tpu.memory_space<vmem>>, %arg6: memref<1x128xf32, #tpu.memory_space<vmem>>, %arg7: memref<1x128xf32, #tpu.memory_space<vmem>>, %arg8: memref<128x128xbf16, #tpu.memory_space<vmem>>, %arg9: memref<8x512x1xf32, #tpu.memory_space<vmem>>, %arg10: memref<1x512x128xf32, #tpu.memory_space<vmem>>) attributes {dimension_semantics = [#tpu.dimension_semantics<parallel>], iteration_bounds = array<i64: 1>, scalar_prefetch = 0 : i64, scratch_operands = 0 : i64, tpu.core_type = #tpu.core_type<tc>, window_params = [{transform_indices = @transform_0, window_bounds = array<i64: 1, 512, 128>}, {pipeline_mode = #tpu.pipeline_mode<synchronous>, transform_indices = @transform_1, window_bounds = array<i64: 6, 128>}, {pipeline_mode = #tpu.pipeline_mode<synchronous>, transform_indices = @transform_2, window_bounds = array<i64: 1, 1>}, {pipeline_mode = #tpu.pipeline_mode<synchronous>, transform_indices = @transform_3, window_bounds = array<i64: 3, 3, 128>}, {pipeline_mode = #tpu.pipeline_mode<synchronous>, transform_indices = @transform_4, window_bounds = array<i64: 128, 128>}, {pipeline_mode = #tpu.pipeline_mode<synchronous>, transform_indices = @transform_5, window_bounds = array<i64: 1, 128>}, {pipeline_mode = #tpu.pipeline_mode<synchronous>, transform_indices = @transform_6, window_bounds = array<i64: 1, 128>}, {pipeline_mode = #tpu.pipeline_mode<synchronous>, transform_indices = @transform_7, window_bounds = array<i64: 128, 128>}, {pipeline_mode = #tpu.pipeline_mode<synchronous>, transform_indices = @transform_8, window_bounds = array<i64: 8, 512, 1>}, {transform_indices = @transform_9, window_bounds = array<i64: 1, 512, 128>}]} {
    %c0 = arith.constant 0 : index
    %c0_0 = arith.constant 0 : index
    %c0_1 = arith.constant 0 : index
    %0 = vector.load %arg1[%c0, %c0_0, %c0_1] : memref<1x512x128xf32, #tpu.memory_space<vmem>>, vector<1x512x128xf32>
    %1 = vector.shape_cast %0 : vector<1x512x128xf32> to vector<512x128xf32>
    %c0_2 = arith.constant 0 : index
    %c0_3 = arith.constant 0 : index
    %2 = vector.load %arg2[%c0_2, %c0_3] : memref<6x128xf32, #tpu.memory_space<vmem>>, vector<1x128xf32>
    %3 = vector.shape_cast %2 : vector<1x128xf32> to vector<128xf32>
    %c1 = arith.constant 1 : index
    %c0_4 = arith.constant 0 : index
    %4 = vector.load %arg2[%c1, %c0_4] : memref<6x128xf32, #tpu.memory_space<vmem>>, vector<1x128xf32>
    %5 = vector.shape_cast %4 : vector<1x128xf32> to vector<128xf32>
    %c2 = arith.constant 2 : index
    %c0_5 = arith.constant 0 : index
    %6 = vector.load %arg2[%c2, %c0_5] : memref<6x128xf32, #tpu.memory_space<vmem>>, vector<1x128xf32>
    %7 = vector.shape_cast %6 : vector<1x128xf32> to vector<128xf32>
    %c3 = arith.constant 3 : index
    %c0_6 = arith.constant 0 : index
    %8 = vector.load %arg2[%c3, %c0_6] : memref<6x128xf32, #tpu.memory_space<vmem>>, vector<1x128xf32>
    %9 = vector.shape_cast %8 : vector<1x128xf32> to vector<128xf32>
    %c4 = arith.constant 4 : index
    %c0_7 = arith.constant 0 : index
    %10 = vector.load %arg2[%c4, %c0_7] : memref<6x128xf32, #tpu.memory_space<vmem>>, vector<1x128xf32>
    %11 = vector.shape_cast %10 : vector<1x128xf32> to vector<128xf32>
    %c5 = arith.constant 5 : index
    %c0_8 = arith.constant 0 : index
    %12 = vector.load %arg2[%c5, %c0_8] : memref<6x128xf32, #tpu.memory_space<vmem>>, vector<1x128xf32>
    %13 = vector.shape_cast %12 : vector<1x128xf32> to vector<128xf32>
    %14 = vector.shape_cast %3 : vector<128xf32> to vector<1x128xf32>
    %15 = vector.broadcast %14 : vector<1x128xf32> to vector<512x128xf32>
    %16 = arith.mulf %1, %15 : vector<512x128xf32>
    %17 = vector.shape_cast %5 : vector<128xf32> to vector<1x128xf32>
    %18 = vector.broadcast %17 : vector<1x128xf32> to vector<512x128xf32>
    %19 = arith.addf %16, %18 : vector<512x128xf32>
    %c1_9 = arith.constant 1 : index
    %c1_10 = arith.constant 1 : index
    %c0_11 = arith.constant 0 : index
    %20 = vector.load %arg4[%c1_9, %c1_10, %c0_11] : memref<3x3x128xf32, #tpu.memory_space<vmem>>, vector<1x1x128xf32>
    %21 = vector.shape_cast %20 : vector<1x1x128xf32> to vector<128xf32>
    %22 = vector.shape_cast %21 : vector<128xf32> to vector<1x128xf32>
    %23 = vector.broadcast %22 : vector<1x128xf32> to vector<512x128xf32>
    %24 = arith.mulf %19, %23 : vector<512x128xf32>
    %c17_i32 = arith.constant 17 : i32
    %25 = tpu.dynamic_rotate %19 by %c17_i32 dim 0 : vector<512x128xf32>, i32 -> vector<512x128xf32>
    %c0_12 = arith.constant 0 : index
    %c0_13 = arith.constant 0 : index
    %c0_14 = arith.constant 0 : index
    %26 = vector.load %arg4[%c0_12, %c0_13, %c0_14] : memref<3x3x128xf32, #tpu.memory_space<vmem>>, vector<1x1x128xf32>
    %27 = vector.shape_cast %26 : vector<1x1x128xf32> to vector<128xf32>
    %28 = vector.shape_cast %27 : vector<128xf32> to vector<1x128xf32>
    %29 = vector.broadcast %28 : vector<1x128xf32> to vector<512x128xf32>
    %30 = arith.mulf %25, %29 : vector<512x128xf32>
    %c0_15 = arith.constant 0 : index
    %c0_16 = arith.constant 0 : index
    %c0_17 = arith.constant 0 : index
    %31 = vector.load %arg9[%c0_15, %c0_16, %c0_17] : memref<8x512x1xf32, #tpu.memory_space<vmem>>, vector<1x512x1xf32>
    %32 = vector.shape_cast %31 : vector<1x512x1xf32> to vector<512x1xf32>
    %33 = vector.broadcast %32 : vector<512x1xf32> to vector<512x128xf32>
    %34 = arith.mulf %30, %33 : vector<512x128xf32>
    %35 = arith.addf %24, %34 : vector<512x128xf32>
    %c16_i32 = arith.constant 16 : i32
    %36 = tpu.dynamic_rotate %19 by %c16_i32 dim 0 : vector<512x128xf32>, i32 -> vector<512x128xf32>
    %c0_18 = arith.constant 0 : index
    %c1_19 = arith.constant 1 : index
    %c0_20 = arith.constant 0 : index
    %37 = vector.load %arg4[%c0_18, %c1_19, %c0_20] : memref<3x3x128xf32, #tpu.memory_space<vmem>>, vector<1x1x128xf32>
    %38 = vector.shape_cast %37 : vector<1x1x128xf32> to vector<128xf32>
    %39 = vector.shape_cast %38 : vector<128xf32> to vector<1x128xf32>
    %40 = vector.broadcast %39 : vector<1x128xf32> to vector<512x128xf32>
    %41 = arith.mulf %36, %40 : vector<512x128xf32>
    %c1_21 = arith.constant 1 : index
    %c0_22 = arith.constant 0 : index
    %c0_23 = arith.constant 0 : index
    %42 = vector.load %arg9[%c1_21, %c0_22, %c0_23] : memref<8x512x1xf32, #tpu.memory_space<vmem>>, vector<1x512x1xf32>
    %43 = vector.shape_cast %42 : vector<1x512x1xf32> to vector<512x1xf32>
    %44 = vector.broadcast %43 : vector<512x1xf32> to vector<512x128xf32>
    %45 = arith.mulf %41, %44 : vector<512x128xf32>
    %46 = arith.addf %35, %45 : vector<512x128xf32>
    %c15_i32 = arith.constant 15 : i32
    %47 = tpu.dynamic_rotate %19 by %c15_i32 dim 0 : vector<512x128xf32>, i32 -> vector<512x128xf32>
    %c0_24 = arith.constant 0 : index
    %c2_25 = arith.constant 2 : index
    %c0_26 = arith.constant 0 : index
    %48 = vector.load %arg4[%c0_24, %c2_25, %c0_26] : memref<3x3x128xf32, #tpu.memory_space<vmem>>, vector<1x1x128xf32>
    %49 = vector.shape_cast %48 : vector<1x1x128xf32> to vector<128xf32>
    %50 = vector.shape_cast %49 : vector<128xf32> to vector<1x128xf32>
    %51 = vector.broadcast %50 : vector<1x128xf32> to vector<512x128xf32>
    %52 = arith.mulf %47, %51 : vector<512x128xf32>
    %c2_27 = arith.constant 2 : index
    %c0_28 = arith.constant 0 : index
    %c0_29 = arith.constant 0 : index
    %53 = vector.load %arg9[%c2_27, %c0_28, %c0_29] : memref<8x512x1xf32, #tpu.memory_space<vmem>>, vector<1x512x1xf32>
    %54 = vector.shape_cast %53 : vector<1x512x1xf32> to vector<512x1xf32>
    %55 = vector.broadcast %54 : vector<512x1xf32> to vector<512x128xf32>
    %56 = arith.mulf %52, %55 : vector<512x128xf32>
    %57 = arith.addf %46, %56 : vector<512x128xf32>
    %c1_i32 = arith.constant 1 : i32
    %58 = tpu.dynamic_rotate %19 by %c1_i32 dim 0 : vector<512x128xf32>, i32 -> vector<512x128xf32>
    %c1_30 = arith.constant 1 : index
    %c0_31 = arith.constant 0 : index
    %c0_32 = arith.constant 0 : index
    %59 = vector.load %arg4[%c1_30, %c0_31, %c0_32] : memref<3x3x128xf32, #tpu.memory_space<vmem>>, vector<1x1x128xf32>
    %60 = vector.shape_cast %59 : vector<1x1x128xf32> to vector<128xf32>
    %61 = vector.shape_cast %60 : vector<128xf32> to vector<1x128xf32>
    %62 = vector.broadcast %61 : vector<1x128xf32> to vector<512x128xf32>
    %63 = arith.mulf %58, %62 : vector<512x128xf32>
    %c3_33 = arith.constant 3 : index
    %c0_34 = arith.constant 0 : index
    %c0_35 = arith.constant 0 : index
    %64 = vector.load %arg9[%c3_33, %c0_34, %c0_35] : memref<8x512x1xf32, #tpu.memory_space<vmem>>, vector<1x512x1xf32>
    %65 = vector.shape_cast %64 : vector<1x512x1xf32> to vector<512x1xf32>
    %66 = vector.broadcast %65 : vector<512x1xf32> to vector<512x128xf32>
    %67 = arith.mulf %63, %66 : vector<512x128xf32>
    %68 = arith.addf %57, %67 : vector<512x128xf32>
    %c511_i32 = arith.constant 511 : i32
    %69 = tpu.dynamic_rotate %19 by %c511_i32 dim 0 : vector<512x128xf32>, i32 -> vector<512x128xf32>
    %c1_36 = arith.constant 1 : index
    %c2_37 = arith.constant 2 : index
    %c0_38 = arith.constant 0 : index
    %70 = vector.load %arg4[%c1_36, %c2_37, %c0_38] : memref<3x3x128xf32, #tpu.memory_space<vmem>>, vector<1x1x128xf32>
    %71 = vector.shape_cast %70 : vector<1x1x128xf32> to vector<128xf32>
    %72 = vector.shape_cast %71 : vector<128xf32> to vector<1x128xf32>
    %73 = vector.broadcast %72 : vector<1x128xf32> to vector<512x128xf32>
    %74 = arith.mulf %69, %73 : vector<512x128xf32>
    %c4_39 = arith.constant 4 : index
    %c0_40 = arith.constant 0 : index
    %c0_41 = arith.constant 0 : index
    %75 = vector.load %arg9[%c4_39, %c0_40, %c0_41] : memref<8x512x1xf32, #tpu.memory_space<vmem>>, vector<1x512x1xf32>
    %76 = vector.shape_cast %75 : vector<1x512x1xf32> to vector<512x1xf32>
    %77 = vector.broadcast %76 : vector<512x1xf32> to vector<512x128xf32>
    %78 = arith.mulf %74, %77 : vector<512x128xf32>
    %79 = arith.addf %68, %78 : vector<512x128xf32>
    %c497_i32 = arith.constant 497 : i32
    %80 = tpu.dynamic_rotate %19 by %c497_i32 dim 0 : vector<512x128xf32>, i32 -> vector<512x128xf32>
    %c2_42 = arith.constant 2 : index
    %c0_43 = arith.constant 0 : index
    %c0_44 = arith.constant 0 : index
    %81 = vector.load %arg4[%c2_42, %c0_43, %c0_44] : memref<3x3x128xf32, #tpu.memory_space<vmem>>, vector<1x1x128xf32>
    %82 = vector.shape_cast %81 : vector<1x1x128xf32> to vector<128xf32>
    %83 = vector.shape_cast %82 : vector<128xf32> to vector<1x128xf32>
    %84 = vector.broadcast %83 : vector<1x128xf32> to vector<512x128xf32>
    %85 = arith.mulf %80, %84 : vector<512x128xf32>
    %c5_45 = arith.constant 5 : index
    %c0_46 = arith.constant 0 : index
    %c0_47 = arith.constant 0 : index
    %86 = vector.load %arg9[%c5_45, %c0_46, %c0_47] : memref<8x512x1xf32, #tpu.memory_space<vmem>>, vector<1x512x1xf32>
    %87 = vector.shape_cast %86 : vector<1x512x1xf32> to vector<512x1xf32>
    %88 = vector.broadcast %87 : vector<512x1xf32> to vector<512x128xf32>
    %89 = arith.mulf %85, %88 : vector<512x128xf32>
    %90 = arith.addf %79, %89 : vector<512x128xf32>
    %c496_i32 = arith.constant 496 : i32
    %91 = tpu.dynamic_rotate %19 by %c496_i32 dim 0 : vector<512x128xf32>, i32 -> vector<512x128xf32>
    %c2_48 = arith.constant 2 : index
    %c1_49 = arith.constant 1 : index
    %c0_50 = arith.constant 0 : index
    %92 = vector.load %arg4[%c2_48, %c1_49, %c0_50] : memref<3x3x128xf32, #tpu.memory_space<vmem>>, vector<1x1x128xf32>
    %93 = vector.shape_cast %92 : vector<1x1x128xf32> to vector<128xf32>
    %94 = vector.shape_cast %93 : vector<128xf32> to vector<1x128xf32>
    %95 = vector.broadcast %94 : vector<1x128xf32> to vector<512x128xf32>
    %96 = arith.mulf %91, %95 : vector<512x128xf32>
    %c6 = arith.constant 6 : index
    %c0_51 = arith.constant 0 : index
    %c0_52 = arith.constant 0 : index
    %97 = vector.load %arg9[%c6, %c0_51, %c0_52] : memref<8x512x1xf32, #tpu.memory_space<vmem>>, vector<1x512x1xf32>
    %98 = vector.shape_cast %97 : vector<1x512x1xf32> to vector<512x1xf32>
    %99 = vector.broadcast %98 : vector<512x1xf32> to vector<512x128xf32>
    %100 = arith.mulf %96, %99 : vector<512x128xf32>
    %101 = arith.addf %90, %100 : vector<512x128xf32>
    %c495_i32 = arith.constant 495 : i32
    %102 = tpu.dynamic_rotate %19 by %c495_i32 dim 0 : vector<512x128xf32>, i32 -> vector<512x128xf32>
    %c2_53 = arith.constant 2 : index
    %c2_54 = arith.constant 2 : index
    %c0_55 = arith.constant 0 : index
    %103 = vector.load %arg4[%c2_53, %c2_54, %c0_55] : memref<3x3x128xf32, #tpu.memory_space<vmem>>, vector<1x1x128xf32>
    %104 = vector.shape_cast %103 : vector<1x1x128xf32> to vector<128xf32>
    %105 = vector.shape_cast %104 : vector<128xf32> to vector<1x128xf32>
    %106 = vector.broadcast %105 : vector<1x128xf32> to vector<512x128xf32>
    %107 = arith.mulf %102, %106 : vector<512x128xf32>
    %c7 = arith.constant 7 : index
    %c0_56 = arith.constant 0 : index
    %c0_57 = arith.constant 0 : index
    %108 = vector.load %arg9[%c7, %c0_56, %c0_57] : memref<8x512x1xf32, #tpu.memory_space<vmem>>, vector<1x512x1xf32>
    %109 = vector.shape_cast %108 : vector<1x512x1xf32> to vector<512x1xf32>
    %110 = vector.broadcast %109 : vector<512x1xf32> to vector<512x128xf32>
    %111 = arith.mulf %107, %110 : vector<512x128xf32>
    %112 = arith.addf %101, %111 : vector<512x128xf32>
    %113 = vector.shape_cast %7 : vector<128xf32> to vector<1x128xf32>
    %114 = vector.broadcast %113 : vector<1x128xf32> to vector<512x128xf32>
    %115 = arith.addf %112, %114 : vector<512x128xf32>
    %116 = arith.mulf %115, %115 : vector<512x128xf32>
    %117 = arith.mulf %116, %115 : vector<512x128xf32>
    %cst = arith.constant 4.471500e-02 : f32
    %118 = vector.broadcast %cst : f32 to vector<512x128xf32>
    %119 = arith.mulf %118, %117 : vector<512x128xf32>
    %120 = arith.addf %115, %119 : vector<512x128xf32>
    %cst_58 = arith.constant 0.797884583 : f32
    %121 = vector.broadcast %cst_58 : f32 to vector<512x128xf32>
    %122 = arith.mulf %121, %120 : vector<512x128xf32>
    %cst_59 = arith.constant 5.000000e-01 : f32
    %123 = vector.broadcast %cst_59 : f32 to vector<512x128xf32>
    %124 = arith.mulf %123, %115 : vector<512x128xf32>
    %125 = math.tanh %122 : vector<512x128xf32>
    %cst_60 = arith.constant 1.000000e+00 : f32
    %126 = vector.broadcast %cst_60 : f32 to vector<512x128xf32>
    %127 = arith.addf %126, %125 : vector<512x128xf32>
    %128 = arith.mulf %124, %127 : vector<512x128xf32>
    %129 = arith.truncf %128 : vector<512x128xf32> to vector<512x128xbf16>
    %c0_61 = arith.constant 0 : index
    %c0_62 = arith.constant 0 : index
    %130 = vector.load %arg5[%c0_61, %c0_62] : memref<128x128xbf16, #tpu.memory_space<vmem>>, vector<128x128xbf16>
    %cst_63 = arith.constant dense<0.000000e+00> : vector<512x128xf32>
    %131 = tpu.matmul %129, %130, %cst_63 {dimension_numbers = #tpu.dot_dimension_numbers<[1], [0], [0], [1], [0, 0, 1, 1], [], []>} : vector<512x128xbf16>, vector<128x128xbf16>, vector<512x128xf32> -> vector<512x128xf32>
    %132 = vector.shape_cast %9 : vector<128xf32> to vector<1x128xf32>
    %133 = vector.broadcast %132 : vector<1x128xf32> to vector<512x128xf32>
    %134 = arith.addf %131, %133 : vector<512x128xf32>
    %135 = vector.shape_cast %3 : vector<128xf32> to vector<1x128xf32>
    %136 = vector.broadcast %135 : vector<1x128xf32> to vector<512x128xf32>
    %137 = arith.mulf %1, %136 : vector<512x128xf32>
    %138 = arith.addf %134, %137 : vector<512x128xf32>
    %139 = vector.extract_strided_slice %138 {offsets = [0, 0], sizes = [256, 128], strides = [1, 1]} : vector<512x128xf32> to vector<256x128xf32>
    %cst_64 = arith.constant dense<0.000000e+00> : vector<128xf32>
    %140 = vector.multi_reduction <add>, %139, %cst_64 [0] : vector<256x128xf32> to vector<128xf32>
    %141 = vector.shape_cast %140 : vector<128xf32> to vector<1x128xf32>
    %cst_65 = arith.constant 3.906250e-03 : f32
    %142 = vector.broadcast %cst_65 : f32 to vector<1x128xf32>
    %143 = arith.mulf %141, %142 : vector<1x128xf32>
    %c0_66 = arith.constant 0 : index
    %c0_67 = arith.constant 0 : index
    %144 = vector.load %arg6[%c0_66, %c0_67] : memref<1x128xf32, #tpu.memory_space<vmem>>, vector<1x128xf32>
    %145 = arith.mulf %143, %144 : vector<1x128xf32>
    %cst_68 = arith.constant dense<0.000000e+00> : vector<1xf32>
    %146 = vector.multi_reduction <add>, %145, %cst_68 [1] : vector<1x128xf32> to vector<1xf32>
    %147 = vector.shape_cast %146 : vector<1xf32> to vector<1x1xf32>
    %c0_69 = arith.constant 0 : index
    %c0_70 = arith.constant 0 : index
    %148 = vector.load %arg3[%c0_69, %c0_70] : memref<1x1xf32, #tpu.memory_space<vmem>>, vector<1x1xf32>
    %149 = arith.addf %147, %148 : vector<1x1xf32>
    %cst_71 = arith.constant 0.000000e+00 : f32
    %150 = vector.broadcast %cst_71 : f32 to vector<1x1xf32>
    %151 = arith.maximumf %149, %150 : vector<1x1xf32>
    %c0_72 = arith.constant 0 : index
    %c0_73 = arith.constant 0 : index
    %152 = vector.load %arg7[%c0_72, %c0_73] : memref<1x128xf32, #tpu.memory_space<vmem>>, vector<1x128xf32>
    %153 = vector.broadcast %151 : vector<1x1xf32> to vector<1x128xf32>
    %154 = arith.mulf %153, %152 : vector<1x128xf32>
    %cst_74 = arith.constant dense<0.000000e+00> : vector<128xf32>
    %155 = vector.multi_reduction <add>, %154, %cst_74 [0] : vector<1x128xf32> to vector<128xf32>
    %156 = vector.shape_cast %155 : vector<128xf32> to vector<1x128xf32>
    %157 = vector.shape_cast %11 : vector<128xf32> to vector<1x128xf32>
    %158 = arith.addf %156, %157 : vector<1x128xf32>
    %159 = arith.negf %158 : vector<1x128xf32>
    %160 = math.exp %159 : vector<1x128xf32>
    %cst_75 = arith.constant 1.000000e+00 : f32
    %161 = vector.broadcast %cst_75 : f32 to vector<1x128xf32>
    %162 = arith.addf %161, %160 : vector<1x128xf32>
    %163 = arith.divf %161, %162 : vector<1x128xf32>
    %164 = vector.broadcast %163 : vector<1x128xf32> to vector<256x128xf32>
    %165 = arith.mulf %139, %164 : vector<256x128xf32>
    %166 = arith.truncf %165 : vector<256x128xf32> to vector<256x128xbf16>
    %c0_76 = arith.constant 0 : index
    %c0_77 = arith.constant 0 : index
    %167 = vector.load %arg8[%c0_76, %c0_77] : memref<128x128xbf16, #tpu.memory_space<vmem>>, vector<128x128xbf16>
    %cst_78 = arith.constant dense<0.000000e+00> : vector<256x128xf32>
    %168 = tpu.matmul %166, %167, %cst_78 {dimension_numbers = #tpu.dot_dimension_numbers<[1], [0], [0], [1], [0, 0, 1, 1], [], []>} : vector<256x128xbf16>, vector<128x128xbf16>, vector<256x128xf32> -> vector<256x128xf32>
    %169 = vector.shape_cast %13 : vector<128xf32> to vector<1x128xf32>
    %170 = vector.broadcast %169 : vector<1x128xf32> to vector<256x128xf32>
    %171 = arith.addf %168, %170 : vector<256x128xf32>
    %172 = vector.extract_strided_slice %1 {offsets = [0, 0], sizes = [256, 128], strides = [1, 1]} : vector<512x128xf32> to vector<256x128xf32>
    %173 = arith.addf %171, %172 : vector<256x128xf32>
    %174 = vector.extract_strided_slice %138 {offsets = [256, 0], sizes = [256, 128], strides = [1, 1]} : vector<512x128xf32> to vector<256x128xf32>
    %cst_79 = arith.constant dense<0.000000e+00> : vector<128xf32>
    %175 = vector.multi_reduction <add>, %174, %cst_79 [0] : vector<256x128xf32> to vector<128xf32>
    %176 = vector.shape_cast %175 : vector<128xf32> to vector<1x128xf32>
    %cst_80 = arith.constant 3.906250e-03 : f32
    %177 = vector.broadcast %cst_80 : f32 to vector<1x128xf32>
    %178 = arith.mulf %176, %177 : vector<1x128xf32>
    %c0_81 = arith.constant 0 : index
    %c0_82 = arith.constant 0 : index
    %179 = vector.load %arg6[%c0_81, %c0_82] : memref<1x128xf32, #tpu.memory_space<vmem>>, vector<1x128xf32>
    %180 = arith.mulf %178, %179 : vector<1x128xf32>
    %cst_83 = arith.constant dense<0.000000e+00> : vector<1xf32>
    %181 = vector.multi_reduction <add>, %180, %cst_83 [1] : vector<1x128xf32> to vector<1xf32>
    %182 = vector.shape_cast %181 : vector<1xf32> to vector<1x1xf32>
    %c0_84 = arith.constant 0 : index
    %c0_85 = arith.constant 0 : index
    %183 = vector.load %arg3[%c0_84, %c0_85] : memref<1x1xf32, #tpu.memory_space<vmem>>, vector<1x1xf32>
    %184 = arith.addf %182, %183 : vector<1x1xf32>
    %cst_86 = arith.constant 0.000000e+00 : f32
    %185 = vector.broadcast %cst_86 : f32 to vector<1x1xf32>
    %186 = arith.maximumf %184, %185 : vector<1x1xf32>
    %c0_87 = arith.constant 0 : index
    %c0_88 = arith.constant 0 : index
    %187 = vector.load %arg7[%c0_87, %c0_88] : memref<1x128xf32, #tpu.memory_space<vmem>>, vector<1x128xf32>
    %188 = vector.broadcast %186 : vector<1x1xf32> to vector<1x128xf32>
    %189 = arith.mulf %188, %187 : vector<1x128xf32>
    %cst_89 = arith.constant dense<0.000000e+00> : vector<128xf32>
    %190 = vector.multi_reduction <add>, %189, %cst_89 [0] : vector<1x128xf32> to vector<128xf32>
    %191 = vector.shape_cast %190 : vector<128xf32> to vector<1x128xf32>
    %192 = vector.shape_cast %11 : vector<128xf32> to vector<1x128xf32>
    %193 = arith.addf %191, %192 : vector<1x128xf32>
    %194 = arith.negf %193 : vector<1x128xf32>
    %195 = math.exp %194 : vector<1x128xf32>
    %cst_90 = arith.constant 1.000000e+00 : f32
    %196 = vector.broadcast %cst_90 : f32 to vector<1x128xf32>
    %197 = arith.addf %196, %195 : vector<1x128xf32>
    %198 = arith.divf %196, %197 : vector<1x128xf32>
    %199 = vector.broadcast %198 : vector<1x128xf32> to vector<256x128xf32>
    %200 = arith.mulf %174, %199 : vector<256x128xf32>
    %201 = arith.truncf %200 : vector<256x128xf32> to vector<256x128xbf16>
    %c0_91 = arith.constant 0 : index
    %c0_92 = arith.constant 0 : index
    %202 = vector.load %arg8[%c0_91, %c0_92] : memref<128x128xbf16, #tpu.memory_space<vmem>>, vector<128x128xbf16>
    %cst_93 = arith.constant dense<0.000000e+00> : vector<256x128xf32>
    %203 = tpu.matmul %201, %202, %cst_93 {dimension_numbers = #tpu.dot_dimension_numbers<[1], [0], [0], [1], [0, 0, 1, 1], [], []>} : vector<256x128xbf16>, vector<128x128xbf16>, vector<256x128xf32> -> vector<256x128xf32>
    %204 = vector.shape_cast %13 : vector<128xf32> to vector<1x128xf32>
    %205 = vector.broadcast %204 : vector<1x128xf32> to vector<256x128xf32>
    %206 = arith.addf %203, %205 : vector<256x128xf32>
    %207 = vector.extract_strided_slice %1 {offsets = [256, 0], sizes = [256, 128], strides = [1, 1]} : vector<512x128xf32> to vector<256x128xf32>
    %208 = arith.addf %206, %207 : vector<256x128xf32>
    %209 = tpu.concatenate %173, %208 in 0 : vector<256x128xf32>, vector<256x128xf32> -> vector<512x128xf32>
    %c0_94 = arith.constant 0 : index
    %c0_95 = arith.constant 0 : index
    %c0_96 = arith.constant 0 : index
    %210 = vector.load %arg10[%c0_94, %c0_95, %c0_96] : memref<1x512x128xf32, #tpu.memory_space<vmem>>, vector<1x512x128xf32>
    %211 = vector.shape_cast %210 : vector<1x512x128xf32> to vector<512x128xf32>
    %212 = vector.shape_cast %209 : vector<512x128xf32> to vector<1x512x128xf32>
    tpu.vector_store %arg10[%c0_94, %c0_95, %c0_96], %212 {strides = array<i32>} : memref<1x512x128xf32, #tpu.memory_space<vmem>>, vector<1x512x128xf32>,
    return
  }
  func.func @transform_0(%arg0: i32) -> (i32, i32, i32) {
    %c0_i32 = arith.constant 0 : i32
    %c0_i32_0 = arith.constant 0 : i32
    %c0_i32_1 = arith.constant 0 : i32
    return %arg0, %c0_i32, %c0_i32_0 : i32, i32, i32
  }
  func.func @transform_1(%arg0: i32) -> (i32, i32) {
    %c0_i32 = arith.constant 0 : i32
    %c0_i32_0 = arith.constant 0 : i32
    %c0_i32_1 = arith.constant 0 : i32
    return %c0_i32, %c0_i32_0 : i32, i32
  }
  func.func @transform_2(%arg0: i32) -> (i32, i32) {
    %c0_i32 = arith.constant 0 : i32
    %c0_i32_0 = arith.constant 0 : i32
    %c0_i32_1 = arith.constant 0 : i32
    return %c0_i32, %c0_i32_0 : i32, i32
  }
  func.func @transform_3(%arg0: i32) -> (i32, i32, i32) {
    %c0_i32 = arith.constant 0 : i32
    %c0_i32_0 = arith.constant 0 : i32
    %c0_i32_1 = arith.constant 0 : i32
    %c0_i32_2 = arith.constant 0 : i32
    return %c0_i32, %c0_i32_0, %c0_i32_1 : i32, i32, i32
  }
  func.func @transform_4(%arg0: i32) -> (i32, i32) {
    %c0_i32 = arith.constant 0 : i32
    %c0_i32_0 = arith.constant 0 : i32
    %c0_i32_1 = arith.constant 0 : i32
    return %c0_i32, %c0_i32_0 : i32, i32
  }
  func.func @transform_5(%arg0: i32) -> (i32, i32) {
    %c0_i32 = arith.constant 0 : i32
    %c0_i32_0 = arith.constant 0 : i32
    %c0_i32_1 = arith.constant 0 : i32
    return %c0_i32, %c0_i32_0 : i32, i32
  }
  func.func @transform_6(%arg0: i32) -> (i32, i32) {
    %c0_i32 = arith.constant 0 : i32
    %c0_i32_0 = arith.constant 0 : i32
    %c0_i32_1 = arith.constant 0 : i32
    return %c0_i32, %c0_i32_0 : i32, i32
  }
  func.func @transform_7(%arg0: i32) -> (i32, i32) {
    %c0_i32 = arith.constant 0 : i32
    %c0_i32_0 = arith.constant 0 : i32
    %c0_i32_1 = arith.constant 0 : i32
    return %c0_i32, %c0_i32_0 : i32, i32
  }
  func.func @transform_8(%arg0: i32) -> (i32, i32, i32) {
    %c0_i32 = arith.constant 0 : i32
    %c0_i32_0 = arith.constant 0 : i32
    %c0_i32_1 = arith.constant 0 : i32
    %c0_i32_2 = arith.constant 0 : i32
    return %c0_i32, %c0_i32_0, %c0_i32_1 : i32, i32, i32
  }
  func.func @transform_9(%arg0: i32) -> (i32, i32, i32) {
    %c0_i32 = arith.constant 0 : i32
    %c0_i32_0 = arith.constant 0 : i32
    %c0_i32_1 = arith.constant 0 : i32
    return %arg0, %c0_i32, %c0_i32_0 : i32, i32, i32
  }
}

</mosaic_0001>

<bundles_post_ra>
// kernel: tpu_custom_call.1
= control target key start
LH: loop header
LB: loop body
LE: loop exit
PB: predicated region body
PF: predicated region fallthrough
CT: control target
= control target key end

     0   :  { %s16476_s0 = inlined_call_operand.vmem [shape: f32[1,512,128], index: 0, kind: input, shape index: {}]   ;;  %s16477_s1 = inlined_call_operand.vmem [shape: f32[6,128], index: 1, kind: input, shape index: {}]   ;;  %s16478_s2 = inlined_call_operand.<no memory space> [shape: f32[1,1], index: 2, kind: input, shape index: {}]   ;;  %s16479_s3 = inlined_call_operand.vmem [shape: f32[3,3,128], index: 3, kind: input, shape index: {}]   ;;  %s16480_s4 = inlined_call_operand.vmem [shape: bf16[128,128], index: 4, kind: input, shape index: {}]   ;;  %s16481_s5 = inlined_call_operand.vmem [shape: f32[1,128], index: 5, kind: input, shape index: {}]   ;;  %s16482_s6 = inlined_call_operand.vmem [shape: f32[1,128], index: 6, kind: input, shape index: {}]   ;;  %s16483_s7 = inlined_call_operand.vmem [shape: bf16[128,128], index: 7, kind: input, shape index: {}]   ;;  %s16484_s8 = inlined_call_operand.vmem [shape: f32[8,512,1], index: 8, kind: input, shape index: {}]   ;;  %s16485_s9 = inlined_call_operand.hbm [shape: f32[1,512,128], index: 9, kind: output, shape index: {}]  }
   0x1   :  { %v14_v0 = vstv %s16478_s2 }
   0x2   :  { %15 = vst [vmem:[#allocation2] sm:$0x1] %v14_v0 }
   0x3   :  { %v514_v1 = vld [vmem:[%s16484_s8 + $0x10] sm:$0xff]  ;;  %v512_v2 = vld [vmem:[%s16484_s8] sm:$0xff]  ;;  %v8101_v3 = vmov 0   ;;  %v515_v4 = vld [vmem:[%s16484_s8 + $0x18] sm:$0xff] }
   0x4   :  { %7838 = vset.pattern.permute.xlu1 %v8101_v3  ;;  %7837 = vset.pattern.permute.xlu0 %v8101_v3  ;;  %v513_v5 = vld [vmem:[%s16484_s8 + $0x8] sm:$0xff]  ;;  %v516_v7 = vld [vmem:[%s16484_s8 + $0x20] sm:$0xff]  ;;  %v519_v8 = vld [vmem:[%s16484_s8 + $0x38] sm:$0xff] }
   0x5   :  { %588 = vperm.xlu1 %7838, %v514_v1   ;;  %578 = vperm.xlu0 %7837, %v512_v2   ;;  %v517_v6 = vld [vmem:[%s16484_s8 + $0x28] sm:$0xff]  ;;  %v518_v9 = vld [vmem:[%s16484_s8 + $0x30] sm:$0xff]  ;;  %v520_v11 = vld [vmem:[%s16484_s8 + $0x40] sm:$0xff] }
   0x6   :  { %v521_v10 = vld [vmem:[%s16484_s8 + $0x48] sm:$0xff]  ;;  %v523_v12 = vld [vmem:[%s16484_s8 + $0x58] sm:$0xff]  ;;  %v522_v13 = vld [vmem:[%s16484_s8 + $0x50] sm:$0xff] }
   0x7   :  { %v525_v14 = vld [vmem:[%s16484_s8 + $0x68] sm:$0xff]  ;;  %v524_v15 = vld [vmem:[%s16484_s8 + $0x60] sm:$0xff]  ;;  %v527_v16 = vld [vmem:[%s16484_s8 + $0x78] sm:$0xff] }
   0x8   :  { %v526_v17 = vld [vmem:[%s16484_s8 + $0x70] sm:$0xff]  ;;  %v529_v18 = vld [vmem:[%s16484_s8 + $0x88] sm:$0xff]  ;;  %v528_v19 = vld [vmem:[%s16484_s8 + $0x80] sm:$0xff] }
   0x9   :  { %593 = vperm.xlu1 %7838, %v515_v4   ;;  %583 = vperm.xlu0 %7837, %v513_v5   ;;  %v531_v20 = vld [vmem:[%s16484_s8 + $0x98] sm:$0xff]  ;;  %v530_v21 = vld [vmem:[%s16484_s8 + $0x90] sm:$0xff]  ;;  %v533_v22 = vld [vmem:[%s16484_s8 + $0xa8] sm:$0xff] }
   0xa   :  { %v532_v23 = vld [vmem:[%s16484_s8 + $0xa0] sm:$0xff]  ;;  %v535_v24 = vld [vmem:[%s16484_s8 + $0xb8] sm:$0xff]  ;;  %v534_v25 = vld [vmem:[%s16484_s8 + $0xb0] sm:$0xff] }
   0xb   :  { %v537_v26 = vld [vmem:[%s16484_s8 + $0xc8] sm:$0xff]  ;;  %v536_v27 = vld [vmem:[%s16484_s8 + $0xc0] sm:$0xff]  ;;  %v539_v28 = vld [vmem:[%s16484_s8 + $0xd8] sm:$0xff] }
   0xc   :  { %v538_v29 = vld [vmem:[%s16484_s8 + $0xd0] sm:$0xff]  ;;  %v541_v30 = vld [vmem:[%s16484_s8 + $0xe8] sm:$0xff]  ;;  %v540_v31 = vld [vmem:[%s16484_s8 + $0xe0] sm:$0xff] }
   0xd   :  { %603 = vperm.xlu1 %7838, %v517_v6   ;;  %598 = vperm.xlu0 %7837, %v516_v7  }
  0x11   :  { %613 = vperm.xlu1 %7838, %v519_v8   ;;  %608 = vperm.xlu0 %7837, %v518_v9  }
  0x15   :  { %623 = vperm.xlu1 %7838, %v521_v10   ;;  %618 = vperm.xlu0 %7837, %v520_v11  }
  0x19   :  { %633 = vperm.xlu1 %7838, %v523_v12   ;;  %628 = vperm.xlu0 %7837, %v522_v13  }
  0x1d   :  { %643 = vperm.xlu1 %7838, %v525_v14   ;;  %638 = vperm.xlu0 %7837, %v524_v15  }
  0x21   :  { %653 = vperm.xlu1 %7838, %v527_v16   ;;  %648 = vperm.xlu0 %7837, %v526_v17  }
  0x25   :  { %663 = vperm.xlu1 %7838, %v529_v18   ;;  %658 = vperm.xlu0 %7837, %v528_v19  }
  0x29   :  { %673 = vperm.xlu1 %7838, %v531_v20   ;;  %668 = vperm.xlu0 %7837, %v530_v21  }
  0x2d   :  { %683 = vperm.xlu1 %7838, %v533_v22   ;;  %678 = vperm.xlu0 %7837, %v532_v23  }
  0x31   :  { %693 = vperm.xlu1 %7838, %v535_v24   ;;  %688 = vperm.xlu0 %7837, %v534_v25  }
  0x35   :  { %703 = vperm.xlu1 %7838, %v537_v26   ;;  %698 = vperm.xlu0 %7837, %v536_v27  }
  0x39   :  { %713 = vperm.xlu1 %7838, %v539_v28   ;;  %708 = vperm.xlu0 %7837, %v538_v29  }
  0x3a   :  { %16 = vsyncpa [#allocation4], 0  ;;  %v543_v32 = vld [vmem:[%s16484_s8 + $0xf8] sm:$0xff]  ;;  %v542_v33 = vld [vmem:[%s16484_s8 + $0xf0] sm:$0xff]  ;;  %vm6365_vm2 = vcmask 1040384   ;;  %s8102_s18 = smov [#allocation3]  }
  0x3b   :  { %v545_v34 = vld [vmem:[%s16484_s8 + $0x108] sm:$0xff]  ;;  %v544_v35 = vld [vmem:[%s16484_s8 + $0x100] sm:$0xff]  ;;  %v547_v36 = vld [vmem:[%s16484_s8 + $0x118] sm:$0xff] }
  0x3c   :  { %v546_v37 = vld [vmem:[%s16484_s8 + $0x110] sm:$0xff]  ;;  %v549_v38 = vld [vmem:[%s16484_s8 + $0x128] sm:$0xff]  ;;  %v548_v39 = vld [vmem:[%s16484_s8 + $0x120] sm:$0xff] }
  0x3d   :  { %723 = vperm.xlu1 %7838, %v541_v30   ;;  %718 = vperm.xlu0 %7837, %v540_v31   ;;  %v551_v40 = vld [vmem:[%s16484_s8 + $0x138] sm:$0xff]  ;;  %v550_v41 = vld [vmem:[%s16484_s8 + $0x130] sm:$0xff]  ;;  %v553_v42 = vld [vmem:[%s16484_s8 + $0x148] sm:$0xff] }
  0x3e   :  { %v552_v43 = vld [vmem:[%s16484_s8 + $0x140] sm:$0xff]  ;;  %v555_v44 = vld [vmem:[%s16484_s8 + $0x158] sm:$0xff]  ;;  %v554_v45 = vld [vmem:[%s16484_s8 + $0x150] sm:$0xff] }
  0x3f   :  { %v557_v46 = vld [vmem:[%s16484_s8 + $0x168] sm:$0xff]  ;;  %v556_v47 = vld [vmem:[%s16484_s8 + $0x160] sm:$0xff]  ;;  %v559_v48 = vld [vmem:[%s16484_s8 + $0x178] sm:$0xff] }
  0x40   :  { %v558_v49 = vld [vmem:[%s16484_s8 + $0x170] sm:$0xff]  ;;  %v561_v50 = vld [vmem:[%s16484_s8 + $0x188] sm:$0xff]  ;;  %v560_v51 = vld [vmem:[%s16484_s8 + $0x180] sm:$0xff] }
  0x41   :  { %733 = vperm.xlu1 %7838, %v543_v32   ;;  %728 = vperm.xlu0 %7837, %v542_v33   ;;  %v563_v52 = vld [vmem:[%s16484_s8 + $0x198] sm:$0xff]  ;;  %v562_v53 = vld [vmem:[%s16484_s8 + $0x190] sm:$0xff]  ;;  %v565_v54 = vld [vmem:[%s16484_s8 + $0x1a8] sm:$0xff] }
  0x42   :  { %v564_v55 = vld [vmem:[%s16484_s8 + $0x1a0] sm:$0xff]  ;;  %v567_v56 = vld [vmem:[%s16484_s8 + $0x1b8] sm:$0xff]  ;;  %v566_v57 = vld [vmem:[%s16484_s8 + $0x1b0] sm:$0xff] }
  0x43   :  { %v569_v58 = vld [vmem:[%s16484_s8 + $0x1c8] sm:$0xff]  ;;  %v568_v59 = vld [vmem:[%s16484_s8 + $0x1c0] sm:$0xff]  ;;  %v571_v60 = vld [vmem:[%s16484_s8 + $0x1d8] sm:$0xff] }
  0x44   :  { %v570_v61 = vld [vmem:[%s16484_s8 + $0x1d0] sm:$0xff]  ;;  %v573_v62 = vld [vmem:[%s16484_s8 + $0x1e8] sm:$0xff]  ;;  %v572_v63 = vld [vmem:[%s16484_s8 + $0x1e0] sm:$0xff] }
  0x45   :  { %743 = vperm.xlu1 %7838, %v545_v34   ;;  %738 = vperm.xlu0 %7837, %v544_v35   ;;  %v575_v0 = vld [vmem:[%s16484_s8 + $0x1f8] sm:$0xff]  ;;  %v574_v1 = vld [vmem:[%s16484_s8 + $0x1f0] sm:$0xff]  ;;  %v7090_v2 = vld [vmem:[%s16484_s8 + $0x208] sm:$0xff] }
  0x46   :  { %v7089_v3 = vld [vmem:[%s16484_s8 + $0x200] sm:$0xff]  ;;  %v7092_v6 = vld [vmem:[%s16484_s8 + $0x218] sm:$0xff]  ;;  %v7091_v7 = vld [vmem:[%s16484_s8 + $0x210] sm:$0xff] }
  0x47   :  { %v7094_v10 = vld [vmem:[%s16484_s8 + $0x228] sm:$0xff]  ;;  %v7093_v11 = vld [vmem:[%s16484_s8 + $0x220] sm:$0xff]  ;;  %v7096_v14 = vld [vmem:[%s16484_s8 + $0x238] sm:$0xff] }
  0x48   :  { %v7095_v15 = vld [vmem:[%s16484_s8 + $0x230] sm:$0xff]  ;;  %v7098_v18 = vld [vmem:[%s16484_s8 + $0x248] sm:$0xff]  ;;  %v7097_v19 = vld [vmem:[%s16484_s8 + $0x240] sm:$0xff] }
  0x49   :  { %753 = vperm.xlu1 %7838, %v547_v36   ;;  %748 = vperm.xlu0 %7837, %v546_v37   ;;  %v7100_v22 = vld [vmem:[%s16484_s8 + $0x258] sm:$0xff]  ;;  %v7099_v23 = vld [vmem:[%s16484_s8 + $0x250] sm:$0xff]  ;;  %v7102_v26 = vld [vmem:[%s16484_s8 + $0x268] sm:$0xff] }
  0x4a   :  { %v7101_v27 = vld [vmem:[%s16484_s8 + $0x260] sm:$0xff]  ;;  %v7104_v30 = vld [vmem:[%s16484_s8 + $0x278] sm:$0xff]  ;;  %v7103_v31 = vld [vmem:[%s16484_s8 + $0x270] sm:$0xff] }
  0x4b   :  { %v7106_v34 = vld [vmem:[%s16484_s8 + $0x288] sm:$0xff]  ;;  %v7105_v35 = vld [vmem:[%s16484_s8 + $0x280] sm:$0xff] }
  0x4d   :  { %763 = vperm.xlu1 %7838, %v549_v38   ;;  %758 = vperm.xlu0 %7837, %v548_v39   ;;  %v7108_v38 = vld [vmem:[%s16484_s8 + $0x298] sm:$0xff]  ;;  %v7107_v39 = vld [vmem:[%s16484_s8 + $0x290] sm:$0xff] }
  0x51   :  { %773 = vperm.xlu1 %7838, %v551_v40   ;;  %768 = vperm.xlu0 %7837, %v550_v41  }
  0x55   :  { %783 = vperm.xlu1 %7838, %v553_v42   ;;  %778 = vperm.xlu0 %7837, %v552_v43   ;;  %v7110_v42 = vld [vmem:[%s16484_s8 + $0x2a8] sm:$0xff]  ;;  %v7109_v43 = vld [vmem:[%s16484_s8 + $0x2a0] sm:$0xff] }
  0x59   :  { %793 = vperm.xlu1 %7838, %v555_v44   ;;  %788 = vperm.xlu0 %7837, %v554_v45  }
  0x5d   :  { %803 = vperm.xlu1 %7838, %v557_v46   ;;  %798 = vperm.xlu0 %7837, %v556_v47   ;;  %v7112_v46 = vld [vmem:[%s16484_s8 + $0x2b8] sm:$0xff]  ;;  %v7111_v47 = vld [vmem:[%s16484_s8 + $0x2b0] sm:$0xff] }
  0x61   :  { %813 = vperm.xlu1 %7838, %v559_v48   ;;  %808 = vperm.xlu0 %7837, %v558_v49  }
  0x65   :  { %823 = vperm.xlu1 %7838, %v561_v50   ;;  %818 = vperm.xlu0 %7837, %v560_v51   ;;  %v7114_v50 = vld [vmem:[%s16484_s8 + $0x2c8] sm:$0xff]  ;;  %v7113_v51 = vld [vmem:[%s16484_s8 + $0x2c0] sm:$0xff] }
  0x69   :  { %833 = vperm.xlu1 %7838, %v563_v52   ;;  %828 = vperm.xlu0 %7837, %v562_v53  }
  0x6d   :  { %843 = vperm.xlu1 %7838, %v565_v54   ;;  %838 = vperm.xlu0 %7837, %v564_v55   ;;  %v7116_v54 = vld [vmem:[%s16484_s8 + $0x2d8] sm:$0xff]  ;;  %v7115_v55 = vld [vmem:[%s16484_s8 + $0x2d0] sm:$0xff] }
  0x71   :  { %853 = vperm.xlu1 %7838, %v567_v56   ;;  %848 = vperm.xlu0 %7837, %v566_v57  }
  0x75   :  { %863 = vperm.xlu1 %7838, %v569_v58   ;;  %858 = vperm.xlu0 %7837, %v568_v59   ;;  %v7118_v58 = vld [vmem:[%s16484_s8 + $0x2e8] sm:$0xff]  ;;  %v7117_v59 = vld [vmem:[%s16484_s8 + $0x2e0] sm:$0xff] }
  0x79   :  { %873 = vperm.xlu1 %7838, %v571_v60   ;;  %868 = vperm.xlu0 %7837, %v570_v61  }
  0x7d   :  { %883 = vperm.xlu1 %7838, %v573_v62   ;;  %878 = vperm.xlu0 %7837, %v572_v63   ;;  %v7120_v62 = vld [vmem:[%s16484_s8 + $0x2f8] sm:$0xff]  ;;  %v7119_v63 = vld [vmem:[%s16484_s8 + $0x2f0] sm:$0xff] }
  0x81   :  { %893 = vperm.xlu1 %7838, %v575_v0   ;;  %888 = vperm.xlu0 %7837, %v574_v1  }
  0x84   :  { %v8356_v4 = vpop.permute.xlu1 %588  ;;  %v8358_v5 = vpop.permute.xlu0 %578 }
  0x85   :  { %1165 = vperm.xlu1 %7838, %v7090_v2   ;;  %1160 = vperm.xlu0 %7837, %v7089_v3   ;;  %v7122_v2 = vld [vmem:[%s16484_s8 + $0x308] sm:$0xff]  ;;  %v7121_v3 = vld [vmem:[%s16484_s8 + $0x300] sm:$0xff] }
  0x88   :  { %v8366_v8 = vpop.permute.xlu1 %593  ;;  %v8368_v9 = vpop.permute.xlu0 %583 }
  0x89   :  { %1175 = vperm.xlu1 %7838, %v7092_v6   ;;  %1170 = vperm.xlu0 %7837, %v7091_v7  }
  0x8c   :  { %v8376_v12 = vpop.permute.xlu1 %603  ;;  %v8378_v13 = vpop.permute.xlu0 %598 }
  0x8d   :  { %1185 = vperm.xlu1 %7838, %v7094_v10   ;;  %1180 = vperm.xlu0 %7837, %v7093_v11   ;;  %v7124_v10 = vld [vmem:[%s16484_s8 + $0x318] sm:$0xff]  ;;  %v7123_v11 = vld [vmem:[%s16484_s8 + $0x310] sm:$0xff] }
  0x90   :  { %v8386_v16 = vpop.permute.xlu1 %613  ;;  %v8388_v17 = vpop.permute.xlu0 %608 }
  0x91   :  { %1195 = vperm.xlu1 %7838, %v7096_v14   ;;  %1190 = vperm.xlu0 %7837, %v7095_v15  }
  0x94   :  { %v8396_v20 = vpop.permute.xlu1 %623  ;;  %v8398_v21 = vpop.permute.xlu0 %618 }
  0x95   :  { %1205 = vperm.xlu1 %7838, %v7098_v18   ;;  %1200 = vperm.xlu0 %7837, %v7097_v19   ;;  %v7126_v18 = vld [vmem:[%s16484_s8 + $0x328] sm:$0xff]  ;;  %v7125_v19 = vld [vmem:[%s16484_s8 + $0x320] sm:$0xff] }
  0x98   :  { %v8406_v24 = vpop.permute.xlu1 %633  ;;  %v8408_v25 = vpop.permute.xlu0 %628 }
  0x99   :  { %16990 = vst [vmem:[#allocation6_spill] sm:$0xff] %v8406_v24  ;;  %16991 = vst [vmem:[#allocation7_spill] sm:$0xff] %v8408_v25  ;;  %1215 = vperm.xlu1 %7838, %v7100_v22   ;;  %1210 = vperm.xlu0 %7837, %v7099_v23   ;;  %v57_v25 = vld [vmem:[%s16476_s0 + $0xa8] sm:$0xff]  ;;  %v56_v24 = vld [vmem:[%s16476_s0 + $0xa0] sm:$0xff] }
  0x9c   :  { %v8416_v28 = vpop.permute.xlu1 %643  ;;  %v8418_v29 = vpop.permute.xlu0 %638 }
  0x9d   :  { %16992 = vst [vmem:[#allocation8_spill] sm:$0xff] %v8416_v28  ;;  %16993 = vst [vmem:[#allocation9_spill] sm:$0xff] %v8418_v29  ;;  %1225 = vperm.xlu1 %7838, %v7102_v26   ;;  %1220 = vperm.xlu0 %7837, %v7101_v27   ;;  %v7128_v26 = vld [vmem:[%s16484_s8 + $0x338] sm:$0xff]  ;;  %v7127_v27 = vld [vmem:[%s16484_s8 + $0x330] sm:$0xff] }
  0xa0   :  { %v8426_v32 = vpop.permute.xlu1 %653  ;;  %v8428_v33 = vpop.permute.xlu0 %648 }
  0xa1   :  { %16994 = vst [vmem:[#allocation10_spill] sm:$0xff] %v8426_v32  ;;  %16995 = vst [vmem:[#allocation11_spill] sm:$0xff] %v8428_v33  ;;  %1235 = vperm.xlu1 %7838, %v7104_v30   ;;  %1230 = vperm.xlu0 %7837, %v7103_v31  }
  0xa4   :  { %v8436_v36 = vpop.permute.xlu1 %663  ;;  %v8438_v37 = vpop.permute.xlu0 %658 }
  0xa5   :  { %16996 = vst [vmem:[#allocation12_spill] sm:$0xff] %v8436_v36  ;;  %16997 = vst [vmem:[#allocation13_spill] sm:$0xff] %v8438_v37  ;;  %1245 = vperm.xlu1 %7838, %v7106_v34   ;;  %1240 = vperm.xlu0 %7837, %v7105_v35   ;;  %v7130_v34 = vld [vmem:[%s16484_s8 + $0x348] sm:$0xff]  ;;  %v7129_v35 = vld [vmem:[%s16484_s8 + $0x340] sm:$0xff] }
  0xa6   :  { %v50_v37 = vld [vmem:[%s16476_s0 + $0x70] sm:$0xff] }
  0xa8   :  { %v8446_v40 = vpop.permute.xlu1 %673  ;;  %v8448_v41 = vpop.permute.xlu0 %668 }
  0xa9   :  { %16998 = vst [vmem:[#allocation14_spill] sm:$0xff] %v8446_v40  ;;  %16999 = vst [vmem:[#allocation15_spill] sm:$0xff] %v8448_v41  ;;  %1255 = vperm.xlu1 %7838, %v7108_v38   ;;  %1250 = vperm.xlu0 %7837, %v7107_v39  }
  0xac   :  { %v8456_v44 = vpop.permute.xlu1 %683  ;;  %v8458_v45 = vpop.permute.xlu0 %678 }
  0xad   :  { %17000 = vst [vmem:[#allocation16_spill] sm:$0xff] %v8456_v44  ;;  %17001 = vst [vmem:[#allocation17_spill] sm:$0xff] %v8458_v45  ;;  %1265 = vperm.xlu1 %7838, %v7110_v42   ;;  %1260 = vperm.xlu0 %7837, %v7109_v43   ;;  %v7132_v42 = vld [vmem:[%s16484_s8 + $0x358] sm:$0xff]  ;;  %v7131_v43 = vld [vmem:[%s16484_s8 + $0x350] sm:$0xff] }
  0xae   :  { %v51_v45 = vld [vmem:[%s16476_s0 + $0x78] sm:$0xff] }
  0xb0   :  { %v8466_v48 = vpop.permute.xlu1 %693  ;;  %v8468_v49 = vpop.permute.xlu0 %688 }
  0xb1   :  { %17002 = vst [vmem:[#allocation18_spill] sm:$0xff] %v8466_v48  ;;  %17003 = vst [vmem:[#allocation19_spill] sm:$0xff] %v8468_v49  ;;  %1275 = vperm.xlu1 %7838, %v7112_v46   ;;  %1270 = vperm.xlu0 %7837, %v7111_v47  }
  0xb4   :  { %v8476_v52 = vpop.permute.xlu1 %703  ;;  %v8478_v53 = vpop.permute.xlu0 %698 }
  0xb5   :  { %17004 = vst [vmem:[#allocation20_spill] sm:$0xff] %v8476_v52  ;;  %17005 = vst [vmem:[#allocation21_spill] sm:$0xff] %v8478_v53  ;;  %1285 = vperm.xlu1 %7838, %v7114_v50   ;;  %1280 = vperm.xlu0 %7837, %v7113_v51   ;;  %v7134_v50 = vld [vmem:[%s16484_s8 + $0x368] sm:$0xff]  ;;  %v7133_v51 = vld [vmem:[%s16484_s8 + $0x360] sm:$0xff] }
  0xb8   :  { %v8486_v56 = vpop.permute.xlu1 %713  ;;  %v8488_v57 = vpop.permute.xlu0 %708 }
  0xb9   :  { %17006 = vst [vmem:[#allocation22_spill] sm:$0xff] %v8486_v56  ;;  %17007 = vst [vmem:[#allocation23_spill] sm:$0xff] %v8488_v57  ;;  %1295 = vperm.xlu1 %7838, %v7116_v54   ;;  %1290 = vperm.xlu0 %7837, %v7115_v55  }
  0xbc   :  { %v8496_v60 = vpop.permute.xlu1 %723  ;;  %v8498_v61 = vpop.permute.xlu0 %718 }
  0xbd   :  { %17008 = vst [vmem:[#allocation24_spill] sm:$0xff] %v8496_v60  ;;  %17009 = vst [vmem:[#allocation25_spill] sm:$0xff] %v8498_v61  ;;  %1305 = vperm.xlu1 %7838, %v7118_v58   ;;  %1300 = vperm.xlu0 %7837, %v7117_v59   ;;  %v7136_v58 = vld [vmem:[%s16484_s8 + $0x378] sm:$0xff]  ;;  %v7135_v59 = vld [vmem:[%s16484_s8 + $0x370] sm:$0xff] }
  0xbe   :  { %v47_v61 = vld [vmem:[%s16476_s0 + $0x58] sm:$0xff] }
  0xc0   :  { %v8506_v0 = vpop.permute.xlu1 %733  ;;  %v8508_v1 = vpop.permute.xlu0 %728 }
  0xc1   :  { %17010 = vst [vmem:[#allocation26_spill] sm:$0xff] %v8506_v0  ;;  %17011 = vst [vmem:[#allocation27_spill] sm:$0xff] %v8508_v1  ;;  %1315 = vperm.xlu1 %7838, %v7120_v62   ;;  %1310 = vperm.xlu0 %7837, %v7119_v63  }
  0xc4   :  { %v8516_v6 = vpop.permute.xlu1 %743  ;;  %v8518_v7 = vpop.permute.xlu0 %738 }
  0xc5   :  { %17012 = vst [vmem:[#allocation28_spill] sm:$0xff] %v8516_v6  ;;  %17013 = vst [vmem:[#allocation29_spill] sm:$0xff] %v8518_v7  ;;  %1325 = vperm.xlu1 %7838, %v7122_v2   ;;  %1320 = vperm.xlu0 %7837, %v7121_v3   ;;  %v7138_v2 = vld [vmem:[%s16484_s8 + $0x388] sm:$0xff]  ;;  %v7137_v3 = vld [vmem:[%s16484_s8 + $0x380] sm:$0xff] }
  0xc8   :  { %v8526_v14 = vpop.permute.xlu1 %753  ;;  %v8528_v15 = vpop.permute.xlu0 %748 }
  0xc9   :  { %17014 = vst [vmem:[#allocation30_spill] sm:$0xff] %v8526_v14  ;;  %17015 = vst [vmem:[#allocation31_spill] sm:$0xff] %v8528_v15  ;;  %1335 = vperm.xlu1 %7838, %v7124_v10   ;;  %1330 = vperm.xlu0 %7837, %v7123_v11  }
  0xcc   :  { %v8536_v22 = vpop.permute.xlu1 %763  ;;  %v8538_v23 = vpop.permute.xlu0 %758 }
  0xcd   :  { %17016 = vst [vmem:[#allocation32_spill] sm:$0xff] %v8536_v22  ;;  %17017 = vst [vmem:[#allocation33_spill] sm:$0xff] %v8538_v23  ;;  %1345 = vperm.xlu1 %7838, %v7126_v18   ;;  %1340 = vperm.xlu0 %7837, %v7125_v19   ;;  %v7140_v18 = vld [vmem:[%s16484_s8 + $0x398] sm:$0xff]  ;;  %v7139_v19 = vld [vmem:[%s16484_s8 + $0x390] sm:$0xff] }
  0xd0   :  { %v8546_v30 = vpop.permute.xlu1 %773  ;;  %v8548_v31 = vpop.permute.xlu0 %768 }
  0xd1   :  { %17018 = vst [vmem:[#allocation34_spill] sm:$0xff] %v8546_v30  ;;  %17019 = vst [vmem:[#allocation35_spill] sm:$0xff] %v8548_v31  ;;  %1355 = vperm.xlu1 %7838, %v7128_v26   ;;  %1350 = vperm.xlu0 %7837, %v7127_v27  }
  0xd4   :  { %v8556_v38 = vpop.permute.xlu1 %783  ;;  %v8558_v39 = vpop.permute.xlu0 %778 }
  0xd5   :  { %17020 = vst [vmem:[#allocation36_spill] sm:$0xff] %v8556_v38  ;;  %17021 = vst [vmem:[#allocation37_spill] sm:$0xff] %v8558_v39  ;;  %1365 = vperm.xlu1 %7838, %v7130_v34   ;;  %1360 = vperm.xlu0 %7837, %v7129_v35   ;;  %v7142_v34 = vld [vmem:[%s16484_s8 + $0x3a8] sm:$0xff]  ;;  %v7141_v35 = vld [vmem:[%s16484_s8 + $0x3a0] sm:$0xff] }
  0xd8   :  { %v8566_v46 = vpop.permute.xlu1 %793  ;;  %v8568_v47 = vpop.permute.xlu0 %788 }
  0xd9   :  { %17022 = vst [vmem:[#allocation38_spill] sm:$0xff] %v8566_v46  ;;  %17023 = vst [vmem:[#allocation39_spill] sm:$0xff] %v8568_v47  ;;  %1375 = vperm.xlu1 %7838, %v7132_v42   ;;  %1370 = vperm.xlu0 %7837, %v7131_v43  }
  0xdc   :  { %v8576_v54 = vpop.permute.xlu1 %803  ;;  %v8578_v55 = vpop.permute.xlu0 %798 }
  0xdd   :  { %17024 = vst [vmem:[#allocation40_spill] sm:$0xff] %v8576_v54  ;;  %17025 = vst [vmem:[#allocation41_spill] sm:$0xff] %v8578_v55  ;;  %1385 = vperm.xlu1 %7838, %v7134_v50   ;;  %1380 = vperm.xlu0 %7837, %v7133_v51   ;;  %v7144_v50 = vld [vmem:[%s16484_s8 + $0x3b8] sm:$0xff]  ;;  %v7143_v51 = vld [vmem:[%s16484_s8 + $0x3b0] sm:$0xff] }
  0xe0   :  { %v8586_v62 = vpop.permute.xlu1 %813  ;;  %v8588_v63 = vpop.permute.xlu0 %808 }
  0xe1   :  { %17026 = vst [vmem:[#allocation42_spill] sm:$0xff] %v8586_v62  ;;  %17027 = vst [vmem:[#allocation43_spill] sm:$0xff] %v8588_v63  ;;  %1395 = vperm.xlu1 %7838, %v7136_v58   ;;  %1390 = vperm.xlu0 %7837, %v7135_v59  }
  0xe4   :  { %v8596_v10 = vpop.permute.xlu1 %823  ;;  %v8598_v11 = vpop.permute.xlu0 %818 }
  0xe5   :  { %17028 = vst [vmem:[#allocation44_spill] sm:$0xff] %v8596_v10  ;;  %17029 = vst [vmem:[#allocation45_spill] sm:$0xff] %v8598_v11  ;;  %1405 = vperm.xlu1 %7838, %v7138_v2   ;;  %1400 = vperm.xlu0 %7837, %v7137_v3   ;;  %v7146_v2 = vld [vmem:[%s16484_s8 + $0x3c8] sm:$0xff]  ;;  %v7145_v3 = vld [vmem:[%s16484_s8 + $0x3c0] sm:$0xff] }
  0xe6   :  { %v7261_v11 = vld [vmem:[%s16484_s8 + $0x748] sm:$0xff]  ;;  %v7260_v10 = vld [vmem:[%s16484_s8 + $0x740] sm:$0xff] }
  0xe8   :  { %v8606_v26 = vpop.permute.xlu1 %833  ;;  %v8608_v27 = vpop.permute.xlu0 %828 }
  0xe9   :  { %17030 = vst [vmem:[#allocation46_spill] sm:$0xff] %v8606_v26  ;;  %17031 = vst [vmem:[#allocation47_spill] sm:$0xff] %v8608_v27  ;;  %1415 = vperm.xlu1 %7838, %v7140_v18   ;;  %1410 = vperm.xlu0 %7837, %v7139_v19   ;;  %v39_v26 = vld [vmem:[%s16476_s0 + $0x18] sm:$0xff] }
  0xec   :  { %v8616_v42 = vpop.permute.xlu1 %843  ;;  %v8618_v43 = vpop.permute.xlu0 %838 }
  0xed   :  { %17032 = vst [vmem:[#allocation48_spill] sm:$0xff] %v8616_v42  ;;  %17033 = vst [vmem:[#allocation49_spill] sm:$0xff] %v8618_v43  ;;  %1425 = vperm.xlu1 %7838, %v7142_v34   ;;  %1420 = vperm.xlu0 %7837, %v7141_v35   ;;  %v7148_v34 = vld [vmem:[%s16484_s8 + $0x3d8] sm:$0xff]  ;;  %v7147_v35 = vld [vmem:[%s16484_s8 + $0x3d0] sm:$0xff] }
  0xf0   :  { %v8626_v58 = vpop.permute.xlu1 %853  ;;  %v8628_v59 = vpop.permute.xlu0 %848 }
  0xf1   :  { %17034 = vst [vmem:[#allocation50_spill] sm:$0xff] %v8626_v58  ;;  %17035 = vst [vmem:[#allocation51_spill] sm:$0xff] %v8628_v59  ;;  %1435 = vperm.xlu1 %7838, %v7144_v50   ;;  %1430 = vperm.xlu0 %7837, %v7143_v51   ;;  %v7258_v59 = vld [vmem:[%s16484_s8 + $0x730] sm:$0xff] }
  0xf4   :  { %v8636_v18 = vpop.permute.xlu1 %863  ;;  %v8638_v19 = vpop.permute.xlu0 %858 }
  0xf5   :  { %17036 = vst [vmem:[#allocation52_spill] sm:$0xff] %v8636_v18  ;;  %17037 = vst [vmem:[#allocation53_spill] sm:$0xff] %v8638_v19  ;;  %1445 = vperm.xlu1 %7838, %v7146_v2   ;;  %1440 = vperm.xlu0 %7837, %v7145_v3   ;;  %v7150_v19 = vld [vmem:[%s16484_s8 + $0x3e8] sm:$0xff]  ;;  %v7149_v2 = vld [vmem:[%s16484_s8 + $0x3e0] sm:$0xff] }
  0xf8   :  { %v8646_v50 = vpop.permute.xlu1 %873  ;;  %v8648_v51 = vpop.permute.xlu0 %868 }
  0xf9   :  { %17038 = vst [vmem:[#allocation54_spill] sm:$0xff] %v8646_v50  ;;  %17039 = vst [vmem:[#allocation55_spill] sm:$0xff] %v8648_v51  ;;  %1455 = vperm.xlu1 %7838, %v7148_v34   ;;  %1450 = vperm.xlu0 %7837, %v7147_v35   ;;  %v7152_v51 = vld [vmem:[%s16484_s8 + $0x3f8] sm:$0xff]  ;;  %v7151_v34 = vld [vmem:[%s16484_s8 + $0x3f0] sm:$0xff] }
  0xfc   :  { %v8656_v3 = vpop.permute.xlu1 %883  ;;  %v8658_v18 = vpop.permute.xlu0 %878 }
  0xfd   :  { %17040 = vst [vmem:[#allocation56_spill] sm:$0xff] %v8656_v3  ;;  %17041 = vst [vmem:[#allocation57_spill] sm:$0xff] %v8658_v18  ;;  %1465 = vperm.xlu1 %7838, %v7150_v19   ;;  %1460 = vperm.xlu0 %7837, %v7149_v2   ;;  %v7155_v18 = vld [vmem:[%s16484_s8 + $0x408] sm:$0xff]  ;;  %v7154_v19 = vld [vmem:[%s16484_s8 + $0x400] sm:$0xff] }
 0x100   :  { %v8666_v35 = vpop.permute.xlu1 %893  ;;  %v8668_v50 = vpop.permute.xlu0 %888 }
 0x101   :  { %17042 = vst [vmem:[#allocation58_spill] sm:$0xff] %v8666_v35  ;;  %17043 = vst [vmem:[#allocation59_spill] sm:$0xff] %v8668_v50  ;;  %1475 = vperm.xlu1 %7838, %v7152_v51   ;;  %1470 = vperm.xlu0 %7837, %v7151_v34   ;;  %v7157_v50 = vld [vmem:[%s16484_s8 + $0x418] sm:$0xff]  ;;  %v7156_v51 = vld [vmem:[%s16484_s8 + $0x410] sm:$0xff] }
 0x104   :  { %v8676_v2 = vpop.permute.xlu1 %1165  ;;  %v8678_v3 = vpop.permute.xlu0 %1160 }
 0x105   :  { %17044 = vst [vmem:[#allocation60_spill] sm:$0xff] %v8676_v2  ;;  %17045 = vst [vmem:[#allocation61_spill] sm:$0xff] %v8678_v3  ;;  %1876 = vperm.xlu1 %7838, %v7155_v18   ;;  %1871 = vperm.xlu0 %7837, %v7154_v19   ;;  %v7159_v3 = vld [vmem:[%s16484_s8 + $0x428] sm:$0xff]  ;;  %v7158_v18 = vld [vmem:[%s16484_s8 + $0x420] sm:$0xff] }
 0x108   :  { %v8686_v34 = vpop.permute.xlu1 %1175  ;;  %v8688_v35 = vpop.permute.xlu0 %1170 }
 0x109   :  { %17046 = vst [vmem:[#allocation62_spill] sm:$0xff] %v8686_v34  ;;  %17047 = vst [vmem:[#allocation63_spill] sm:$0xff] %v8688_v35  ;;  %1886 = vperm.xlu1 %7838, %v7157_v50   ;;  %1881 = vperm.xlu0 %7837, %v7156_v51   ;;  %v7161_v35 = vld [vmem:[%s16484_s8 + $0x438] sm:$0xff]  ;;  %v7160_v50 = vld [vmem:[%s16484_s8 + $0x430] sm:$0xff] }
 0x10c   :  { %v8696_v19 = vpop.permute.xlu1 %1185  ;;  %v8698_v2 = vpop.permute.xlu0 %1180 }
 0x10d   :  { %17048 = vst [vmem:[#allocation64_spill] sm:$0xff] %v8696_v19  ;;  %17049 = vst [vmem:[#allocation65_spill] sm:$0xff] %v8698_v2  ;;  %1896 = vperm.xlu1 %7838, %v7159_v3   ;;  %1891 = vperm.xlu0 %7837, %v7158_v18   ;;  %v7163_v2 = vld [vmem:[%s16484_s8 + $0x448] sm:$0xff]  ;;  %v7162_v3 = vld [vmem:[%s16484_s8 + $0x440] sm:$0xff] }
 0x110   :  { %v8706_v51 = vpop.permute.xlu1 %1195  ;;  %v8708_v34 = vpop.permute.xlu0 %1190 }
 0x111   :  { %17050 = vst [vmem:[#allocation66_spill] sm:$0xff] %v8706_v51  ;;  %17051 = vst [vmem:[#allocation67_spill] sm:$0xff] %v8708_v34  ;;  %1906 = vperm.xlu1 %7838, %v7161_v35   ;;  %1901 = vperm.xlu0 %7837, %v7160_v50   ;;  %v7165_v34 = vld [vmem:[%s16484_s8 + $0x458] sm:$0xff]  ;;  %v7164_v35 = vld [vmem:[%s16484_s8 + $0x450] sm:$0xff] }
 0x114   :  { %v8716_v18 = vpop.permute.xlu1 %1205  ;;  %v8718_v19 = vpop.permute.xlu0 %1200 }
 0x115   :  { %17052 = vst [vmem:[#allocation68_spill] sm:$0xff] %v8716_v18  ;;  %17053 = vst [vmem:[#allocation69_spill] sm:$0xff] %v8718_v19  ;;  %1916 = vperm.xlu1 %7838, %v7163_v2   ;;  %1911 = vperm.xlu0 %7837, %v7162_v3   ;;  %v7167_v19 = vld [vmem:[%s16484_s8 + $0x468] sm:$0xff]  ;;  %v7166_v2 = vld [vmem:[%s16484_s8 + $0x460] sm:$0xff] }
 0x118   :  { %v8726_v50 = vpop.permute.xlu1 %1215  ;;  %v8728_v51 = vpop.permute.xlu0 %1210 }
 0x119   :  { %17054 = vst [vmem:[#allocation70_spill] sm:$0xff] %v8726_v50  ;;  %17055 = vst [vmem:[#allocation71_spill] sm:$0xff] %v8728_v51  ;;  %1926 = vperm.xlu1 %7838, %v7165_v34   ;;  %1921 = vperm.xlu0 %7837, %v7164_v35   ;;  %v7169_v51 = vld [vmem:[%s16484_s8 + $0x478] sm:$0xff]  ;;  %v7168_v34 = vld [vmem:[%s16484_s8 + $0x470] sm:$0xff] }
 0x11c   :  { %v8736_v3 = vpop.permute.xlu1 %1225  ;;  %v8738_v18 = vpop.permute.xlu0 %1220 }
 0x11d   :  { %17056 = vst [vmem:[#allocation72_spill] sm:$0xff] %v8736_v3  ;;  %17057 = vst [vmem:[#allocation73_spill] sm:$0xff] %v8738_v18  ;;  %1936 = vperm.xlu1 %7838, %v7167_v19   ;;  %1931 = vperm.xlu0 %7837, %v7166_v2   ;;  %v7171_v18 = vld [vmem:[%s16484_s8 + $0x488] sm:$0xff]  ;;  %v7170_v19 = vld [vmem:[%s16484_s8 + $0x480] sm:$0xff] }
 0x120   :  { %v8746_v35 = vpop.permute.xlu1 %1235  ;;  %v8748_v50 = vpop.permute.xlu0 %1230 }
 0x121   :  { %17058 = vst [vmem:[#allocation74_spill] sm:$0xff] %v8746_v35  ;;  %17059 = vst [vmem:[#allocation75_spill] sm:$0xff] %v8748_v50  ;;  %1946 = vperm.xlu1 %7838, %v7169_v51   ;;  %1941 = vperm.xlu0 %7837, %v7168_v34   ;;  %v7173_v50 = vld [vmem:[%s16484_s8 + $0x498] sm:$0xff]  ;;  %v7172_v51 = vld [vmem:[%s16484_s8 + $0x490] sm:$0xff] }
 0x124   :  { %v8756_v2 = vpop.permute.xlu1 %1245  ;;  %v8758_v3 = vpop.permute.xlu0 %1240 }
 0x125   :  { %17060 = vst [vmem:[#allocation76_spill] sm:$0xff] %v8756_v2  ;;  %17061 = vst [vmem:[#allocation77_spill] sm:$0xff] %v8758_v3  ;;  %1956 = vperm.xlu1 %7838, %v7171_v18   ;;  %1951 = vperm.xlu0 %7837, %v7170_v19   ;;  %v7175_v3 = vld [vmem:[%s16484_s8 + $0x4a8] sm:$0xff]  ;;  %v7174_v18 = vld [vmem:[%s16484_s8 + $0x4a0] sm:$0xff] }
 0x128   :  { %v8766_v34 = vpop.permute.xlu1 %1255  ;;  %v8768_v35 = vpop.permute.xlu0 %1250 }
 0x129   :  { %17062 = vst [vmem:[#allocation78_spill] sm:$0xff] %v8766_v34  ;;  %17063 = vst [vmem:[#allocation79_spill] sm:$0xff] %v8768_v35  ;;  %1966 = vperm.xlu1 %7838, %v7173_v50   ;;  %1961 = vperm.xlu0 %7837, %v7172_v51   ;;  %v7177_v35 = vld [vmem:[%s16484_s8 + $0x4b8] sm:$0xff]  ;;  %v7176_v50 = vld [vmem:[%s16484_s8 + $0x4b0] sm:$0xff] }
 0x12c   :  { %v8776_v19 = vpop.permute.xlu1 %1265  ;;  %v8778_v2 = vpop.permute.xlu0 %1260 }
 0x12d   :  { %17064 = vst [vmem:[#allocation80_spill] sm:$0xff] %v8776_v19  ;;  %17065 = vst [vmem:[#allocation81_spill] sm:$0xff] %v8778_v2  ;;  %1976 = vperm.xlu1 %7838, %v7175_v3   ;;  %1971 = vperm.xlu0 %7837, %v7174_v18   ;;  %v7179_v2 = vld [vmem:[%s16484_s8 + $0x4c8] sm:$0xff]  ;;  %v7178_v3 = vld [vmem:[%s16484_s8 + $0x4c0] sm:$0xff] }
 0x130   :  { %v8786_v51 = vpop.permute.xlu1 %1275  ;;  %v8788_v34 = vpop.permute.xlu0 %1270 }
 0x131   :  { %17066 = vst [vmem:[#allocation82_spill] sm:$0xff] %v8786_v51  ;;  %17067 = vst [vmem:[#allocation83_spill] sm:$0xff] %v8788_v34  ;;  %1986 = vperm.xlu1 %7838, %v7177_v35   ;;  %1981 = vperm.xlu0 %7837, %v7176_v50   ;;  %v7181_v34 = vld [vmem:[%s16484_s8 + $0x4d8] sm:$0xff]  ;;  %v7180_v35 = vld [vmem:[%s16484_s8 + $0x4d0] sm:$0xff] }
 0x134   :  { %v8796_v18 = vpop.permute.xlu1 %1285  ;;  %v8798_v19 = vpop.permute.xlu0 %1280 }
 0x135   :  { %17068 = vst [vmem:[#allocation84_spill] sm:$0xff] %v8796_v18  ;;  %17069 = vst [vmem:[#allocation85_spill] sm:$0xff] %v8798_v19  ;;  %1996 = vperm.xlu1 %7838, %v7179_v2   ;;  %1991 = vperm.xlu0 %7837, %v7178_v3   ;;  %v7183_v19 = vld [vmem:[%s16484_s8 + $0x4e8] sm:$0xff]  ;;  %v7182_v2 = vld [vmem:[%s16484_s8 + $0x4e0] sm:$0xff] }
 0x138   :  { %v8806_v50 = vpop.permute.xlu1 %1295  ;;  %v8808_v51 = vpop.permute.xlu0 %1290 }
 0x139   :  { %17070 = vst [vmem:[#allocation86_spill] sm:$0xff] %v8806_v50  ;;  %17071 = vst [vmem:[#allocation87_spill] sm:$0xff] %v8808_v51  ;;  %2006 = vperm.xlu1 %7838, %v7181_v34   ;;  %2001 = vperm.xlu0 %7837, %v7180_v35   ;;  %v7185_v51 = vld [vmem:[%s16484_s8 + $0x4f8] sm:$0xff]  ;;  %v7184_v34 = vld [vmem:[%s16484_s8 + $0x4f0] sm:$0xff] }
 0x13c   :  { %v8816_v3 = vpop.permute.xlu1 %1305  ;;  %v8818_v18 = vpop.permute.xlu0 %1300 }
 0x13d   :  { %17072 = vst [vmem:[#allocation88_spill] sm:$0xff] %v8816_v3  ;;  %17073 = vst [vmem:[#allocation89_spill] sm:$0xff] %v8818_v18  ;;  %2016 = vperm.xlu1 %7838, %v7183_v19   ;;  %2011 = vperm.xlu0 %7837, %v7182_v2   ;;  %v7187_v18 = vld [vmem:[%s16484_s8 + $0x508] sm:$0xff]  ;;  %v7186_v19 = vld [vmem:[%s16484_s8 + $0x500] sm:$0xff] }
 0x140   :  { %v8826_v35 = vpop.permute.xlu1 %1315  ;;  %v8828_v50 = vpop.permute.xlu0 %1310 }
 0x141   :  { %17074 = vst [vmem:[#allocation90_spill] sm:$0xff] %v8826_v35  ;;  %17075 = vst [vmem:[#allocation91_spill] sm:$0xff] %v8828_v50  ;;  %2026 = vperm.xlu1 %7838, %v7185_v51   ;;  %2021 = vperm.xlu0 %7837, %v7184_v34   ;;  %v7189_v50 = vld [vmem:[%s16484_s8 + $0x518] sm:$0xff]  ;;  %v7188_v51 = vld [vmem:[%s16484_s8 + $0x510] sm:$0xff] }
 0x144   :  { %v8836_v2 = vpop.permute.xlu1 %1325  ;;  %v8838_v3 = vpop.permute.xlu0 %1320 }
 0x145   :  { %17076 = vst [vmem:[#allocation92_spill] sm:$0xff] %v8836_v2  ;;  %17077 = vst [vmem:[#allocation93_spill] sm:$0xff] %v8838_v3  ;;  %2036 = vperm.xlu1 %7838, %v7187_v18   ;;  %2031 = vperm.xlu0 %7837, %v7186_v19   ;;  %v7191_v3 = vld [vmem:[%s16484_s8 + $0x528] sm:$0xff]  ;;  %v7190_v18 = vld [vmem:[%s16484_s8 + $0x520] sm:$0xff] }
 0x148   :  { %v8846_v34 = vpop.permute.xlu1 %1335  ;;  %v8848_v35 = vpop.permute.xlu0 %1330 }
 0x149   :  { %17078 = vst [vmem:[#allocation94_spill] sm:$0xff] %v8846_v34  ;;  %17079 = vst [vmem:[#allocation95_spill] sm:$0xff] %v8848_v35  ;;  %2046 = vperm.xlu1 %7838, %v7189_v50   ;;  %2041 = vperm.xlu0 %7837, %v7188_v51   ;;  %v7193_v35 = vld [vmem:[%s16484_s8 + $0x538] sm:$0xff]  ;;  %v7192_v50 = vld [vmem:[%s16484_s8 + $0x530] sm:$0xff] }
 0x14c   :  { %v8856_v19 = vpop.permute.xlu1 %1345  ;;  %v8858_v2 = vpop.permute.xlu0 %1340 }
 0x14d   :  { %17080 = vst [vmem:[#allocation96_spill] sm:$0xff] %v8856_v19  ;;  %17081 = vst [vmem:[#allocation97_spill] sm:$0xff] %v8858_v2  ;;  %2056 = vperm.xlu1 %7838, %v7191_v3   ;;  %2051 = vperm.xlu0 %7837, %v7190_v18   ;;  %v7195_v2 = vld [vmem:[%s16484_s8 + $0x548] sm:$0xff]  ;;  %v7194_v3 = vld [vmem:[%s16484_s8 + $0x540] sm:$0xff] }
 0x150   :  { %v8866_v51 = vpop.permute.xlu1 %1355  ;;  %v8868_v34 = vpop.permute.xlu0 %1350 }
 0x151   :  { %17082 = vst [vmem:[#allocation98_spill] sm:$0xff] %v8866_v51  ;;  %17083 = vst [vmem:[#allocation99_spill] sm:$0xff] %v8868_v34  ;;  %2066 = vperm.xlu1 %7838, %v7193_v35   ;;  %2061 = vperm.xlu0 %7837, %v7192_v50   ;;  %v7197_v34 = vld [vmem:[%s16484_s8 + $0x558] sm:$0xff]  ;;  %v7196_v35 = vld [vmem:[%s16484_s8 + $0x550] sm:$0xff] }
 0x154   :  { %v8876_v18 = vpop.permute.xlu1 %1365  ;;  %v8878_v19 = vpop.permute.xlu0 %1360 }
 0x155   :  { %17084 = vst [vmem:[#allocation100_spill] sm:$0xff] %v8876_v18  ;;  %17085 = vst [vmem:[#allocation101_spill] sm:$0xff] %v8878_v19  ;;  %2076 = vperm.xlu1 %7838, %v7195_v2   ;;  %2071 = vperm.xlu0 %7837, %v7194_v3   ;;  %v7199_v19 = vld [vmem:[%s16484_s8 + $0x568] sm:$0xff]  ;;  %v7198_v2 = vld [vmem:[%s16484_s8 + $0x560] sm:$0xff] }
 0x158   :  { %v8886_v50 = vpop.permute.xlu1 %1375  ;;  %v8888_v51 = vpop.permute.xlu0 %1370 }
 0x159   :  { %17086 = vst [vmem:[#allocation102_spill] sm:$0xff] %v8886_v50  ;;  %17087 = vst [vmem:[#allocation103_spill] sm:$0xff] %v8888_v51  ;;  %2086 = vperm.xlu1 %7838, %v7197_v34   ;;  %2081 = vperm.xlu0 %7837, %v7196_v35   ;;  %v7201_v51 = vld [vmem:[%s16484_s8 + $0x578] sm:$0xff]  ;;  %v7200_v34 = vld [vmem:[%s16484_s8 + $0x570] sm:$0xff] }
 0x15c   :  { %v8896_v3 = vpop.permute.xlu1 %1385  ;;  %v8898_v18 = vpop.permute.xlu0 %1380 }
 0x15d   :  { %17088 = vst [vmem:[#allocation104_spill] sm:$0xff] %v8896_v3  ;;  %17089 = vst [vmem:[#allocation105_spill] sm:$0xff] %v8898_v18  ;;  %2096 = vperm.xlu1 %7838, %v7199_v19   ;;  %2091 = vperm.xlu0 %7837, %v7198_v2   ;;  %v7203_v18 = vld [vmem:[%s16484_s8 + $0x588] sm:$0xff]  ;;  %v7202_v19 = vld [vmem:[%s16484_s8 + $0x580] sm:$0xff] }
 0x160   :  { %v8906_v35 = vpop.permute.xlu1 %1395  ;;  %v8908_v50 = vpop.permute.xlu0 %1390 }
 0x161   :  { %17090 = vst [vmem:[#allocation106_spill] sm:$0xff] %v8906_v35  ;;  %17091 = vst [vmem:[#allocation107_spill] sm:$0xff] %v8908_v50  ;;  %2106 = vperm.xlu1 %7838, %v7201_v51   ;;  %2101 = vperm.xlu0 %7837, %v7200_v34   ;;  %v7205_v50 = vld [vmem:[%s16484_s8 + $0x598] sm:$0xff]  ;;  %v7204_v51 = vld [vmem:[%s16484_s8 + $0x590] sm:$0xff] }
 0x164   :  { %v8916_v2 = vpop.permute.xlu1 %1405  ;;  %v8918_v3 = vpop.permute.xlu0 %1400 }
 0x165   :  { %17092 = vst [vmem:[#allocation108_spill] sm:$0xff] %v8916_v2  ;;  %17093 = vst [vmem:[#allocation109_spill] sm:$0xff] %v8918_v3  ;;  %2116 = vperm.xlu1 %7838, %v7203_v18   ;;  %2111 = vperm.xlu0 %7837, %v7202_v19   ;;  %v7207_v3 = vld [vmem:[%s16484_s8 + $0x5a8] sm:$0xff]  ;;  %v7206_v18 = vld [vmem:[%s16484_s8 + $0x5a0] sm:$0xff] }
 0x168   :  { %v8926_v34 = vpop.permute.xlu1 %1415  ;;  %v8928_v35 = vpop.permute.xlu0 %1410 }
 0x169   :  { %17094 = vst [vmem:[#allocation110_spill] sm:$0xff] %v8926_v34  ;;  %17095 = vst [vmem:[#allocation111_spill] sm:$0xff] %v8928_v35  ;;  %2126 = vperm.xlu1 %7838, %v7205_v50   ;;  %2121 = vperm.xlu0 %7837, %v7204_v51   ;;  %v7209_v35 = vld [vmem:[%s16484_s8 + $0x5b8] sm:$0xff]  ;;  %v7208_v50 = vld [vmem:[%s16484_s8 + $0x5b0] sm:$0xff] }
 0x16c   :  { %v8936_v19 = vpop.permute.xlu1 %1425  ;;  %v8938_v2 = vpop.permute.xlu0 %1420 }
 0x16d   :  { %17096 = vst [vmem:[#allocation112_spill] sm:$0xff] %v8936_v19  ;;  %17097 = vst [vmem:[#allocation113_spill] sm:$0xff] %v8938_v2  ;;  %2136 = vperm.xlu1 %7838, %v7207_v3   ;;  %2131 = vperm.xlu0 %7837, %v7206_v18   ;;  %v7211_v2 = vld [vmem:[%s16484_s8 + $0x5c8] sm:$0xff]  ;;  %v7210_v3 = vld [vmem:[%s16484_s8 + $0x5c0] sm:$0xff] }
 0x170   :  { %v8946_v51 = vpop.permute.xlu1 %1435  ;;  %v8948_v34 = vpop.permute.xlu0 %1430 }
 0x171   :  { %17098 = vst [vmem:[#allocation114_spill] sm:$0xff] %v8946_v51  ;;  %17099 = vst [vmem:[#allocation115_spill] sm:$0xff] %v8948_v34  ;;  %2146 = vperm.xlu1 %7838, %v7209_v35   ;;  %2141 = vperm.xlu0 %7837, %v7208_v50   ;;  %v7213_v34 = vld [vmem:[%s16484_s8 + $0x5d8] sm:$0xff]  ;;  %v7212_v35 = vld [vmem:[%s16484_s8 + $0x5d0] sm:$0xff] }
 0x174   :  { %v8956_v18 = vpop.permute.xlu1 %1445  ;;  %v8958_v19 = vpop.permute.xlu0 %1440 }
 0x175   :  { %17100 = vst [vmem:[#allocation116_spill] sm:$0xff] %v8956_v18  ;;  %17101 = vst [vmem:[#allocation117_spill] sm:$0xff] %v8958_v19  ;;  %2156 = vperm.xlu1 %7838, %v7211_v2   ;;  %2151 = vperm.xlu0 %7837, %v7210_v3   ;;  %v7215_v19 = vld [vmem:[%s16484_s8 + $0x5e8] sm:$0xff]  ;;  %v7214_v2 = vld [vmem:[%s16484_s8 + $0x5e0] sm:$0xff] }
 0x178   :  { %v8966_v50 = vpop.permute.xlu1 %1455  ;;  %v8968_v51 = vpop.permute.xlu0 %1450 }
 0x179   :  { %17102 = vst [vmem:[#allocation118_spill] sm:$0xff] %v8966_v50  ;;  %17103 = vst [vmem:[#allocation119_spill] sm:$0xff] %v8968_v51  ;;  %2166 = vperm.xlu1 %7838, %v7213_v34   ;;  %2161 = vperm.xlu0 %7837, %v7212_v35   ;;  %v7217_v51 = vld [vmem:[%s16484_s8 + $0x5f8] sm:$0xff]  ;;  %v7216_v34 = vld [vmem:[%s16484_s8 + $0x5f0] sm:$0xff] }
 0x17c   :  { %v8976_v3 = vpop.permute.xlu1 %1465  ;;  %v8978_v18 = vpop.permute.xlu0 %1460 }
 0x17d   :  { %17104 = vst [vmem:[#allocation120_spill] sm:$0xff] %v8976_v3  ;;  %17105 = vst [vmem:[#allocation121_spill] sm:$0xff] %v8978_v18  ;;  %2176 = vperm.xlu1 %7838, %v7215_v19   ;;  %2171 = vperm.xlu0 %7837, %v7214_v2   ;;  %v7221_v18 = vld [vmem:[%s16484_s8 + $0x608] sm:$0xff]  ;;  %v7220_v19 = vld [vmem:[%s16484_s8 + $0x600] sm:$0xff] }
 0x180   :  { %v8986_v35 = vpop.permute.xlu1 %1475  ;;  %v8988_v50 = vpop.permute.xlu0 %1470 }
 0x181   :  { %17106 = vst [vmem:[#allocation122_spill] sm:$0xff] %v8986_v35  ;;  %17107 = vst [vmem:[#allocation123_spill] sm:$0xff] %v8988_v50  ;;  %2186 = vperm.xlu1 %7838, %v7217_v51   ;;  %2181 = vperm.xlu0 %7837, %v7216_v34   ;;  %v7223_v50 = vld [vmem:[%s16484_s8 + $0x618] sm:$0xff]  ;;  %v7222_v51 = vld [vmem:[%s16484_s8 + $0x610] sm:$0xff] }
 0x184   :  { %v8996_v2 = vpop.permute.xlu1 %1876  ;;  %v8998_v3 = vpop.permute.xlu0 %1871 }
 0x185   :  { %17108 = vst [vmem:[#allocation124_spill] sm:$0xff] %v8996_v2  ;;  %17109 = vst [vmem:[#allocation125_spill] sm:$0xff] %v8998_v3  ;;  %2458 = vperm.xlu1 %7838, %v7221_v18   ;;  %2453 = vperm.xlu0 %7837, %v7220_v19   ;;  %v7225_v3 = vld [vmem:[%s16484_s8 + $0x628] sm:$0xff]  ;;  %v7224_v18 = vld [vmem:[%s16484_s8 + $0x620] sm:$0xff] }
 0x188   :  { %v9006_v34 = vpop.permute.xlu1 %1886  ;;  %v9008_v35 = vpop.permute.xlu0 %1881 }
 0x189   :  { %17110 = vst [vmem:[#allocation126_spill] sm:$0xff] %v9006_v34  ;;  %17111 = vst [vmem:[#allocation127_spill] sm:$0xff] %v9008_v35  ;;  %2468 = vperm.xlu1 %7838, %v7223_v50   ;;  %2463 = vperm.xlu0 %7837, %v7222_v51   ;;  %v7227_v35 = vld [vmem:[%s16484_s8 + $0x638] sm:$0xff]  ;;  %v7226_v50 = vld [vmem:[%s16484_s8 + $0x630] sm:$0xff] }
 0x18c   :  { %v9016_v19 = vpop.permute.xlu1 %1896  ;;  %v9018_v2 = vpop.permute.xlu0 %1891 }
 0x18d   :  { %17112 = vst [vmem:[#allocation128_spill] sm:$0xff] %v9016_v19  ;;  %17113 = vst [vmem:[#allocation129_spill] sm:$0xff] %v9018_v2  ;;  %2478 = vperm.xlu1 %7838, %v7225_v3   ;;  %2473 = vperm.xlu0 %7837, %v7224_v18   ;;  %v7229_v2 = vld [vmem:[%s16484_s8 + $0x648] sm:$0xff]  ;;  %v7228_v3 = vld [vmem:[%s16484_s8 + $0x640] sm:$0xff] }
 0x190   :  { %v9026_v51 = vpop.permute.xlu1 %1906  ;;  %v9028_v34 = vpop.permute.xlu0 %1901 }
 0x191   :  { %17114 = vst [vmem:[#allocation130_spill] sm:$0xff] %v9026_v51  ;;  %17115 = vst [vmem:[#allocation131_spill] sm:$0xff] %v9028_v34  ;;  %2488 = vperm.xlu1 %7838, %v7227_v35   ;;  %2483 = vperm.xlu0 %7837, %v7226_v50   ;;  %v7231_v34 = vld [vmem:[%s16484_s8 + $0x658] sm:$0xff]  ;;  %v7230_v35 = vld [vmem:[%s16484_s8 + $0x650] sm:$0xff] }
 0x194   :  { %v9036_v18 = vpop.permute.xlu1 %1916  ;;  %v9038_v19 = vpop.permute.xlu0 %1911 }
 0x195   :  { %17116 = vst [vmem:[#allocation132_spill] sm:$0xff] %v9036_v18  ;;  %17117 = vst [vmem:[#allocation133_spill] sm:$0xff] %v9038_v19  ;;  %2498 = vperm.xlu1 %7838, %v7229_v2   ;;  %2493 = vperm.xlu0 %7837, %v7228_v3   ;;  %v7233_v19 = vld [vmem:[%s16484_s8 + $0x668] sm:$0xff]  ;;  %v7232_v2 = vld [vmem:[%s16484_s8 + $0x660] sm:$0xff] }
 0x198   :  { %v9046_v50 = vpop.permute.xlu1 %1926  ;;  %v9048_v51 = vpop.permute.xlu0 %1921 }
 0x199   :  { %17118 = vst [vmem:[#allocation134_spill] sm:$0xff] %v9046_v50  ;;  %17119 = vst [vmem:[#allocation135_spill] sm:$0xff] %v9048_v51  ;;  %2508 = vperm.xlu1 %7838, %v7231_v34   ;;  %2503 = vperm.xlu0 %7837, %v7230_v35   ;;  %v7235_v51 = vld [vmem:[%s16484_s8 + $0x678] sm:$0xff]  ;;  %v7234_v34 = vld [vmem:[%s16484_s8 + $0x670] sm:$0xff] }
 0x19c   :  { %v9056_v3 = vpop.permute.xlu1 %1936  ;;  %v9058_v18 = vpop.permute.xlu0 %1931 }
 0x19d   :  { %17120 = vst [vmem:[#allocation136_spill] sm:$0xff] %v9056_v3  ;;  %17121 = vst [vmem:[#allocation137_spill] sm:$0xff] %v9058_v18  ;;  %2518 = vperm.xlu1 %7838, %v7233_v19   ;;  %2513 = vperm.xlu0 %7837, %v7232_v2   ;;  %v7237_v18 = vld [vmem:[%s16484_s8 + $0x688] sm:$0xff]  ;;  %v7236_v19 = vld [vmem:[%s16484_s8 + $0x680] sm:$0xff] }
 0x1a0   :  { %v9066_v35 = vpop.permute.xlu1 %1946  ;;  %v9068_v50 = vpop.permute.xlu0 %1941 }
 0x1a1   :  { %17122 = vst [vmem:[#allocation138_spill] sm:$0xff] %v9066_v35  ;;  %17123 = vst [vmem:[#allocation139_spill] sm:$0xff] %v9068_v50  ;;  %2528 = vperm.xlu1 %7838, %v7235_v51   ;;  %2523 = vperm.xlu0 %7837, %v7234_v34   ;;  %v7239_v50 = vld [vmem:[%s16484_s8 + $0x698] sm:$0xff]  ;;  %v7238_v51 = vld [vmem:[%s16484_s8 + $0x690] sm:$0xff] }
 0x1a4   :  { %v9076_v2 = vpop.permute.xlu1 %1956  ;;  %v9078_v3 = vpop.permute.xlu0 %1951 }
 0x1a5   :  { %17124 = vst [vmem:[#allocation140_spill] sm:$0xff] %v9076_v2  ;;  %17125 = vst [vmem:[#allocation141_spill] sm:$0xff] %v9078_v3  ;;  %2538 = vperm.xlu1 %7838, %v7237_v18   ;;  %2533 = vperm.xlu0 %7837, %v7236_v19   ;;  %v7241_v3 = vld [vmem:[%s16484_s8 + $0x6a8] sm:$0xff]  ;;  %v7240_v18 = vld [vmem:[%s16484_s8 + $0x6a0] sm:$0xff] }
 0x1a8   :  { %v9086_v34 = vpop.permute.xlu1 %1966  ;;  %v9088_v35 = vpop.permute.xlu0 %1961 }
 0x1a9   :  { %17126 = vst [vmem:[#allocation142_spill] sm:$0xff] %v9086_v34  ;;  %17127 = vst [vmem:[#allocation143_spill] sm:$0xff] %v9088_v35  ;;  %2548 = vperm.xlu1 %7838, %v7239_v50   ;;  %2543 = vperm.xlu0 %7837, %v7238_v51   ;;  %v7243_v35 = vld [vmem:[%s16484_s8 + $0x6b8] sm:$0xff]  ;;  %v7242_v50 = vld [vmem:[%s16484_s8 + $0x6b0] sm:$0xff] }
 0x1ac   :  { %v9096_v19 = vpop.permute.xlu1 %1976  ;;  %v9098_v2 = vpop.permute.xlu0 %1971 }
 0x1ad   :  { %17128 = vst [vmem:[#allocation144_spill] sm:$0xff] %v9096_v19  ;;  %17129 = vst [vmem:[#allocation145_spill] sm:$0xff] %v9098_v2  ;;  %2558 = vperm.xlu1 %7838, %v7241_v3   ;;  %2553 = vperm.xlu0 %7837, %v7240_v18   ;;  %v7245_v2 = vld [vmem:[%s16484_s8 + $0x6c8] sm:$0xff]  ;;  %v7244_v3 = vld [vmem:[%s16484_s8 + $0x6c0] sm:$0xff] }
 0x1b0   :  { %v9106_v51 = vpop.permute.xlu1 %1986  ;;  %v9108_v34 = vpop.permute.xlu0 %1981 }
 0x1b1   :  { %17130 = vst [vmem:[#allocation146_spill] sm:$0xff] %v9106_v51  ;;  %17131 = vst [vmem:[#allocation147_spill] sm:$0xff] %v9108_v34  ;;  %2568 = vperm.xlu1 %7838, %v7243_v35   ;;  %2563 = vperm.xlu0 %7837, %v7242_v50   ;;  %v7247_v34 = vld [vmem:[%s16484_s8 + $0x6d8] sm:$0xff]  ;;  %v7246_v35 = vld [vmem:[%s16484_s8 + $0x6d0] sm:$0xff] }
 0x1b4   :  { %v9116_v18 = vpop.permute.xlu1 %1996  ;;  %v9118_v19 = vpop.permute.xlu0 %1991 }
 0x1b5   :  { %17132 = vst [vmem:[#allocation148_spill] sm:$0xff] %v9116_v18  ;;  %17133 = vst [vmem:[#allocation149_spill] sm:$0xff] %v9118_v19  ;;  %2578 = vperm.xlu1 %7838, %v7245_v2   ;;  %2573 = vperm.xlu0 %7837, %v7244_v3   ;;  %v7249_v19 = vld [vmem:[%s16484_s8 + $0x6e8] sm:$0xff]  ;;  %v7248_v2 = vld [vmem:[%s16484_s8 + $0x6e0] sm:$0xff] }
 0x1b8   :  { %v9126_v50 = vpop.permute.xlu1 %2006  ;;  %v9128_v51 = vpop.permute.xlu0 %2001 }
 0x1b9   :  { %17134 = vst [vmem:[#allocation150_spill] sm:$0xff] %v9126_v50  ;;  %17135 = vst [vmem:[#allocation151_spill] sm:$0xff] %v9128_v51  ;;  %2588 = vperm.xlu1 %7838, %v7247_v34   ;;  %2583 = vperm.xlu0 %7837, %v7246_v35   ;;  %v7251_v51 = vld [vmem:[%s16484_s8 + $0x6f8] sm:$0xff]  ;;  %v7250_v34 = vld [vmem:[%s16484_s8 + $0x6f0] sm:$0xff] }
 0x1bc   :  { %v9136_v3 = vpop.permute.xlu1 %2016  ;;  %v9138_v18 = vpop.permute.xlu0 %2011 }
 0x1bd   :  { %17136 = vst [vmem:[#allocation152_spill] sm:$0xff] %v9136_v3  ;;  %17137 = vst [vmem:[#allocation153_spill] sm:$0xff] %v9138_v18  ;;  %2598 = vperm.xlu1 %7838, %v7249_v19   ;;  %2593 = vperm.xlu0 %7837, %v7248_v2   ;;  %v7253_v18 = vld [vmem:[%s16484_s8 + $0x708] sm:$0xff]  ;;  %v7252_v19 = vld [vmem:[%s16484_s8 + $0x700] sm:$0xff] }
 0x1c0   :  { %v9146_v35 = vpop.permute.xlu1 %2026  ;;  %v9148_v50 = vpop.permute.xlu0 %2021 }
 0x1c1   :  { %17138 = vst [vmem:[#allocation154_spill] sm:$0xff] %v9146_v35  ;;  %17139 = vst [vmem:[#allocation155_spill] sm:$0xff] %v9148_v50  ;;  %2608 = vperm.xlu1 %7838, %v7251_v51   ;;  %2603 = vperm.xlu0 %7837, %v7250_v34   ;;  %v7255_v50 = vld [vmem:[%s16484_s8 + $0x718] sm:$0xff]  ;;  %v7254_v51 = vld [vmem:[%s16484_s8 + $0x710] sm:$0xff] }
 0x1c4   :  { %v9156_v2 = vpop.permute.xlu1 %2036  ;;  %v9158_v3 = vpop.permute.xlu0 %2031 }
 0x1c5   :  { %17140 = vst [vmem:[#allocation156_spill] sm:$0xff] %v9156_v2  ;;  %17141 = vst [vmem:[#allocation157_spill] sm:$0xff] %v9158_v3  ;;  %2618 = vperm.xlu1 %7838, %v7253_v18   ;;  %2613 = vperm.xlu0 %7837, %v7252_v19   ;;  %v7257_v3 = vld [vmem:[%s16484_s8 + $0x728] sm:$0xff]  ;;  %v7256_v18 = vld [vmem:[%s16484_s8 + $0x720] sm:$0xff] }
 0x1c6   :  { %v36_v19 = vld [vmem:[%s16476_s0] sm:$0xff]  ;;  %v7259_v2 = vld [vmem:[%s16484_s8 + $0x738] sm:$0xff] }
 0x1c8   :  { %v9166_v34 = vpop.permute.xlu1 %2046  ;;  %v9168_v35 = vpop.permute.xlu0 %2041 }
 0x1c9   :  { %17142 = vst [vmem:[#allocation158_spill] sm:$0xff] %v9166_v34  ;;  %17143 = vst [vmem:[#allocation159_spill] sm:$0xff] %v9168_v35  ;;  %2628 = vperm.xlu1 %7838, %v7255_v50   ;;  %2623 = vperm.xlu0 %7837, %v7254_v51   ;;  %v99_v34 = vld [vmem:[%s16476_s0 + $0x1f8] sm:$0xff]  ;;  %v9185_v50 = vld [vmem:[%s16477_s1] ss:$0 sm:$0xff] }
 0x1ca   :  { %v9198_v58 = vmul.f32 %v9185_v50, %v36_v19  ;;  %v9201_v43 = vmul.f32 %v9185_v50, %v99_v34  ;;  %v37_v19 = vld [vmem:[%s16476_s0 + $0x8] sm:$0xff]  ;;  %v9257_v54 = vmul.f32 %v9185_v50, %v39_v26  ;;  %v7263_v26 = vld [vmem:[%s16484_s8 + $0x758] sm:$0xff]  ;;  %v9548_v32 = vmul.f32 %v9185_v50, %v50_v37 }
 0x1cb   :  { %v53_v37 = vld [vmem:[%s16476_s0 + $0x88] sm:$0xff] }
 0x1cc   :  { %v9187_v51 = vpop.permute.xlu1 %2056  ;;  %v9189_v35 = vpop.permute.xlu0 %2051  ;;  %17146 = vst [vmem:[#allocation162_spill] sm:$0xff] %v9198_v58  ;;  %17147 = vst [vmem:[#allocation163_spill] sm:$0xff] %v9201_v43 }
 0x1cd   :  { %17144 = vst [vmem:[#allocation160_spill] sm:$0xff] %v9187_v51  ;;  %17145 = vst [vmem:[#allocation161_spill] sm:$0xff] %v9189_v35  ;;  %2638 = vperm.xlu1 %7838, %v7257_v3   ;;  %2633 = vperm.xlu0 %7837, %v7256_v18   ;;  %v97_v35 = vld [vmem:[%s16476_s0 + $0x1e8] sm:$0xff]  ;;  %v9209_v3 = vld [vmem:[%s16477_s1 + $0x1] ss:$0 sm:$0xff]  ;;  %v376_v18 = vlaneseq }
 0x1ce   :  { %v98_v51 = vld [vmem:[%s16476_s0 + $0x1f0] sm:$0xff]  ;;  %v9222_v27 = vmul.f32 %v9185_v50, %v97_v35  ;;  %v9242_v35 = vadd.f32 %v9209_v3, %v9201_v43  ;;  %17158 = vst [vmem:[#allocation174_spill] sm:$0xff] %v9257_v54  ;;  %v41_v43 = vld [vmem:[%s16476_s0 + $0x28] sm:$0xff]  ;;  %17204 = vst [vmem:[#allocation219_spill] sm:$0xff] %v9548_v32 }
 0x1cf   :  { %v9250_v63 = vshrl.u32 %v376_v18, 7 }
 0x1d0   :  { %v9217_v34 = vpop.permute.xlu1 %2066  ;;  %v9219_v42 = vpop.permute.xlu0 %2061  ;;  %17150 = vst [vmem:[#allocation166_spill] sm:$0xff] %v9222_v27  ;;  %17152 = vst [vmem:[#allocation168_spill] sm:$0xff] %v9242_v35 }
 0x1d1   :  { %17148 = vst [vmem:[#allocation164_spill] sm:$0xff] %v9217_v34  ;;  %17149 = vst [vmem:[#allocation165_spill] sm:$0xff] %v9219_v42  ;;  %2648 = vperm.xlu1 %7838, %v7259_v2   ;;  %2643 = vperm.xlu0 %7837, %v7258_v59   ;;  %v38_v2 = vld [vmem:[%s16476_s0 + $0x10] sm:$0xff]  ;;  %v9238_v59 = vadd.f32 %v9209_v3, %v9198_v58  ;;  %v9245_v42 = vmul.f32 %v9185_v50, %v98_v51  ;;  %v40_v51 = vld [vmem:[%s16476_s0 + $0x20] sm:$0xff]  ;;  %vm378_vm0 = vcmp.lt.s32.totalorder %v9250_v63, 1 }
 0x1d2   :  { %v9248_v34 = vmul.f32 %v9185_v50, %v37_v19  ;;  %17155 = vst [vmem:[#allocation171_spill] sm:$0xff] %v9250_v63  ;;  %v9266_v18 = vmul.f32 %v9185_v50, %v38_v2  ;;  %v9270_v19 = vadd.f32 %v9209_v3, %v9222_v27  ;;  %v7262_v58 = vld [vmem:[%s16484_s8 + $0x750] sm:$0xff]  ;;  %v9290_v27 = vmul.f32 %v9185_v50, %v41_v43  ;;  %v43_v43 = vld [vmem:[%s16476_s0 + $0x38] sm:$0xff] }
 0x1d3   :  { %17151 = vst [vmem:[#allocation167_spill] sm:$0xff] %v9238_v59  ;;  %17153 = vst [vmem:[#allocation169_spill] sm:$0xff] %v9245_v42  ;;  %v9351_v14 = vmul.f32 %v9185_v50, %v43_v43  ;;  %vm1670_vm1 = vcmp.lt.s32.totalorder %v9250_v63, 7 }
 0x1d4   :  { %17154 = vst [vmem:[#allocation170_spill] sm:$0xff] %v9248_v34  ;;  %v9252_v62 = vpop.permute.xlu1 %2076  ;;  %v9254_v55 = vpop.permute.xlu0 %2071  ;;  %17159 = vst [vmem:[#allocation175_spill] sm:$0xff] %v9266_v18  ;;  %v9286_v2 = vadd.f32 %v9209_v3, %v9248_v34  ;;  %v9306_v34 = vadd.f32 %v9209_v3, %v9257_v54  ;;  %v7264_v54 = vld [vmem:[%s16484_s8 + $0x760] sm:$0xff]  ;;  %v9338_v31 = vadd.f32 %v9209_v3, %v9290_v27 }
 0x1d5   :  { %17156 = vst [vmem:[#allocation172_spill] sm:$0xff] %v9252_v62  ;;  %17157 = vst [vmem:[#allocation173_spill] sm:$0xff] %v9254_v55  ;;  %2658 = vperm.xlu1 %7838, %v7261_v11   ;;  %2653 = vperm.xlu0 %7837, %v7260_v10   ;;  %v312_v55 = vrot.slane %v9238_v59, 7  ;;  %v375_v11 = vrot.slane %v9242_v35, 7  ;;  %v9282_v10 = vadd.f32 %v9209_v3, %v9245_v42  ;;  %v9302_v42 = vld [vmem:[%s16479_s3 + $0x5] ss:$0 sm:$0xff] }
 0x1d6   :  { %17160 = vst [vmem:[#allocation176_spill] sm:$0xff] %v9270_v19  ;;  %17162 = vst [vmem:[#allocation178_spill] sm:$0xff] %v9286_v2  ;;  %v9293_v62 = vmul.f32 %v9185_v50, %v40_v51  ;;  %v9313_v51 = vadd.f32 %v9209_v3, %v9266_v18  ;;  %v313_v38 = vrot.slane %v9286_v2, 7  ;;  %v315_v18 = vrot.slane %v9306_v34, 7 }
 0x1d7   :  { %17161 = vst [vmem:[#allocation177_spill] sm:$0xff] %v9282_v10  ;;  %17163 = vst [vmem:[#allocation179_spill] sm:$0xff] %v9290_v27  ;;  %v374_v39 = vrot.slane %v9282_v10, 7  ;;  %v45_v27 = vld [vmem:[%s16476_s0 + $0x48] sm:$0xff]  ;;  %v317_v57 = vrot.slane %v9338_v31, 7  ;;  %v9422_v52 = vadd.f32 %v9209_v3, %v9351_v14 }
 0x1d8   :  { %17164 = vst [vmem:[#allocation180_spill] sm:$0xff] %v9293_v62  ;;  %v9295_v47 = vpop.permute.xlu1 %2086  ;;  %v9297_v46 = vpop.permute.xlu0 %2081  ;;  %17167 = vst [vmem:[#allocation183_spill] sm:$0xff] %v9306_v34  ;;  %v9342_v30 = vadd.f32 %v9209_v3, %v9293_v62  ;;  %v314_v15 = vrot.slane %v9313_v51, 7  ;;  %v44_v62 = vld [vmem:[%s16476_s0 + $0x40] sm:$0xff]  ;;  %v9392_v1 = vsel %vm378_vm0, %v312_v55, %v313_v38  ;;  %v9407_v56 = vmul.f32 %v9185_v50, %v45_v27 }
 0x1d9   :  { %17165 = vst [vmem:[#allocation181_spill] sm:$0xff] %v9295_v47  ;;  %17166 = vst [vmem:[#allocation182_spill] sm:$0xff] %v9297_v46  ;;  %2668 = vperm.xlu1 %7838, %v7263_v26   ;;  %2663 = vperm.xlu0 %7837, %v7262_v58   ;;  %v42_v46 = vld [vmem:[%s16476_s0 + $0x30] sm:$0xff]  ;;  %v7265_v47 = vld [vmem:[%s16484_s8 + $0x768] sm:$0xff]  ;;  %v9326_v26 = vsel %vm378_vm0, %v375_v11, %v312_v55  ;;  %v9396_v0 = vsel %vm378_vm0, %v374_v39, %v375_v11 }
 0x1da   :  { %17168 = vst [vmem:[#allocation184_spill] sm:$0xff] %v9313_v51  ;;  %17169 = vst [vmem:[#allocation185_spill] sm:$0xff] %v9326_v26  ;;  %v9331_v58 = vld [vmem:[%s16479_s3] ss:$0 sm:$0xff]  ;;  %v9354_v7 = vmul.f32 %v9185_v50, %v42_v46  ;;  %v9372_v46 = vmul.f32 %v9302_v42, %v9238_v59  ;;  %v316_v60 = vrot.slane %v9342_v30, 7  ;;  %v9410_v55 = vmul.f32 %v9185_v50, %v44_v62 }
 0x1db   :  { %17170 = vst [vmem:[#allocation186_spill] sm:$0xff] %v9338_v31  ;;  %17171 = vst [vmem:[#allocation187_spill] sm:$0xff] %v9342_v30  ;;  %v9368_v43 = vmul.f32 %v9331_v58, %v9326_v26  ;;  %v9388_v26 = vmul.f32 %v9302_v42, %v9306_v34  ;;  %v9418_v53 = vsel %vm378_vm0, %v314_v15, %v315_v18 }
 0x1dc   :  { %v9344_v23 = vpop.permute.xlu1 %2096  ;;  %v9346_v22 = vpop.permute.xlu0 %2091  ;;  %17174 = vst [vmem:[#allocation190_spill] sm:$0xff] %v9351_v14  ;;  %17175 = vst [vmem:[#allocation191_spill] sm:$0xff] %v9354_v7  ;;  %v9426_v49 = vadd.f32 %v9209_v3, %v9354_v7  ;;  %v9430_v62 = vmul.f32 %v9302_v42, %v9286_v2  ;;  %v9434_v27 = vsel %vm378_vm0, %v313_v38, %v314_v15  ;;  %v7269_v7 = vld [vmem:[%s16484_s8 + $0x788] sm:$0xff] }
 0x1dd   :  { %17172 = vst [vmem:[#allocation188_spill] sm:$0xff] %v9344_v23  ;;  %17173 = vst [vmem:[#allocation189_spill] sm:$0xff] %v9346_v22  ;;  %2678 = vperm.xlu1 %7838, %v7265_v47   ;;  %2673 = vperm.xlu0 %7837, %v7264_v54   ;;  %v9364_v22 = vmul.f32 %v9302_v42, %v9313_v51  ;;  %v7267_v23 = vld [vmem:[%s16484_s8 + $0x778] sm:$0xff]  ;;  %v7266_v47 = vld [vmem:[%s16484_s8 + $0x770] sm:$0xff]  ;;  %v17176_v54 = vrot.slane %v9270_v19, 7  ;;  %v9454_v15 = vmul.f32 %v9331_v58, %v9392_v1 }
 0x1de   :  { %17178 = vst [vmem:[#allocation193_spill] sm:$0xff] %v9392_v1  ;;  %17179 = vst [vmem:[#allocation194_spill] sm:$0xff] %v9396_v0  ;;  %v9462_v38 = vmul.f32 %v9302_v42, %v9338_v31  ;;  %v9480_v1 = vadd.f32 %v9209_v3, %v9407_v56  ;;  %v9484_v48 = vadd.f32 %v9209_v3, %v9410_v55  ;;  %v318_v40 = vrot.slane %v9426_v49, 7 }
 0x1df   :  { %v9384_v6 = vsel %vm378_vm0, %v17176_v54, %v374_v39  ;;  %v46_v54 = vld [vmem:[%s16476_s0 + $0x50] sm:$0xff]  ;;  %17180 = vst [vmem:[#allocation195_spill] sm:$0xff] %v9407_v56  ;;  %17181 = vst [vmem:[#allocation196_spill] sm:$0xff] %v9410_v55  ;;  %v9495_v41 = vmul.f32 %v9331_v58, %v9434_v27  ;;  %v9499_v56 = vsel %vm378_vm0, %v315_v18, %v316_v60  ;;  %v319_v55 = vrot.slane %v9422_v52, 7 }
 0x1e0   :  { %17177 = vst [vmem:[#allocation192_spill] sm:$0xff] %v9384_v6  ;;  %v9412_v39 = vpop.permute.xlu1 %2106  ;;  %v9414_v11 = vpop.permute.xlu0 %2101  ;;  %17184 = vst [vmem:[#allocation199_spill] sm:$0xff] %v9418_v53  ;;  %v9440_v14 = vmul.f32 %v9185_v50, %v46_v54  ;;  %v49_v54 = vld [vmem:[%s16476_s0 + $0x68] sm:$0xff]  ;;  %v320_v36 = vrot.slane %v9484_v48, 7  ;;  %v321_v33 = vrot.slane %v9480_v1, 7 }
 0x1e1   :  { %17182 = vst [vmem:[#allocation197_spill] sm:$0xff] %v9412_v39  ;;  %17183 = vst [vmem:[#allocation198_spill] sm:$0xff] %v9414_v11  ;;  %2688 = vperm.xlu1 %7838, %v7267_v23   ;;  %2683 = vperm.xlu0 %7837, %v7266_v47   ;;  %v9437_v11 = vmul.f32 %v9185_v50, %v47_v61  ;;  %v7268_v23 = vld [vmem:[%s16484_s8 + $0x780] sm:$0xff]  ;;  %v9450_v47 = vmul.f32 %v9331_v58, %v9384_v6 }
 0x1e2   :  { %17185 = vst [vmem:[#allocation200_spill] sm:$0xff] %v9422_v52  ;;  %17186 = vst [vmem:[#allocation201_spill] sm:$0xff] %v9426_v49  ;;  %v9458_v61 = vmul.f32 %v9331_v58, %v9396_v0  ;;  %v48_v6 = vld [vmem:[%s16476_s0 + $0x60] sm:$0xff]  ;;  %v9472_v39 = vmul.f32 %v9331_v58, %v9418_v53  ;;  %v9476_v0 = vsel %vm378_vm0, %v316_v60, %v317_v57 }
 0x1e3   :  { %17187 = vst [vmem:[#allocation202_spill] sm:$0xff] %v9434_v27  ;;  %17188 = vst [vmem:[#allocation203_spill] sm:$0xff] %v9437_v11  ;;  %v9515_v60 = vmul.f32 %v9185_v50, %v49_v54  ;;  %v9518_v18 = vmul.f32 %v9185_v50, %v48_v6  ;;  %v7271_v27 = vld [vmem:[%s16484_s8 + $0x798] sm:$0xff]  ;;  %v9536_v6 = vmul.f32 %v9331_v58, %v9476_v0 }
 0x1e4   :  { %17189 = vst [vmem:[#allocation204_spill] sm:$0xff] %v9440_v14  ;;  %17190 = vst [vmem:[#allocation205_spill] sm:$0xff] %v9476_v0  ;;  %v9489_v44 = vpop.permute.xlu1 %2116  ;;  %v9491_v53 = vpop.permute.xlu0 %2111  ;;  %v9539_v54 = vmul.f32 %v9185_v50, %v51_v45  ;;  %v9556_v0 = vmul.f32 %v9331_v58, %v9499_v56  ;;  %v9560_v45 = vsel %vm378_vm0, %v318_v40, %v319_v55 }
 0x1e5   :  { %17191 = vst [vmem:[#allocation206_spill] sm:$0xff] %v9480_v1  ;;  %17192 = vst [vmem:[#allocation207_spill] sm:$0xff] %v9484_v48  ;;  %2698 = vperm.xlu1 %7838, %v7269_v7   ;;  %2693 = vperm.xlu0 %7837, %v7268_v23   ;;  %v7270_v7 = vld [vmem:[%s16484_s8 + $0x790] sm:$0xff]  ;;  %v9528_v23 = vmul.f32 %v9302_v42, %v9342_v30  ;;  %v9606_v30 = vsel %vm378_vm0, %v320_v36, %v321_v33 }
 0x1e6   :  { %17193 = vst [vmem:[#allocation208_spill] sm:$0xff] %v9489_v44  ;;  %17194 = vst [vmem:[#allocation209_spill] sm:$0xff] %v9491_v53  ;;  %v9508_v53 = vadd.f32 %v9209_v3, %v9437_v11  ;;  %v9512_v44 = vadd.f32 %v9209_v3, %v9440_v14  ;;  %v9532_v11 = vmul.f32 %v9302_v42, %v9422_v52 }
 0x1e7   :  { %17195 = vst [vmem:[#allocation210_spill] sm:$0xff] %v9499_v56  ;;  %17198 = vst [vmem:[#allocation213_spill] sm:$0xff] %v9515_v60  ;;  %v9543_v14 = vmul.f32 %v9302_v42, %v9426_v49  ;;  %v9564_v49 = vsel %vm378_vm0, %v317_v57, %v318_v40  ;;  %v9580_v40 = vadd.f32 %v9209_v3, %v9518_v18  ;;  %v7273_v57 = vld [vmem:[%s16484_s8 + $0x7a8] sm:$0xff] }
 0x1e8   :  { %17196 = vst [vmem:[#allocation211_spill] sm:$0xff] %v9508_v53  ;;  %17197 = vst [vmem:[#allocation212_spill] sm:$0xff] %v9512_v44  ;;  %v9550_v52 = vpop.permute.xlu1 %2126  ;;  %v9552_v29 = vpop.permute.xlu0 %2121  ;;  %v322_v56 = vrot.slane %v9512_v44, 7  ;;  %v323_v28 = vrot.slane %v9508_v53, 7 }
 0x1e9   :  { %17199 = vst [vmem:[#allocation214_spill] sm:$0xff] %v9518_v18  ;;  %17200 = vst [vmem:[#allocation215_spill] sm:$0xff] %v9528_v23  ;;  %2708 = vperm.xlu1 %7838, %v7271_v27   ;;  %2703 = vperm.xlu0 %7837, %v7270_v7   ;;  %v7272_v27 = vld [vmem:[%s16484_s8 + $0x7a0] sm:$0xff]  ;;  %v9590_v7 = vmul.f32 %v9302_v42, %v9480_v1  ;;  %v9598_v18 = vmul.f32 %v9302_v42, %v9508_v53  ;;  %v55_v53 = vld [vmem:[%s16476_s0 + $0x98] sm:$0xff] }
 0x1ea   :  { %17201 = vst [vmem:[#allocation216_spill] sm:$0xff] %v9532_v11  ;;  %17202 = vst [vmem:[#allocation217_spill] sm:$0xff] %v9539_v54  ;;  %v9610_v1 = vadd.f32 %v9209_v3, %v9548_v32  ;;  %v9631_v32 = vmul.f32 %v9331_v58, %v9564_v49 }
 0x1eb   :  { %17203 = vst [vmem:[#allocation218_spill] sm:$0xff] %v9543_v14  ;;  %17205 = vst [vmem:[#allocation220_spill] sm:$0xff] %v9550_v52  ;;  %v9574_v52 = vadd.f32 %v9209_v3, %v9515_v60  ;;  %v9594_v60 = vmul.f32 %v9302_v42, %v9484_v48  ;;  %v9602_v14 = vadd.f32 %v9209_v3, %v9539_v54 }
 0x1ec   :  { %17206 = vst [vmem:[#allocation221_spill] sm:$0xff] %v9552_v29  ;;  %17207 = vst [vmem:[#allocation222_spill] sm:$0xff] %v9560_v45  ;;  %v52_v29 = vld [vmem:[%s16476_s0 + $0x80] sm:$0xff]  ;;  %v9621_v54 = vpop.permute.xlu1 %2136 }
 0x1ed   :  { %17208 = vst [vmem:[#allocation223_spill] sm:$0xff] %v9564_v49  ;;  %17209 = vst [vmem:[#allocation224_spill] sm:$0xff] %v9574_v52  ;;  %v9616_v48 = vmul.f32 %v9185_v50, %v52_v29  ;;  %v9635_v29 = vmul.f32 %v9302_v42, %v9512_v44  ;;  %2718 = vperm.xlu1 %7838, %v7273_v57   ;;  %2713 = vperm.xlu0 %7837, %v7272_v27   ;;  %v324_v49 = vrot.slane %v9580_v40, 7  ;;  %v7275_v44 = vld [vmem:[%s16484_s8 + $0x7b8] sm:$0xff]  ;;  %v7274_v57 = vld [vmem:[%s16484_s8 + $0x7b0] sm:$0xff] }
 0x1ee   :  { %17210 = vst [vmem:[#allocation225_spill] sm:$0xff] %v9580_v40  ;;  %17211 = vst [vmem:[#allocation226_spill] sm:$0xff] %v9590_v7  ;;  %v9613_v7 = vmul.f32 %v9185_v50, %v53_v37  ;;  %v54_v37 = vld [vmem:[%s16476_s0 + $0x90] sm:$0xff]  ;;  %v327_v27 = vrot.slane %v9602_v14, 7 }
 0x1ef   :  { %17212 = vst [vmem:[#allocation227_spill] sm:$0xff] %v9594_v60  ;;  %17213 = vst [vmem:[#allocation228_spill] sm:$0xff] %v9598_v18  ;;  %v9623_v18 = vpop.permute.xlu0 %2131  ;;  %v9627_v60 = vmul.f32 %v9331_v58, %v9560_v45  ;;  %v325_v45 = vrot.slane %v9574_v52, 7 }
 0x1f0   :  { %17214 = vst [vmem:[#allocation229_spill] sm:$0xff] %v9602_v14  ;;  %17215 = vst [vmem:[#allocation230_spill] sm:$0xff] %v9606_v30 }
 0x1f1   :  { %17216 = vst [vmem:[#allocation231_spill] sm:$0xff] %v9610_v1  ;;  %17217 = vst [vmem:[#allocation232_spill] sm:$0xff] %v9613_v7  ;;  %2728 = vperm.xlu1 %7838, %v7275_v44   ;;  %2723 = vperm.xlu0 %7837, %v7274_v57   ;;  %v7276_v44 = vld [vmem:[%s16484_s8 + $0x7c0] sm:$0xff]  ;;  %v9724_v57 = vmul.f32 %v9302_v42, %v9580_v40 }
 0x1f2   :  { %17218 = vst [vmem:[#allocation233_spill] sm:$0xff] %v9616_v48  ;;  %17219 = vst [vmem:[#allocation234_spill] sm:$0xff] %v9621_v54  ;;  %v9646_v54 = vsel %vm378_vm0, %v322_v56, %v323_v28 }
 0x1f3   :  { %17220 = vst [vmem:[#allocation235_spill] sm:$0xff] %v9623_v18  ;;  %17221 = vst [vmem:[#allocation236_spill] sm:$0xff] %v9635_v29  ;;  %v9642_v18 = vsel %vm378_vm0, %v319_v55, %v320_v36  ;;  %v9658_v36 = vmul.f32 %v9331_v58, %v9606_v30  ;;  %v9662_v55 = vsel %vm378_vm0, %v321_v33, %v322_v56  ;;  %v326_v33 = vrot.slane %v9610_v1, 7  ;;  %v9688_v11 = vpop.permute.xlu0 %2141 }
 0x1f4   :  { %17222 = vst [vmem:[#allocation237_spill] sm:$0xff] %v9642_v18  ;;  %17223 = vst [vmem:[#allocation238_spill] sm:$0xff] %v9646_v54  ;;  %v9666_v29 = vmul.f32 %v9185_v50, %v55_v53  ;;  %v9676_v30 = vadd.f32 %v9209_v3, %v9613_v7  ;;  %v9681_v56 = vadd.f32 %v9209_v3, %v9616_v48 }
 0x1f5   :  { %17224 = vst [vmem:[#allocation239_spill] sm:$0xff] %v9658_v36  ;;  %17225 = vst [vmem:[#allocation240_spill] sm:$0xff] %v9662_v55  ;;  %v9684_v53 = vmul.f32 %v9185_v50, %v54_v37  ;;  %v9686_v36 = vpop.permute.xlu1 %2146  ;;  %v9692_v31 = vmul.f32 %v9331_v58, %v9642_v18  ;;  %v9696_v7 = vmul.f32 %v9302_v42, %v9574_v52  ;;  %v58_v18 = vld [vmem:[%s16476_s0 + $0xb0] sm:$0xff]  ;;  %2733 = vperm.xlu0 %7837, %v7276_v44  }
 0x1f6   :  { %17226 = vst [vmem:[#allocation241_spill] sm:$0xff] %v9666_v29  ;;  %17227 = vst [vmem:[#allocation242_spill] sm:$0xff] %v9676_v30  ;;  %v9700_v23 = vmul.f32 %v9331_v58, %v9646_v54  ;;  %v9704_v37 = vsel %vm378_vm0, %v324_v49, %v325_v45  ;;  %v9708_v48 = vsel %vm378_vm0, %v323_v28, %v324_v49  ;;  %v7277_v54 = vld [vmem:[%s16484_s8 + $0x7c8] sm:$0xff]  ;;  %v59_v49 = vld [vmem:[%s16476_s0 + $0xb8] sm:$0xff]  ;;  %v328_v40 = vrot.slane %v9681_v56, 7 }
 0x1f7   :  { %17228 = vst [vmem:[#allocation243_spill] sm:$0xff] %v9681_v56  ;;  %17229 = vst [vmem:[#allocation244_spill] sm:$0xff] %v9684_v53  ;;  %v9728_v28 = vmul.f32 %v9331_v58, %v9662_v55  ;;  %v9746_v55 = vsel %vm378_vm0, %v326_v33, %v327_v27  ;;  %v9756_v52 = vpop.permute.xlu0 %2151  ;;  %2738 = vperm.xlu1 %7838, %v7277_v54   ;;  %v7279_v54 = vld [vmem:[%s16484_s8 + $0x7d8] sm:$0xff]  ;;  %v7278_v44 = vld [vmem:[%s16484_s8 + $0x7d0] sm:$0xff] }
 0x1f8   :  { %17230 = vst [vmem:[#allocation245_spill] sm:$0xff] %v9686_v36  ;;  %17231 = vst [vmem:[#allocation246_spill] sm:$0xff] %v9688_v11  ;;  %v9711_v11 = vmul.f32 %v9185_v50, %v57_v25  ;;  %v9714_v36 = vmul.f32 %v9185_v50, %v56_v24  ;;  %v9732_v24 = vmul.f32 %v9302_v42, %v9602_v14  ;;  %v329_v14 = vrot.slane %v9676_v30, 7 }
 0x1f9   :  { %17232 = vst [vmem:[#allocation247_spill] sm:$0xff] %v9692_v31  ;;  %17233 = vst [vmem:[#allocation248_spill] sm:$0xff] %v9696_v7  ;;  %v9736_v25 = vadd.f32 %v9209_v3, %v9666_v29  ;;  %v9752_v29 = vadd.f32 %v9209_v3, %v9684_v53  ;;  %v9764_v7 = vmul.f32 %v9302_v42, %v9610_v1  ;;  %v61_v53 = vld [vmem:[%s16476_s0 + $0xc8] sm:$0xff]  ;;  %v60_v1 = vld [vmem:[%s16476_s0 + $0xc0] sm:$0xff]  ;;  %2743 = vperm.xlu0 %7837, %v7278_v44  }
 0x1fa   :  { %17234 = vst [vmem:[#allocation249_spill] sm:$0xff] %v9700_v23  ;;  %17235 = vst [vmem:[#allocation250_spill] sm:$0xff] %v9704_v37 }
 0x1fb   :  { %17236 = vst [vmem:[#allocation251_spill] sm:$0xff] %v9708_v48  ;;  %17237 = vst [vmem:[#allocation252_spill] sm:$0xff] %v9711_v11  ;;  %2748 = vperm.xlu1 %7838, %v7279_v54   ;;  %v9864_v54 = vmul.f32 %v9302_v42, %v9752_v29 }
 0x1fc   :  { %17238 = vst [vmem:[#allocation253_spill] sm:$0xff] %v9714_v36  ;;  %17239 = vst [vmem:[#allocation254_spill] sm:$0xff] %v9724_v57  ;;  %v9760_v57 = vmul.f32 %v9331_v58, %v9704_v37  ;;  %v9782_v37 = vmul.f32 %v9185_v50, %v59_v49  ;;  %v9806_v49 = vmul.f32 %v9302_v42, %v9681_v56  ;;  %v63_v56 = vld [vmem:[%s16476_s0 + $0xd8] sm:$0xff] }
 0x1fd   :  { %17240 = vst [vmem:[#allocation255_spill] sm:$0xff] %v9728_v28  ;;  %17241 = vst [vmem:[#allocation256_spill] sm:$0xff] %v9732_v24  ;;  %v9754_v24 = vpop.permute.xlu1 %2156  ;;  %v9768_v28 = vmul.f32 %v9331_v58, %v9708_v48  ;;  %v9785_v48 = vmul.f32 %v9185_v50, %v58_v18  ;;  %v9802_v18 = vmul.f32 %v9331_v58, %v9746_v55 }
 0x1fe   :  { %17242 = vst [vmem:[#allocation257_spill] sm:$0xff] %v9736_v25  ;;  %17243 = vst [vmem:[#allocation258_spill] sm:$0xff] %v9746_v55  ;;  %v331_v55 = vrot.slane %v9736_v25, 7  ;;  %v9867_v44 = vmul.f32 %v9185_v50, %v63_v56  ;;  %v65_v56 = vld [vmem:[%s16476_s0 + $0xe8] sm:$0xff] }
 0x1ff   :  { %17244 = vst [vmem:[#allocation259_spill] sm:$0xff] %v9752_v29  ;;  %17245 = vst [vmem:[#allocation260_spill] sm:$0xff] %v9754_v24  ;;  %v9779_v24 = vadd.f32 %v9209_v3, %v9714_v36  ;;  %v9810_v36 = vsel %vm378_vm0, %v325_v45, %v326_v33  ;;  %v62_v45 = vld [vmem:[%s16476_s0 + $0xd0] sm:$0xff] }
 0x200   :  { %17246 = vst [vmem:[#allocation261_spill] sm:$0xff] %v9756_v52  ;;  %17247 = vst [vmem:[#allocation262_spill] sm:$0xff] %v9760_v57  ;;  %v9775_v52 = vadd.f32 %v9209_v3, %v9711_v11  ;;  %v9798_v11 = vmul.f32 %v9302_v42, %v9676_v30  ;;  %v9818_v30 = vsel %vm378_vm0, %v328_v40, %v329_v14 }
 0x201   :  { %17248 = vst [vmem:[#allocation263_spill] sm:$0xff] %v9764_v7  ;;  %17249 = vst [vmem:[#allocation264_spill] sm:$0xff] %v9768_v28  ;;  %v9814_v7 = vmul.f32 %v9302_v42, %v9736_v25  ;;  %v9828_v33 = vpop.permute.xlu1 %2166  ;;  %v9840_v25 = vmul.f32 %v9185_v50, %v60_v1  ;;  %v9844_v28 = vadd.f32 %v9209_v3, %v9782_v37  ;;  %v7280_v1 = vld [vmem:[%s16484_s8 + $0x7e0] sm:$0xff] }
 0x202   :  { %17250 = vst [vmem:[#allocation265_spill] sm:$0xff] %v9775_v52  ;;  %17251 = vst [vmem:[#allocation266_spill] sm:$0xff] %v9779_v24  ;;  %2753 = vperm.xlu0 %7837, %v7280_v1   ;;  %v9928_v1 = vadd.f32 %v9209_v3, %v9867_v44 }
 0x203   :  { %17252 = vst [vmem:[#allocation267_spill] sm:$0xff] %v9782_v37  ;;  %17253 = vst [vmem:[#allocation268_spill] sm:$0xff] %v9785_v48  ;;  %v9870_v37 = vmul.f32 %v9185_v50, %v62_v45  ;;  %v64_v45 = vld [vmem:[%s16476_s0 + $0xe0] sm:$0xff] }
 0x204   :  { %17254 = vst [vmem:[#allocation269_spill] sm:$0xff] %v9798_v11  ;;  %17255 = vst [vmem:[#allocation270_spill] sm:$0xff] %v9802_v18  ;;  %v330_v11 = vrot.slane %v9752_v29, 7  ;;  %v9837_v18 = vmul.f32 %v9185_v50, %v61_v53  ;;  %v9860_v53 = vmul.f32 %v9331_v58, %v9810_v36 }
 0x205   :  { %17256 = vst [vmem:[#allocation271_spill] sm:$0xff] %v9806_v49  ;;  %17257 = vst [vmem:[#allocation272_spill] sm:$0xff] %v9810_v36  ;;  %v9830_v49 = vpop.permute.xlu0 %2161 }
 0x206   :  { %17258 = vst [vmem:[#allocation273_spill] sm:$0xff] %v9814_v7  ;;  %17259 = vst [vmem:[#allocation274_spill] sm:$0xff] %v9818_v30  ;;  %v9834_v7 = vsel %vm378_vm0, %v327_v27, %v328_v40  ;;  %v9850_v40 = vadd.f32 %v9209_v3, %v9785_v48  ;;  %v7281_v27 = vld [vmem:[%s16484_s8 + $0x7e8] sm:$0xff]  ;;  %v9874_v48 = vmul.f32 %v9331_v58, %v9818_v30  ;;  %v9894_v30 = vpop.permute.xlu1 %2176 }
 0x207   :  { %17260 = vst [vmem:[#allocation275_spill] sm:$0xff] %v9828_v33  ;;  %17261 = vst [vmem:[#allocation276_spill] sm:$0xff] %v9830_v49  ;;  %v332_v33 = vrot.slane %v9779_v24, 7  ;;  %v333_v49 = vrot.slane %v9775_v52, 7  ;;  %v9878_v57 = vmul.f32 %v9331_v58, %v9834_v7  ;;  %v9882_v36 = vsel %vm378_vm0, %v330_v11, %v331_v55  ;;  %2758 = vperm.xlu1 %7838, %v7281_v27   ;;  %v7282_v27 = vld [vmem:[%s16484_s8 + $0x7f0] sm:$0xff] }
 0x208   :  { %17262 = vst [vmem:[#allocation277_spill] sm:$0xff] %v9834_v7  ;;  %17263 = vst [vmem:[#allocation278_spill] sm:$0xff] %v9837_v18  ;;  %v9886_v29 = vsel %vm378_vm0, %v329_v14, %v330_v11  ;;  %v9904_v14 = vadd.f32 %v9209_v3, %v9837_v18  ;;  %v9908_v11 = vadd.f32 %v9209_v3, %v9840_v25  ;;  %v7283_v18 = vld [vmem:[%s16484_s8 + $0x7f8] sm:$0xff]  ;;  %2763 = vperm.xlu0 %7837, %v7282_v27  }
 0x209   :  { %17264 = vst [vmem:[#allocation279_spill] sm:$0xff] %v9840_v25  ;;  %17265 = vst [vmem:[#allocation280_spill] sm:$0xff] %v9844_v28  ;;  %v9896_v7 = vpop.permute.xlu0 %2171  ;;  %v9938_v25 = vmul.f32 %v9185_v50, %v64_v45  ;;  %v9960_v45 = vmul.f32 %v9302_v42, %v9844_v28 }
 0x20a   :  { %17266 = vst [vmem:[#allocation281_spill] sm:$0xff] %v9850_v40  ;;  %17267 = vst [vmem:[#allocation282_spill] sm:$0xff] %v9860_v53  ;;  %v9962_v53 = vpop.permute.xlu1 %2186 }
 0x20b   :  { %17268 = vst [vmem:[#allocation283_spill] sm:$0xff] %v9864_v54  ;;  %17269 = vst [vmem:[#allocation284_spill] sm:$0xff] %v9867_v44  ;;  %v9900_v54 = vmul.f32 %v9302_v42, %v9775_v52  ;;  %v335_v52 = vrot.slane %v9844_v28, 7  ;;  %v9948_v44 = vmul.f32 %v9331_v58, %v9882_v36  ;;  %v69_v28 = vld [vmem:[%s16476_s0 + $0x108] sm:$0xff]  ;;  %2768 = vperm.xlu1 %7838, %v7283_v18   ;;  %v7286_v18 = vld [vmem:[%s16484_s8 + $0x800] sm:$0xff] }
 0x20c   :  { %17270 = vst [vmem:[#allocation285_spill] sm:$0xff] %v9870_v37  ;;  %17271 = vst [vmem:[#allocation286_spill] sm:$0xff] %v9874_v48  ;;  %v66_v48 = vld [vmem:[%s16476_s0 + $0xf0] sm:$0xff]  ;;  %3035 = vperm.xlu0 %7837, %v7286_v18  }
 0x20d   :  { %17272 = vst [vmem:[#allocation287_spill] sm:$0xff] %v9878_v57  ;;  %17273 = vst [vmem:[#allocation288_spill] sm:$0xff] %v9882_v36  ;;  %v9912_v57 = vsel %vm378_vm0, %v332_v33, %v333_v49  ;;  %v9964_v23 = vpop.permute.xlu0 %2181  ;;  %v7288_v18 = vld [vmem:[%s16484_s8 + $0x810] sm:$0xff] }
 0x20e   :  { %17274 = vst [vmem:[#allocation289_spill] sm:$0xff] %v9886_v29  ;;  %17275 = vst [vmem:[#allocation290_spill] sm:$0xff] %v9894_v30  ;;  %v334_v30 = vrot.slane %v9850_v40, 7  ;;  %v9968_v36 = vmul.f32 %v9331_v58, %v9912_v57 }
 0x20f   :  { %17276 = vst [vmem:[#allocation291_spill] sm:$0xff] %v9896_v7  ;;  %17277 = vst [vmem:[#allocation292_spill] sm:$0xff] %v9900_v54  ;;  %v9916_v7 = vsel %vm378_vm0, %v331_v55, %v332_v33  ;;  %v9932_v55 = vadd.f32 %v9209_v3, %v9870_v37  ;;  %v9935_v33 = vmul.f32 %v9185_v50, %v65_v56  ;;  %v67_v54 = vld [vmem:[%s16476_s0 + $0xf8] sm:$0xff] }
 0x210   :  { %17278 = vst [vmem:[#allocation293_spill] sm:$0xff] %v9904_v14  ;;  %17279 = vst [vmem:[#allocation294_spill] sm:$0xff] %v9908_v11  ;;  %v9952_v37 = vmul.f32 %v9302_v42, %v9779_v24  ;;  %v9956_v56 = vmul.f32 %v9331_v58, %v9886_v29  ;;  %v9972_v24 = vmul.f32 %v9331_v58, %v9916_v7  ;;  %v337_v29 = vrot.slane %v9904_v14, 7 }
 0x211   :  { %17280 = vst [vmem:[#allocation295_spill] sm:$0xff] %v9912_v57  ;;  %17281 = vst [vmem:[#allocation296_spill] sm:$0xff] %v9916_v7  ;;  %v9988_v7 = vsel %vm378_vm0, %v334_v30, %v335_v52  ;;  %v9991_v57 = vmul.f32 %v9185_v50, %v67_v54  ;;  %v10004_v27 = vadd.f32 %v9209_v3, %v9935_v33  ;;  %v339_v54 = vrot.slane %v9928_v1, 7  ;;  %v10028_v31 = vpop.permute.xlu0 %2453 }
 0x212   :  { %17282 = vst [vmem:[#allocation297_spill] sm:$0xff] %v9928_v1  ;;  %17283 = vst [vmem:[#allocation298_spill] sm:$0xff] %v9932_v55  ;;  %3045 = vperm.xlu0 %7837, %v7288_v18  }
 0x213   :  { %17284 = vst [vmem:[#allocation299_spill] sm:$0xff] %v9935_v33  ;;  %17285 = vst [vmem:[#allocation300_spill] sm:$0xff] %v9938_v25 }
 0x214   :  { %17286 = vst [vmem:[#allocation301_spill] sm:$0xff] %v9948_v44  ;;  %17287 = vst [vmem:[#allocation302_spill] sm:$0xff] %v9952_v37  ;;  %v336_v37 = vrot.slane %v9908_v11, 7  ;;  %v10026_v44 = vpop.permute.xlu1 %2458 }
 0x215   :  { %17288 = vst [vmem:[#allocation303_spill] sm:$0xff] %v9956_v56  ;;  %17289 = vst [vmem:[#allocation304_spill] sm:$0xff] %v9960_v45  ;;  %v9994_v45 = vmul.f32 %v9185_v50, %v66_v48  ;;  %v10010_v48 = vadd.f32 %v9209_v3, %v9938_v25  ;;  %v10021_v56 = vmul.f32 %v9185_v50, %v69_v28 }
 0x216   :  { %17290 = vst [vmem:[#allocation305_spill] sm:$0xff] %v9962_v53  ;;  %17291 = vst [vmem:[#allocation306_spill] sm:$0xff] %v9964_v23  ;;  %v68_v23 = vld [vmem:[%s16476_s0 + $0x100] sm:$0xff]  ;;  %v9984_v53 = vmul.f32 %v9302_v42, %v9850_v40  ;;  %v338_v40 = vrot.slane %v9932_v55, 7  ;;  %v10032_v25 = vmul.f32 %v9302_v42, %v9908_v11  ;;  %v10048_v28 = vsel %vm378_vm0, %v335_v52, %v336_v37 }
 0x217   :  { %17292 = vst [vmem:[#allocation307_spill] sm:$0xff] %v9968_v36  ;;  %17293 = vst [vmem:[#allocation308_spill] sm:$0xff] %v9972_v24  ;;  %v7287_v24 = vld [vmem:[%s16484_s8 + $0x808] sm:$0xff]  ;;  %v10018_v36 = vsel %vm378_vm0, %v333_v49, %v334_v30  ;;  %v10024_v33 = vmul.f32 %v9185_v50, %v68_v23  ;;  %v10040_v30 = vsel %vm378_vm0, %v336_v37, %v337_v29 }
 0x218   :  { %17294 = vst [vmem:[#allocation309_spill] sm:$0xff] %v9984_v53  ;;  %17295 = vst [vmem:[#allocation310_spill] sm:$0xff] %v9988_v7  ;;  %v10014_v53 = vmul.f32 %v9302_v42, %v9904_v14  ;;  %v10036_v14 = vmul.f32 %v9302_v42, %v9928_v1  ;;  %3040 = vperm.xlu1 %7838, %v7287_v24   ;;  %v10044_v23 = vmul.f32 %v9331_v58, %v9988_v7  ;;  %v7289_v24 = vld [vmem:[%s16484_s8 + $0x818] sm:$0xff] }
 0x219   :  { %17296 = vst [vmem:[#allocation311_spill] sm:$0xff] %v9991_v57  ;;  %17297 = vst [vmem:[#allocation312_spill] sm:$0xff] %v9994_v45  ;;  %v10052_v49 = vadd.f32 %v9209_v3, %v9991_v57  ;;  %v10066_v52 = vmul.f32 %v9331_v58, %v10018_v36  ;;  %v10070_v37 = vsel %vm378_vm0, %v338_v40, %v339_v54  ;;  %v340_v57 = vrot.slane %v10010_v48, 7 }
 0x21a   :  { %17298 = vst [vmem:[#allocation313_spill] sm:$0xff] %v10004_v27  ;;  %17299 = vst [vmem:[#allocation314_spill] sm:$0xff] %v10010_v48  ;;  %v10079_v7 = vmul.f32 %v9331_v58, %v10040_v30  ;;  %v10087_v1 = vadd.f32 %v9209_v3, %v10021_v56  ;;  %v10091_v11 = vadd.f32 %v9209_v3, %v10024_v33 }
 0x21b   :  { %17300 = vst [vmem:[#allocation315_spill] sm:$0xff] %v10014_v53  ;;  %17301 = vst [vmem:[#allocation316_spill] sm:$0xff] %v10018_v36  ;;  %v10083_v36 = vmul.f32 %v9302_v42, %v9932_v55  ;;  %v10102_v55 = vmul.f32 %v9331_v58, %v10048_v28  ;;  %v10135_v18 = vmul.f32 %v9302_v42, %v10010_v48 }
 0x21c   :  { %17302 = vst [vmem:[#allocation317_spill] sm:$0xff] %v10021_v56  ;;  %17303 = vst [vmem:[#allocation318_spill] sm:$0xff] %v10024_v33  ;;  %v10106_v56 = vmul.f32 %v9302_v42, %v10004_v27  ;;  %v10110_v33 = vsel %vm378_vm0, %v337_v29, %v338_v40  ;;  %3050 = vperm.xlu1 %7838, %v7289_v24   ;;  %v7291_v40 = vld [vmem:[%s16484_s8 + $0x828] sm:$0xff]  ;;  %v7290_v24 = vld [vmem:[%s16484_s8 + $0x820] sm:$0xff]  ;;  %v344_v53 = vrot.slane %v10091_v11, 7 }
 0x21d   :  { %17304 = vst [vmem:[#allocation319_spill] sm:$0xff] %v10026_v44  ;;  %17305 = vst [vmem:[#allocation320_spill] sm:$0xff] %v10028_v31  ;;  %v10056_v31 = vadd.f32 %v9209_v3, %v9994_v45  ;;  %v341_v45 = vrot.slane %v10004_v27, 7  ;;  %v71_v44 = vld [vmem:[%s16476_s0 + $0x118] sm:$0xff]  ;;  %v343_v27 = vrot.slane %v10052_v49, 7  ;;  %3055 = vperm.xlu0 %7837, %v7290_v24   ;;  %v7292_v24 = vld [vmem:[%s16484_s8 + $0x830] sm:$0xff] }
 0x21e   :  { %17306 = vst [vmem:[#allocation321_spill] sm:$0xff] %v10032_v25  ;;  %17307 = vst [vmem:[#allocation322_spill] sm:$0xff] %v10036_v14  ;;  %v70_v14 = vld [vmem:[%s16476_s0 + $0x110] sm:$0xff]  ;;  %v10096_v25 = vpop.permute.xlu1 %2468  ;;  %v10125_v29 = vmul.f32 %v9185_v50, %v71_v44  ;;  %v10143_v44 = vsel %vm378_vm0, %v339_v54, %v340_v57  ;;  %v10169_v54 = vmul.f32 %v9302_v42, %v10052_v49 }
 0x21f   :  { %17308 = vst [vmem:[#allocation323_spill] sm:$0xff] %v10040_v30  ;;  %17309 = vst [vmem:[#allocation324_spill] sm:$0xff] %v10044_v23  ;;  %v10098_v30 = vpop.permute.xlu0 %2463 }
 0x220   :  { %17310 = vst [vmem:[#allocation325_spill] sm:$0xff] %v10048_v28  ;;  %17311 = vst [vmem:[#allocation326_spill] sm:$0xff] %v10052_v49  ;;  %v342_v28 = vrot.slane %v10056_v31, 7  ;;  %3060 = vperm.xlu1 %7838, %v7291_v40   ;;  %v7293_v40 = vld [vmem:[%s16484_s8 + $0x838] sm:$0xff]  ;;  %v77_v49 = vld [vmem:[%s16476_s0 + $0x148] sm:$0xff] }
 0x221   :  { %17312 = vst [vmem:[#allocation327_spill] sm:$0xff] %v10056_v31  ;;  %17313 = vst [vmem:[#allocation328_spill] sm:$0xff] %v10066_v52  ;;  %3065 = vperm.xlu0 %7837, %v7292_v24  }
 0x222   :  { %17314 = vst [vmem:[#allocation329_spill] sm:$0xff] %v10070_v37  ;;  %17315 = vst [vmem:[#allocation330_spill] sm:$0xff] %v10079_v7  ;;  %v10159_v7 = vpop.permute.xlu1 %2478 }
 0x223   :  { %17316 = vst [vmem:[#allocation331_spill] sm:$0xff] %v10083_v36  ;;  %17317 = vst [vmem:[#allocation332_spill] sm:$0xff] %v10087_v1  ;;  %v73_v36 = vld [vmem:[%s16476_s0 + $0x128] sm:$0xff] }
 0x224   :  { %17318 = vst [vmem:[#allocation333_spill] sm:$0xff] %v10091_v11  ;;  %17319 = vst [vmem:[#allocation334_spill] sm:$0xff] %v10096_v25  ;;  %v10120_v25 = vmul.f32 %v9331_v58, %v10070_v37  ;;  %v10139_v37 = vsel %vm378_vm0, %v340_v57, %v341_v45  ;;  %v10161_v57 = vpop.permute.xlu0 %2473  ;;  %3070 = vperm.xlu1 %7838, %v7293_v40   ;;  %v7294_v40 = vld [vmem:[%s16484_s8 + $0x840] sm:$0xff] }
 0x225   :  { %17320 = vst [vmem:[#allocation335_spill] sm:$0xff] %v10098_v30  ;;  %17321 = vst [vmem:[#allocation336_spill] sm:$0xff] %v10102_v55  ;;  %v72_v30 = vld [vmem:[%s16476_s0 + $0x120] sm:$0xff]  ;;  %v10151_v55 = vmul.f32 %v9185_v50, %v73_v36  ;;  %v10173_v36 = vmul.f32 %v9302_v42, %v10056_v31  ;;  %3075 = vperm.xlu0 %7837, %v7294_v40   ;;  %v7297_v40 = vld [vmem:[%s16484_s8 + $0x858] sm:$0xff] }
 0x226   :  { %17322 = vst [vmem:[#allocation337_spill] sm:$0xff] %v10106_v56  ;;  %17323 = vst [vmem:[#allocation338_spill] sm:$0xff] %v10110_v33  ;;  %v10146_v56 = vmul.f32 %v9185_v50, %v70_v14  ;;  %v10154_v48 = vmul.f32 %v9185_v50, %v72_v30  ;;  %v10165_v14 = vmul.f32 %v9331_v58, %v10110_v33  ;;  %v74_v30 = vld [vmem:[%s16476_s0 + $0x130] sm:$0xff] }
 0x227   :  { %17324 = vst [vmem:[#allocation339_spill] sm:$0xff] %v10120_v25  ;;  %17325 = vst [vmem:[#allocation340_spill] sm:$0xff] %v10125_v29  ;;  %v10180_v25 = vmul.f32 %v9331_v58, %v10139_v37  ;;  %v10192_v33 = vadd.f32 %v9209_v3, %v10125_v29 }
 0x228   :  { %17326 = vst [vmem:[#allocation341_spill] sm:$0xff] %v10135_v18  ;;  %17327 = vst [vmem:[#allocation342_spill] sm:$0xff] %v10139_v37  ;;  %v75_v18 = vld [vmem:[%s16476_s0 + $0x138] sm:$0xff]  ;;  %v10206_v37 = vsel %vm378_vm0, %v341_v45, %v342_v28  ;;  %v10210_v29 = vadd.f32 %v9209_v3, %v10146_v56 }
 0x229   :  { %17328 = vst [vmem:[#allocation343_spill] sm:$0xff] %v10143_v44  ;;  %17329 = vst [vmem:[#allocation344_spill] sm:$0xff] %v10146_v56  ;;  %v10213_v31 = vmul.f32 %v9185_v50, %v75_v18  ;;  %v10233_v18 = vadd.f32 %v9209_v3, %v10154_v48  ;;  %v10236_v56 = vmul.f32 %v9185_v50, %v74_v30 }
 0x22a   :  { %17330 = vst [vmem:[#allocation345_spill] sm:$0xff] %v10151_v55  ;;  %17331 = vst [vmem:[#allocation346_spill] sm:$0xff] %v10154_v48  ;;  %v10256_v30 = vmul.f32 %v9331_v58, %v10206_v37  ;;  %v10260_v48 = vmul.f32 %v9302_v42, %v10192_v33 }
 0x22b   :  { %17332 = vst [vmem:[#allocation347_spill] sm:$0xff] %v10159_v7  ;;  %17333 = vst [vmem:[#allocation348_spill] sm:$0xff] %v10161_v57  ;;  %v10184_v57 = vmul.f32 %v9331_v58, %v10143_v44  ;;  %v10188_v7 = vsel %vm378_vm0, %v342_v28, %v343_v27  ;;  %v10202_v44 = vmul.f32 %v9302_v42, %v10087_v1 }
 0x22c   :  { %17334 = vst [vmem:[#allocation349_spill] sm:$0xff] %v10165_v14  ;;  %17335 = vst [vmem:[#allocation350_spill] sm:$0xff] %v10169_v54  ;;  %v10229_v28 = vadd.f32 %v9209_v3, %v10151_v55  ;;  %v10238_v54 = vpop.permute.xlu1 %2488  ;;  %v10252_v55 = vsel %vm378_vm0, %v343_v27, %v344_v53  ;;  %v7295_v27 = vld [vmem:[%s16484_s8 + $0x848] sm:$0xff] }
 0x22d   :  { %17336 = vst [vmem:[#allocation351_spill] sm:$0xff] %v10173_v36  ;;  %17337 = vst [vmem:[#allocation352_spill] sm:$0xff] %v10180_v25  ;;  %v76_v36 = vld [vmem:[%s16476_s0 + $0x140] sm:$0xff]  ;;  %v10244_v25 = vmul.f32 %v9331_v58, %v10188_v7  ;;  %3080 = vperm.xlu1 %7838, %v7295_v27   ;;  %v83_v27 = vld [vmem:[%s16476_s0 + $0x178] sm:$0xff] }
 0x22e   :  { %17338 = vst [vmem:[#allocation353_spill] sm:$0xff] %v10184_v57  ;;  %17339 = vst [vmem:[#allocation354_spill] sm:$0xff] %v10188_v7  ;;  %v10240_v57 = vpop.permute.xlu0 %2483  ;;  %v78_v7 = vld [vmem:[%s16476_s0 + $0x150] sm:$0xff]  ;;  %v10387_v52 = vmul.f32 %v9185_v50, %v83_v27  ;;  %v7298_v27 = vld [vmem:[%s16484_s8 + $0x860] sm:$0xff] }
 0x22f   :  { %17340 = vst [vmem:[#allocation355_spill] sm:$0xff] %v10192_v33  ;;  %17341 = vst [vmem:[#allocation356_spill] sm:$0xff] %v10202_v44  ;;  %v17345_v44 = vrot.slane %v10087_v1, 7 }
 0x230   :  { %17342 = vst [vmem:[#allocation357_spill] sm:$0xff] %v10206_v37  ;;  %17343 = vst [vmem:[#allocation358_spill] sm:$0xff] %v10210_v29  ;;  %v10285_v37 = vadd.f32 %v9209_v3, %v10213_v31 }
 0x231   :  { %17344 = vst [vmem:[#allocation359_spill] sm:$0xff] %v10213_v31  ;;  %v10225_v45 = vsel %vm378_vm0, %v344_v53, %v17345_v44  ;;  %17347 = vst [vmem:[#allocation361_spill] sm:$0xff] %v10229_v28  ;;  %v10248_v44 = vmul.f32 %v9302_v42, %v10091_v11  ;;  %v79_v53 = vld [vmem:[%s16476_s0 + $0x158] sm:$0xff]  ;;  %v348_v11 = vrot.slane %v10233_v18, 7  ;;  %3090 = vperm.xlu1 %7838, %v7297_v40  }
 0x232   :  { %17346 = vst [vmem:[#allocation360_spill] sm:$0xff] %v10225_v45  ;;  %17348 = vst [vmem:[#allocation362_spill] sm:$0xff] %v10233_v18  ;;  %v10279_v24 = vmul.f32 %v9331_v58, %v10225_v45  ;;  %v349_v45 = vrot.slane %v10229_v28, 7  ;;  %v10302_v31 = vpop.permute.xlu0 %2493 }
 0x233   :  { %17349 = vst [vmem:[#allocation363_spill] sm:$0xff] %v10236_v56  ;;  %17350 = vst [vmem:[#allocation364_spill] sm:$0xff] %v10238_v54  ;;  %v10266_v54 = vmul.f32 %v9185_v50, %v76_v36  ;;  %v347_v36 = vrot.slane %v10192_v33, 7  ;;  %v10300_v33 = vpop.permute.xlu1 %2498 }
 0x234   :  { %17351 = vst [vmem:[#allocation365_spill] sm:$0xff] %v10240_v57  ;;  %17352 = vst [vmem:[#allocation366_spill] sm:$0xff] %v10244_v25  ;;  %v10263_v57 = vmul.f32 %v9185_v50, %v77_v49  ;;  %v346_v49 = vrot.slane %v10210_v29, 7 }
 0x235   :  { %17353 = vst [vmem:[#allocation367_spill] sm:$0xff] %v10248_v44  ;;  %17354 = vst [vmem:[#allocation368_spill] sm:$0xff] %v10252_v55  ;;  %v10298_v44 = vadd.f32 %v9209_v3, %v10236_v56  ;;  %v81_v56 = vld [vmem:[%s16476_s0 + $0x168] sm:$0xff] }
 0x236   :  { %17355 = vst [vmem:[#allocation369_spill] sm:$0xff] %v10256_v30  ;;  %17356 = vst [vmem:[#allocation370_spill] sm:$0xff] %v10260_v48  ;;  %v10292_v48 = vmul.f32 %v9331_v58, %v10252_v55  ;;  %v10310_v55 = vmul.f32 %v9302_v42, %v10229_v28  ;;  %v10327_v28 = vadd.f32 %v9209_v3, %v10263_v57 }
 0x237   :  { %17357 = vst [vmem:[#allocation371_spill] sm:$0xff] %v10263_v57  ;;  %17358 = vst [vmem:[#allocation372_spill] sm:$0xff] %v10266_v54  ;;  %v7296_v57 = vld [vmem:[%s16484_s8 + $0x850] sm:$0xff]  ;;  %v10365_v30 = vsel %vm378_vm0, %v348_v11, %v349_v45  ;;  %v10369_v25 = vmul.f32 %v9185_v50, %v81_v56 }
 0x238   :  { %17359 = vst [vmem:[#allocation373_spill] sm:$0xff] %v10279_v24  ;;  %17360 = vst [vmem:[#allocation374_spill] sm:$0xff] %v10285_v37  ;;  %v10306_v24 = vmul.f32 %v9302_v42, %v10210_v29  ;;  %v10334_v29 = vmul.f32 %v9185_v50, %v78_v7  ;;  %3085 = vperm.xlu0 %7837, %v7296_v57   ;;  %v353_v56 = vrot.slane %v10327_v28, 7 }
 0x239   :  { %17361 = vst [vmem:[#allocation375_spill] sm:$0xff] %v10292_v48  ;;  %17362 = vst [vmem:[#allocation376_spill] sm:$0xff] %v10298_v44  ;;  %v10313_v48 = vmul.f32 %v9185_v50, %v79_v53  ;;  %v10331_v53 = vadd.f32 %v9209_v3, %v10266_v54  ;;  %v17373_v54 = vrot.slane %v10087_v1, 7  ;;  %v350_v1 = vrot.slane %v10298_v44, 7 }
 0x23a   :  { %17363 = vst [vmem:[#allocation377_spill] sm:$0xff] %v10300_v33  ;;  %17364 = vst [vmem:[#allocation378_spill] sm:$0xff] %v10302_v31  ;;  %v80_v33 = vld [vmem:[%s16476_s0 + $0x160] sm:$0xff]  ;;  %v10323_v31 = vmul.f32 %v9302_v42, %v10233_v18  ;;  %v10347_v18 = vsel %vm378_vm0, %v346_v49, %v347_v36 }
 0x23b   :  { %17365 = vst [vmem:[#allocation379_spill] sm:$0xff] %v10306_v24  ;;  %17366 = vst [vmem:[#allocation380_spill] sm:$0xff] %v10310_v55  ;;  %v10353_v7 = vsel %vm378_vm0, %v17373_v54, %v346_v49  ;;  %v351_v55 = vrot.slane %v10285_v37, 7  ;;  %v82_v24 = vld [vmem:[%s16476_s0 + $0x170] sm:$0xff]  ;;  %v10372_v54 = vmul.f32 %v9185_v50, %v80_v33  ;;  %v10374_v49 = vpop.permute.xlu1 %2508  ;;  %v10384_v14 = vadd.f32 %v9209_v3, %v10313_v48 }
 0x23c   :  { %17367 = vst [vmem:[#allocation381_spill] sm:$0xff] %v10313_v48  ;;  %17368 = vst [vmem:[#allocation382_spill] sm:$0xff] %v10323_v31  ;;  %v10357_v31 = vmul.f32 %v9302_v42, %v10285_v37  ;;  %v10380_v37 = vsel %vm378_vm0, %v347_v36, %v348_v11  ;;  %v352_v33 = vrot.slane %v10331_v53, 7  ;;  %v10396_v11 = vmul.f32 %v9185_v50, %v82_v24  ;;  %v7299_v36 = vld [vmem:[%s16484_s8 + $0x868] sm:$0xff] }
 0x23d   :  { %17369 = vst [vmem:[#allocation383_spill] sm:$0xff] %v10327_v28  ;;  %17370 = vst [vmem:[#allocation384_spill] sm:$0xff] %v10331_v53  ;;  %v10406_v57 = vmul.f32 %v9331_v58, %v10347_v18  ;;  %v10410_v40 = vmul.f32 %v9331_v58, %v10353_v7  ;;  %v10414_v24 = vmul.f32 %v9331_v58, %v10365_v30  ;;  %3100 = vperm.xlu1 %7838, %v7299_v36   ;;  %v7301_v36 = vld [vmem:[%s16484_s8 + $0x878] sm:$0xff] }
 0x23e   :  { %17371 = vst [vmem:[#allocation385_spill] sm:$0xff] %v10334_v29  ;;  %17372 = vst [vmem:[#allocation386_spill] sm:$0xff] %v10347_v18  ;;  %v10418_v48 = vmul.f32 %v9302_v42, %v10298_v44  ;;  %3095 = vperm.xlu0 %7837, %v7298_v27   ;;  %v7300_v27 = vld [vmem:[%s16484_s8 + $0x870] sm:$0xff] }
 0x23f   :  { %17374 = vst [vmem:[#allocation387_spill] sm:$0xff] %v10353_v7  ;;  %17375 = vst [vmem:[#allocation388_spill] sm:$0xff] %v10357_v31  ;;  %v10376_v31 = vpop.permute.xlu0 %2503  ;;  %v10430_v7 = vadd.f32 %v9209_v3, %v10369_v25  ;;  %v10436_v18 = vpop.permute.xlu1 %2518 }
 0x240   :  { %17376 = vst [vmem:[#allocation389_spill] sm:$0xff] %v10365_v30  ;;  %17377 = vst [vmem:[#allocation390_spill] sm:$0xff] %v10369_v25  ;;  %v10434_v30 = vadd.f32 %v9209_v3, %v10372_v54  ;;  %v10451_v25 = vadd.f32 %v9209_v3, %v10387_v52 }
 0x241   :  { %17378 = vst [vmem:[#allocation391_spill] sm:$0xff] %v10372_v54  ;;  %17379 = vst [vmem:[#allocation392_spill] sm:$0xff] %v10374_v49  ;;  %v10426_v49 = vsel %vm378_vm0, %v349_v45, %v350_v1  ;;  %v355_v45 = vrot.slane %v10384_v14, 7  ;;  %v85_v54 = vld [vmem:[%s16476_s0 + $0x188] sm:$0xff]  ;;  %3110 = vperm.xlu1 %7838, %v7301_v36   ;;  %v10542_v36 = vmul.f32 %v9302_v42, %v10430_v7 }
 0x242   :  { %17380 = vst [vmem:[#allocation393_spill] sm:$0xff] %v10376_v31  ;;  %17381 = vst [vmem:[#allocation394_spill] sm:$0xff] %v10380_v37  ;;  %v10393_v31 = vadd.f32 %v9209_v3, %v10334_v29  ;;  %v10422_v29 = vsel %vm378_vm0, %v350_v1, %v351_v55  ;;  %v10446_v1 = vmul.f32 %v9302_v42, %v10327_v28  ;;  %v84_v28 = vld [vmem:[%s16476_s0 + $0x180] sm:$0xff]  ;;  %3105 = vperm.xlu0 %7837, %v7300_v27  }
 0x243   :  { %17382 = vst [vmem:[#allocation395_spill] sm:$0xff] %v10384_v14  ;;  %17383 = vst [vmem:[#allocation396_spill] sm:$0xff] %v10387_v52  ;;  %v10438_v44 = vpop.permute.xlu0 %2513  ;;  %v10467_v52 = vadd.f32 %v9209_v3, %v10396_v11 }
 0x244   :  { %17384 = vst [vmem:[#allocation397_spill] sm:$0xff] %v10393_v31  ;;  %17385 = vst [vmem:[#allocation398_spill] sm:$0xff] %v10396_v11  ;;  %v10488_v11 = vmul.f32 %v9331_v58, %v10426_v49 }
 0x245   :  { %17386 = vst [vmem:[#allocation399_spill] sm:$0xff] %v10406_v57  ;;  %17387 = vst [vmem:[#allocation400_spill] sm:$0xff] %v10410_v40 }
 0x246   :  { %17388 = vst [vmem:[#allocation401_spill] sm:$0xff] %v10414_v24  ;;  %17389 = vst [vmem:[#allocation402_spill] sm:$0xff] %v10418_v48  ;;  %v10442_v48 = vmul.f32 %v9331_v58, %v10380_v37  ;;  %v354_v37 = vrot.slane %v10393_v31, 7  ;;  %v356_v24 = vrot.slane %v10434_v30, 7 }
 0x247   :  { %17390 = vst [vmem:[#allocation403_spill] sm:$0xff] %v10422_v29  ;;  %17391 = vst [vmem:[#allocation404_spill] sm:$0xff] %v10426_v49  ;;  %v87_v49 = vld [vmem:[%s16476_s0 + $0x198] sm:$0xff] }
 0x248   :  { %17392 = vst [vmem:[#allocation405_spill] sm:$0xff] %v10430_v7  ;;  %17393 = vst [vmem:[#allocation406_spill] sm:$0xff] %v10434_v30 }
 0x249   :  { %17394 = vst [vmem:[#allocation407_spill] sm:$0xff] %v10436_v18  ;;  %17395 = vst [vmem:[#allocation408_spill] sm:$0xff] %v10438_v44  ;;  %v10458_v44 = vsel %vm378_vm0, %v352_v33, %v353_v56  ;;  %v10462_v18 = vsel %vm378_vm0, %v351_v55, %v352_v33  ;;  %v10480_v55 = vmul.f32 %v9331_v58, %v10422_v29  ;;  %v357_v29 = vrot.slane %v10430_v7, 7 }
 0x24a   :  { %17396 = vst [vmem:[#allocation409_spill] sm:$0xff] %v10442_v48  ;;  %17397 = vst [vmem:[#allocation410_spill] sm:$0xff] %v10446_v1  ;;  %v10484_v33 = vmul.f32 %v9302_v42, %v10331_v53  ;;  %v10492_v1 = vmul.f32 %v9302_v42, %v10384_v14  ;;  %v10496_v48 = vmul.f32 %v9302_v42, %v10393_v31  ;;  %v86_v14 = vld [vmem:[%s16476_s0 + $0x190] sm:$0xff]  ;;  %v10509_v53 = vpop.permute.xlu1 %2528 }
 0x24b   :  { %17398 = vst [vmem:[#allocation411_spill] sm:$0xff] %v10451_v25  ;;  %17399 = vst [vmem:[#allocation412_spill] sm:$0xff] %v10458_v44  ;;  %v10515_v31 = vmul.f32 %v9331_v58, %v10458_v44  ;;  %v10552_v27 = vmul.f32 %v9185_v50, %v86_v14  ;;  %v89_v44 = vld [vmem:[%s16476_s0 + $0x1a8] sm:$0xff]  ;;  %v10562_v7 = vmul.f32 %v9302_v42, %v10451_v25 }
 0x24c   :  { %17400 = vst [vmem:[#allocation413_spill] sm:$0xff] %v10462_v18  ;;  %17401 = vst [vmem:[#allocation414_spill] sm:$0xff] %v10467_v52  ;;  %v10570_v14 = vsel %vm378_vm0, %v355_v45, %v356_v24 }
 0x24d   :  { %17402 = vst [vmem:[#allocation415_spill] sm:$0xff] %v10480_v55  ;;  %17403 = vst [vmem:[#allocation416_spill] sm:$0xff] %v10484_v33  ;;  %v10501_v55 = vmul.f32 %v9185_v50, %v85_v54  ;;  %v10519_v54 = vmul.f32 %v9331_v58, %v10462_v18  ;;  %v10526_v33 = vsel %vm378_vm0, %v354_v37, %v355_v45  ;;  %v7303_v18 = vld [vmem:[%s16484_s8 + $0x888] sm:$0xff]  ;;  %v91_v45 = vld [vmem:[%s16476_s0 + $0x1b8] sm:$0xff] }
 0x24e   :  { %17404 = vst [vmem:[#allocation417_spill] sm:$0xff] %v10488_v11  ;;  %17405 = vst [vmem:[#allocation418_spill] sm:$0xff] %v10492_v1  ;;  %v10511_v1 = vpop.permute.xlu0 %2523  ;;  %3120 = vperm.xlu1 %7838, %v7303_v18   ;;  %v92_v18 = vld [vmem:[%s16476_s0 + $0x1c0] sm:$0xff] }
 0x24f   :  { %17406 = vst [vmem:[#allocation419_spill] sm:$0xff] %v10496_v48  ;;  %17407 = vst [vmem:[#allocation420_spill] sm:$0xff] %v10501_v55  ;;  %v10522_v48 = vmul.f32 %v9185_v50, %v84_v28  ;;  %v7302_v28 = vld [vmem:[%s16484_s8 + $0x880] sm:$0xff] }
 0x250   :  { %17408 = vst [vmem:[#allocation421_spill] sm:$0xff] %v10509_v53  ;;  %17409 = vst [vmem:[#allocation422_spill] sm:$0xff] %v10511_v1  ;;  %v10530_v1 = vsel %vm378_vm0, %v353_v56, %v354_v37  ;;  %v358_v53 = vrot.slane %v10467_v52, 7  ;;  %v10546_v37 = vmul.f32 %v9302_v42, %v10434_v30  ;;  %v10549_v56 = vmul.f32 %v9185_v50, %v87_v49 }
 0x251   :  { %17410 = vst [vmem:[#allocation423_spill] sm:$0xff] %v10515_v31  ;;  %17411 = vst [vmem:[#allocation424_spill] sm:$0xff] %v10519_v54  ;;  %v88_v54 = vld [vmem:[%s16476_s0 + $0x1a0] sm:$0xff]  ;;  %v10566_v30 = vsel %vm378_vm0, %v356_v24, %v357_v29  ;;  %v10574_v49 = vadd.f32 %v9209_v3, %v10501_v55  ;;  %v10582_v31 = vmul.f32 %v9331_v58, %v10526_v33  ;;  %v90_v55 = vld [vmem:[%s16476_s0 + $0x1b0] sm:$0xff]  ;;  %3115 = vperm.xlu0 %7837, %v7302_v28  }
 0x252   :  { %17412 = vst [vmem:[#allocation425_spill] sm:$0xff] %v10522_v48  ;;  %17413 = vst [vmem:[#allocation426_spill] sm:$0xff] %v10526_v33  ;;  %v10590_v24 = vadd.f32 %v9209_v3, %v10522_v48  ;;  %v17429_v48 = vrot.slane %v10451_v25, 7  ;;  %v10612_v33 = vmul.f32 %v9185_v50, %v89_v44  ;;  %v7305_v28 = vld [vmem:[%s16484_s8 + $0x898] sm:$0xff]  ;;  %v10636_v44 = vadd.f32 %v9209_v3, %v10549_v56 }
 0x253   :  { %17414 = vst [vmem:[#allocation427_spill] sm:$0xff] %v10530_v1  ;;  %17415 = vst [vmem:[#allocation428_spill] sm:$0xff] %v10542_v36  ;;  %v10578_v36 = vpop.permute.xlu0 %2533  ;;  %3130 = vperm.xlu1 %7838, %v7305_v28   ;;  %v7306_v28 = vld [vmem:[%s16484_s8 + $0x8a0] sm:$0xff] }
 0x254   :  { %17416 = vst [vmem:[#allocation429_spill] sm:$0xff] %v10546_v37  ;;  %17417 = vst [vmem:[#allocation430_spill] sm:$0xff] %v10549_v56  ;;  %v10576_v37 = vpop.permute.xlu1 %2538 }
 0x255   :  { %17418 = vst [vmem:[#allocation431_spill] sm:$0xff] %v10552_v27  ;;  %17419 = vst [vmem:[#allocation432_spill] sm:$0xff] %v10562_v7  ;;  %v10586_v7 = vmul.f32 %v9331_v58, %v10530_v1  ;;  %v10609_v1 = vsel %vm378_vm0, %v358_v53, %v17429_v48  ;;  %v10628_v48 = vmul.f32 %v9331_v58, %v10566_v30 }
 0x256   :  { %17420 = vst [vmem:[#allocation433_spill] sm:$0xff] %v10566_v30  ;;  %17421 = vst [vmem:[#allocation434_spill] sm:$0xff] %v10570_v14  ;;  %v10648_v30 = vsel %vm378_vm0, %v357_v29, %v358_v53  ;;  %v10669_v53 = vmul.f32 %v9331_v58, %v10609_v1 }
 0x257   :  { %17422 = vst [vmem:[#allocation435_spill] sm:$0xff] %v10574_v49  ;;  %17423 = vst [vmem:[#allocation436_spill] sm:$0xff] %v10576_v37  ;;  %v10603_v37 = vmul.f32 %v9302_v42, %v10467_v52  ;;  %v7304_v52 = vld [vmem:[%s16484_s8 + $0x890] sm:$0xff]  ;;  %v10665_v29 = vpop.permute.xlu0 %2543 }
 0x258   :  { %17424 = vst [vmem:[#allocation437_spill] sm:$0xff] %v10578_v36  ;;  %17425 = vst [vmem:[#allocation438_spill] sm:$0xff] %v10582_v31  ;;  %v93_v36 = vld [vmem:[%s16476_s0 + $0x1c8] sm:$0xff]  ;;  %v96_v31 = vld [vmem:[%s16476_s0 + $0x1e0] sm:$0xff]  ;;  %3125 = vperm.xlu0 %7837, %v7304_v52  }
 0x259   :  { %17426 = vst [vmem:[#allocation439_spill] sm:$0xff] %v10586_v7  ;;  %17427 = vst [vmem:[#allocation440_spill] sm:$0xff] %v10590_v24  ;;  %v10615_v7 = vmul.f32 %v9185_v50, %v88_v54  ;;  %v10632_v50 = vmul.f32 %v9331_v58, %v10570_v14  ;;  %v10640_v54 = vadd.f32 %v9209_v3, %v10552_v27  ;;  %v7991_v14 = vld [vmem:[%s16477_s1] ss:$0 sm:$0xff]  ;;  %v95_v3 = vld [vmem:[%s16476_s0 + $0x1d8] sm:$0xff] }
 0x25a   :  { %17428 = vst [vmem:[#allocation441_spill] sm:$0xff] %v10603_v37  ;;  %17430 = vst [vmem:[#allocation442_spill] sm:$0xff] %v10609_v1  ;;  %v10644_v37 = vmul.f32 %v9302_v42, %v10574_v49  ;;  %v10655_v56 = vmul.f32 %v7991_v14, %v90_v55  ;;  %v94_v27 = vld [vmem:[%s16476_s0 + $0x1d0] sm:$0xff]  ;;  %v10672_v55 = vmul.f32 %v7991_v14, %v93_v36  ;;  %v7992_v1 = vld [vmem:[%s16477_s1 + $0x1] ss:$0 sm:$0xff] }
 0x25b   :  { %17431 = vst [vmem:[#allocation443_spill] sm:$0xff] %v10612_v33  ;;  %17432 = vst [vmem:[#allocation444_spill] sm:$0xff] %v10615_v7  ;;  %v10688_v36 = vadd.f32 %v7992_v1, %v10612_v33  ;;  %v7307_v52 = vld [vmem:[%s16484_s8 + $0x8a8] sm:$0xff]  ;;  %v10707_v33 = vmul.f32 %v9331_v58, %v10648_v30  ;;  %v10715_v40 = vmul.f32 %v7991_v14, %v96_v31  ;;  %v10719_v23 = vpop.permute.xlu0 %2553 }
 0x25c   :  { %17433 = vst [vmem:[#allocation445_spill] sm:$0xff] %v10628_v48  ;;  %17434 = vst [vmem:[#allocation446_spill] sm:$0xff] %v10632_v50  ;;  %v10653_v50 = vmul.f32 %v7991_v14, %v91_v45  ;;  %v360_v45 = vrot.slane %v10590_v24, 7  ;;  %v10674_v48 = vmul.f32 %v7991_v14, %v92_v18  ;;  %v10691_v18 = vadd.f32 %v7992_v1, %v10615_v7 }
 0x25d   :  { %17435 = vst [vmem:[#allocation447_spill] sm:$0xff] %v10636_v44  ;;  %17436 = vst [vmem:[#allocation448_spill] sm:$0xff] %v10640_v54  ;;  %v10713_v11 = vadd.f32 %v7992_v1, %v10655_v56  ;;  %3140 = vperm.xlu1 %7838, %v7307_v52   ;;  %3135 = vperm.xlu0 %7837, %v7306_v28   ;;  %v10735_v31 = vmul.f32 %v9302_v42, %v10636_v44  ;;  %v7308_v52 = vld [vmem:[%s16484_s8 + $0x8b0] sm:$0xff] }
 0x25e   :  { %17437 = vst [vmem:[#allocation449_spill] sm:$0xff] %v10644_v37  ;;  %17438 = vst [vmem:[#allocation450_spill] sm:$0xff] %v10648_v30  ;;  %v10663_v37 = vpop.permute.xlu1 %2548  ;;  %v10710_v7 = vadd.f32 %v7992_v1, %v10653_v50  ;;  %v10728_v30 = vadd.f32 %v7992_v1, %v10672_v55  ;;  %v10751_v28 = vmul.f32 %v9302_v42, %v10640_v54 }
 0x25f   :  { %17439 = vst [vmem:[#allocation451_spill] sm:$0xff] %v10653_v50  ;;  %17440 = vst [vmem:[#allocation452_spill] sm:$0xff] %v10655_v56  ;;  %v10731_v50 = vadd.f32 %v7992_v1, %v10674_v48  ;;  %v364_v56 = vrot.slane %v10691_v18, 7 }
 0x260   :  { %17441 = vst [vmem:[#allocation453_spill] sm:$0xff] %v10663_v37  ;;  %17442 = vst [vmem:[#allocation454_spill] sm:$0xff] %v10665_v29  ;;  %v10681_v37 = vmul.f32 %v9302_v42, %v10590_v24  ;;  %v361_v29 = vrot.slane %v10574_v49, 7  ;;  %v362_v24 = vrot.slane %v10640_v54, 7  ;;  %v363_v49 = vrot.slane %v10636_v44, 7 }
 0x261   :  { %17443 = vst [vmem:[#allocation455_spill] sm:$0xff] %v10669_v53  ;;  %17444 = vst [vmem:[#allocation456_spill] sm:$0xff] %v10672_v55  ;;  %v10703_v53 = vmul.f32 %v7991_v14, %v94_v27  ;;  %v7309_v55 = vld [vmem:[%s16484_s8 + $0x8b8] sm:$0xff]  ;;  %v366_v44 = vrot.slane %v10713_v11, 7  ;;  %v10770_v42 = vadd.f32 %v7992_v1, %v10715_v40  ;;  %3145 = vperm.xlu0 %7837, %v7308_v52   ;;  %v7311_v52 = vld [vmem:[%s16484_s8 + $0x8c8] sm:$0xff] }
 0x262   :  { %17445 = vst [vmem:[#allocation457_spill] sm:$0xff] %v10674_v48  ;;  %17446 = vst [vmem:[#allocation458_spill] sm:$0xff] %v10681_v37  ;;  %v10701_v37 = vmul.f32 %v7991_v14, %v95_v3  ;;  %v10717_v57 = vpop.permute.xlu1 %2558  ;;  %v17456_v3 = vrot.slane %v10451_v25, 7  ;;  %v10739_v14 = vsel %vm378_vm0, %v360_v45, %v361_v29  ;;  %3150 = vperm.xlu1 %7838, %v7309_v55  }
 0x263   :  { %17447 = vst [vmem:[#allocation459_spill] sm:$0xff] %v10688_v36  ;;  %17448 = vst [vmem:[#allocation460_spill] sm:$0xff] %v10691_v18 }
 0x264   :  { %17449 = vst [vmem:[#allocation461_spill] sm:$0xff] %v10701_v37  ;;  %17450 = vst [vmem:[#allocation462_spill] sm:$0xff] %v10703_v53  ;;  %v10725_v27 = vsel %vm378_vm0, %v17456_v3, %v360_v45  ;;  %v365_v3 = vrot.slane %v10688_v36, 7  ;;  %v10755_v45 = vsel %vm378_vm0, %v362_v24, %v363_v49  ;;  %v10758_v48 = vadd.f32 %v7992_v1, %v10701_v37 }
 0x265   :  { %17451 = vst [vmem:[#allocation463_spill] sm:$0xff] %v10710_v7  ;;  %17452 = vst [vmem:[#allocation464_spill] sm:$0xff] %v10713_v11  ;;  %v10778_v37 = vmul.f32 %v9331_v58, %v10739_v14 }
 0x266   :  { %17453 = vst [vmem:[#allocation465_spill] sm:$0xff] %v10715_v40  ;;  %17454 = vst [vmem:[#allocation466_spill] sm:$0xff] %v10717_v57  ;;  %v10765_v57 = vsel %vm378_vm0, %v361_v29, %v362_v24  ;;  %v10772_v54 = vpop.permute.xlu1 %2568  ;;  %v368_v24 = vrot.slane %v10731_v50, 7  ;;  %v369_v29 = vrot.slane %v10728_v30, 7  ;;  %v10803_v55 = vsel %vm378_vm0, %v364_v56, %v365_v3  ;;  %3160 = vperm.xlu1 %7838, %v7311_v52  }
 0x267   :  { %17455 = vst [vmem:[#allocation467_spill] sm:$0xff] %v10719_v23  ;;  %17457 = vst [vmem:[#allocation468_spill] sm:$0xff] %v10725_v27  ;;  %v10761_v23 = vadd.f32 %v7992_v1, %v10703_v53  ;;  %v10782_v53 = vmul.f32 %v9331_v58, %v10725_v27  ;;  %v7993_v1 = vld [vmem:[%s16479_s3 + $0x5] ss:$0 sm:$0xff]  ;;  %v10829_v25 = vsel %vm378_vm0, %v365_v3, %v366_v44 }
 0x268   :  { %17458 = vst [vmem:[#allocation469_spill] sm:$0xff] %v10728_v30  ;;  %17459 = vst [vmem:[#allocation470_spill] sm:$0xff] %v10731_v50  ;;  %v10790_v40 = vmul.f32 %v7993_v1, %v10688_v36  ;;  %v10799_v27 = vmul.f32 %v7993_v1, %v10691_v18  ;;  %v371_v36 = vrot.slane %v10758_v48, 7  ;;  %v10850_v3 = vmul.f32 %v7993_v1, %v10728_v30 }
 0x269   :  { %17460 = vst [vmem:[#allocation471_spill] sm:$0xff] %v10735_v31  ;;  %17461 = vst [vmem:[#allocation472_spill] sm:$0xff] %v10739_v14  ;;  %v367_v31 = vrot.slane %v10710_v7, 7  ;;  %v7994_v14 = vld [vmem:[%s16479_s3] ss:$0 sm:$0xff]  ;;  %v370_v18 = vrot.slane %v10761_v23, 7 }
 0x26a   :  { %17462 = vst [vmem:[#allocation473_spill] sm:$0xff] %v10751_v28  ;;  %17463 = vst [vmem:[#allocation474_spill] sm:$0xff] %v10755_v45  ;;  %v10774_v28 = vpop.permute.xlu0 %2563  ;;  %v10796_v58 = vmul.f32 %v7994_v14, %v10755_v45  ;;  %v10816_v45 = vsel %vm378_vm0, %v363_v49, %v364_v56  ;;  %v10837_v49 = vmul.f32 %v7994_v14, %v10803_v55 }
 0x26b   :  { %17464 = vst [vmem:[#allocation475_spill] sm:$0xff] %v10758_v48  ;;  %17465 = vst [vmem:[#allocation476_spill] sm:$0xff] %v10761_v23 }
 0x26c   :  { %17466 = vst [vmem:[#allocation477_spill] sm:$0xff] %v10765_v57  ;;  %17467 = vst [vmem:[#allocation478_spill] sm:$0xff] %v10770_v42 }
 0x26d   :  { %17468 = vst [vmem:[#allocation479_spill] sm:$0xff] %v10772_v54  ;;  %17469 = vst [vmem:[#allocation480_spill] sm:$0xff] %v10774_v28  ;;  %v7310_v28 = vld [vmem:[%s16484_s8 + $0x8c0] sm:$0xff]  ;;  %v10812_v54 = vmul.f32 %v7994_v14, %v10765_v57  ;;  %v372_v57 = vrot.slane %v10770_v42, 7 }
 0x26e   :  { %17470 = vst [vmem:[#allocation481_spill] sm:$0xff] %v10790_v40  ;;  %17471 = vst [vmem:[#allocation482_spill] sm:$0xff] %v10799_v27  ;;  %v10821_v27 = vmul.f32 %v7993_v1, %v10710_v7  ;;  %v10825_v40 = vsel %vm378_vm0, %v366_v44, %v367_v31  ;;  %v10834_v56 = vpop.permute.xlu0 %2573  ;;  %v10840_v7 = vmul.f32 %v7993_v1, %v10713_v11  ;;  %3155 = vperm.xlu0 %7837, %v7310_v28   ;;  %v7312_v28 = vld [vmem:[%s16484_s8 + $0x8d0] sm:$0xff] }
 0x26f   :  { %17472 = vst [vmem:[#allocation483_spill] sm:$0xff] %v10803_v55  ;;  %17473 = vst [vmem:[#allocation484_spill] sm:$0xff] %v10812_v54  ;;  %v10832_v54 = vpop.permute.xlu1 %2578  ;;  %v10847_v44 = vmul.f32 %v7994_v14, %v10816_v45  ;;  %v10857_v55 = vsel %vm378_vm0, %v367_v31, %v368_v24  ;;  %v10866_v52 = vmul.f32 %v7994_v14, %v10825_v40 }
 0x270   :  { %17474 = vst [vmem:[#allocation485_spill] sm:$0xff] %v10816_v45  ;;  %17475 = vst [vmem:[#allocation486_spill] sm:$0xff] %v10821_v27  ;;  %v10844_v27 = vsel %vm378_vm0, %v368_v24, %v369_v29  ;;  %v10869_v45 = vmul.f32 %v7994_v14, %v10829_v25  ;;  %v10877_v31 = vsel %vm378_vm0, %v369_v29, %v370_v18 }
 0x271   :  { %17476 = vst [vmem:[#allocation487_spill] sm:$0xff] %v10825_v40  ;;  %17477 = vst [vmem:[#allocation488_spill] sm:$0xff] %v10829_v25  ;;  %v10880_v24 = vmul.f32 %v7993_v1, %v10758_v48  ;;  %v10883_v30 = vmul.f32 %v7994_v14, %v10844_v27  ;;  %v10886_v40 = vmul.f32 %v7993_v1, %v10761_v23  ;;  %v17486_v25 = vrot.slane %v9270_v19, 7  ;;  %v10911_v23 = vld [vmem:[%s16479_s3 + $0x1] ss:$0 sm:$0xff] }
 0x272   :  { %17478 = vst [vmem:[#allocation489_spill] sm:$0xff] %v10832_v54  ;;  %17479 = vst [vmem:[#allocation490_spill] sm:$0xff] %v10834_v56  ;;  %v10853_v56 = vmul.f32 %v7993_v1, %v10731_v50  ;;  %v7313_v54 = vld [vmem:[%s16484_s8 + $0x8d8] sm:$0xff]  ;;  %v10873_v50 = vsel %vm378_vm0, %v370_v18, %v371_v36  ;;  %v10899_v18 = vmul.f32 %v7994_v14, %v10857_v55  ;;  %3165 = vperm.xlu0 %7837, %v7312_v28  }
 0x273   :  { %17480 = vst [vmem:[#allocation491_spill] sm:$0xff] %v10844_v27  ;;  %17481 = vst [vmem:[#allocation492_spill] sm:$0xff] %v10850_v3  ;;  %v10892_v11 = vsel %vm378_vm0, %v372_v57, %v17486_v25  ;;  %v10896_v3 = vpop.permute.xlu0 %2583  ;;  %v10902_v29 = vmul.f32 %v7993_v1, %v9270_v19  ;;  %v10906_v27 = vsel %vm378_vm0, %v371_v36, %v372_v57  ;;  %3170 = vperm.xlu1 %7838, %v7313_v54   ;;  %v7315_v57 = vld [vmem:[%s16484_s8 + $0x8e8] sm:$0xff]  ;;  %v7314_v54 = vld [vmem:[%s16484_s8 + $0x8e0] sm:$0xff] }
 0x274   :  { %17482 = vst [vmem:[#allocation493_spill] sm:$0xff] %v10853_v56  ;;  %17483 = vst [vmem:[#allocation494_spill] sm:$0xff] %v10857_v55  ;;  %v10894_v56 = vpop.permute.xlu1 %2588  ;;  %v898_v25 = vmul.f32 %v8356_v4, %v9368_v43  ;;  %v896_v55 = vmul.f32 %v8358_v5, %v9450_v47  ;;  %v899_v4 = vmul.f32 %v8366_v8, %v9454_v15 }
 0x275   :  { %17484 = vst [vmem:[#allocation495_spill] sm:$0xff] %v10873_v50  ;;  %17485 = vst [vmem:[#allocation496_spill] sm:$0xff] %v10877_v31  ;;  %v897_v5 = vmul.f32 %v8368_v9, %v9458_v61  ;;  %v10934_v43 = vmul.f32 %v7993_v1, %v10770_v42  ;;  %v10937_v47 = vmul.f32 %v7994_v14, %v10892_v11 }
 0x276   :  { %17487 = vst [vmem:[#allocation497_spill] sm:$0xff] %v10892_v11  ;;  %17488 = vst [vmem:[#allocation498_spill] sm:$0xff] %v10894_v56  ;;  %v10921_v56 = vmul.f32 %v7994_v14, %v10877_v31  ;;  %v10940_v36 = vmul.f32 %v7993_v1, %v9242_v35  ;;  %v10943_v28 = vmul.f32 %v7993_v1, %v9282_v10  ;;  %3175 = vperm.xlu0 %7837, %v7314_v54  }
 0x277   :  { %17489 = vst [vmem:[#allocation499_spill] sm:$0xff] %v10896_v3  ;;  %17490 = vst [vmem:[#allocation500_spill] sm:$0xff] %v10906_v27  ;;  %v10918_v3 = vmul.f32 %v7994_v14, %v10873_v50  ;;  %v10946_v31 = vmul.f32 %v7994_v14, %v10906_v27  ;;  %v10950_v8 = vmul.f32 %v10911_v23, %v9242_v35  ;;  %v10954_v15 = vpop.permute.xlu0 %2593  ;;  %3180 = vperm.xlu1 %7838, %v7315_v57   ;;  %v17500_v57 = vld [vmem:[#allocation215_spill] sm:$0xff] }
 0x278   :  { %v10952_v9 = vpop.permute.xlu1 %2598  ;;  %17492 = vst [vmem:[#allocation502_spill] sm:$0xff] %v10954_v15  ;;  %v901_v61 = vmul.f32 %v8376_v12, %v9472_v39  ;;  %v900_v11 = vmul.f32 %v8378_v13, %v9495_v41  ;;  %v10962_v1 = vmul.f32 %v10911_v23, %v9282_v10  ;;  %v10965_v14 = vadd.f32 %v898_v25, %v9364_v22  ;;  %v7317_v13 = vld [vmem:[%s16484_s8 + $0x8f8] sm:$0xff]  ;;  %v7316_v41 = vld [vmem:[%s16484_s8 + $0x8f0] sm:$0xff] }
 0x279   :  { %17491 = vst [vmem:[#allocation501_spill] sm:$0xff] %v10952_v9  ;;  %v10968_v27 = vadd.f32 %v896_v55, %v9372_v46  ;;  %v903_v50 = vmul.f32 %v8386_v16, %v9536_v6  ;;  %v10974_v12 = vmul.f32 %v10911_v23, %v9286_v2  ;;  %v10983_v22 = vadd.f32 %v899_v4, %v9388_v26  ;;  %v17506_v4 = vld [vmem:[#allocation239_spill] sm:$0xff] }
 0x27a   :  { %17493 = vst [vmem:[#allocation503_spill] sm:$0xff] %v10965_v14  ;;  %v10986_v46 = vadd.f32 %v897_v5, %v9430_v62  ;;  %v902_v16 = vmul.f32 %v8388_v17, %v9556_v0  ;;  %v10992_v39 = vmul.f32 %v10911_v23, %v9238_v59  ;;  %v905_v6 = vmul.f32 %v8396_v20, %v9627_v60  ;;  %v17502_v60 = vld [vmem:[#allocation186_spill] sm:$0xff]  ;;  %v17508_v15 = vld [vmem:[#allocation247_spill] sm:$0xff] }
 0x27b   :  { %17494 = vst [vmem:[#allocation504_spill] sm:$0xff] %v10983_v22  ;;  %v904_v55 = vmul.f32 %v8398_v21, %v9631_v32  ;;  %v11000_v26 = vmul.f32 %v10911_v23, %v9306_v34  ;;  %v11004_v62 = vmul.f32 %v10911_v23, %v9313_v51  ;;  %v11008_v17 = vpop.permute.xlu0 %2603  ;;  %v11011_v0 = vadd.f32 %v901_v61, %v9462_v38  ;;  %v17504_v32 = vld [vmem:[#allocation216_spill] sm:$0xff]  ;;  %v17507_v5 = vld [vmem:[#allocation6_spill] sm:$0xff]  ;;  %v17510_v38 = vld [vmem:[#allocation187_spill] sm:$0xff] }
 0x27c   :  { %v11006_v25 = vpop.permute.xlu1 %2608  ;;  %17498 = vst [vmem:[#allocation508_spill] sm:$0xff] %v11008_v17  ;;  %v11014_v20 = vadd.f32 %v900_v11, %v17500_v57  ;;  %v11018_v21 = vmul.f32 %v10911_v23, %v17502_v60  ;;  %3190 = vperm.xlu1 %7838, %v7317_v13   ;;  %3185 = vperm.xlu0 %7837, %v7316_v41   ;;  %v17509_v17 = vld [vmem:[#allocation7_spill] sm:$0xff]  ;;  %v7318_v13 = vld [vmem:[%s16484_s8 + $0x900] sm:$0xff] }
 0x27d   :  { %17495 = vst [vmem:[#allocation505_spill] sm:$0xff] %v11000_v26  ;;  %17496 = vst [vmem:[#allocation506_spill] sm:$0xff] %v11004_v62  ;;  %v11021_v54 = vadd.f32 %v903_v50, %v17504_v32  ;;  %v906_v9 = vmul.f32 %v17509_v17, %v17508_v15  ;;  %v11029_v61 = vmul.f32 %v10911_v23, %v17510_v38  ;;  %v7319_v11 = vld [vmem:[%s16484_s8 + $0x908] sm:$0xff]  ;;  %v17514_v57 = vld [vmem:[#allocation249_spill] sm:$0xff] }
 0x27e   :  { %17497 = vst [vmem:[#allocation507_spill] sm:$0xff] %v11006_v25  ;;  %17499 = vst [vmem:[#allocation509_spill] sm:$0xff] %v11011_v0  ;;  %v907_v25 = vmul.f32 %v17507_v5, %v17506_v4  ;;  %v17512_v50 = vld [vmem:[#allocation218_spill] sm:$0xff]  ;;  %v17515_v32 = vld [vmem:[#allocation8_spill] sm:$0xff] }
 0x27f   :  { %17501 = vst [vmem:[#allocation215_spill] sm:$0xff] %v11014_v20  ;;  %17503 = vst [vmem:[#allocation510_spill] sm:$0xff] %v11018_v21  ;;  %v11038_v41 = vadd.f32 %v902_v16, %v17512_v50  ;;  %v909_v4 = vmul.f32 %v17515_v32, %v17514_v57  ;;  %v17516_v5 = vld [vmem:[#allocation255_spill] sm:$0xff]  ;;  %v17517_v15 = vld [vmem:[#allocation9_spill] sm:$0xff] }
 0x280   :  { %17505 = vst [vmem:[#allocation216_spill] sm:$0xff] %v11021_v54  ;;  %17511 = vst [vmem:[#allocation239_spill] sm:$0xff] %v11029_v61  ;;  %v908_v17 = vmul.f32 %v17517_v15, %v17516_v5  ;;  %v17518_v54 = vld [vmem:[#allocation200_spill] sm:$0xff]  ;;  %v17520_v0 = vld [vmem:[#allocation226_spill] sm:$0xff]  ;;  %v11062_v32 = vpop.permute.xlu1 %2618  ;;  %v11064_v5 = vpop.permute.xlu0 %2613  ;;  %3200 = vperm.xlu1 %7838, %v7319_v11   ;;  %3195 = vperm.xlu0 %7837, %v7318_v13  }
 0x281   :  { %17513 = vst [vmem:[#allocation6_spill] sm:$0xff] %v11038_v41  ;;  %v11046_v20 = vmul.f32 %v10911_v23, %v17518_v54  ;;  %v11049_v61 = vadd.f32 %v905_v6, %v17520_v0  ;;  %v17522_v21 = vld [vmem:[#allocation227_spill] sm:$0xff]  ;;  %v17524_v22 = vld [vmem:[#allocation201_spill] sm:$0xff]  ;;  %v17526_v50 = vld [vmem:[#allocation206_spill] sm:$0xff] }
 0x282   :  { %v11052_v14 = vadd.f32 %v904_v55, %v17522_v21  ;;  %v11056_v16 = vmul.f32 %v10911_v23, %v17524_v22  ;;  %v11060_v57 = vmul.f32 %v10911_v23, %v17526_v50  ;;  %17528 = vst [vmem:[#allocation255_spill] sm:$0xff] %v11062_v32  ;;  %17529 = vst [vmem:[#allocation9_spill] sm:$0xff] %v11064_v5  ;;  %v17530_v15 = vld [vmem:[#allocation262_spill] sm:$0xff]  ;;  %v17532_v6 = vld [vmem:[#allocation264_spill] sm:$0xff] }
 0x283   :  { %17519 = vst [vmem:[#allocation247_spill] sm:$0xff] %v11046_v20  ;;  %17521 = vst [vmem:[#allocation7_spill] sm:$0xff] %v11049_v61  ;;  %v17531_v41 = vld [vmem:[#allocation10_spill] sm:$0xff]  ;;  %v17533_v0 = vld [vmem:[#allocation11_spill] sm:$0xff] }
 0x284   :  { %17523 = vst [vmem:[#allocation218_spill] sm:$0xff] %v11052_v14  ;;  %17525 = vst [vmem:[#allocation249_spill] sm:$0xff] %v11056_v16  ;;  %v911_v20 = vmul.f32 %v17531_v41, %v17530_v15  ;;  %v910_v61 = vmul.f32 %v17533_v0, %v17532_v6  ;;  %v17534_v55 = vld [vmem:[#allocation207_spill] sm:$0xff]  ;;  %v17536_v14 = vld [vmem:[#allocation228_spill] sm:$0xff] }
 0x285   :  { %17527 = vst [vmem:[#allocation8_spill] sm:$0xff] %v11060_v57  ;;  %v11072_v21 = vmul.f32 %v10911_v23, %v17534_v55  ;;  %v11075_v16 = vadd.f32 %v907_v25, %v17536_v14  ;;  %v17538_v57 = vld [vmem:[#allocation236_spill] sm:$0xff]  ;;  %v17540_v32 = vld [vmem:[#allocation270_spill] sm:$0xff]  ;;  %v17542_v62 = vld [vmem:[#allocation211_spill] sm:$0xff] }
 0x286   :  { %v11078_v50 = vadd.f32 %v906_v9, %v17538_v57  ;;  %v17541_v5 = vld [vmem:[#allocation12_spill] sm:$0xff]  ;;  %v11084_v41 = vmul.f32 %v10911_v23, %v17542_v62  ;;  %v17546_v9 = vld [vmem:[#allocation254_spill] sm:$0xff]  ;;  %v17555_v62 = vld [vmem:[#allocation15_spill] sm:$0xff] }
 0x287   :  { %17535 = vst [vmem:[#allocation226_spill] sm:$0xff] %v11072_v21  ;;  %17537 = vst [vmem:[#allocation227_spill] sm:$0xff] %v11075_v16  ;;  %v913_v54 = vmul.f32 %v17541_v5, %v17540_v32  ;;  %v7321_v15 = vld [vmem:[%s16484_s8 + $0x918] sm:$0xff]  ;;  %v7320_v11 = vld [vmem:[%s16484_s8 + $0x910] sm:$0xff]  ;;  %v11096_v13 = vadd.f32 %v908_v17, %v17546_v9  ;;  %v11116_v9 = vpop.permute.xlu1 %2628 }
 0x288   :  { %17539 = vst [vmem:[#allocation262_spill] sm:$0xff] %v11078_v50  ;;  %17543 = vst [vmem:[#allocation10_spill] sm:$0xff] %v11084_v41  ;;  %v17544_v14 = vld [vmem:[#allocation248_spill] sm:$0xff]  ;;  %v17548_v57 = vld [vmem:[#allocation282_spill] sm:$0xff]  ;;  %3210 = vperm.xlu1 %7838, %v7321_v15   ;;  %3205 = vperm.xlu0 %7837, %v7320_v11  }
 0x289   :  { %v11093_v25 = vadd.f32 %v909_v4, %v17544_v14  ;;  %17547 = vst [vmem:[#allocation11_spill] sm:$0xff] %v11096_v13  ;;  %v17549_v32 = vld [vmem:[#allocation13_spill] sm:$0xff]  ;;  %v17550_v6 = vld [vmem:[#allocation212_spill] sm:$0xff]  ;;  %v17552_v50 = vld [vmem:[#allocation286_spill] sm:$0xff] }
 0x28a   :  { %v912_v5 = vmul.f32 %v17549_v32, %v17548_v57  ;;  %v11102_v0 = vmul.f32 %v10911_v23, %v17550_v6  ;;  %v17553_v16 = vld [vmem:[#allocation14_spill] sm:$0xff]  ;;  %v17554_v21 = vld [vmem:[#allocation287_spill] sm:$0xff]  ;;  %v17556_v26 = vld [vmem:[#allocation224_spill] sm:$0xff]  ;;  %17560 = vst [vmem:[#allocation12_spill] sm:$0xff] %v11116_v9  ;;  %v11118_v57 = vpop.permute.xlu0 %2623 }
 0x28b   :  { %17545 = vst [vmem:[#allocation264_spill] sm:$0xff] %v11093_v25  ;;  %v915_v41 = vmul.f32 %v17553_v16, %v17552_v50  ;;  %v914_v55 = vmul.f32 %v17555_v62, %v17554_v21  ;;  %v11110_v4 = vmul.f32 %v10911_v23, %v17556_v26  ;;  %v17558_v14 = vld [vmem:[#allocation225_spill] sm:$0xff]  ;;  %17561 = vst [vmem:[#allocation248_spill] sm:$0xff] %v11118_v57  ;;  %v17562_v32 = vld [vmem:[#allocation256_spill] sm:$0xff] }
 0x28c   :  { %17551 = vst [vmem:[#allocation228_spill] sm:$0xff] %v11102_v0  ;;  %v11114_v17 = vmul.f32 %v10911_v23, %v17558_v14  ;;  %v11121_v13 = vadd.f32 %v911_v20, %v17562_v32  ;;  %v17564_v25 = vld [vmem:[#allocation263_spill] sm:$0xff]  ;;  %v17566_v50 = vld [vmem:[#allocation229_spill] sm:$0xff]  ;;  %v17571_v0 = vld [vmem:[#allocation16_spill] sm:$0xff] }
 0x28d   :  { %17557 = vst [vmem:[#allocation236_spill] sm:$0xff] %v11110_v4  ;;  %v11124_v16 = vadd.f32 %v910_v61, %v17564_v25  ;;  %v11128_v62 = vmul.f32 %v10911_v23, %v17566_v50  ;;  %v17568_v21 = vld [vmem:[#allocation269_spill] sm:$0xff]  ;;  %v17572_v26 = vld [vmem:[#allocation303_spill] sm:$0xff]  ;;  %v17620_v6 = vld [vmem:[#allocation280_spill] sm:$0xff] }
 0x28e   :  { %17559 = vst [vmem:[#allocation270_spill] sm:$0xff] %v11114_v17  ;;  %17563 = vst [vmem:[#allocation254_spill] sm:$0xff] %v11121_v13  ;;  %v11131_v4 = vadd.f32 %v913_v54, %v17568_v21  ;;  %v17570_v17 = vld [vmem:[#allocation301_spill] sm:$0xff]  ;;  %v17574_v20 = vld [vmem:[#allocation231_spill] sm:$0xff] }
 0x28f   :  { %17565 = vst [vmem:[#allocation282_spill] sm:$0xff] %v11124_v16  ;;  %17567 = vst [vmem:[#allocation13_spill] sm:$0xff] %v11128_v62  ;;  %v917_v9 = vmul.f32 %v17571_v0, %v17570_v17  ;;  %v17573_v57 = vld [vmem:[#allocation17_spill] sm:$0xff]  ;;  %v11139_v32 = vmul.f32 %v10911_v23, %v17574_v20  ;;  %v7323_v61 = vld [vmem:[%s16484_s8 + $0x928] sm:$0xff] }
 0x290   :  { %17569 = vst [vmem:[#allocation286_spill] sm:$0xff] %v11131_v4  ;;  %v916_v14 = vmul.f32 %v17573_v57, %v17572_v26  ;;  %v7322_v15 = vld [vmem:[%s16484_s8 + $0x920] sm:$0xff]  ;;  %v17576_v54 = vld [vmem:[#allocation271_spill] sm:$0xff]  ;;  %v17580_v21 = vld [vmem:[#allocation308_spill] sm:$0xff]  ;;  %3220 = vperm.xlu1 %7838, %v7323_v61  }
 0x291   :  { %17575 = vst [vmem:[#allocation14_spill] sm:$0xff] %v11139_v32  ;;  %v11148_v11 = vadd.f32 %v912_v5, %v17576_v54  ;;  %v17578_v25 = vld [vmem:[#allocation307_spill] sm:$0xff]  ;;  %v17579_v0 = vld [vmem:[#allocation18_spill] sm:$0xff]  ;;  %v17584_v13 = vld [vmem:[#allocation273_spill] sm:$0xff]  ;;  %3215 = vperm.xlu0 %7837, %v7322_v15  }
 0x292   :  { %v919_v17 = vmul.f32 %v17579_v0, %v17578_v25  ;;  %v17581_v26 = vld [vmem:[#allocation19_spill] sm:$0xff]  ;;  %v17582_v4 = vld [vmem:[#allocation242_spill] sm:$0xff]  ;;  %v11159_v32 = vadd.f32 %v915_v41, %v17584_v13  ;;  %v17590_v54 = vld [vmem:[#allocation257_spill] sm:$0xff]  ;;  %v11172_v0 = vpop.permute.xlu1 %2638 }
 0x293   :  { %17577 = vst [vmem:[#allocation287_spill] sm:$0xff] %v11148_v11  ;;  %v918_v57 = vmul.f32 %v17581_v26, %v17580_v21  ;;  %v11156_v16 = vmul.f32 %v10911_v23, %v17582_v4  ;;  %v17586_v62 = vld [vmem:[#allocation283_spill] sm:$0xff]  ;;  %v11170_v25 = vmul.f32 %v10911_v23, %v17590_v54  ;;  %17592 = vst [vmem:[#allocation16_spill] sm:$0xff] %v11172_v0  ;;  %v11174_v21 = vpop.permute.xlu0 %2633  ;;  %v17594_v26 = vld [vmem:[#allocation324_spill] sm:$0xff] }
 0x294   :  { %17585 = vst [vmem:[#allocation256_spill] sm:$0xff] %v11159_v32  ;;  %v11162_v50 = vadd.f32 %v914_v55, %v17586_v62  ;;  %v17588_v20 = vld [vmem:[#allocation243_spill] sm:$0xff]  ;;  %17593 = vst [vmem:[#allocation303_spill] sm:$0xff] %v11174_v21  ;;  %v17595_v11 = vld [vmem:[#allocation20_spill] sm:$0xff] }
 0x295   :  { %17583 = vst [vmem:[#allocation15_spill] sm:$0xff] %v11156_v16  ;;  %v11166_v5 = vmul.f32 %v10911_v23, %v17588_v20  ;;  %17591 = vst [vmem:[#allocation301_spill] sm:$0xff] %v11170_v25  ;;  %v921_v16 = vmul.f32 %v17595_v11, %v17594_v26  ;;  %v17596_v41 = vld [vmem:[#allocation328_spill] sm:$0xff]  ;;  %v17597_v13 = vld [vmem:[#allocation21_spill] sm:$0xff] }
 0x296   :  { %17587 = vst [vmem:[#allocation263_spill] sm:$0xff] %v11162_v50  ;;  %v920_v32 = vmul.f32 %v17597_v13, %v17596_v41  ;;  %v17598_v55 = vld [vmem:[#allocation259_spill] sm:$0xff]  ;;  %v17600_v50 = vld [vmem:[#allocation292_spill] sm:$0xff]  ;;  %v17602_v25 = vld [vmem:[#allocation302_spill] sm:$0xff] }
 0x297   :  { %17589 = vst [vmem:[#allocation269_spill] sm:$0xff] %v11166_v5  ;;  %v11182_v62 = vmul.f32 %v10911_v23, %v17598_v55  ;;  %v11185_v5 = vadd.f32 %v917_v9, %v17600_v50  ;;  %v11188_v54 = vadd.f32 %v916_v14, %v17602_v25  ;;  %v17604_v0 = vld [vmem:[#allocation330_spill] sm:$0xff]  ;;  %v17606_v20 = vld [vmem:[#allocation265_spill] sm:$0xff]  ;;  %v7324_v61 = vld [vmem:[%s16484_s8 + $0x930] sm:$0xff] }
 0x298   :  { %v17605_v21 = vld [vmem:[#allocation22_spill] sm:$0xff]  ;;  %v11194_v11 = vmul.f32 %v10911_v23, %v17606_v20  ;;  %v7325_v26 = vld [vmem:[%s16484_s8 + $0x938] sm:$0xff]  ;;  %3225 = vperm.xlu0 %7837, %v7324_v61  }
 0x299   :  { %17599 = vst [vmem:[#allocation17_spill] sm:$0xff] %v11182_v62  ;;  %17601 = vst [vmem:[#allocation271_spill] sm:$0xff] %v11185_v5  ;;  %v923_v4 = vmul.f32 %v17605_v21, %v17604_v0  ;;  %v17608_v9 = vld [vmem:[#allocation304_spill] sm:$0xff]  ;;  %v17610_v14 = vld [vmem:[#allocation309_spill] sm:$0xff]  ;;  %3230 = vperm.xlu1 %7838, %v7325_v26  }
 0x29a   :  { %17603 = vst [vmem:[#allocation307_spill] sm:$0xff] %v11188_v54  ;;  %17607 = vst [vmem:[#allocation18_spill] sm:$0xff] %v11194_v11  ;;  %v11203_v50 = vadd.f32 %v919_v17, %v17608_v9  ;;  %v11206_v15 = vadd.f32 %v918_v57, %v17610_v14  ;;  %v17612_v25 = vld [vmem:[#allocation336_spill] sm:$0xff]  ;;  %v17613_v0 = vld [vmem:[#allocation23_spill] sm:$0xff]  ;;  %v11220_v17 = vmul.f32 %v10911_v23, %v17620_v6  ;;  %v11226_v14 = vpop.permute.xlu1 %2648 }
 0x29b   :  { %v922_v21 = vmul.f32 %v17613_v0, %v17612_v25  ;;  %v17614_v41 = vld [vmem:[#allocation266_spill] sm:$0xff]  ;;  %v17616_v54 = vld [vmem:[#allocation339_spill] sm:$0xff]  ;;  %v17617_v5 = vld [vmem:[#allocation24_spill] sm:$0xff]  ;;  %17624 = vst [vmem:[#allocation20_spill] sm:$0xff] %v11226_v14  ;;  %v11228_v25 = vpop.permute.xlu0 %2643 }
 0x29c   :  { %17609 = vst [vmem:[#allocation308_spill] sm:$0xff] %v11203_v50  ;;  %17611 = vst [vmem:[#allocation19_spill] sm:$0xff] %v11206_v15  ;;  %v11212_v13 = vmul.f32 %v10911_v23, %v17614_v41  ;;  %v925_v11 = vmul.f32 %v17617_v5, %v17616_v54  ;;  %v17618_v62 = vld [vmem:[#allocation349_spill] sm:$0xff]  ;;  %v17626_v0 = vld [vmem:[#allocation315_spill] sm:$0xff] }
 0x29d   :  { %v17619_v20 = vld [vmem:[#allocation25_spill] sm:$0xff]  ;;  %17621 = vst [vmem:[#allocation283_spill] sm:$0xff] %v11220_v17  ;;  %17625 = vst [vmem:[#allocation328_spill] sm:$0xff] %v11228_v25  ;;  %v11231_v15 = vadd.f32 %v921_v16, %v17626_v0  ;;  %v17637_v25 = vld [vmem:[#allocation27_spill] sm:$0xff] }
 0x29e   :  { %17615 = vst [vmem:[#allocation273_spill] sm:$0xff] %v11212_v13  ;;  %v924_v55 = vmul.f32 %v17619_v20, %v17618_v62  ;;  %v17622_v9 = vld [vmem:[#allocation281_spill] sm:$0xff]  ;;  %v17632_v62 = vld [vmem:[#allocation322_spill] sm:$0xff]  ;;  %v17684_v41 = vld [vmem:[#allocation332_spill] sm:$0xff] }
 0x29f   :  { %v11224_v57 = vmul.f32 %v10911_v23, %v17622_v9  ;;  %17627 = vst [vmem:[#allocation21_spill] sm:$0xff] %v11231_v15  ;;  %v17628_v50 = vld [vmem:[#allocation321_spill] sm:$0xff]  ;;  %v11241_v17 = vadd.f32 %v923_v4, %v17632_v62  ;;  %v17635_v13 = vld [vmem:[#allocation26_spill] sm:$0xff]  ;;  %v17640_v4 = vld [vmem:[#allocation331_spill] sm:$0xff] }
 0x2a0   :  { %v11234_v5 = vadd.f32 %v920_v32, %v17628_v50  ;;  %v17630_v54 = vld [vmem:[#allocation293_spill] sm:$0xff]  ;;  %v17638_v16 = vld [vmem:[#allocation294_spill] sm:$0xff]  ;;  %v11258_v61 = vadd.f32 %v922_v21, %v17640_v4 }
 0x2a1   :  { %17623 = vst [vmem:[#allocation324_spill] sm:$0xff] %v11224_v57  ;;  %v11238_v20 = vmul.f32 %v10911_v23, %v17630_v54  ;;  %17633 = vst [vmem:[#allocation330_spill] sm:$0xff] %v11241_v17  ;;  %v17634_v57 = vld [vmem:[#allocation352_spill] sm:$0xff]  ;;  %v17636_v6 = vld [vmem:[#allocation353_spill] sm:$0xff]  ;;  %v11249_v0 = vmul.f32 %v10911_v23, %v17638_v16 }
 0x2a2   :  { %17629 = vst [vmem:[#allocation292_spill] sm:$0xff] %v11234_v5  ;;  %v927_v14 = vmul.f32 %v17635_v13, %v17634_v57  ;;  %v926_v9 = vmul.f32 %v17637_v25, %v17636_v6  ;;  %v7327_v32 = vld [vmem:[%s16484_s8 + $0x948] sm:$0xff]  ;;  %v7326_v26 = vld [vmem:[%s16484_s8 + $0x940] sm:$0xff]  ;;  %17641 = vst [vmem:[#allocation304_spill] sm:$0xff] %v11258_v61 }
 0x2a3   :  { %17631 = vst [vmem:[#allocation302_spill] sm:$0xff] %v11238_v20  ;;  %17639 = vst [vmem:[#allocation22_spill] sm:$0xff] %v11249_v0  ;;  %v17642_v50 = vld [vmem:[#allocation366_spill] sm:$0xff]  ;;  %v17643_v13 = vld [vmem:[#allocation28_spill] sm:$0xff]  ;;  %3240 = vperm.xlu1 %7838, %v7327_v32   ;;  %3235 = vperm.xlu0 %7837, %v7326_v26  }
 0x2a4   :  { %v929_v57 = vmul.f32 %v17643_v13, %v17642_v50  ;;  %v17644_v62 = vld [vmem:[#allocation369_spill] sm:$0xff]  ;;  %v17652_v16 = vld [vmem:[#allocation298_spill] sm:$0xff]  ;;  %v11282_v13 = vpop.permute.xlu1 %2658  ;;  %v7328_v32 = vld [vmem:[%s16484_s8 + $0x950] sm:$0xff] }
 0x2a5   :  { %v17645_v6 = vld [vmem:[#allocation29_spill] sm:$0xff]  ;;  %v11276_v21 = vmul.f32 %v10911_v23, %v17652_v16  ;;  %17656 = vst [vmem:[#allocation349_spill] sm:$0xff] %v11282_v13  ;;  %v17659_v61 = vld [vmem:[#allocation30_spill] sm:$0xff]  ;;  %v17668_v13 = vld [vmem:[#allocation399_spill] sm:$0xff] }
 0x2a6   :  { %v928_v25 = vmul.f32 %v17645_v6, %v17644_v62  ;;  %v17646_v17 = vld [vmem:[#allocation297_spill] sm:$0xff]  ;;  %v11284_v62 = vpop.permute.xlu0 %2653  ;;  %v17670_v16 = vld [vmem:[#allocation326_spill] sm:$0xff] }
 0x2a7   :  { %v11266_v0 = vmul.f32 %v10911_v23, %v17646_v17  ;;  %v17648_v5 = vld [vmem:[#allocation337_spill] sm:$0xff]  ;;  %17653 = vst [vmem:[#allocation339_spill] sm:$0xff] %v11276_v21  ;;  %17657 = vst [vmem:[#allocation25_spill] sm:$0xff] %v11284_v62  ;;  %v17669_v62 = vld [vmem:[#allocation32_spill] sm:$0xff]  ;;  %3245 = vperm.xlu0 %7837, %v7328_v32  }
 0x2a8   :  { %v11269_v15 = vadd.f32 %v925_v11, %v17648_v5  ;;  %v17650_v20 = vld [vmem:[#allocation341_spill] sm:$0xff]  ;;  %v17660_v11 = vld [vmem:[#allocation375_spill] sm:$0xff]  ;;  %v933_v17 = vmul.f32 %v17669_v62, %v17668_v13 }
 0x2a9   :  { %17647 = vst [vmem:[#allocation309_spill] sm:$0xff] %v11266_v0  ;;  %v11272_v54 = vadd.f32 %v924_v55, %v17650_v20  ;;  %v17654_v4 = vld [vmem:[#allocation313_spill] sm:$0xff]  ;;  %v17661_v5 = vld [vmem:[#allocation31_spill] sm:$0xff]  ;;  %v17662_v55 = vld [vmem:[#allocation314_spill] sm:$0xff] }
 0x2aa   :  { %17649 = vst [vmem:[#allocation336_spill] sm:$0xff] %v11269_v15  ;;  %v11280_v50 = vmul.f32 %v10911_v23, %v17654_v4  ;;  %v17658_v6 = vld [vmem:[#allocation373_spill] sm:$0xff]  ;;  %v930_v15 = vmul.f32 %v17661_v5, %v17660_v11  ;;  %v11292_v20 = vmul.f32 %v10911_v23, %v17662_v55  ;;  %v17678_v11 = vld [vmem:[#allocation327_spill] sm:$0xff] }
 0x2ab   :  { %17651 = vst [vmem:[#allocation23_spill] sm:$0xff] %v11272_v54  ;;  %v931_v0 = vmul.f32 %v17659_v61, %v17658_v6  ;;  %v17664_v54 = vld [vmem:[#allocation350_spill] sm:$0xff]  ;;  %v11304_v61 = vmul.f32 %v10911_v23, %v17670_v16  ;;  %v7329_v6 = vld [vmem:[%s16484_s8 + $0x958] sm:$0xff]  ;;  %v11322_v5 = vmul.f32 %v10911_v23, %v17678_v11  ;;  %v17683_v16 = vld [vmem:[#allocation35_spill] sm:$0xff] }
 0x2ac   :  { %17655 = vst [vmem:[#allocation24_spill] sm:$0xff] %v11280_v50  ;;  %17663 = vst [vmem:[#allocation315_spill] sm:$0xff] %v11292_v20  ;;  %v11295_v21 = vadd.f32 %v927_v14, %v17664_v54  ;;  %v17666_v50 = vld [vmem:[#allocation351_spill] sm:$0xff]  ;;  %v17672_v14 = vld [vmem:[#allocation356_spill] sm:$0xff]  ;;  %3250 = vperm.xlu1 %7838, %v7329_v6  }
 0x2ad   :  { %v11298_v4 = vadd.f32 %v926_v9, %v17666_v50  ;;  %17671 = vst [vmem:[#allocation352_spill] sm:$0xff] %v11304_v61  ;;  %v11313_v54 = vadd.f32 %v929_v57, %v17672_v14  ;;  %v17674_v9 = vld [vmem:[#allocation367_spill] sm:$0xff]  ;;  %v17676_v50 = vld [vmem:[#allocation400_spill] sm:$0xff]  ;;  %v17677_v13 = vld [vmem:[#allocation33_spill] sm:$0xff]  ;;  %v11330_v57 = vmul.f32 %v10911_v23, %v17684_v41 }
 0x2ae   :  { %17665 = vst [vmem:[#allocation321_spill] sm:$0xff] %v11295_v21  ;;  %v11316_v26 = vadd.f32 %v928_v25, %v17674_v9  ;;  %v932_v62 = vmul.f32 %v17677_v13, %v17676_v50  ;;  %17679 = vst [vmem:[#allocation27_spill] sm:$0xff] %v11322_v5  ;;  %v17681_v21 = vld [vmem:[#allocation34_spill] sm:$0xff]  ;;  %v17682_v20 = vld [vmem:[#allocation409_spill] sm:$0xff]  ;;  %v11336_v9 = vpop.permute.xlu1 %2668  ;;  %v11338_v50 = vpop.permute.xlu0 %2663 }
 0x2af   :  { %17667 = vst [vmem:[#allocation322_spill] sm:$0xff] %v11298_v4  ;;  %17673 = vst [vmem:[#allocation26_spill] sm:$0xff] %v11313_v54  ;;  %v17680_v4 = vld [vmem:[#allocation401_spill] sm:$0xff]  ;;  %v934_v55 = vmul.f32 %v17683_v16, %v17682_v20  ;;  %v17690_v13 = vld [vmem:[#allocation370_spill] sm:$0xff] }
 0x2b0   :  { %17675 = vst [vmem:[#allocation353_spill] sm:$0xff] %v11316_v26  ;;  %v935_v61 = vmul.f32 %v17681_v21, %v17680_v4  ;;  %17685 = vst [vmem:[#allocation331_spill] sm:$0xff] %v11330_v57  ;;  %v17686_v14 = vld [vmem:[#allocation333_spill] sm:$0xff]  ;;  %v11341_v26 = vadd.f32 %v931_v0, %v17690_v13  ;;  %v17692_v54 = vld [vmem:[#allocation379_spill] sm:$0xff] }
 0x2b1   :  { %v11334_v25 = vmul.f32 %v10911_v23, %v17686_v14  ;;  %17688 = vst [vmem:[#allocation28_spill] sm:$0xff] %v11336_v9  ;;  %17689 = vst [vmem:[#allocation369_spill] sm:$0xff] %v11338_v50  ;;  %v11344_v21 = vadd.f32 %v930_v15, %v17692_v54  ;;  %v17694_v4 = vld [vmem:[#allocation355_spill] sm:$0xff]  ;;  %v17696_v20 = vld [vmem:[#allocation380_spill] sm:$0xff] }
 0x2b2   :  { %17691 = vst [vmem:[#allocation29_spill] sm:$0xff] %v11341_v26  ;;  %v11348_v16 = vmul.f32 %v10911_v23, %v17694_v4  ;;  %v11351_v57 = vadd.f32 %v933_v17, %v17696_v20  ;;  %v17699_v5 = vld [vmem:[#allocation36_spill] sm:$0xff]  ;;  %v17700_v41 = vld [vmem:[#allocation417_spill] sm:$0xff]  ;;  %v17702_v0 = vld [vmem:[#allocation358_spill] sm:$0xff] }
 0x2b3   :  { %17687 = vst [vmem:[#allocation366_spill] sm:$0xff] %v11334_v25  ;;  %17693 = vst [vmem:[#allocation337_spill] sm:$0xff] %v11344_v21  ;;  %v17698_v25 = vld [vmem:[#allocation415_spill] sm:$0xff]  ;;  %v17701_v50 = vld [vmem:[#allocation37_spill] sm:$0xff]  ;;  %v11359_v13 = vmul.f32 %v10911_v23, %v17702_v0 }
 0x2b4   :  { %17695 = vst [vmem:[#allocation341_spill] sm:$0xff] %v11348_v16  ;;  %17697 = vst [vmem:[#allocation373_spill] sm:$0xff] %v11351_v57  ;;  %v937_v9 = vmul.f32 %v17699_v5, %v17698_v25  ;;  %v936_v14 = vmul.f32 %v17701_v50, %v17700_v41  ;;  %v7331_v15 = vld [vmem:[%s16484_s8 + $0x968] sm:$0xff]  ;;  %v7330_v6 = vld [vmem:[%s16484_s8 + $0x960] sm:$0xff] }
 0x2b5   :  { %17703 = vst [vmem:[#allocation30_spill] sm:$0xff] %v11359_v13  ;;  %v17704_v17 = vld [vmem:[#allocation382_spill] sm:$0xff]  ;;  %v17706_v54 = vld [vmem:[#allocation423_spill] sm:$0xff]  ;;  %v17708_v20 = vld [vmem:[#allocation424_spill] sm:$0xff]  ;;  %3260 = vperm.xlu1 %7838, %v7331_v15   ;;  %3255 = vperm.xlu0 %7837, %v7330_v6  }
 0x2b6   :  { %v11368_v32 = vadd.f32 %v932_v62, %v17704_v17  ;;  %v17707_v5 = vld [vmem:[#allocation38_spill] sm:$0xff]  ;;  %v17709_v41 = vld [vmem:[#allocation39_spill] sm:$0xff]  ;;  %v17710_v57 = vld [vmem:[#allocation361_spill] sm:$0xff] }
 0x2b7   :  { %v939_v25 = vmul.f32 %v17707_v5, %v17706_v54  ;;  %v938_v50 = vmul.f32 %v17709_v41, %v17708_v20  ;;  %v11376_v21 = vmul.f32 %v10911_v23, %v17710_v57  ;;  %v17712_v26 = vld [vmem:[#allocation388_spill] sm:$0xff]  ;;  %v17714_v16 = vld [vmem:[#allocation402_spill] sm:$0xff]  ;;  %v11392_v5 = vpop.permute.xlu1 %2678  ;;  %v11394_v20 = vpop.permute.xlu0 %2673 }
 0x2b8   :  { %17705 = vst [vmem:[#allocation375_spill] sm:$0xff] %v11368_v32  ;;  %v11379_v13 = vadd.f32 %v935_v61, %v17712_v26  ;;  %v11382_v4 = vadd.f32 %v934_v55, %v17714_v16  ;;  %v17716_v0 = vld [vmem:[#allocation362_spill] sm:$0xff]  ;;  %17720 = vst [vmem:[#allocation356_spill] sm:$0xff] %v11392_v5  ;;  %v17723_v32 = vld [vmem:[#allocation40_spill] sm:$0xff] }
 0x2b9   :  { %17711 = vst [vmem:[#allocation31_spill] sm:$0xff] %v11376_v21  ;;  %v11386_v62 = vmul.f32 %v10911_v23, %v17716_v0  ;;  %v17718_v17 = vld [vmem:[#allocation374_spill] sm:$0xff]  ;;  %17721 = vst [vmem:[#allocation367_spill] sm:$0xff] %v11394_v20  ;;  %v17724_v61 = vld [vmem:[#allocation439_spill] sm:$0xff] }
 0x2ba   :  { %17713 = vst [vmem:[#allocation350_spill] sm:$0xff] %v11379_v13  ;;  %17715 = vst [vmem:[#allocation351_spill] sm:$0xff] %v11382_v4  ;;  %v11390_v54 = vmul.f32 %v10911_v23, %v17718_v17  ;;  %v17722_v41 = vld [vmem:[#allocation438_spill] sm:$0xff]  ;;  %v17725_v26 = vld [vmem:[#allocation41_spill] sm:$0xff] }
 0x2bb   :  { %17717 = vst [vmem:[#allocation399_spill] sm:$0xff] %v11386_v62  ;;  %v941_v21 = vmul.f32 %v17723_v32, %v17722_v41  ;;  %v940_v13 = vmul.f32 %v17725_v26, %v17724_v61  ;;  %v17726_v55 = vld [vmem:[#allocation376_spill] sm:$0xff]  ;;  %v17728_v4 = vld [vmem:[#allocation410_spill] sm:$0xff]  ;;  %v17732_v5 = vld [vmem:[#allocation445_spill] sm:$0xff] }
 0x2bc   :  { %17719 = vst [vmem:[#allocation32_spill] sm:$0xff] %v11390_v54  ;;  %v11402_v16 = vmul.f32 %v10911_v23, %v17726_v55  ;;  %v11405_v62 = vadd.f32 %v937_v9, %v17728_v4  ;;  %v17730_v54 = vld [vmem:[#allocation416_spill] sm:$0xff]  ;;  %v17733_v20 = vld [vmem:[#allocation42_spill] sm:$0xff]  ;;  %v17734_v0 = vld [vmem:[#allocation383_spill] sm:$0xff] }
 0x2bd   :  { %v11408_v17 = vadd.f32 %v936_v14, %v17730_v54  ;;  %v943_v57 = vmul.f32 %v17733_v20, %v17732_v5  ;;  %v11414_v32 = vmul.f32 %v10911_v23, %v17734_v0  ;;  %v7353_v41 = vld [vmem:[%s16484_s8 + $0xa08] sm:$0xff]  ;;  %v7352_v15 = vld [vmem:[%s16484_s8 + $0xa00] sm:$0xff]  ;;  %v17742_v61 = vld [vmem:[#allocation384_spill] sm:$0xff] }
 0x2be   :  { %17727 = vst [vmem:[#allocation400_spill] sm:$0xff] %v11402_v16  ;;  %17729 = vst [vmem:[#allocation33_spill] sm:$0xff] %v11405_v62  ;;  %v17736_v9 = vld [vmem:[#allocation418_spill] sm:$0xff]  ;;  %v17738_v14 = vld [vmem:[#allocation419_spill] sm:$0xff]  ;;  %v11432_v26 = vmul.f32 %v10911_v23, %v17742_v61  ;;  %3623 = vperm.xlu1 %7838, %v7353_v41   ;;  %3618 = vperm.xlu0 %7837, %v7352_v15  }
 0x2bf   :  { %17731 = vst [vmem:[#allocation401_spill] sm:$0xff] %v11408_v17  ;;  %17735 = vst [vmem:[#allocation34_spill] sm:$0xff] %v11414_v32  ;;  %v11423_v4 = vadd.f32 %v939_v25, %v17736_v9  ;;  %v11426_v6 = vadd.f32 %v938_v50, %v17738_v14  ;;  %v17740_v54 = vld [vmem:[#allocation446_spill] sm:$0xff]  ;;  %v17741_v5 = vld [vmem:[#allocation43_spill] sm:$0xff]  ;;  %v11446_v14 = vpop.permute.xlu1 %2688 }
 0x2c0   :  { %v942_v20 = vmul.f32 %v17741_v5, %v17740_v54  ;;  %17743 = vst [vmem:[#allocation370_spill] sm:$0xff] %v11432_v26  ;;  %v17744_v17 = vld [vmem:[#allocation455_spill] sm:$0xff]  ;;  %v17745_v62 = vld [vmem:[#allocation44_spill] sm:$0xff]  ;;  %v17746_v16 = vld [vmem:[#allocation45_spill] sm:$0xff]  ;;  %v11448_v54 = vpop.permute.xlu0 %2683 }
 0x2c1   :  { %17737 = vst [vmem:[#allocation409_spill] sm:$0xff] %v11423_v4  ;;  %17739 = vst [vmem:[#allocation35_spill] sm:$0xff] %v11426_v6  ;;  %v945_v32 = vmul.f32 %v17745_v62, %v17744_v17  ;;  %v944_v0 = vmul.f32 %v17746_v16, %v10707_v33  ;;  %v17747_v55 = vld [vmem:[#allocation395_spill] sm:$0xff]  ;;  %v17749_v9 = vld [vmem:[#allocation397_spill] sm:$0xff] }
 0x2c2   :  { %v11440_v25 = vmul.f32 %v10911_v23, %v17747_v55  ;;  %v11444_v50 = vmul.f32 %v10911_v23, %v17749_v9  ;;  %17751 = vst [vmem:[#allocation415_spill] sm:$0xff] %v11446_v14  ;;  %17752 = vst [vmem:[#allocation36_spill] sm:$0xff] %v11448_v54  ;;  %v17753_v5 = vld [vmem:[#allocation428_spill] sm:$0xff]  ;;  %v17755_v4 = vld [vmem:[#allocation429_spill] sm:$0xff] }
 0x2c3   :  { %v11451_v6 = vadd.f32 %v941_v21, %v17753_v5  ;;  %v11454_v62 = vadd.f32 %v940_v13, %v17755_v4  ;;  %v17757_v17 = vld [vmem:[#allocation405_spill] sm:$0xff]  ;;  %v17759_v16 = vld [vmem:[#allocation432_spill] sm:$0xff]  ;;  %v17762_v54 = vld [vmem:[#allocation47_spill] sm:$0xff] }
 0x2c4   :  { %17748 = vst [vmem:[#allocation379_spill] sm:$0xff] %v11440_v25  ;;  %17750 = vst [vmem:[#allocation380_spill] sm:$0xff] %v11444_v50  ;;  %v11458_v33 = vmul.f32 %v10911_v23, %v17757_v17  ;;  %v11461_v25 = vadd.f32 %v943_v57, %v17759_v16  ;;  %v17761_v50 = vld [vmem:[#allocation46_spill] sm:$0xff]  ;;  %v946_v26 = vmul.f32 %v17762_v54, %v10782_v53  ;;  %v7355_v13 = vld [vmem:[%s16484_s8 + $0xa18] sm:$0xff] }
 0x2c5   :  { %17754 = vst [vmem:[#allocation417_spill] sm:$0xff] %v11451_v6  ;;  %17756 = vst [vmem:[#allocation37_spill] sm:$0xff] %v11454_v62  ;;  %v947_v14 = vmul.f32 %v17761_v50, %v10778_v37  ;;  %v17763_v21 = vld [vmem:[#allocation406_spill] sm:$0xff]  ;;  %v7354_v41 = vld [vmem:[%s16484_s8 + $0xa10] sm:$0xff]  ;;  %3633 = vperm.xlu1 %7838, %v7355_v13  }
 0x2c6   :  { %17758 = vst [vmem:[#allocation382_spill] sm:$0xff] %v11458_v33  ;;  %17760 = vst [vmem:[#allocation423_spill] sm:$0xff] %v11461_v25  ;;  %v11469_v5 = vmul.f32 %v10911_v23, %v17763_v21  ;;  %v17765_v57 = vld [vmem:[#allocation441_spill] sm:$0xff]  ;;  %v17767_v37 = vld [vmem:[#allocation48_spill] sm:$0xff]  ;;  %3628 = vperm.xlu0 %7837, %v7354_v41  }
 0x2c7   :  { %v11478_v15 = vadd.f32 %v942_v20, %v17765_v57  ;;  %v949_v4 = vmul.f32 %v17767_v37, %v10796_v58  ;;  %v17768_v50 = vld [vmem:[#allocation411_spill] sm:$0xff]  ;;  %v17770_v54 = vld [vmem:[#allocation414_spill] sm:$0xff]  ;;  %v17772_v25 = vld [vmem:[#allocation449_spill] sm:$0xff]  ;;  %v11502_v37 = vpop.permute.xlu1 %2698 }
 0x2c8   :  { %17764 = vst [vmem:[#allocation38_spill] sm:$0xff] %v11469_v5  ;;  %v11484_v53 = vmul.f32 %v10911_v23, %v17768_v50  ;;  %v11488_v16 = vmul.f32 %v10911_v23, %v17770_v54  ;;  %v11491_v62 = vadd.f32 %v945_v32, %v17772_v25  ;;  %v17774_v6 = vld [vmem:[#allocation458_spill] sm:$0xff]  ;;  %v17776_v33 = vld [vmem:[#allocation484_spill] sm:$0xff]  ;;  %v17777_v20 = vld [vmem:[#allocation49_spill] sm:$0xff] }
 0x2c9   :  { %17766 = vst [vmem:[#allocation424_spill] sm:$0xff] %v11478_v15  ;;  %v11494_v5 = vadd.f32 %v944_v0, %v17774_v6  ;;  %v948_v57 = vmul.f32 %v17777_v20, %v17776_v33  ;;  %v17778_v15 = vld [vmem:[#allocation435_spill] sm:$0xff]  ;;  %17779 = vst [vmem:[#allocation40_spill] sm:$0xff] %v11502_v37  ;;  %v17781_v50 = vld [vmem:[#allocation50_spill] sm:$0xff] }
 0x2ca   :  { %17769 = vst [vmem:[#allocation39_spill] sm:$0xff] %v11484_v53  ;;  %17771 = vst [vmem:[#allocation388_spill] sm:$0xff] %v11488_v16  ;;  %v11500_v58 = vmul.f32 %v10911_v23, %v17778_v15  ;;  %v11504_v53 = vpop.permute.xlu0 %2693  ;;  %v951_v16 = vmul.f32 %v17781_v50, %v10837_v49  ;;  %v17782_v32 = vld [vmem:[#allocation51_spill] sm:$0xff]  ;;  %v17787_v20 = vld [vmem:[#allocation473_spill] sm:$0xff] }
 0x2cb   :  { %17773 = vst [vmem:[#allocation402_spill] sm:$0xff] %v11491_v62  ;;  %17775 = vst [vmem:[#allocation438_spill] sm:$0xff] %v11494_v5  ;;  %v950_v25 = vmul.f32 %v17782_v32, %v10847_v44  ;;  %v17783_v62 = vld [vmem:[#allocation440_spill] sm:$0xff]  ;;  %v17785_v6 = vld [vmem:[#allocation471_spill] sm:$0xff]  ;;  %v11518_v5 = vadd.f32 %v946_v26, %v17787_v20 }
 0x2cc   :  { %17780 = vst [vmem:[#allocation439_spill] sm:$0xff] %v11504_v53  ;;  %v11512_v0 = vmul.f32 %v10911_v23, %v17783_v62  ;;  %v11515_v33 = vadd.f32 %v947_v14, %v17785_v6  ;;  %v17789_v53 = vld [vmem:[#allocation52_spill] sm:$0xff]  ;;  %v17790_v49 = vld [vmem:[#allocation53_spill] sm:$0xff]  ;;  %v7419_v44 = vld [vmem:[%s16484_s8 + $0xc08] sm:$0xff] }
 0x2cd   :  { %17788 = vst [vmem:[#allocation416_spill] sm:$0xff] %v11518_v5  ;;  %v953_v37 = vmul.f32 %v17789_v53, %v10866_v52  ;;  %v952_v50 = vmul.f32 %v17790_v49, %v10869_v45  ;;  %v7418_v13 = vld [vmem:[%s16484_s8 + $0xc00] sm:$0xff]  ;;  %v17794_v6 = vld [vmem:[#allocation447_spill] sm:$0xff]  ;;  %v17796_v53 = vld [vmem:[#allocation448_spill] sm:$0xff]  ;;  %4205 = vperm.xlu1 %7838, %v7419_v44  }
 0x2ce   :  { %17784 = vst [vmem:[#allocation41_spill] sm:$0xff] %v11512_v0  ;;  %17786 = vst [vmem:[#allocation410_spill] sm:$0xff] %v11515_v33  ;;  %v17791_v41 = vld [vmem:[#allocation481_spill] sm:$0xff]  ;;  %v17793_v26 = vld [vmem:[#allocation54_spill] sm:$0xff]  ;;  %v11537_v52 = vmul.f32 %v10911_v23, %v17794_v6  ;;  %v11541_v45 = vmul.f32 %v10911_v23, %v17796_v53  ;;  %4200 = vperm.xlu0 %7837, %v7418_v13  }
 0x2cf   :  { %v11531_v14 = vadd.f32 %v949_v4, %v17791_v41  ;;  %v955_v32 = vmul.f32 %v17793_v26, %v10883_v30  ;;  %v17798_v20 = vld [vmem:[#allocation482_spill] sm:$0xff]  ;;  %v17800_v5 = vld [vmem:[#allocation55_spill] sm:$0xff]  ;;  %v17803_v41 = vld [vmem:[#allocation460_spill] sm:$0xff]  ;;  %v11556_v26 = vpop.permute.xlu1 %2708 }
 0x2d0   :  { %17795 = vst [vmem:[#allocation42_spill] sm:$0xff] %v11537_v52  ;;  %17797 = vst [vmem:[#allocation418_spill] sm:$0xff] %v11541_v45  ;;  %v11544_v49 = vadd.f32 %v948_v57, %v17798_v20  ;;  %v954_v33 = vmul.f32 %v17800_v5, %v10899_v18  ;;  %v17801_v0 = vld [vmem:[#allocation459_spill] sm:$0xff]  ;;  %v11554_v30 = vmul.f32 %v10911_v23, %v17803_v41  ;;  %v17807_v52 = vld [vmem:[#allocation486_spill] sm:$0xff] }
 0x2d1   :  { %17792 = vst [vmem:[#allocation445_spill] sm:$0xff] %v11531_v14  ;;  %v11550_v4 = vmul.f32 %v10911_v23, %v17801_v0  ;;  %17805 = vst [vmem:[#allocation455_spill] sm:$0xff] %v11556_v26  ;;  %v11558_v14 = vpop.permute.xlu0 %2703  ;;  %v11561_v45 = vadd.f32 %v951_v16, %v17807_v52  ;;  %v11564_v57 = vadd.f32 %v950_v25, %v10840_v7  ;;  %v17808_v20 = vld [vmem:[#allocation463_spill] sm:$0xff]  ;;  %v17809_v5 = vld [vmem:[#allocation492_spill] sm:$0xff] }
 0x2d2   :  { %17799 = vst [vmem:[#allocation419_spill] sm:$0xff] %v11544_v49  ;;  %17804 = vst [vmem:[#allocation43_spill] sm:$0xff] %v11554_v30  ;;  %v11568_v18 = vmul.f32 %v10911_v23, %v17808_v20  ;;  %v11571_v49 = vadd.f32 %v953_v37, %v17809_v5  ;;  %v17811_v30 = vld [vmem:[#allocation493_spill] sm:$0xff]  ;;  %v17814_v16 = vld [vmem:[#allocation464_spill] sm:$0xff]  ;;  %v11589_v37 = vadd.f32 %v955_v32, %v10880_v24 }
 0x2d3   :  { %17802 = vst [vmem:[#allocation446_spill] sm:$0xff] %v11550_v4  ;;  %17806 = vst [vmem:[#allocation44_spill] sm:$0xff] %v11558_v14  ;;  %v11574_v4 = vadd.f32 %v952_v50, %v17811_v30  ;;  %v17813_v14 = vld [vmem:[#allocation56_spill] sm:$0xff]  ;;  %v11580_v52 = vmul.f32 %v10911_v23, %v17814_v16  ;;  %v17816_v50 = vld [vmem:[#allocation57_spill] sm:$0xff]  ;;  %v11602_v5 = vadd.f32 %v954_v33, %v10886_v40  ;;  %v11607_v32 = vpop.permute.xlu1 %2718  ;;  %v1608_v40 = vrot.slane %v9313_v51, 1 }
 0x2d4   :  { %17810 = vst [vmem:[#allocation45_spill] sm:$0xff] %v11571_v49  ;;  %v957_v26 = vmul.f32 %v17813_v14, %v10918_v3  ;;  %v7421_v7 = vld [vmem:[%s16484_s8 + $0xc18] sm:$0xff]  ;;  %v7420_v25 = vld [vmem:[%s16484_s8 + $0xc10] sm:$0xff]  ;;  %17815 = vst [vmem:[#allocation429_spill] sm:$0xff] %v11589_v37  ;;  %v956_v44 = vmul.f32 %v17816_v50, %v10921_v56  ;;  %v1669_v49 = vrot.slane %v9242_v35, 1  ;;  %v11623_v35 = vmul.f32 %v10911_v23, %v10758_v48 }
 0x2d5   :  { %17812 = vst [vmem:[#allocation428_spill] sm:$0xff] %v11574_v4  ;;  %v17817_v13 = vld [vmem:[#allocation469_spill] sm:$0xff]  ;;  %v17818_v14 = vld [vmem:[#allocation470_spill] sm:$0xff]  ;;  %v1606_v4 = vrot.slane %v9238_v59, 1  ;;  %17820 = vst [vmem:[#allocation46_spill] sm:$0xff] %v11607_v32  ;;  %v11609_v56 = vpop.permute.xlu0 %2713  ;;  %4215 = vperm.xlu1 %7838, %v7421_v7   ;;  %4210 = vperm.xlu0 %7837, %v7420_v25   ;;  %v1609_v7 = vrot.slane %v9306_v34, 1 }
 0x2d6   :  { %v11595_v3 = vmul.f32 %v10911_v23, %v17817_v13  ;;  %v11599_v30 = vmul.f32 %v10911_v23, %v17818_v14  ;;  %17821 = vst [vmem:[#allocation47_spill] sm:$0xff] %v11609_v56  ;;  %v17822_v50 = vld [vmem:[#allocation58_spill] sm:$0xff]  ;;  %v11617_v33 = vadd.f32 %v957_v26, %v10902_v29  ;;  %v17824_v24 = vld [vmem:[#allocation59_spill] sm:$0xff]  ;;  %v17825_v56 = vld [vmem:[#allocation476_spill] sm:$0xff]  ;;  %v11636_v26 = vadd.f32 %v956_v44, %v10934_v43 }
 0x2d7   :  { %v959_v37 = vmul.f32 %v17822_v50, %v10937_v47  ;;  %v958_v59 = vmul.f32 %v17824_v24, %v10946_v31  ;;  %v11627_v47 = vmul.f32 %v10911_v23, %v17825_v56  ;;  %v7485_v50 = vld [vmem:[%s16484_s8 + $0xe08] sm:$0xff]  ;;  %v7484_v29 = vld [vmem:[%s16484_s8 + $0xe00] sm:$0xff]  ;;  %v11640_v31 = vmul.f32 %v10911_v23, %v9270_v19  ;;  %v17827_v24 = vld [vmem:[#allocation60_spill] sm:$0xff] }
 0x2d8   :  { %17819 = vst [vmem:[#allocation432_spill] sm:$0xff] %v11599_v30  ;;  %v1607_v30 = vrot.slane %v9286_v2, 1  ;;  %17823 = vst [vmem:[#allocation441_spill] sm:$0xff] %v11617_v33  ;;  %v1610_v25 = vrot.slane %v17510_v38, 1  ;;  %v1479_v2 = vmul.f32 %v17827_v24, %v10950_v8  ;;  %v17828_v32 = vld [vmem:[#allocation61_spill] sm:$0xff]  ;;  %v11650_v33 = vmul.f32 %v10911_v23, %v10770_v42  ;;  %v11661_v38 = vpop.permute.xlu1 %2728 }
 0x2d9   :  { %17826 = vst [vmem:[#allocation48_spill] sm:$0xff] %v11636_v26  ;;  %v1478_v51 = vmul.f32 %v17828_v32, %v10962_v1  ;;  %v11655_v43 = vld [vmem:[%s16479_s3 + $0x2] ss:$0 sm:$0xff]  ;;  %v11659_v44 = vsel %vm1670_vm1, %v1669_v49, %v1606_v4  ;;  %17830 = vst [vmem:[#allocation458_spill] sm:$0xff] %v11661_v38  ;;  %v11663_v34 = vpop.permute.xlu0 %2723  ;;  %v11666_v8 = vadd.f32 %v959_v37, %v10940_v36  ;;  %v17833_v1 = vrot.slane %v9282_v10, 1  ;;  %v17838_v36 = vld [vmem:[#allocation63_spill] sm:$0xff] }
 0x2da   :  { %17829 = vst [vmem:[#allocation449_spill] sm:$0xff] %v11659_v44  ;;  %17831 = vst [vmem:[#allocation484_spill] sm:$0xff] %v11663_v34  ;;  %v11676_v32 = vsel %vm1670_vm1, %v1607_v30, %v1608_v40  ;;  %4787 = vperm.xlu1 %7838, %v7485_v50   ;;  %4782 = vperm.xlu0 %7837, %v7484_v29   ;;  %v11679_v24 = vadd.f32 %v958_v59, %v10943_v28  ;;  %v17837_v34 = vld [vmem:[#allocation62_spill] sm:$0xff]  ;;  %v7486_v50 = vld [vmem:[%s16484_s8 + $0xe10] sm:$0xff]  ;;  %v1611_v28 = vrot.slane %v17502_v60, 1 }
 0x2db   :  { %17832 = vst [vmem:[#allocation49_spill] sm:$0xff] %v11666_v8  ;;  %v11672_v23 = vsel %vm1670_vm1, %v17833_v1, %v1669_v49  ;;  %17835 = vst [vmem:[#allocation51_spill] sm:$0xff] %v11676_v32  ;;  %v1481_v38 = vmul.f32 %v17837_v34, %v10974_v12  ;;  %v1480_v37 = vmul.f32 %v17838_v36, %v10992_v39  ;;  %v7487_v49 = vld [vmem:[%s16484_s8 + $0xe18] sm:$0xff]  ;;  %v1612_v12 = vrot.slane %v17524_v22, 1 }
 0x2dc   :  { %17834 = vst [vmem:[#allocation50_spill] sm:$0xff] %v11672_v23  ;;  %17836 = vst [vmem:[#allocation471_spill] sm:$0xff] %v11679_v24  ;;  %v11687_v8 = vsel %vm1670_vm1, %v1606_v4, %v1607_v30  ;;  %v11697_v59 = vmul.f32 %v11655_v43, %v11659_v44  ;;  %v11701_v34 = vsel %vm1670_vm1, %v1609_v7, %v1610_v25  ;;  %v11719_v1 = vpop.permute.xlu1 %2738  ;;  %v17847_v44 = vld [vmem:[#allocation505_spill] sm:$0xff]  ;;  %v17848_v22 = vld [vmem:[#allocation64_spill] sm:$0xff] }
 0x2dd   :  { %17839 = vst [vmem:[#allocation473_spill] sm:$0xff] %v11687_v8  ;;  %17840 = vst [vmem:[#allocation52_spill] sm:$0xff] %v11701_v34  ;;  %v11706_v39 = vadd.f32 %v1479_v2, %v10986_v46  ;;  %v11709_v4 = vadd.f32 %v1478_v51, %v10968_v27  ;;  %v11713_v30 = vmul.f32 %v11655_v43, %v11672_v23  ;;  %v11721_v36 = vpop.permute.xlu0 %2733  ;;  %v17849_v2 = vld [vmem:[#allocation506_spill] sm:$0xff]  ;;  %v17850_v46 = vld [vmem:[#allocation65_spill] sm:$0xff] }
 0x2de   :  { %v11717_v29 = vmul.f32 %v11655_v43, %v11676_v32  ;;  %17845 = vst [vmem:[#allocation55_spill] sm:$0xff] %v11719_v1  ;;  %17846 = vst [vmem:[#allocation486_spill] sm:$0xff] %v11721_v36  ;;  %v1483_v60 = vmul.f32 %v17848_v22, %v17847_v44  ;;  %v11729_v51 = vmul.f32 %v11655_v43, %v11687_v8  ;;  %4797 = vperm.xlu1 %7838, %v7487_v49   ;;  %v7839_v27 = vld [vmem:[%s16480_s4] sm:$0xff]   ;;  %v17852_v23 = vld [vmem:[#allocation504_spill] sm:$0xff] }
 0x2df   :  { %17841 = vst [vmem:[#allocation53_spill] sm:$0xff] %v11706_v39  ;;  %17842 = vst [vmem:[#allocation481_spill] sm:$0xff] %v11709_v4  ;;  %v1482_v39 = vmul.f32 %v17850_v46, %v17849_v2  ;;  %4792 = vperm.xlu0 %7837, %v7486_v50   ;;  %v11735_v1 = vadd.f32 %v1481_v38, %v17852_v23  ;;  %v17854_v36 = vld [vmem:[#allocation503_spill] sm:$0xff]  ;;  %v11742_v22 = vmul.f32 %v11655_v43, %v11701_v34  ;;  %v7356_v38 = vld [vmem:[%s16484_s8 + $0xa20] sm:$0xff] }
 0x2e0   :  { %17843 = vst [vmem:[#allocation54_spill] sm:$0xff] %v11713_v30  ;;  %17844 = vst [vmem:[#allocation482_spill] sm:$0xff] %v11717_v29  ;;  %v11738_v32 = vadd.f32 %v1480_v37, %v17854_v36  ;;  %v11746_v44 = vsel %vm1670_vm1, %v1608_v40, %v1609_v7  ;;  %v7357_v49 = vld [vmem:[%s16484_s8 + $0xa28] sm:$0xff]  ;;  %v11756_v23 = vsel %vm1670_vm1, %v1611_v28, %v1612_v12  ;;  %v17860_v50 = vld [vmem:[#allocation200_spill] sm:$0xff]  ;;  %7657 = vmatprep.subr.bf16.mxu0 %v7839_v27  ;;  %v11770_v29 = vpop.permute.xlu1 %2748 }
 0x2e1   :  { %17851 = vst [vmem:[#allocation492_spill] sm:$0xff] %v11729_v51  ;;  %17853 = vst [vmem:[#allocation493_spill] sm:$0xff] %v11735_v1  ;;  %v11760_v37 = vsel %vm1670_vm1, %v1610_v25, %v1611_v28  ;;  %v1613_v36 = vrot.slane %v17860_v50, 1  ;;  %v17861_v40 = vld [vmem:[#allocation207_spill] sm:$0xff]  ;;  %v17862_v2 = vld [vmem:[#allocation510_spill] sm:$0xff]  ;;  %v11772_v26 = vpop.permute.xlu0 %2743  ;;  %7658 = vmatpush3.bf16.msra.mxu0 %v7839_v27 }
 0x2e2   :  { %17855 = vst [vmem:[#allocation56_spill] sm:$0xff] %v11738_v32  ;;  %17856 = vst [vmem:[#allocation57_spill] sm:$0xff] %v11742_v22  ;;  %v1614_v7 = vrot.slane %v17861_v40, 1  ;;  %v17863_v46 = vld [vmem:[#allocation66_spill] sm:$0xff]  ;;  %v17864_v8 = vld [vmem:[#allocation239_spill] sm:$0xff]  ;;  %3643 = vperm.xlu1 %7838, %v7357_v49  }
 0x2e3   :  { %17857 = vst [vmem:[#allocation58_spill] sm:$0xff] %v11746_v44  ;;  %17858 = vst [vmem:[#allocation59_spill] sm:$0xff] %v11756_v23  ;;  %v1485_v34 = vmul.f32 %v17863_v46, %v17862_v2  ;;  %v17865_v32 = vld [vmem:[#allocation67_spill] sm:$0xff]  ;;  %v17866_v4 = vld [vmem:[#allocation206_spill] sm:$0xff]  ;;  %v11782_v2 = vmul.f32 %v11655_v43, %v11746_v44  ;;  %3638 = vperm.xlu0 %7837, %v7356_v38  }
 0x2e4   :  { %17859 = vst [vmem:[#allocation60_spill] sm:$0xff] %v11760_v37  ;;  %v1484_v1 = vmul.f32 %v17865_v32, %v17864_v8  ;;  %v1615_v22 = vrot.slane %v17866_v4, 1  ;;  %v17867_v24 = vld [vmem:[#allocation212_spill] sm:$0xff]  ;;  %17868 = vst [vmem:[#allocation61_spill] sm:$0xff] %v11770_v29  ;;  %v17870_v25 = vld [vmem:[#allocation509_spill] sm:$0xff] }
 0x2e5   :  { %v1616_v51 = vrot.slane %v17867_v24, 1  ;;  %17869 = vst [vmem:[#allocation62_spill] sm:$0xff] %v11772_v26  ;;  %v11775_v28 = vadd.f32 %v1483_v60, %v17870_v25  ;;  %v17872_v40 = vld [vmem:[#allocation215_spill] sm:$0xff]  ;;  %17874 = vst [vmem:[#allocation64_spill] sm:$0xff] %v11782_v2  ;;  %v17876_v46 = vld [vmem:[#allocation68_spill] sm:$0xff]  ;;  %v11807_v25 = vsel %vm1670_vm1, %v1613_v36, %v1614_v7 }
 0x2e6   :  { %v11778_v50 = vadd.f32 %v1482_v39, %v17872_v40  ;;  %v7840_v8 = vld [vmem:[%s16480_s4 + $0x8] sm:$0xff]   ;;  %v17877_v27 = vld [vmem:[#allocation249_spill] sm:$0xff]  ;;  %v11793_v39 = vmul.f32 %v11655_v43, %v11756_v23  ;;  %v11797_v40 = vmul.f32 %v11655_v43, %v11760_v37  ;;  %v7358_v38 = vld [vmem:[%s16484_s8 + $0xa30] sm:$0xff]  ;;  %17881 = vst [vmem:[#allocation504_spill] sm:$0xff] %v11807_v25 }
 0x2e7   :  { %17871 = vst [vmem:[#allocation63_spill] sm:$0xff] %v11775_v28  ;;  %v17875_v32 = vld [vmem:[#allocation247_spill] sm:$0xff]  ;;  %v17878_v29 = vld [vmem:[#allocation69_spill] sm:$0xff]  ;;  %7659 = vmatprep.subr.bf16.mxu0 %v7840_v8  ;;  %v17885_v4 = vld [vmem:[#allocation216_spill] sm:$0xff]  ;;  %v11827_v28 = vsel %vm1670_vm1, %v1614_v7, %v1615_v22  ;;  %3648 = vperm.xlu0 %7837, %v7358_v38  }
 0x2e8   :  { %17873 = vst [vmem:[#allocation505_spill] sm:$0xff] %v11778_v50  ;;  %v1487_v26 = vmul.f32 %v17876_v46, %v17875_v32  ;;  %v1486_v60 = vmul.f32 %v17878_v29, %v17877_v27  ;;  %17879 = vst [vmem:[#allocation506_spill] sm:$0xff] %v11793_v39  ;;  %v7359_v49 = vld [vmem:[%s16484_s8 + $0xa38] sm:$0xff]  ;;  %v11811_v29 = vsel %vm1670_vm1, %v1612_v12, %v1613_v36  ;;  %v17883_v32 = vld [vmem:[#allocation211_spill] sm:$0xff]  ;;  %v11829_v12 = vpop.permute.xlu1 %2758  ;;  %v11831_v36 = vpop.permute.xlu0 %2753  ;;  %7660 = vmatpush3.bf16.msra.mxu0 %v7840_v8 }
 0x2e9   :  { %17880 = vst [vmem:[#allocation65_spill] sm:$0xff] %v11797_v40  ;;  %17882 = vst [vmem:[#allocation503_spill] sm:$0xff] %v11811_v29  ;;  %v1617_v46 = vrot.slane %v17883_v32, 1  ;;  %v17884_v27 = vld [vmem:[#allocation225_spill] sm:$0xff]  ;;  %v11816_v37 = vadd.f32 %v1485_v34, %v17885_v4  ;;  %v17887_v23 = vld [vmem:[#allocation6_spill] sm:$0xff]  ;;  %v11823_v50 = vsel %vm1670_vm1, %v1615_v22, %v1616_v51  ;;  %3653 = vperm.xlu1 %7838, %v7359_v49  }
 0x2ea   :  { %v1618_v24 = vrot.slane %v17884_v27, 1  ;;  %v11819_v44 = vadd.f32 %v1484_v1, %v17887_v23  ;;  %17889 = vst [vmem:[#allocation239_spill] sm:$0xff] %v11823_v50  ;;  %17890 = vst [vmem:[#allocation67_spill] sm:$0xff] %v11827_v28  ;;  %v17893_v27 = vld [vmem:[#allocation8_spill] sm:$0xff]  ;;  %v17894_v32 = vld [vmem:[#allocation70_spill] sm:$0xff] }
 0x2eb   :  { %17886 = vst [vmem:[#allocation510_spill] sm:$0xff] %v11816_v37  ;;  %17891 = vst [vmem:[#allocation509_spill] sm:$0xff] %v11829_v12  ;;  %v1489_v34 = vmul.f32 %v17894_v32, %v17893_v27  ;;  %v17895_v4 = vld [vmem:[#allocation226_spill] sm:$0xff]  ;;  %v17896_v37 = vld [vmem:[#allocation71_spill] sm:$0xff]  ;;  %v11850_v32 = vmul.f32 %v11655_v43, %v11807_v25  ;;  %v11880_v25 = vsel %vm1670_vm1, %v1616_v51, %v1617_v46 }
 0x2ec   :  { %17888 = vst [vmem:[#allocation66_spill] sm:$0xff] %v11819_v44  ;;  %17892 = vst [vmem:[#allocation215_spill] sm:$0xff] %v11831_v36  ;;  %v1488_v1 = vmul.f32 %v17896_v37, %v17895_v4  ;;  %v17897_v23 = vld [vmem:[#allocation224_spill] sm:$0xff]  ;;  %v17898_v40 = vld [vmem:[#allocation231_spill] sm:$0xff]  ;;  %v11854_v37 = vmul.f32 %v11655_v43, %v11811_v29  ;;  %v11866_v4 = vmul.f32 %v11655_v43, %v11823_v50 }
 0x2ed   :  { %v1619_v44 = vrot.slane %v17897_v23, 1  ;;  %v1620_v39 = vrot.slane %v17898_v40, 1  ;;  %v7841_v22 = vld [vmem:[%s16480_s4 + $0x10] sm:$0xff]   ;;  %v17901_v8 = vld [vmem:[#allocation218_spill] sm:$0xff]  ;;  %17903 = vst [vmem:[#allocation249_spill] sm:$0xff] %v11850_v32  ;;  %v17911_v23 = vld [vmem:[#allocation73_spill] sm:$0xff] }
 0x2ee   :  { %v17899_v7 = vld [vmem:[#allocation7_spill] sm:$0xff]  ;;  %v11846_v36 = vadd.f32 %v1486_v60, %v17901_v8  ;;  %17904 = vst [vmem:[#allocation69_spill] sm:$0xff] %v11854_v37  ;;  %v17905_v38 = vld [vmem:[#allocation10_spill] sm:$0xff]  ;;  %v17906_v27 = vld [vmem:[#allocation72_spill] sm:$0xff]  ;;  %v11874_v8 = vsel %vm1670_vm1, %v1617_v46, %v1618_v24  ;;  %7661 = vmatprep.subr.bf16.mxu0 %v7841_v22 }
 0x2ef   :  { %v11843_v12 = vadd.f32 %v1487_v26, %v17899_v7  ;;  %v7423_v49 = vld [vmem:[%s16484_s8 + $0xc28] sm:$0xff]  ;;  %v7422_v26 = vld [vmem:[%s16484_s8 + $0xc20] sm:$0xff]  ;;  %v1491_v60 = vmul.f32 %v17906_v27, %v17905_v38  ;;  %17907 = vst [vmem:[#allocation216_spill] sm:$0xff] %v11866_v4  ;;  %v11870_v7 = vmul.f32 %v11655_v43, %v11827_v28  ;;  %17909 = vst [vmem:[#allocation8_spill] sm:$0xff] %v11874_v8  ;;  %v11886_v28 = vpop.permute.xlu0 %2763  ;;  %7662 = vmatpush3.bf16.msra.mxu0 %v7841_v22 }
 0x2f0   :  { %17902 = vst [vmem:[#allocation68_spill] sm:$0xff] %v11846_v36  ;;  %v17910_v40 = vld [vmem:[#allocation228_spill] sm:$0xff]  ;;  %17912 = vst [vmem:[#allocation70_spill] sm:$0xff] %v11880_v25  ;;  %v17913_v38 = vld [vmem:[#allocation229_spill] sm:$0xff]  ;;  %4225 = vperm.xlu1 %7838, %v7423_v49   ;;  %4220 = vperm.xlu0 %7837, %v7422_v26  }
 0x2f1   :  { %17900 = vst [vmem:[#allocation247_spill] sm:$0xff] %v11843_v12  ;;  %17908 = vst [vmem:[#allocation6_spill] sm:$0xff] %v11870_v7  ;;  %v1490_v29 = vmul.f32 %v17911_v23, %v17910_v40  ;;  %v1621_v27 = vrot.slane %v17913_v38, 1  ;;  %v17914_v50 = vld [vmem:[#allocation243_spill] sm:$0xff]  ;;  %v11884_v12 = vpop.permute.xlu1 %2768  ;;  %v17919_v37 = vld [vmem:[#allocation262_spill] sm:$0xff]  ;;  %v11896_v40 = vsel %vm1670_vm1, %v1619_v44, %v1620_v39 }
 0x2f2   :  { %v1622_v36 = vrot.slane %v17914_v50, 1  ;;  %17915 = vst [vmem:[#allocation226_spill] sm:$0xff] %v11884_v12  ;;  %17916 = vst [vmem:[#allocation71_spill] sm:$0xff] %v11886_v28  ;;  %v17917_v7 = vld [vmem:[#allocation227_spill] sm:$0xff]  ;;  %v11892_v32 = vadd.f32 %v1488_v1, %v17919_v37  ;;  %v7842_v51 = vld [vmem:[%s16480_s4 + $0x18] sm:$0xff]  }
 0x2f3   :  { %v11889_v4 = vadd.f32 %v1489_v34, %v17917_v7  ;;  %17921 = vst [vmem:[#allocation10_spill] sm:$0xff] %v11896_v40  ;;  %v17922_v46 = vld [vmem:[#allocation236_spill] sm:$0xff]  ;;  %v17923_v23 = vld [vmem:[#allocation74_spill] sm:$0xff]  ;;  %v17925_v12 = vld [vmem:[#allocation75_spill] sm:$0xff]  ;;  %7663 = vmatprep.subr.bf16.mxu0 %v7842_v51 }
 0x2f4   :  { %17920 = vst [vmem:[#allocation218_spill] sm:$0xff] %v11892_v32  ;;  %v1493_v28 = vmul.f32 %v17923_v23, %v17922_v46  ;;  %v17924_v22 = vld [vmem:[#allocation270_spill] sm:$0xff]  ;;  %v17927_v1 = vld [vmem:[#allocation259_spill] sm:$0xff]  ;;  %v7425_v38 = vld [vmem:[%s16484_s8 + $0xc38] sm:$0xff]  ;;  %v11918_v46 = vmul.f32 %v11655_v43, %v11874_v8  ;;  %v11926_v23 = vsel %vm1670_vm1, %v1618_v24, %v1619_v44  ;;  %v11939_v8 = vsel %vm1670_vm1, %v1621_v27, %v1622_v36 }
 0x2f5   :  { %17918 = vst [vmem:[#allocation7_spill] sm:$0xff] %v11889_v4  ;;  %v1492_v34 = vmul.f32 %v17925_v12, %v17924_v22  ;;  %v17926_v7 = vld [vmem:[#allocation242_spill] sm:$0xff]  ;;  %v1624_v37 = vrot.slane %v17927_v1, 1  ;;  %v7424_v49 = vld [vmem:[%s16484_s8 + $0xc30] sm:$0xff]  ;;  %v11922_v12 = vmul.f32 %v11655_v43, %v11880_v25  ;;  %17932 = vst [vmem:[#allocation227_spill] sm:$0xff] %v11926_v23  ;;  %v11941_v25 = vpop.permute.xlu1 %3040  ;;  %7664 = vmatpush3.bf16.msra.mxu0 %v7842_v51  ;;  %4235 = vperm.xlu1 %7838, %v7425_v38  }
 0x2f6   :  { %v1623_v50 = vrot.slane %v17926_v7, 1  ;;  %v17928_v26 = vld [vmem:[#allocation264_spill] sm:$0xff]  ;;  %17930 = vst [vmem:[#allocation228_spill] sm:$0xff] %v11918_v46  ;;  %v17933_v22 = vld [vmem:[#allocation11_spill] sm:$0xff]  ;;  %v17935_v7 = vld [vmem:[#allocation13_spill] sm:$0xff]  ;;  %4230 = vperm.xlu0 %7837, %v7424_v49   ;;  %v11991_v2 = vmul.f32 %v11655_v43, %v11939_v8 }
 0x2f7   :  { %v11914_v32 = vadd.f32 %v1491_v60, %v17928_v26  ;;  %17931 = vst [vmem:[#allocation73_spill] sm:$0xff] %v11922_v12  ;;  %v11929_v1 = vadd.f32 %v1490_v29, %v17933_v22  ;;  %v17936_v4 = vld [vmem:[#allocation76_spill] sm:$0xff]  ;;  %v11935_v26 = vmul.f32 %v11655_v43, %v11896_v40  ;;  %17938 = vst [vmem:[#allocation74_spill] sm:$0xff] %v11939_v8  ;;  %v17941_v24 = vld [vmem:[#allocation14_spill] sm:$0xff] }
 0x2f8   :  { %v1495_v60 = vmul.f32 %v17936_v4, %v17935_v7  ;;  %17939 = vst [vmem:[#allocation270_spill] sm:$0xff] %v11941_v25  ;;  %v17942_v44 = vld [vmem:[#allocation77_spill] sm:$0xff]  ;;  %v11949_v22 = vsel %vm1670_vm1, %v1620_v39, %v1621_v27  ;;  %v17945_v40 = vld [vmem:[#allocation266_spill] sm:$0xff]  ;;  %v11964_v39 = vmul.f32 %v11655_v43, %v11926_v23  ;;  %v11968_v27 = vsel %vm1670_vm1, %v1623_v50, %v1624_v37  ;;  %v17952_v49 = vld [vmem:[#allocation15_spill] sm:$0xff] }
 0x2f9   :  { %17929 = vst [vmem:[#allocation72_spill] sm:$0xff] %v11914_v32  ;;  %17934 = vst [vmem:[#allocation262_spill] sm:$0xff] %v11929_v1  ;;  %v11943_v32 = vpop.permute.xlu0 %3035  ;;  %v1494_v29 = vmul.f32 %v17942_v44, %v17941_v24  ;;  %v17944_v4 = vld [vmem:[#allocation257_spill] sm:$0xff]  ;;  %v1626_v1 = vrot.slane %v17945_v40, 1  ;;  %v17948_v51 = vld [vmem:[#allocation282_spill] sm:$0xff]  ;;  %v11980_v24 = vsel %vm1670_vm1, %v1622_v36, %v1623_v50  ;;  %v11997_v50 = vpop.permute.xlu1 %3050 }
 0x2fa   :  { %17937 = vst [vmem:[#allocation236_spill] sm:$0xff] %v11935_v26  ;;  %17940 = vst [vmem:[#allocation75_spill] sm:$0xff] %v11943_v32  ;;  %v1625_v7 = vrot.slane %v17944_v4, 1  ;;  %v7843_v25 = vld [vmem:[%s16480_s4 + $0x20] sm:$0xff]   ;;  %v11960_v12 = vadd.f32 %v1492_v34, %v17948_v51  ;;  %v7489_v38 = vld [vmem:[%s16484_s8 + $0xe28] sm:$0xff] }
 0x2fb   :  { %17943 = vst [vmem:[#allocation264_spill] sm:$0xff] %v11949_v22  ;;  %v17946_v26 = vld [vmem:[#allocation254_spill] sm:$0xff]  ;;  %17950 = vst [vmem:[#allocation76_spill] sm:$0xff] %v11964_v39  ;;  %v17955_v44 = vld [vmem:[#allocation265_spill] sm:$0xff]  ;;  %7665 = vmatprep.subr.bf16.mxu0 %v7843_v25  ;;  %4807 = vperm.xlu1 %7838, %v7489_v38  }
 0x2fc   :  { %v11957_v32 = vadd.f32 %v1493_v28, %v17946_v26  ;;  %17949 = vst [vmem:[#allocation13_spill] sm:$0xff] %v11960_v12  ;;  %17951 = vst [vmem:[#allocation14_spill] sm:$0xff] %v11968_v27  ;;  %v7488_v28 = vld [vmem:[%s16484_s8 + $0xe20] sm:$0xff]  ;;  %v1627_v51 = vrot.slane %v17955_v44, 1  ;;  %v17960_v39 = vld [vmem:[#allocation79_spill] sm:$0xff]  ;;  %7666 = vmatpush3.bf16.msra.mxu0 %v7843_v25  ;;  %v12025_v8 = vsel %vm1670_vm1, %v1624_v37, %v1625_v7 }
 0x2fd   :  { %v17953_v26 = vld [vmem:[#allocation78_spill] sm:$0xff]  ;;  %17954 = vst [vmem:[#allocation77_spill] sm:$0xff] %v11980_v24  ;;  %v17956_v40 = vld [vmem:[#allocation281_spill] sm:$0xff]  ;;  %17961 = vst [vmem:[#allocation282_spill] sm:$0xff] %v11991_v2  ;;  %v11999_v36 = vpop.permute.xlu0 %3045  ;;  %4802 = vperm.xlu0 %7837, %v7488_v28  }
 0x2fe   :  { %17947 = vst [vmem:[#allocation11_spill] sm:$0xff] %v11957_v32  ;;  %v1497_v34 = vmul.f32 %v17953_v26, %v17952_v49  ;;  %v1628_v4 = vrot.slane %v17956_v40, 1  ;;  %v17957_v23 = vld [vmem:[#allocation286_spill] sm:$0xff]  ;;  %v17959_v32 = vld [vmem:[#allocation269_spill] sm:$0xff]  ;;  %v11995_v49 = vmul.f32 %v11655_v43, %v11949_v22  ;;  %17963 = vst [vmem:[#allocation78_spill] sm:$0xff] %v11997_v50 }
 0x2ff   :  { %v11985_v12 = vadd.f32 %v1495_v60, %v17957_v23  ;;  %v1496_v46 = vmul.f32 %v17960_v39, %v17959_v32  ;;  %17964 = vst [vmem:[#allocation286_spill] sm:$0xff] %v11999_v36  ;;  %v17965_v26 = vld [vmem:[#allocation287_spill] sm:$0xff]  ;;  %v12006_v23 = vmul.f32 %v11655_v43, %v11968_v27  ;;  %v12010_v32 = vsel %vm1670_vm1, %v1625_v7, %v1626_v1  ;;  %v17969_v39 = vld [vmem:[#allocation301_spill] sm:$0xff]  ;;  %v17970_v44 = vld [vmem:[#allocation80_spill] sm:$0xff] }
 0x300   :  { %17962 = vst [vmem:[#allocation15_spill] sm:$0xff] %v11995_v49  ;;  %v12002_v40 = vadd.f32 %v1494_v29, %v17965_v26  ;;  %17968 = vst [vmem:[#allocation287_spill] sm:$0xff] %v12010_v32  ;;  %v7844_v60 = vld [vmem:[%s16480_s4 + $0x28] sm:$0xff]   ;;  %v1499_v25 = vmul.f32 %v17970_v44, %v17969_v39  ;;  %v17971_v22 = vld [vmem:[#allocation17_spill] sm:$0xff]  ;;  %v12021_v27 = vmul.f32 %v11655_v43, %v11980_v24 }
 0x301   :  { %17958 = vst [vmem:[#allocation254_spill] sm:$0xff] %v11985_v12  ;;  %17967 = vst [vmem:[#allocation79_spill] sm:$0xff] %v12006_v23  ;;  %v17972_v29 = vld [vmem:[#allocation81_spill] sm:$0xff]  ;;  %v7490_v28 = vld [vmem:[%s16484_s8 + $0xe30] sm:$0xff]  ;;  %7667 = vmatprep.subr.bf16.mxu0 %v7844_v60  ;;  %v12053_v23 = vpop.permute.xlu0 %3055 }
 0x302   :  { %17966 = vst [vmem:[#allocation269_spill] sm:$0xff] %v12002_v40  ;;  %v1498_v26 = vmul.f32 %v17972_v29, %v17971_v22  ;;  %17973 = vst [vmem:[#allocation301_spill] sm:$0xff] %v12021_v27  ;;  %v7491_v38 = vld [vmem:[%s16484_s8 + $0xe38] sm:$0xff]  ;;  %v12038_v22 = vsel %vm1670_vm1, %v1627_v51, %v1628_v4  ;;  %v17979_v36 = vld [vmem:[#allocation294_spill] sm:$0xff]  ;;  %v12047_v40 = vmul.f32 %v11655_v43, %v12010_v32  ;;  %7668 = vmatpush3.bf16.msra.mxu0 %v7844_v60 }
 0x303   :  { %17974 = vst [vmem:[#allocation80_spill] sm:$0xff] %v12025_v8  ;;  %v17975_v44 = vld [vmem:[#allocation256_spill] sm:$0xff]  ;;  %17977 = vst [vmem:[#allocation81_spill] sm:$0xff] %v12038_v22  ;;  %v1630_v37 = vrot.slane %v17979_v36, 1  ;;  %v17980_v7 = vld [vmem:[#allocation263_spill] sm:$0xff]  ;;  %4817 = vperm.xlu1 %7838, %v7491_v38   ;;  %4812 = vperm.xlu0 %7837, %v7490_v28  }
 0x304   :  { %v12034_v39 = vadd.f32 %v1497_v34, %v17975_v44  ;;  %v17978_v29 = vld [vmem:[#allocation280_spill] sm:$0xff]  ;;  %v12043_v50 = vadd.f32 %v1496_v46, %v17980_v7  ;;  %v17982_v12 = vld [vmem:[#allocation293_spill] sm:$0xff]  ;;  %v17983_v34 = vld [vmem:[#allocation298_spill] sm:$0xff]  ;;  %17985 = vst [vmem:[#allocation511_spill] sm:$0xff] %v12053_v23  ;;  %v12061_v7 = vsel %vm1670_vm1, %v1626_v1, %v1627_v51 }
 0x305   :  { %v1629_v24 = vrot.slane %v17978_v29, 1  ;;  %v1631_v27 = vrot.slane %v17982_v12, 1  ;;  %v1632_v44 = vrot.slane %v17983_v34, 1  ;;  %v17986_v29 = vld [vmem:[#allocation18_spill] sm:$0xff]  ;;  %v17988_v2 = vld [vmem:[#allocation273_spill] sm:$0xff]  ;;  %v17989_v30 = vld [vmem:[#allocation83_spill] sm:$0xff] }
 0x306   :  { %17976 = vst [vmem:[#allocation17_spill] sm:$0xff] %v12034_v39  ;;  %17981 = vst [vmem:[#allocation256_spill] sm:$0xff] %v12043_v50  ;;  %v12051_v39 = vpop.permute.xlu1 %3060  ;;  %v17987_v49 = vld [vmem:[#allocation82_spill] sm:$0xff]  ;;  %v1500_v46 = vmul.f32 %v17989_v30, %v17988_v2  ;;  %v7845_v34 = vld [vmem:[%s16480_s4 + $0x30] sm:$0xff]   ;;  %v12078_v30 = vmul.f32 %v11655_v43, %v12038_v22  ;;  %v12100_v22 = vmul.f32 %v11655_v43, %v12061_v7 }
 0x307   :  { %17984 = vst [vmem:[#allocation263_spill] sm:$0xff] %v12051_v39  ;;  %v1501_v36 = vmul.f32 %v17987_v49, %v17986_v29  ;;  %17990 = vst [vmem:[#allocation18_spill] sm:$0xff] %v12061_v7  ;;  %v17991_v12 = vld [vmem:[#allocation271_spill] sm:$0xff]  ;;  %v12074_v49 = vmul.f32 %v11655_v43, %v12025_v8  ;;  %v7360_v1 = vld [vmem:[%s16484_s8 + $0xa40] sm:$0xff]  ;;  %v12092_v29 = vsel %vm1670_vm1, %v1629_v24, %v1630_v37  ;;  %7669 = vmatprep.subr.bf16.mxu0 %v7845_v34 }
 0x308   :  { %v12067_v32 = vadd.f32 %v1499_v25, %v17991_v12  ;;  %v17993_v60 = vld [vmem:[#allocation307_spill] sm:$0xff]  ;;  %17995 = vst [vmem:[#allocation83_spill] sm:$0xff] %v12078_v30  ;;  %v17997_v51 = vld [vmem:[#allocation84_spill] sm:$0xff]  ;;  %v17999_v38 = vld [vmem:[#allocation85_spill] sm:$0xff]  ;;  %v12104_v8 = vsel %vm1670_vm1, %v1631_v27, %v1632_v44  ;;  %7670 = vmatpush3.bf16.msra.mxu0 %v7845_v34  ;;  %v1636_v30 = vrot.slane %v17678_v11, 1  ;;  %3658 = vperm.xlu0 %7837, %v7360_v1  }
 0x309   :  { %v12070_v23 = vadd.f32 %v1498_v26, %v17993_v60  ;;  %v7361_v2 = vld [vmem:[%s16484_s8 + $0xa48] sm:$0xff]  ;;  %v17998_v26 = vld [vmem:[#allocation324_spill] sm:$0xff]  ;;  %18000 = vst [vmem:[#allocation271_spill] sm:$0xff] %v12092_v29  ;;  %v12096_v60 = vsel %vm1670_vm1, %v1628_v4, %v1629_v24  ;;  %18003 = vst [vmem:[#allocation84_spill] sm:$0xff] %v12104_v8  ;;  %v12135_v34 = vsel %vm1670_vm1, %v1630_v37, %v1631_v27 }
 0x30a   :  { %17992 = vst [vmem:[#allocation82_spill] sm:$0xff] %v12067_v32  ;;  %v17996_v12 = vld [vmem:[#allocation283_spill] sm:$0xff]  ;;  %v1502_v28 = vmul.f32 %v17999_v38, %v17998_v26  ;;  %18001 = vst [vmem:[#allocation307_spill] sm:$0xff] %v12096_v60  ;;  %v18005_v26 = vld [vmem:[#allocation314_spill] sm:$0xff]  ;;  %v12108_v39 = vpop.permute.xlu1 %3070  ;;  %3663 = vperm.xlu1 %7838, %v7361_v2   ;;  %v12153_v27 = vmul.f32 %v11655_v43, %v12104_v8 }
 0x30b   :  { %17994 = vst [vmem:[#allocation273_spill] sm:$0xff] %v12070_v23  ;;  %v1503_v25 = vmul.f32 %v17997_v51, %v17996_v12  ;;  %18002 = vst [vmem:[#allocation283_spill] sm:$0xff] %v12100_v22  ;;  %v18004_v12 = vld [vmem:[#allocation297_spill] sm:$0xff]  ;;  %v1634_v38 = vrot.slane %v18005_v26, 1  ;;  %v12110_v23 = vpop.permute.xlu0 %3065  ;;  %v18008_v4 = vld [vmem:[#allocation308_spill] sm:$0xff] }
 0x30c   :  { %v1633_v51 = vrot.slane %v18004_v12, 1  ;;  %18006 = vst [vmem:[#allocation324_spill] sm:$0xff] %v12108_v39  ;;  %18007 = vst [vmem:[#allocation85_spill] sm:$0xff] %v12110_v23  ;;  %v12113_v24 = vadd.f32 %v1501_v36, %v18008_v4  ;;  %v18010_v32 = vld [vmem:[#allocation19_spill] sm:$0xff]  ;;  %v18012_v7 = vld [vmem:[#allocation313_spill] sm:$0xff]  ;;  %v12127_v36 = vmul.f32 %v11655_v43, %v12092_v29 }
 0x30d   :  { %v12116_v50 = vadd.f32 %v1500_v46, %v18010_v32  ;;  %v1635_v22 = vrot.slane %v18012_v7, 1  ;;  %v7846_v26 = vld [vmem:[%s16480_s4 + $0x38] sm:$0xff]   ;;  %v18013_v12 = vld [vmem:[#allocation302_spill] sm:$0xff]  ;;  %v12131_v32 = vmul.f32 %v11655_v43, %v12096_v60  ;;  %18017 = vst [vmem:[#allocation512_spill] sm:$0xff] %v12135_v34  ;;  %v18023_v7 = vld [vmem:[#allocation87_spill] sm:$0xff] }
 0x30e   :  { %18009 = vst [vmem:[#allocation308_spill] sm:$0xff] %v12113_v24  ;;  %v18014_v39 = vld [vmem:[#allocation86_spill] sm:$0xff]  ;;  %18015 = vst [vmem:[#allocation302_spill] sm:$0xff] %v12127_v36  ;;  %v7363_v46 = vld [vmem:[%s16484_s8 + $0xa58] sm:$0xff]  ;;  %7671 = vmatprep.subr.bf16.mxu0 %v7846_v26 }
 0x30f   :  { %18011 = vst [vmem:[#allocation19_spill] sm:$0xff] %v12116_v50  ;;  %v1505_v23 = vmul.f32 %v18014_v39, %v18013_v12  ;;  %18016 = vst [vmem:[#allocation86_spill] sm:$0xff] %v12131_v32  ;;  %v7362_v39 = vld [vmem:[%s16484_s8 + $0xa50] sm:$0xff]  ;;  %v18018_v2 = vld [vmem:[#allocation21_spill] sm:$0xff]  ;;  %7672 = vmatpush3.bf16.msra.mxu0 %v7846_v26  ;;  %3673 = vperm.xlu1 %7838, %v7363_v46  }
 0x310   :  { %v12144_v1 = vadd.f32 %v1503_v25, %v18018_v2  ;;  %v18020_v12 = vld [vmem:[#allocation292_spill] sm:$0xff]  ;;  %v18022_v11 = vld [vmem:[#allocation22_spill] sm:$0xff]  ;;  %v18025_v37 = vld [vmem:[#allocation309_spill] sm:$0xff]  ;;  %v12161_v25 = vsel %vm1670_vm1, %v1633_v51, %v1634_v38  ;;  %v12173_v2 = vmul.f32 %v11655_v43, %v12135_v34  ;;  %3668 = vperm.xlu0 %7837, %v7362_v39  }
 0x311   :  { %v12147_v4 = vadd.f32 %v1502_v28, %v18020_v12  ;;  %v1504_v60 = vmul.f32 %v18023_v7, %v18022_v11  ;;  %18024 = vst [vmem:[#allocation22_spill] sm:$0xff] %v12153_v27  ;;  %v18026_v29 = vld [vmem:[#allocation88_spill] sm:$0xff]  ;;  %v18027_v24 = vld [vmem:[#allocation339_spill] sm:$0xff]  ;;  %v18028_v32 = vld [vmem:[#allocation89_spill] sm:$0xff]  ;;  %v12165_v28 = vsel %vm1670_vm1, %v1632_v44, %v1633_v51  ;;  %v12167_v11 = vpop.permute.xlu1 %3080  ;;  %v12169_v7 = vpop.permute.xlu0 %3075 }
 0x312   :  { %18019 = vst [vmem:[#allocation21_spill] sm:$0xff] %v12144_v1  ;;  %v1507_v50 = vmul.f32 %v18026_v29, %v18025_v37  ;;  %v1506_v36 = vmul.f32 %v18028_v32, %v18027_v24  ;;  %18029 = vst [vmem:[#allocation87_spill] sm:$0xff] %v12161_v25  ;;  %v12177_v29 = vsel %vm1670_vm1, %v1635_v22, %v1636_v30  ;;  %v18035_v24 = vld [vmem:[#allocation326_spill] sm:$0xff]  ;;  %v18036_v12 = vld [vmem:[#allocation333_spill] sm:$0xff] }
 0x313   :  { %18021 = vst [vmem:[#allocation292_spill] sm:$0xff] %v12147_v4  ;;  %18030 = vst [vmem:[#allocation309_spill] sm:$0xff] %v12165_v28  ;;  %v1637_v32 = vrot.slane %v18035_v24, 1  ;;  %v1638_v37 = vrot.slane %v18036_v12, 1  ;;  %v18037_v44 = vld [vmem:[#allocation330_spill] sm:$0xff]  ;;  %v18039_v8 = vld [vmem:[#allocation24_spill] sm:$0xff] }
 0x314   :  { %18031 = vst [vmem:[#allocation88_spill] sm:$0xff] %v12167_v11  ;;  %18032 = vst [vmem:[#allocation339_spill] sm:$0xff] %v12169_v7  ;;  %v12182_v51 = vadd.f32 %v1505_v23, %v18037_v44  ;;  %v18040_v7 = vld [vmem:[#allocation90_spill] sm:$0xff]  ;;  %v18041_v11 = vld [vmem:[#allocation332_spill] sm:$0xff]  ;;  %v12199_v23 = vmul.f32 %v11655_v43, %v12161_v25  ;;  %v12219_v25 = vmul.f32 %v11655_v43, %v12177_v29 }
 0x315   :  { %18033 = vst [vmem:[#allocation89_spill] sm:$0xff] %v12173_v2  ;;  %18034 = vst [vmem:[#allocation513_spill] sm:$0xff] %v12177_v29  ;;  %v1509_v26 = vmul.f32 %v18040_v7, %v18039_v8  ;;  %v1639_v4 = vrot.slane %v18041_v11, 1  ;;  %v18042_v34 = vld [vmem:[#allocation358_spill] sm:$0xff]  ;;  %v18043_v46 = vld [vmem:[#allocation304_spill] sm:$0xff]  ;;  %v12203_v8 = vmul.f32 %v11655_v43, %v12165_v28  ;;  %v12207_v7 = vsel %vm1670_vm1, %v1634_v38, %v1635_v22  ;;  %v12223_v28 = vpop.permute.xlu0 %3085 }
 0x316   :  { %18038 = vst [vmem:[#allocation330_spill] sm:$0xff] %v12182_v51  ;;  %v1640_v1 = vrot.slane %v18042_v34, 1  ;;  %v7427_v2 = vld [vmem:[%s16484_s8 + $0xc48] sm:$0xff]  ;;  %v7426_v12 = vld [vmem:[%s16484_s8 + $0xc40] sm:$0xff]  ;;  %v12195_v39 = vadd.f32 %v1504_v60, %v18043_v46  ;;  %18045 = vst [vmem:[#allocation90_spill] sm:$0xff] %v12199_v23  ;;  %v12221_v51 = vpop.permute.xlu1 %3090 }
 0x317   :  { %18046 = vst [vmem:[#allocation304_spill] sm:$0xff] %v12203_v8  ;;  %18047 = vst [vmem:[#allocation514_spill] sm:$0xff] %v12207_v7  ;;  %v18048_v44 = vld [vmem:[#allocation336_spill] sm:$0xff]  ;;  %v18050_v11 = vld [vmem:[#allocation23_spill] sm:$0xff]  ;;  %4245 = vperm.xlu1 %7838, %v7427_v2   ;;  %4240 = vperm.xlu0 %7837, %v7426_v12  }
 0x318   :  { %18044 = vst [vmem:[#allocation24_spill] sm:$0xff] %v12195_v39  ;;  %v12210_v34 = vadd.f32 %v1507_v50, %v18048_v44  ;;  %v12213_v24 = vadd.f32 %v1506_v36, %v18050_v11  ;;  %v18052_v60 = vld [vmem:[#allocation315_spill] sm:$0xff]  ;;  %18056 = vst [vmem:[#allocation515_spill] sm:$0xff] %v12223_v28  ;;  %v18057_v8 = vld [vmem:[#allocation352_spill] sm:$0xff]  ;;  %v12229_v50 = vsel %vm1670_vm1, %v1637_v32, %v1638_v37 }
 0x319   :  { %v18053_v46 = vld [vmem:[#allocation91_spill] sm:$0xff]  ;;  %18054 = vst [vmem:[#allocation315_spill] sm:$0xff] %v12219_v25  ;;  %v18058_v22 = vld [vmem:[#allocation92_spill] sm:$0xff]  ;;  %18059 = vst [vmem:[#allocation352_spill] sm:$0xff] %v12229_v50  ;;  %v12233_v36 = vsel %vm1670_vm1, %v1636_v30, %v1637_v32  ;;  %v12242_v28 = vmul.f32 %v11655_v43, %v12207_v7 }
 0x31a   :  { %18049 = vst [vmem:[#allocation336_spill] sm:$0xff] %v12210_v34  ;;  %18051 = vst [vmem:[#allocation23_spill] sm:$0xff] %v12213_v24  ;;  %v1508_v39 = vmul.f32 %v18053_v46, %v18052_v60  ;;  %v1511_v38 = vmul.f32 %v18058_v22, %v18057_v8  ;;  %v18061_v11 = vld [vmem:[#allocation321_spill] sm:$0xff]  ;;  %v18063_v60 = vld [vmem:[#allocation27_spill] sm:$0xff]  ;;  %v12246_v8 = vsel %vm1670_vm1, %v1639_v4, %v1640_v1 }
 0x31b   :  { %18055 = vst [vmem:[#allocation91_spill] sm:$0xff] %v12221_v51  ;;  %18060 = vst [vmem:[#allocation92_spill] sm:$0xff] %v12233_v36  ;;  %v12236_v44 = vadd.f32 %v1509_v26, %v18061_v11  ;;  %v18064_v46 = vld [vmem:[#allocation93_spill] sm:$0xff]  ;;  %v7428_v2 = vld [vmem:[%s16484_s8 + $0xc50] sm:$0xff]  ;;  %v12263_v24 = vmul.f32 %v11655_v43, %v12229_v50  ;;  %v12267_v34 = vmul.f32 %v11655_v43, %v12233_v36 }
 0x31c   :  { %v1510_v29 = vmul.f32 %v18064_v46, %v18063_v60  ;;  %18065 = vst [vmem:[#allocation27_spill] sm:$0xff] %v12242_v28  ;;  %18066 = vst [vmem:[#allocation93_spill] sm:$0xff] %v12246_v8  ;;  %v7429_v30 = vld [vmem:[%s16484_s8 + $0xc58] sm:$0xff]  ;;  %v18067_v32 = vld [vmem:[#allocation355_spill] sm:$0xff]  ;;  %4250 = vperm.xlu0 %7837, %v7428_v2  }
 0x31d   :  { %18062 = vst [vmem:[#allocation321_spill] sm:$0xff] %v12236_v44  ;;  %v1641_v12 = vrot.slane %v18067_v32, 1  ;;  %v18068_v26 = vld [vmem:[#allocation362_spill] sm:$0xff]  ;;  %v18069_v11 = vld [vmem:[#allocation361_spill] sm:$0xff]  ;;  %v18070_v46 = vld [vmem:[#allocation376_spill] sm:$0xff]  ;;  %v12271_v32 = vsel %vm1670_vm1, %v1638_v37, %v1639_v4  ;;  %4255 = vperm.xlu1 %7838, %v7429_v30  }
 0x31e   :  { %v1642_v22 = vrot.slane %v18068_v26, 1  ;;  %v1643_v60 = vrot.slane %v18069_v11, 1  ;;  %v1644_v7 = vrot.slane %v18070_v46, 1  ;;  %v18071_v51 = vld [vmem:[#allocation322_spill] sm:$0xff]  ;;  %18073 = vst [vmem:[#allocation516_spill] sm:$0xff] %v12263_v24  ;;  %18074 = vst [vmem:[#allocation517_spill] sm:$0xff] %v12267_v34  ;;  %v12273_v26 = vpop.permute.xlu1 %3100  ;;  %v12275_v11 = vpop.permute.xlu0 %3095 }
 0x31f   :  { %v12259_v44 = vadd.f32 %v1508_v39, %v18071_v51  ;;  %18075 = vst [vmem:[#allocation518_spill] sm:$0xff] %v12271_v32  ;;  %18076 = vst [vmem:[#allocation519_spill] sm:$0xff] %v12273_v26  ;;  %v18078_v46 = vld [vmem:[#allocation26_spill] sm:$0xff]  ;;  %v18080_v51 = vld [vmem:[#allocation331_spill] sm:$0xff] }
 0x320   :  { %18077 = vst [vmem:[#allocation520_spill] sm:$0xff] %v12275_v11  ;;  %v12278_v28 = vadd.f32 %v1511_v38, %v18078_v46  ;;  %v18081_v39 = vld [vmem:[#allocation94_spill] sm:$0xff]  ;;  %v18083_v24 = vld [vmem:[#allocation95_spill] sm:$0xff]  ;;  %v18084_v36 = vld [vmem:[#allocation353_spill] sm:$0xff]  ;;  %v12293_v38 = vmul.f32 %v11655_v43, %v12246_v8 }
 0x321   :  { %18072 = vst [vmem:[#allocation322_spill] sm:$0xff] %v12259_v44  ;;  %v1513_v44 = vmul.f32 %v18081_v39, %v18080_v51  ;;  %v18082_v50 = vld [vmem:[#allocation366_spill] sm:$0xff]  ;;  %v12285_v34 = vadd.f32 %v1510_v29, %v18084_v36  ;;  %v18086_v4 = vld [vmem:[#allocation341_spill] sm:$0xff]  ;;  %v18087_v37 = vld [vmem:[#allocation96_spill] sm:$0xff]  ;;  %v12303_v29 = vmul.f32 %v11655_v43, %v12271_v32  ;;  %v12315_v36 = vsel %vm1670_vm1, %v1643_v60, %v1644_v7 }
 0x322   :  { %18079 = vst [vmem:[#allocation26_spill] sm:$0xff] %v12278_v28  ;;  %v1512_v25 = vmul.f32 %v18083_v24, %v18082_v50  ;;  %v1515_v23 = vmul.f32 %v18087_v37, %v18086_v4  ;;  %v18088_v26 = vld [vmem:[#allocation30_spill] sm:$0xff]  ;;  %v18089_v27 = vld [vmem:[#allocation97_spill] sm:$0xff]  ;;  %v12307_v50 = vsel %vm1670_vm1, %v1641_v12, %v1642_v22  ;;  %18093 = vst [vmem:[#allocation353_spill] sm:$0xff] %v12315_v36  ;;  %v1646_v37 = vrot.slane %v17742_v61, 1  ;;  %v12325_v32 = vpop.permute.xlu1 %3110  ;;  %v12327_v8 = vpop.permute.xlu0 %3105 }
 0x323   :  { %18085 = vst [vmem:[#allocation331_spill] sm:$0xff] %v12285_v34  ;;  %v1514_v11 = vmul.f32 %v18089_v27, %v18088_v26  ;;  %v7493_v46 = vld [vmem:[%s16484_s8 + $0xe48] sm:$0xff]  ;;  %v7492_v24 = vld [vmem:[%s16484_s8 + $0xe40] sm:$0xff]  ;;  %18090 = vst [vmem:[#allocation94_spill] sm:$0xff] %v12303_v29  ;;  %v12311_v27 = vsel %vm1670_vm1, %v1640_v1, %v1641_v12  ;;  %v12321_v51 = vsel %vm1670_vm1, %v1642_v22, %v1643_v60 }
 0x324   :  { %18091 = vst [vmem:[#allocation366_spill] sm:$0xff] %v12307_v50  ;;  %18092 = vst [vmem:[#allocation95_spill] sm:$0xff] %v12311_v27  ;;  %v18094_v30 = vld [vmem:[#allocation31_spill] sm:$0xff]  ;;  %v18095_v2 = vld [vmem:[#allocation98_spill] sm:$0xff]  ;;  %4827 = vperm.xlu1 %7838, %v7493_v46   ;;  %4822 = vperm.xlu0 %7837, %v7492_v24  }
 0x325   :  { %v1517_v26 = vmul.f32 %v18095_v2, %v18094_v30  ;;  %18096 = vst [vmem:[#allocation341_spill] sm:$0xff] %v12321_v51  ;;  %v18097_v39 = vld [vmem:[#allocation374_spill] sm:$0xff]  ;;  %18098 = vst [vmem:[#allocation96_spill] sm:$0xff] %v12325_v32  ;;  %v18100_v1 = vld [vmem:[#allocation29_spill] sm:$0xff]  ;;  %v1648_v2 = vrot.slane %v17749_v9, 1  ;;  %v12367_v9 = vmul.f32 %v11655_v43, %v12321_v51 }
 0x326   :  { %v1645_v4 = vrot.slane %v18097_v39, 1  ;;  %18099 = vst [vmem:[#allocation30_spill] sm:$0xff] %v12327_v8  ;;  %v12330_v12 = vadd.f32 %v1513_v44, %v18100_v1  ;;  %v18101_v34 = vld [vmem:[#allocation337_spill] sm:$0xff]  ;;  %v18103_v29 = vld [vmem:[#allocation383_spill] sm:$0xff]  ;;  %v12345_v8 = vmul.f32 %v11655_v43, %v12307_v50  ;;  %v18111_v24 = vld [vmem:[#allocation100_spill] sm:$0xff] }
 0x327   :  { %v12333_v28 = vadd.f32 %v1512_v25, %v18101_v34  ;;  %v1647_v30 = vrot.slane %v18103_v29, 1  ;;  %v18104_v22 = vld [vmem:[#allocation373_spill] sm:$0xff]  ;;  %v18106_v61 = vld [vmem:[#allocation375_spill] sm:$0xff]  ;;  %v12349_v34 = vmul.f32 %v11655_v43, %v12311_v27  ;;  %v18112_v29 = vld [vmem:[#allocation350_spill] sm:$0xff] }
 0x328   :  { %v12338_v60 = vadd.f32 %v1515_v23, %v18104_v22  ;;  %v12341_v39 = vadd.f32 %v1514_v11, %v18106_v61  ;;  %v7495_v25 = vld [vmem:[%s16484_s8 + $0xe58] sm:$0xff]  ;;  %v7494_v23 = vld [vmem:[%s16484_s8 + $0xe50] sm:$0xff]  ;;  %v12363_v22 = vmul.f32 %v11655_v43, %v12315_v36  ;;  %v12370_v27 = vadd.f32 %v1517_v26, %v18112_v29  ;;  %v18123_v26 = vld [vmem:[#allocation102_spill] sm:$0xff] }
 0x329   :  { %18102 = vst [vmem:[#allocation97_spill] sm:$0xff] %v12333_v28  ;;  %v18108_v44 = vld [vmem:[#allocation399_spill] sm:$0xff]  ;;  %v18110_v11 = vld [vmem:[#allocation32_spill] sm:$0xff]  ;;  %v18115_v32 = vld [vmem:[#allocation101_spill] sm:$0xff]  ;;  %v12388_v51 = vsel %vm1670_vm1, %v1647_v30, %v1648_v2  ;;  %v12392_v29 = vsel %vm1670_vm1, %v1646_v37, %v1647_v30  ;;  %4837 = vperm.xlu1 %7838, %v7495_v25   ;;  %4832 = vperm.xlu0 %7837, %v7494_v23  }
 0x32a   :  { %18105 = vst [vmem:[#allocation31_spill] sm:$0xff] %v12338_v60  ;;  %18107 = vst [vmem:[#allocation98_spill] sm:$0xff] %v12341_v39  ;;  %v18109_v46 = vld [vmem:[#allocation99_spill] sm:$0xff]  ;;  %v1519_v1 = vmul.f32 %v18111_v24, %v18110_v11  ;;  %v18114_v50 = vld [vmem:[#allocation400_spill] sm:$0xff]  ;;  %v12382_v11 = vpop.permute.xlu1 %3120  ;;  %v12384_v24 = vpop.permute.xlu0 %3115  ;;  %v1652_v60 = vrot.slane %v17770_v54, 1 }
 0x32b   :  { %v1516_v61 = vmul.f32 %v18109_v46, %v18108_v44  ;;  %18113 = vst [vmem:[#allocation29_spill] sm:$0xff] %v12370_v27  ;;  %v1518_v39 = vmul.f32 %v18115_v32, %v18114_v50  ;;  %v12376_v44 = vsel %vm1670_vm1, %v1645_v4, %v1646_v37  ;;  %v12380_v46 = vsel %vm1670_vm1, %v1644_v7, %v1645_v4  ;;  %v18122_v7 = vld [vmem:[#allocation34_spill] sm:$0xff]  ;;  %v18126_v25 = vld [vmem:[#allocation351_spill] sm:$0xff] }
 0x32c   :  { %18116 = vst [vmem:[#allocation337_spill] sm:$0xff] %v12376_v44  ;;  %18117 = vst [vmem:[#allocation373_spill] sm:$0xff] %v12380_v46  ;;  %v1649_v32 = vrot.slane %v17747_v55, 1  ;;  %v1650_v50 = vrot.slane %v17763_v21, 1  ;;  %v1521_v4 = vmul.f32 %v18123_v26, %v18122_v7  ;;  %v18124_v36 = vld [vmem:[#allocation370_spill] sm:$0xff]  ;;  %v1651_v27 = vrot.slane %v17757_v17, 1 }
 0x32d   :  { %18118 = vst [vmem:[#allocation375_spill] sm:$0xff] %v12382_v11  ;;  %18119 = vst [vmem:[#allocation399_spill] sm:$0xff] %v12384_v24  ;;  %v18125_v11 = vld [vmem:[#allocation103_spill] sm:$0xff]  ;;  %v7364_v30 = vld [vmem:[%s16484_s8 + $0xa60] sm:$0xff]  ;;  %v12409_v23 = vadd.f32 %v1516_v61, %v18126_v25  ;;  %v12429_v61 = vmul.f32 %v11655_v43, %v12388_v51 }
 0x32e   :  { %18120 = vst [vmem:[#allocation99_spill] sm:$0xff] %v12388_v51  ;;  %18121 = vst [vmem:[#allocation32_spill] sm:$0xff] %v12392_v29  ;;  %v1520_v24 = vmul.f32 %v18125_v11, %v18124_v36  ;;  %v7365_v37 = vld [vmem:[%s16484_s8 + $0xa68] sm:$0xff]  ;;  %v18127_v21 = vld [vmem:[#allocation33_spill] sm:$0xff]  ;;  %v12416_v36 = vmul.f32 %v11655_v43, %v12376_v44  ;;  %v12420_v11 = vmul.f32 %v11655_v43, %v12380_v46  ;;  %v12437_v25 = vpop.permute.xlu0 %3125  ;;  %3678 = vperm.xlu0 %7837, %v7364_v30  }
 0x32f   :  { %v12412_v7 = vadd.f32 %v1519_v1, %v18127_v21  ;;  %v18129_v26 = vld [vmem:[#allocation401_spill] sm:$0xff]  ;;  %v18131_v17 = vld [vmem:[#allocation379_spill] sm:$0xff]  ;;  %v18132_v55 = vld [vmem:[#allocation104_spill] sm:$0xff]  ;;  %v12433_v21 = vmul.f32 %v11655_v43, %v12392_v29  ;;  %v12435_v1 = vpop.permute.xlu1 %3130  ;;  %18135 = vst [vmem:[#allocation34_spill] sm:$0xff] %v12437_v25  ;;  %v12441_v46 = vsel %vm1670_vm1, %v1649_v32, %v1650_v50  ;;  %3683 = vperm.xlu1 %7838, %v7365_v37  }
 0x330   :  { %v12423_v54 = vadd.f32 %v1518_v39, %v18129_v26  ;;  %v1523_v28 = vmul.f32 %v18132_v55, %v18131_v17  ;;  %18134 = vst [vmem:[#allocation101_spill] sm:$0xff] %v12435_v1  ;;  %18136 = vst [vmem:[#allocation102_spill] sm:$0xff] %v12441_v46  ;;  %v12445_v39 = vsel %vm1670_vm1, %v1648_v2, %v1649_v32  ;;  %v18138_v55 = vld [vmem:[#allocation411_spill] sm:$0xff]  ;;  %v1654_v26 = vrot.slane %v17783_v62, 1  ;;  %v18139_v29 = vld [vmem:[#allocation409_spill] sm:$0xff] }
 0x331   :  { %18128 = vst [vmem:[#allocation100_spill] sm:$0xff] %v12412_v7  ;;  %18133 = vst [vmem:[#allocation400_spill] sm:$0xff] %v12433_v21  ;;  %v1653_v17 = vrot.slane %v18138_v55, 1  ;;  %v12450_v51 = vadd.f32 %v1521_v4, %v18139_v29  ;;  %v18141_v44 = vld [vmem:[#allocation35_spill] sm:$0xff]  ;;  %v18143_v25 = vld [vmem:[#allocation380_spill] sm:$0xff]  ;;  %v12459_v21 = vsel %vm1670_vm1, %v1651_v27, %v1652_v60 }
 0x332   :  { %18130 = vst [vmem:[#allocation350_spill] sm:$0xff] %v12423_v54  ;;  %18137 = vst [vmem:[#allocation370_spill] sm:$0xff] %v12445_v39  ;;  %v12453_v1 = vadd.f32 %v1520_v24, %v18141_v44  ;;  %v18144_v54 = vld [vmem:[#allocation105_spill] sm:$0xff]  ;;  %v7366_v32 = vld [vmem:[%s16484_s8 + $0xa70] sm:$0xff] }
 0x333   :  { %18140 = vst [vmem:[#allocation103_spill] sm:$0xff] %v12450_v51  ;;  %v1522_v7 = vmul.f32 %v18144_v54, %v18143_v25  ;;  %18145 = vst [vmem:[#allocation33_spill] sm:$0xff] %v12459_v21  ;;  %v7367_v2 = vld [vmem:[%s16484_s8 + $0xa78] sm:$0xff]  ;;  %v18146_v29 = vld [vmem:[#allocation382_spill] sm:$0xff]  ;;  %v1655_v54 = vrot.slane %v17778_v15, 1  ;;  %v1656_v25 = vrot.slane %v17796_v53, 1  ;;  %v12482_v51 = vmul.f32 %v11655_v43, %v12445_v39  ;;  %3688 = vperm.xlu0 %7837, %v7366_v32  }
 0x334   :  { %18142 = vst [vmem:[#allocation351_spill] sm:$0xff] %v12453_v1  ;;  %v18147_v4 = vld [vmem:[#allocation106_spill] sm:$0xff]  ;;  %v18149_v24 = vld [vmem:[#allocation107_spill] sm:$0xff]  ;;  %v18150_v62 = vld [vmem:[#allocation417_spill] sm:$0xff]  ;;  %v12478_v1 = vmul.f32 %v11655_v43, %v12441_v46  ;;  %v1658_v53 = vrot.slane %v17803_v41, 1  ;;  %3693 = vperm.xlu1 %7838, %v7367_v2  }
 0x335   :  { %v1525_v37 = vmul.f32 %v18147_v4, %v18146_v29  ;;  %v18148_v44 = vld [vmem:[#allocation38_spill] sm:$0xff]  ;;  %v12474_v55 = vadd.f32 %v1523_v28, %v18150_v62  ;;  %18153 = vst [vmem:[#allocation104_spill] sm:$0xff] %v12482_v51  ;;  %v12486_v29 = vsel %vm1670_vm1, %v1650_v50, %v1651_v27  ;;  %v12488_v4 = vpop.permute.xlu1 %3140  ;;  %v12494_v62 = vsel %vm1670_vm1, %v1653_v17, %v1654_v26  ;;  %v18159_v27 = vld [vmem:[#allocation37_spill] sm:$0xff]  ;;  %v18161_v15 = vld [vmem:[#allocation39_spill] sm:$0xff] }
 0x336   :  { %v1524_v30 = vmul.f32 %v18149_v24, %v18148_v44  ;;  %18152 = vst [vmem:[#allocation379_spill] sm:$0xff] %v12478_v1  ;;  %18154 = vst [vmem:[#allocation409_spill] sm:$0xff] %v12486_v29  ;;  %v12490_v44 = vpop.permute.xlu0 %3135  ;;  %v12498_v28 = vsel %vm1670_vm1, %v1652_v60, %v1653_v17  ;;  %v1657_v24 = vrot.slane %v17794_v6, 1  ;;  %v12503_v50 = vadd.f32 %v1522_v7, %v18159_v27  ;;  %v18163_v1 = vld [vmem:[#allocation388_spill] sm:$0xff]  ;;  %v18164_v39 = vld [vmem:[#allocation109_spill] sm:$0xff] }
 0x337   :  { %18151 = vst [vmem:[#allocation401_spill] sm:$0xff] %v12474_v55  ;;  %18155 = vst [vmem:[#allocation35_spill] sm:$0xff] %v12488_v4  ;;  %v18162_v55 = vld [vmem:[#allocation108_spill] sm:$0xff]  ;;  %v1526_v46 = vmul.f32 %v18164_v39, %v18163_v1  ;;  %v7431_v60 = vld [vmem:[%s16484_s8 + $0xc68] sm:$0xff]  ;;  %v12527_v1 = vmul.f32 %v11655_v43, %v12486_v29  ;;  %v12531_v39 = vsel %vm1670_vm1, %v1655_v54, %v1656_v25 }
 0x338   :  { %18156 = vst [vmem:[#allocation380_spill] sm:$0xff] %v12490_v44  ;;  %18157 = vst [vmem:[#allocation105_spill] sm:$0xff] %v12494_v62  ;;  %v1527_v51 = vmul.f32 %v18162_v55, %v18161_v15  ;;  %v12511_v44 = vmul.f32 %v11655_v43, %v12459_v21  ;;  %v7430_v17 = vld [vmem:[%s16484_s8 + $0xc60] sm:$0xff]  ;;  %v18166_v7 = vld [vmem:[#allocation423_spill] sm:$0xff]  ;;  %4265 = vperm.xlu1 %7838, %v7431_v60  }
 0x339   :  { %18158 = vst [vmem:[#allocation382_spill] sm:$0xff] %v12498_v28  ;;  %18160 = vst [vmem:[#allocation106_spill] sm:$0xff] %v12503_v50  ;;  %v12520_v2 = vadd.f32 %v1525_v37, %v18166_v7  ;;  %v18168_v32 = vld [vmem:[#allocation424_spill] sm:$0xff]  ;;  %v18172_v55 = vld [vmem:[#allocation110_spill] sm:$0xff]  ;;  %v12539_v37 = vmul.f32 %v11655_v43, %v12494_v62  ;;  %v12545_v7 = vpop.permute.xlu1 %3150  ;;  %4260 = vperm.xlu0 %7837, %v7430_v17  }
 0x33a   :  { %18165 = vst [vmem:[#allocation38_spill] sm:$0xff] %v12511_v44  ;;  %v12523_v15 = vadd.f32 %v1524_v30, %v18168_v32  ;;  %18170 = vst [vmem:[#allocation37_spill] sm:$0xff] %v12527_v1  ;;  %v1529_v27 = vmul.f32 %v18172_v55, %v11500_v58  ;;  %v18173_v41 = vld [vmem:[#allocation41_spill] sm:$0xff]  ;;  %v18174_v6 = vld [vmem:[#allocation111_spill] sm:$0xff]  ;;  %v12543_v30 = vmul.f32 %v11655_v43, %v12498_v28  ;;  %v12547_v32 = vpop.permute.xlu0 %3145 }
 0x33b   :  { %18167 = vst [vmem:[#allocation107_spill] sm:$0xff] %v12520_v2  ;;  %18171 = vst [vmem:[#allocation39_spill] sm:$0xff] %v12531_v39  ;;  %v1528_v50 = vmul.f32 %v18174_v6, %v18173_v41  ;;  %v12555_v58 = vsel %vm1670_vm1, %v1657_v24, %v1658_v53  ;;  %v1659_v6 = vrot.slane %v17801_v0, 1  ;;  %v1660_v41 = vrot.slane %v17814_v16, 1  ;;  %v18181_v55 = vld [vmem:[#allocation402_spill] sm:$0xff]  ;;  %v18186_v2 = vld [vmem:[#allocation112_spill] sm:$0xff] }
 0x33c   :  { %18169 = vst [vmem:[#allocation417_spill] sm:$0xff] %v12523_v15  ;;  %18175 = vst [vmem:[#allocation108_spill] sm:$0xff] %v12539_v37  ;;  %v12551_v15 = vsel %vm1670_vm1, %v1654_v26, %v1655_v54  ;;  %v18183_v28 = vld [vmem:[#allocation438_spill] sm:$0xff]  ;;  %v12569_v54 = vmul.f32 %v11655_v43, %v12531_v39  ;;  %v7433_v0 = vld [vmem:[%s16484_s8 + $0xc78] sm:$0xff] }
 0x33d   :  { %18176 = vst [vmem:[#allocation388_spill] sm:$0xff] %v12543_v30  ;;  %18177 = vst [vmem:[#allocation109_spill] sm:$0xff] %v12545_v7  ;;  %v12560_v30 = vadd.f32 %v1527_v51, %v18181_v55  ;;  %v12563_v62 = vadd.f32 %v1526_v46, %v18183_v28  ;;  %v18185_v37 = vld [vmem:[#allocation42_spill] sm:$0xff]  ;;  %v7432_v60 = vld [vmem:[%s16484_s8 + $0xc70] sm:$0xff]  ;;  %v12581_v46 = vsel %vm1670_vm1, %v1656_v25, %v1657_v24  ;;  %v1661_v28 = vrot.slane %v17808_v20, 1  ;;  %v12599_v25 = vpop.permute.xlu1 %3160 }
 0x33e   :  { %18178 = vst [vmem:[#allocation423_spill] sm:$0xff] %v12547_v32  ;;  %18179 = vst [vmem:[#allocation424_spill] sm:$0xff] %v12551_v15  ;;  %v1531_v26 = vmul.f32 %v18186_v2, %v18185_v37  ;;  %v18188_v51 = vld [vmem:[#allocation418_spill] sm:$0xff]  ;;  %v18189_v17 = vld [vmem:[#allocation113_spill] sm:$0xff]  ;;  %v1662_v2 = vrot.slane %v17818_v14, 1  ;;  %v12601_v24 = vpop.permute.xlu0 %3155  ;;  %4275 = vperm.xlu1 %7838, %v7433_v0   ;;  %4270 = vperm.xlu0 %7837, %v7432_v60  }
 0x33f   :  { %18180 = vst [vmem:[#allocation110_spill] sm:$0xff] %v12555_v58  ;;  %18182 = vst [vmem:[#allocation41_spill] sm:$0xff] %v12560_v30  ;;  %v1530_v55 = vmul.f32 %v18189_v17, %v18188_v51  ;;  %v18191_v37 = vld [vmem:[#allocation410_spill] sm:$0xff]  ;;  %v12593_v30 = vmul.f32 %v11655_v43, %v12551_v15  ;;  %v12597_v51 = vmul.f32 %v11655_v43, %v12555_v58  ;;  %v18301_v29 = vld [vmem:[#allocation223_spill] sm:$0xff] }
 0x340   :  { %18184 = vst [vmem:[#allocation111_spill] sm:$0xff] %v12563_v62  ;;  %18187 = vst [vmem:[#allocation402_spill] sm:$0xff] %v12569_v54  ;;  %v12586_v16 = vadd.f32 %v1529_v27, %v18191_v37  ;;  %v18193_v54 = vld [vmem:[#allocation416_spill] sm:$0xff]  ;;  %v18199_v17 = vld [vmem:[#allocation446_spill] sm:$0xff]  ;;  %v12607_v27 = vsel %vm1670_vm1, %v1659_v6, %v1660_v41 }
 0x341   :  { %18190 = vst [vmem:[#allocation438_spill] sm:$0xff] %v12581_v46  ;;  %v12589_v62 = vadd.f32 %v1528_v50, %v18193_v54  ;;  %18195 = vst [vmem:[#allocation418_spill] sm:$0xff] %v12593_v30  ;;  %v18200_v14 = vld [vmem:[#allocation114_spill] sm:$0xff]  ;;  %v1663_v50 = vrot.slane %v17817_v13, 1  ;;  %v1664_v54 = vrot.slane %v17825_v56, 1  ;;  %v18202_v37 = vld [vmem:[#allocation445_spill] sm:$0xff]  ;;  %v12618_v30 = vmul.f32 %v11655_v43, %v12581_v46 }
 0x342   :  { %18192 = vst [vmem:[#allocation42_spill] sm:$0xff] %v12586_v16  ;;  %18196 = vst [vmem:[#allocation113_spill] sm:$0xff] %v12597_v51  ;;  %v1533_v20 = vmul.f32 %v18200_v14, %v18199_v17  ;;  %v12612_v58 = vadd.f32 %v1531_v26, %v18202_v37  ;;  %v18205_v16 = vld [vmem:[#allocation115_spill] sm:$0xff]  ;;  %v12622_v14 = vsel %vm1670_vm1, %v1658_v53, %v1659_v6  ;;  %v7496_v0 = vld [vmem:[%s16484_s8 + $0xe60] sm:$0xff] }
 0x343   :  { %18194 = vst [vmem:[#allocation112_spill] sm:$0xff] %v12589_v62  ;;  %18197 = vst [vmem:[#allocation410_spill] sm:$0xff] %v12599_v25  ;;  %v18204_v62 = vld [vmem:[#allocation43_spill] sm:$0xff]  ;;  %v18211_v37 = vld [vmem:[#allocation117_spill] sm:$0xff]  ;;  %v12639_v53 = vsel %vm1670_vm1, %v1661_v28, %v1662_v2  ;;  %v12643_v6 = vmul.f32 %v11655_v43, %v12607_v27  ;;  %v12647_v13 = vsel %vm1670_vm1, %v1660_v41, %v1661_v28  ;;  %v1667_v41 = vrot.slane %v9270_v19, 1 }
 0x344   :  { %18198 = vst [vmem:[#allocation416_spill] sm:$0xff] %v12601_v24  ;;  %18201 = vst [vmem:[#allocation446_spill] sm:$0xff] %v12607_v27  ;;  %v1532_v51 = vmul.f32 %v18205_v16, %v18204_v62  ;;  %v7497_v17 = vld [vmem:[%s16484_s8 + $0xe68] sm:$0xff]  ;;  %v18210_v16 = vld [vmem:[#allocation116_spill] sm:$0xff]  ;;  %v1534_v56 = vmul.f32 %v18211_v37, %v11580_v52  ;;  %v12656_v52 = vadd.f32 %v1533_v20, %v11561_v45  ;;  %4842 = vperm.xlu0 %7837, %v7496_v0  }
 0x345   :  { %18203 = vst [vmem:[#allocation114_spill] sm:$0xff] %v12612_v58  ;;  %18206 = vst [vmem:[#allocation445_spill] sm:$0xff] %v12618_v30  ;;  %v18208_v26 = vld [vmem:[#allocation419_spill] sm:$0xff]  ;;  %v1535_v62 = vmul.f32 %v18210_v16, %v11568_v18  ;;  %v12651_v18 = vpop.permute.xlu1 %3170  ;;  %v12653_v16 = vpop.permute.xlu0 %3165  ;;  %v12660_v37 = vmul.f32 %v11655_v43, %v12622_v14  ;;  %v12664_v27 = vsel %vm1670_vm1, %v1663_v50, %v1664_v54  ;;  %4847 = vperm.xlu1 %7838, %v7497_v17   ;;  %v7499_v19 = vld [vmem:[%s16484_s8 + $0xe78] sm:$0xff] }
 0x346   :  { %18207 = vst [vmem:[#allocation43_spill] sm:$0xff] %v12622_v14  ;;  %v12631_v60 = vadd.f32 %v1530_v55, %v18208_v26  ;;  %18212 = vst [vmem:[#allocation419_spill] sm:$0xff] %v12639_v53  ;;  %v1665_v55 = vrot.slane %v10758_v48, 1  ;;  %v1666_v26 = vrot.slane %v10770_v42, 1  ;;  %v12668_v28 = vadd.f32 %v1532_v51, %v11564_v57  ;;  %v18221_v42 = vld [vmem:[#allocation118_spill] sm:$0xff]  ;;  %v7498_v57 = vld [vmem:[%s16484_s8 + $0xe70] sm:$0xff] }
 0x347   :  { %18213 = vst [vmem:[#allocation116_spill] sm:$0xff] %v12643_v6  ;;  %18214 = vst [vmem:[#allocation117_spill] sm:$0xff] %v12647_v13  ;;  %v1537_v48 = vmul.f32 %v18221_v42, %v11595_v3  ;;  %v12674_v45 = vmul.f32 %v11655_v43, %v12639_v53  ;;  %v12678_v20 = vsel %vm1670_vm1, %v1662_v2, %v1663_v50  ;;  %v18224_v51 = vld [vmem:[#allocation45_spill] sm:$0xff]  ;;  %v18226_v42 = vld [vmem:[#allocation428_spill] sm:$0xff] }
 0x348   :  { %18209 = vst [vmem:[#allocation115_spill] sm:$0xff] %v12631_v60  ;;  %18215 = vst [vmem:[#allocation521_spill] sm:$0xff] %v12651_v18  ;;  %v12687_v17 = vadd.f32 %v1535_v62, %v18224_v51  ;;  %v12690_v3 = vadd.f32 %v1534_v56, %v18226_v42  ;;  %v18228_v0 = vld [vmem:[#allocation432_spill] sm:$0xff]  ;;  %v18229_v53 = vld [vmem:[#allocation119_spill] sm:$0xff]  ;;  %v12696_v2 = vmul.f32 %v11655_v43, %v12647_v13  ;;  %4852 = vperm.xlu0 %7837, %v7498_v57  }
 0x349   :  { %18216 = vst [vmem:[#allocation522_spill] sm:$0xff] %v12653_v16  ;;  %18217 = vst [vmem:[#allocation523_spill] sm:$0xff] %v12656_v52  ;;  %v1536_v14 = vmul.f32 %v18229_v53, %v18228_v0  ;;  %v18231_v50 = vld [vmem:[#allocation120_spill] sm:$0xff]  ;;  %v12704_v62 = vmul.f32 %v11655_v43, %v12664_v27  ;;  %v12708_v56 = vsel %vm1670_vm1, %v1665_v55, %v1666_v26  ;;  %v12710_v51 = vpop.permute.xlu1 %3180  ;;  %v12712_v53 = vpop.permute.xlu0 %3175  ;;  %4857 = vperm.xlu1 %7838, %v7499_v19   ;;  %v18241_v0 = vld [vmem:[#allocation429_spill] sm:$0xff] }
 0x34a   :  { %18218 = vst [vmem:[#allocation524_spill] sm:$0xff] %v12660_v37  ;;  %18219 = vst [vmem:[#allocation525_spill] sm:$0xff] %v12664_v27  ;;  %v1539_v46 = vmul.f32 %v18231_v50, %v11623_v35  ;;  %v12716_v42 = vmul.f32 %v11655_v43, %v12678_v20  ;;  %v12720_v35 = vsel %vm1670_vm1, %v1664_v54, %v1665_v55  ;;  %v18243_v27 = vld [vmem:[#allocation122_spill] sm:$0xff]  ;;  %v18290_v52 = vld [vmem:[#allocation69_spill] sm:$0xff] }
 0x34b   :  { %18220 = vst [vmem:[#allocation526_spill] sm:$0xff] %v12668_v28  ;;  %18222 = vst [vmem:[#allocation118_spill] sm:$0xff] %v12674_v45  ;;  %v18232_v45 = vld [vmem:[#allocation121_spill] sm:$0xff]  ;;  %v12729_v50 = vadd.f32 %v1537_v48, %v18241_v0  ;;  %v1541_v13 = vmul.f32 %v18243_v27, %v11640_v31  ;;  %v12737_v54 = vsel %vm1670_vm1, %v1666_v26, %v1667_v41  ;;  %v7369_v55 = vld [vmem:[%s16484_s8 + $0xa88] sm:$0xff] }
 0x34c   :  { %18223 = vst [vmem:[#allocation527_spill] sm:$0xff] %v12678_v20  ;;  %18225 = vst [vmem:[#allocation45_spill] sm:$0xff] %v12687_v17  ;;  %v1538_v28 = vmul.f32 %v18232_v45, %v11627_v47  ;;  %v18239_v47 = vrot.slane %v9282_v10, 1  ;;  %v18244_v20 = vld [vmem:[#allocation123_spill] sm:$0xff]  ;;  %v7368_v19 = vld [vmem:[%s16484_s8 + $0xa80] sm:$0xff]  ;;  %v12746_v48 = vadd.f32 %v1536_v14, %v11602_v5  ;;  %v12754_v26 = vmul.f32 %v11655_v43, %v12708_v56 }
 0x34d   :  { %18227 = vst [vmem:[#allocation428_spill] sm:$0xff] %v12690_v3  ;;  %18230 = vst [vmem:[#allocation432_spill] sm:$0xff] %v12696_v2  ;;  %v18247_v31 = vld [vmem:[#allocation124_spill] sm:$0xff]  ;;  %v18248_v57 = vld [vmem:[#allocation54_spill] sm:$0xff]  ;;  %3703 = vperm.xlu1 %7838, %v7369_v55   ;;  %3698 = vperm.xlu0 %7837, %v7368_v19  }
 0x34e   :  { %18233 = vst [vmem:[#allocation119_spill] sm:$0xff] %v12704_v62  ;;  %18234 = vst [vmem:[#allocation120_spill] sm:$0xff] %v12708_v56  ;;  %v12726_v45 = vsel %vm1670_vm1, %v1667_v41, %v18239_v47  ;;  %v2190_v27 = vmul.f32 %v18247_v31, %v11697_v59  ;;  %v12759_v41 = vld [vmem:[%s16479_s3 + $0x4] ss:$0 sm:$0xff]  ;;  %v18251_v47 = vld [vmem:[#allocation441_spill] sm:$0xff]  ;;  %v12769_v59 = vmul.f32 %v11655_v43, %v12720_v35 }
 0x34f   :  { %18235 = vst [vmem:[#allocation121_spill] sm:$0xff] %v12710_v51  ;;  %18236 = vst [vmem:[#allocation528_spill] sm:$0xff] %v12712_v53  ;;  %v12762_v0 = vadd.f32 %v1539_v46, %v18251_v47  ;;  %v18253_v5 = vld [vmem:[#allocation48_spill] sm:$0xff]  ;;  %v12773_v31 = vmul.f32 %v11655_v43, %v12726_v45  ;;  %v18259_v63 = vld [vmem:[#allocation482_spill] sm:$0xff] }
 0x350   :  { %18237 = vst [vmem:[#allocation529_spill] sm:$0xff] %v12716_v42  ;;  %18238 = vst [vmem:[#allocation530_spill] sm:$0xff] %v12720_v35  ;;  %v1540_v42 = vmul.f32 %v18244_v20, %v11650_v33  ;;  %v18249_v33 = vld [vmem:[#allocation125_spill] sm:$0xff]  ;;  %v12765_v14 = vadd.f32 %v1538_v28, %v18253_v5  ;;  %v18260_v10 = vld [vmem:[#allocation126_spill] sm:$0xff]  ;;  %v12785_v28 = vmul.f32 %v11655_v43, %v12737_v54 }
 0x351   :  { %18240 = vst [vmem:[#allocation531_spill] sm:$0xff] %v12726_v45  ;;  %18242 = vst [vmem:[#allocation429_spill] sm:$0xff] %v12729_v50  ;;  %v2189_v20 = vmul.f32 %v18249_v33, %v18248_v57  ;;  %v12775_v57 = vpop.permute.xlu1 %3190  ;;  %v12777_v33 = vpop.permute.xlu0 %3185  ;;  %v2192_v56 = vmul.f32 %v18260_v10, %v18259_v63  ;;  %v18261_v46 = vld [vmem:[#allocation492_spill] sm:$0xff]  ;;  %v18262_v47 = vld [vmem:[#allocation127_spill] sm:$0xff] }
 0x352   :  { %18245 = vst [vmem:[#allocation122_spill] sm:$0xff] %v12737_v54  ;;  %18246 = vst [vmem:[#allocation123_spill] sm:$0xff] %v12746_v48  ;;  %v18264_v5 = vld [vmem:[#allocation49_spill] sm:$0xff]  ;;  %v7370_v43 = vld [vmem:[%s16484_s8 + $0xa90] sm:$0xff] }
 0x353   :  { %18250 = vst [vmem:[#allocation124_spill] sm:$0xff] %v12754_v26  ;;  %18252 = vst [vmem:[#allocation54_spill] sm:$0xff] %v12762_v0  ;;  %v2191_v0 = vmul.f32 %v18262_v47, %v18261_v46  ;;  %v18268_v35 = vld [vmem:[#allocation57_spill] sm:$0xff]  ;;  %v18280_v50 = vld [vmem:[#allocation199_spill] sm:$0xff]  ;;  %3708 = vperm.xlu0 %7837, %v7370_v43  }
 0x354   :  { %18254 = vst [vmem:[#allocation125_spill] sm:$0xff] %v12765_v14  ;;  %18255 = vst [vmem:[#allocation441_spill] sm:$0xff] %v12769_v59  ;;  %v12788_v14 = vadd.f32 %v1541_v13, %v18264_v5  ;;  %v18269_v59 = vld [vmem:[#allocation128_spill] sm:$0xff]  ;;  %v18270_v48 = vld [vmem:[#allocation193_spill] sm:$0xff] }
 0x355   :  { %18256 = vst [vmem:[#allocation48_spill] sm:$0xff] %v12773_v31  ;;  %18257 = vst [vmem:[#allocation532_spill] sm:$0xff] %v12775_v57  ;;  %v18266_v31 = vld [vmem:[#allocation471_spill] sm:$0xff]  ;;  %v2194_v26 = vmul.f32 %v18269_v59, %v18268_v35  ;;  %v12797_v63 = vmul.f32 %v12759_v41, %v18270_v48  ;;  %v7371_v10 = vld [vmem:[%s16484_s8 + $0xa98] sm:$0xff] }
 0x356   :  { %18258 = vst [vmem:[#allocation533_spill] sm:$0xff] %v12777_v33  ;;  %18263 = vst [vmem:[#allocation482_spill] sm:$0xff] %v12785_v28  ;;  %v12791_v45 = vadd.f32 %v1540_v42, %v18266_v31  ;;  %v18271_v13 = vld [vmem:[#allocation53_spill] sm:$0xff]  ;;  %v18273_v31 = vld [vmem:[#allocation64_spill] sm:$0xff]  ;;  %3713 = vperm.xlu1 %7838, %v7371_v10  }
 0x357   :  { %18265 = vst [vmem:[#allocation126_spill] sm:$0xff] %v12788_v14  ;;  %v12806_v55 = vadd.f32 %v2190_v27, %v18271_v13  ;;  %v18272_v42 = vld [vmem:[#allocation481_spill] sm:$0xff]  ;;  %v18276_v5 = vld [vmem:[#allocation506_spill] sm:$0xff]  ;;  %v18279_v28 = vld [vmem:[#allocation131_spill] sm:$0xff]  ;;  %v12823_v27 = vmul.f32 %v12759_v41, %v18280_v50 }
 0x358   :  { %18267 = vst [vmem:[#allocation492_spill] sm:$0xff] %v12791_v45  ;;  %v12809_v19 = vadd.f32 %v2189_v20, %v18272_v42  ;;  %v18274_v35 = vld [vmem:[#allocation129_spill] sm:$0xff]  ;;  %v18277_v48 = vld [vmem:[#allocation130_spill] sm:$0xff]  ;;  %v12829_v42 = vpop.permute.xlu1 %3200  ;;  %v18285_v62 = vld [vmem:[#allocation56_spill] sm:$0xff] }
 0x359   :  { %v2193_v59 = vmul.f32 %v18274_v35, %v18273_v31  ;;  %v18275_v46 = vld [vmem:[#allocation185_spill] sm:$0xff]  ;;  %v2196_v45 = vmul.f32 %v18277_v48, %v18276_v5  ;;  %v18281_v13 = vld [vmem:[#allocation202_spill] sm:$0xff]  ;;  %18282 = vst [vmem:[#allocation127_spill] sm:$0xff] %v12829_v42  ;;  %v12831_v31 = vpop.permute.xlu0 %3195  ;;  %v12837_v48 = vadd.f32 %v2191_v0, %v18285_v62  ;;  %v18289_v2 = vld [vmem:[#allocation132_spill] sm:$0xff] }
 0x35a   :  { %v12815_v47 = vmul.f32 %v12759_v41, %v18275_v46  ;;  %v18278_v14 = vld [vmem:[#allocation65_spill] sm:$0xff]  ;;  %v12827_v20 = vmul.f32 %v12759_v41, %v18281_v13  ;;  %18283 = vst [vmem:[#allocation49_spill] sm:$0xff] %v12831_v31  ;;  %v7435_v62 = vld [vmem:[%s16484_s8 + $0xc88] sm:$0xff]  ;;  %v18294_v43 = vld [vmem:[#allocation216_spill] sm:$0xff] }
 0x35b   :  { %v2195_v54 = vmul.f32 %v18279_v28, %v18278_v14  ;;  %v18284_v35 = vld [vmem:[#allocation493_spill] sm:$0xff]  ;;  %v18287_v28 = vld [vmem:[#allocation63_spill] sm:$0xff]  ;;  %v18298_v6 = vld [vmem:[#allocation222_spill] sm:$0xff]  ;;  %4285 = vperm.xlu1 %7838, %v7435_v62  }
 0x35c   :  { %v12834_v46 = vadd.f32 %v2192_v56, %v18284_v35  ;;  %v18286_v5 = vld [vmem:[#allocation205_spill] sm:$0xff]  ;;  %v12844_v3 = vadd.f32 %v2194_v26, %v18287_v28  ;;  %v18292_v56 = vld [vmem:[#allocation210_spill] sm:$0xff]  ;;  %v12869_v30 = vmul.f32 %v12759_v41, %v18298_v6  ;;  %v18306_v21 = vld [vmem:[#allocation136_spill] sm:$0xff] }
 0x35d   :  { %v12841_v14 = vmul.f32 %v12759_v41, %v18286_v5  ;;  %v18288_v17 = vld [vmem:[#allocation249_spill] sm:$0xff]  ;;  %v12852_v35 = vmul.f32 %v12759_v41, %v18292_v56  ;;  %v18296_v28 = vld [vmem:[#allocation6_spill] sm:$0xff]  ;;  %v18310_v33 = vld [vmem:[#allocation247_spill] sm:$0xff] }
 0x35e   :  { %v2198_v37 = vmul.f32 %v18289_v2, %v18288_v17  ;;  %v18291_v60 = vld [vmem:[#allocation133_spill] sm:$0xff]  ;;  %v18295_v17 = vld [vmem:[#allocation134_spill] sm:$0xff]  ;;  %v18311_v53 = vld [vmem:[#allocation68_spill] sm:$0xff] }
 0x35f   :  { %v2197_v58 = vmul.f32 %v18291_v60, %v18290_v52  ;;  %v7434_v0 = vld [vmem:[%s16484_s8 + $0xc80] sm:$0xff]  ;;  %v2200_v2 = vmul.f32 %v18295_v17, %v18294_v43  ;;  %v18297_v60 = vld [vmem:[#allocation135_spill] sm:$0xff]  ;;  %v12885_v17 = vpop.permute.xlu1 %3210  ;;  %v18321_v25 = vld [vmem:[#allocation140_spill] sm:$0xff] }
 0x360   :  { %v18293_v26 = vld [vmem:[#allocation505_spill] sm:$0xff]  ;;  %v2199_v52 = vmul.f32 %v18297_v60, %v18296_v28  ;;  %v18299_v15 = vld [vmem:[#allocation510_spill] sm:$0xff]  ;;  %18303 = vst [vmem:[#allocation471_spill] sm:$0xff] %v12885_v17  ;;  %v12887_v28 = vpop.permute.xlu0 %3205  ;;  %v18305_v60 = vld [vmem:[#allocation228_spill] sm:$0xff]  ;;  %4280 = vperm.xlu0 %7837, %v7434_v0   ;;  %v12898_v57 = vadd.f32 %v2198_v37, %v18310_v33 }
 0x361   :  { %v12861_v10 = vadd.f32 %v2193_v59, %v18293_v26  ;;  %v12872_v39 = vadd.f32 %v2196_v45, %v18299_v15  ;;  %v18300_v1 = vld [vmem:[#allocation66_spill] sm:$0xff]  ;;  %v12879_v59 = vmul.f32 %v12759_v41, %v18301_v29  ;;  %18304 = vst [vmem:[#allocation57_spill] sm:$0xff] %v12887_v28  ;;  %v2202_v31 = vmul.f32 %v18306_v21, %v18305_v60  ;;  %v18307_v15 = vld [vmem:[#allocation73_spill] sm:$0xff]  ;;  %v18312_v17 = vld [vmem:[#allocation236_spill] sm:$0xff] }
 0x362   :  { %v12875_v44 = vadd.f32 %v2195_v54, %v18300_v1  ;;  %v18302_v26 = vld [vmem:[#allocation230_spill] sm:$0xff]  ;;  %v18308_v45 = vld [vmem:[#allocation137_spill] sm:$0xff]  ;;  %v12901_v51 = vadd.f32 %v2197_v58, %v18311_v53  ;;  %v7436_v62 = vld [vmem:[%s16484_s8 + $0xc90] sm:$0xff] }
 0x363   :  { %v12883_v43 = vmul.f32 %v12759_v41, %v18302_v26  ;;  %v2201_v42 = vmul.f32 %v18308_v45, %v18307_v15  ;;  %v18309_v1 = vld [vmem:[#allocation237_spill] sm:$0xff]  ;;  %v18313_v28 = vld [vmem:[#allocation138_spill] sm:$0xff]  ;;  %v18315_v37 = vld [vmem:[#allocation7_spill] sm:$0xff] }
 0x364   :  { %v12895_v54 = vmul.f32 %v12759_v41, %v18309_v1  ;;  %v2204_v16 = vmul.f32 %v18313_v28, %v18312_v17  ;;  %v18314_v18 = vld [vmem:[#allocation238_spill] sm:$0xff]  ;;  %v7437_v60 = vld [vmem:[%s16484_s8 + $0xc98] sm:$0xff]  ;;  %v12916_v33 = vadd.f32 %v2200_v2, %v18315_v37  ;;  %v18318_v17 = vld [vmem:[#allocation139_spill] sm:$0xff]  ;;  %4290 = vperm.xlu0 %7837, %v7436_v62  }
 0x365   :  { %v12907_v21 = vmul.f32 %v12759_v41, %v18314_v18  ;;  %v18316_v58 = vld [vmem:[#allocation218_spill] sm:$0xff]  ;;  %v18317_v0 = vld [vmem:[#allocation76_spill] sm:$0xff]  ;;  %v18322_v7 = vld [vmem:[#allocation15_spill] sm:$0xff]  ;;  %4295 = vperm.xlu1 %7838, %v7437_v60  }
 0x366   :  { %v12919_v53 = vadd.f32 %v2199_v52, %v18316_v58  ;;  %v2203_v28 = vmul.f32 %v18318_v17, %v18317_v0  ;;  %v18319_v15 = vld [vmem:[#allocation240_spill] sm:$0xff]  ;;  %v18320_v24 = vld [vmem:[#allocation282_spill] sm:$0xff]  ;;  %v18323_v4 = vld [vmem:[#allocation141_spill] sm:$0xff]  ;;  %v12939_v58 = vpop.permute.xlu1 %3220  ;;  %v12941_v0 = vpop.permute.xlu0 %3215 }
 0x367   :  { %v12925_v45 = vmul.f32 %v12759_v41, %v18319_v15  ;;  %v2206_v32 = vmul.f32 %v18321_v25, %v18320_v24  ;;  %v2205_v18 = vmul.f32 %v18323_v4, %v18322_v7  ;;  %v18324_v1 = vld [vmem:[#allocation250_spill] sm:$0xff]  ;;  %v18325_v37 = vld [vmem:[#allocation251_spill] sm:$0xff]  ;;  %18327 = vst [vmem:[#allocation53_spill] sm:$0xff] %v12939_v58  ;;  %18328 = vst [vmem:[#allocation481_spill] sm:$0xff] %v12941_v0 }
 0x368   :  { %v12933_v2 = vmul.f32 %v12759_v41, %v18324_v1  ;;  %v12937_v52 = vmul.f32 %v12759_v41, %v18325_v37  ;;  %v18329_v17 = vld [vmem:[#allocation72_spill] sm:$0xff]  ;;  %v18331_v26 = vld [vmem:[#allocation262_spill] sm:$0xff]  ;;  %v18335_v7 = vld [vmem:[#allocation11_spill] sm:$0xff] }
 0x369   :  { %v12944_v15 = vadd.f32 %v2202_v31, %v18329_v17  ;;  %v12947_v25 = vadd.f32 %v2201_v42, %v18331_v26  ;;  %v18333_v24 = vld [vmem:[#allocation258_spill] sm:$0xff]  ;;  %v12954_v1 = vadd.f32 %v2204_v16, %v18335_v7  ;;  %v18337_v37 = vld [vmem:[#allocation79_spill] sm:$0xff]  ;;  %v18339_v29 = vld [vmem:[#allocation301_spill] sm:$0xff] }
 0x36a   :  { %18326 = vst [vmem:[#allocation128_spill] sm:$0xff] %v12937_v52  ;;  %v12951_v4 = vmul.f32 %v12759_v41, %v18333_v24  ;;  %v18338_v52 = vld [vmem:[#allocation142_spill] sm:$0xff]  ;;  %v18340_v0 = vld [vmem:[#allocation143_spill] sm:$0xff]  ;;  %v18341_v31 = vld [vmem:[#allocation272_spill] sm:$0xff] }
 0x36b   :  { %18330 = vst [vmem:[#allocation64_spill] sm:$0xff] %v12944_v15  ;;  %18332 = vst [vmem:[#allocation129_spill] sm:$0xff] %v12947_v25  ;;  %v2208_v58 = vmul.f32 %v18338_v52, %v18337_v37  ;;  %v2207_v6 = vmul.f32 %v18340_v0, %v18339_v29  ;;  %v12962_v17 = vmul.f32 %v12759_v41, %v18341_v31  ;;  %v7501_v42 = vld [vmem:[%s16484_s8 + $0xe88] sm:$0xff]  ;;  %v7500_v26 = vld [vmem:[%s16484_s8 + $0xe80] sm:$0xff] }
 0x36c   :  { %18334 = vst [vmem:[#allocation506_spill] sm:$0xff] %v12951_v4  ;;  %18336 = vst [vmem:[#allocation130_spill] sm:$0xff] %v12954_v1  ;;  %v18343_v16 = vld [vmem:[#allocation13_spill] sm:$0xff]  ;;  %v18345_v62 = vld [vmem:[#allocation144_spill] sm:$0xff]  ;;  %4867 = vperm.xlu1 %7838, %v7501_v42   ;;  %4862 = vperm.xlu0 %7837, %v7500_v26  }
 0x36d   :  { %18342 = vst [vmem:[#allocation65_spill] sm:$0xff] %v12962_v17  ;;  %v12971_v60 = vadd.f32 %v2203_v28, %v18343_v16  ;;  %v2210_v37 = vmul.f32 %v18345_v62, %v12047_v40  ;;  %v18346_v29 = vld [vmem:[#allocation145_spill] sm:$0xff]  ;;  %v18347_v0 = vld [vmem:[#allocation274_spill] sm:$0xff]  ;;  %v18355_v16 = vld [vmem:[#allocation288_spill] sm:$0xff]  ;;  %v12995_v62 = vpop.permute.xlu1 %3230 }
 0x36e   :  { %v2209_v52 = vmul.f32 %v18346_v29, %v12074_v49  ;;  %v12979_v7 = vmul.f32 %v12759_v41, %v18347_v0  ;;  %v18349_v31 = vld [vmem:[#allocation254_spill] sm:$0xff]  ;;  %v18351_v1 = vld [vmem:[#allocation269_spill] sm:$0xff]  ;;  %v12993_v40 = vmul.f32 %v12759_v41, %v18355_v16  ;;  %18357 = vst [vmem:[#allocation63_spill] sm:$0xff] %v12995_v62  ;;  %v12997_v49 = vpop.permute.xlu0 %3225  ;;  %v18359_v29 = vld [vmem:[#allocation83_spill] sm:$0xff] }
 0x36f   :  { %18344 = vst [vmem:[#allocation131_spill] sm:$0xff] %v12971_v60  ;;  %v12982_v24 = vadd.f32 %v2206_v32, %v18349_v31  ;;  %v12985_v17 = vadd.f32 %v2205_v18, %v18351_v1  ;;  %v18353_v4 = vld [vmem:[#allocation277_spill] sm:$0xff]  ;;  %18358 = vst [vmem:[#allocation249_spill] sm:$0xff] %v12997_v49  ;;  %v18360_v0 = vld [vmem:[#allocation146_spill] sm:$0xff] }
 0x370   :  { %18348 = vst [vmem:[#allocation199_spill] sm:$0xff] %v12979_v7  ;;  %v12989_v28 = vmul.f32 %v12759_v41, %v18353_v4  ;;  %18356 = vst [vmem:[#allocation205_spill] sm:$0xff] %v12993_v40  ;;  %v2212_v7 = vmul.f32 %v18360_v0, %v18359_v29  ;;  %v18361_v32 = vld [vmem:[#allocation283_spill] sm:$0xff]  ;;  %v18363_v18 = vld [vmem:[#allocation289_spill] sm:$0xff] }
 0x371   :  { %18350 = vst [vmem:[#allocation202_spill] sm:$0xff] %v12982_v24  ;;  %18352 = vst [vmem:[#allocation493_spill] sm:$0xff] %v12985_v17  ;;  %v18362_v31 = vld [vmem:[#allocation147_spill] sm:$0xff]  ;;  %v13005_v1 = vmul.f32 %v12759_v41, %v18363_v18  ;;  %v18365_v4 = vld [vmem:[#allocation17_spill] sm:$0xff] }
 0x372   :  { %18354 = vst [vmem:[#allocation56_spill] sm:$0xff] %v12989_v28  ;;  %v2211_v24 = vmul.f32 %v18362_v31, %v18361_v32  ;;  %v13008_v17 = vadd.f32 %v2208_v58, %v18365_v4  ;;  %v18367_v16 = vld [vmem:[#allocation256_spill] sm:$0xff]  ;;  %v18369_v62 = vld [vmem:[#allocation302_spill] sm:$0xff]  ;;  %v18371_v60 = vld [vmem:[#allocation295_spill] sm:$0xff] }
 0x373   :  { %18364 = vst [vmem:[#allocation132_spill] sm:$0xff] %v13005_v1  ;;  %v13011_v40 = vadd.f32 %v2207_v6, %v18367_v16  ;;  %v18370_v49 = vld [vmem:[#allocation148_spill] sm:$0xff]  ;;  %v13017_v0 = vmul.f32 %v12759_v41, %v18371_v60  ;;  %v18373_v58 = vld [vmem:[#allocation82_spill] sm:$0xff]  ;;  %v18375_v6 = vld [vmem:[#allocation273_spill] sm:$0xff] }
 0x374   :  { %18366 = vst [vmem:[#allocation69_spill] sm:$0xff] %v13008_v17  ;;  %v2214_v28 = vmul.f32 %v18370_v49, %v18369_v62  ;;  %v7503_v29 = vld [vmem:[%s16484_s8 + $0xe98] sm:$0xff]  ;;  %v7502_v42 = vld [vmem:[%s16484_s8 + $0xe90] sm:$0xff]  ;;  %v13026_v4 = vadd.f32 %v2210_v37, %v18373_v58  ;;  %v13029_v26 = vadd.f32 %v2209_v52, %v18375_v6  ;;  %v18377_v16 = vld [vmem:[#allocation86_spill] sm:$0xff]  ;;  %v13049_v6 = vpop.permute.xlu1 %3240 }
 0x375   :  { %18368 = vst [vmem:[#allocation133_spill] sm:$0xff] %v13011_v40  ;;  %18372 = vst [vmem:[#allocation210_spill] sm:$0xff] %v13017_v0  ;;  %v18378_v62 = vld [vmem:[#allocation149_spill] sm:$0xff]  ;;  %v18379_v32 = vld [vmem:[#allocation296_spill] sm:$0xff]  ;;  %4877 = vperm.xlu1 %7838, %v7503_v29   ;;  %4872 = vperm.xlu0 %7837, %v7502_v42  }
 0x376   :  { %18374 = vst [vmem:[#allocation505_spill] sm:$0xff] %v13026_v4  ;;  %18376 = vst [vmem:[#allocation216_spill] sm:$0xff] %v13029_v26  ;;  %v2213_v49 = vmul.f32 %v18378_v62, %v18377_v16  ;;  %v13035_v31 = vmul.f32 %v12759_v41, %v18379_v32  ;;  %v18381_v60 = vld [vmem:[#allocation22_spill] sm:$0xff]  ;;  %v18383_v17 = vld [vmem:[#allocation89_spill] sm:$0xff]  ;;  %v13051_v16 = vpop.permute.xlu0 %3235 }
 0x377   :  { %v18382_v18 = vld [vmem:[#allocation150_spill] sm:$0xff]  ;;  %v18384_v0 = vld [vmem:[#allocation151_spill] sm:$0xff]  ;;  %v18387_v58 = vld [vmem:[#allocation316_spill] sm:$0xff]  ;;  %18389 = vst [vmem:[#allocation510_spill] sm:$0xff] %v13049_v6 }
 0x378   :  { %18380 = vst [vmem:[#allocation134_spill] sm:$0xff] %v13035_v31  ;;  %v2216_v40 = vmul.f32 %v18382_v18, %v18381_v60  ;;  %v2215_v1 = vmul.f32 %v18384_v0, %v18383_v17  ;;  %v18385_v25 = vld [vmem:[#allocation310_spill] sm:$0xff]  ;;  %v13047_v52 = vmul.f32 %v12759_v41, %v18387_v58  ;;  %18390 = vst [vmem:[#allocation66_spill] sm:$0xff] %v13051_v16  ;;  %v18391_v62 = vld [vmem:[#allocation308_spill] sm:$0xff] }
 0x379   :  { %v13043_v37 = vmul.f32 %v12759_v41, %v18385_v25  ;;  %v13054_v32 = vadd.f32 %v2212_v7, %v18391_v62  ;;  %v18393_v26 = vld [vmem:[#allocation19_spill] sm:$0xff]  ;;  %v18397_v0 = vld [vmem:[#allocation21_spill] sm:$0xff]  ;;  %v18399_v58 = vld [vmem:[#allocation90_spill] sm:$0xff] }
 0x37a   :  { %18388 = vst [vmem:[#allocation135_spill] sm:$0xff] %v13047_v52  ;;  %v13057_v60 = vadd.f32 %v2211_v24, %v18393_v26  ;;  %v18395_v18 = vld [vmem:[#allocation323_spill] sm:$0xff]  ;;  %v13064_v25 = vadd.f32 %v2214_v28, %v18397_v0  ;;  %v18400_v52 = vld [vmem:[#allocation152_spill] sm:$0xff]  ;;  %v18402_v16 = vld [vmem:[#allocation153_spill] sm:$0xff] }
 0x37b   :  { %18386 = vst [vmem:[#allocation6_spill] sm:$0xff] %v13043_v37  ;;  %18392 = vst [vmem:[#allocation228_spill] sm:$0xff] %v13054_v32  ;;  %v13061_v17 = vmul.f32 %v12759_v41, %v18395_v18  ;;  %v2218_v6 = vmul.f32 %v18400_v52, %v18399_v58  ;;  %v18401_v37 = vld [vmem:[#allocation304_spill] sm:$0xff]  ;;  %v18403_v7 = vld [vmem:[#allocation325_spill] sm:$0xff] }
 0x37c   :  { %18394 = vst [vmem:[#allocation136_spill] sm:$0xff] %v13057_v60  ;;  %18398 = vst [vmem:[#allocation137_spill] sm:$0xff] %v13064_v25  ;;  %v2217_v4 = vmul.f32 %v18402_v16, %v18401_v37  ;;  %v13072_v62 = vmul.f32 %v12759_v41, %v18403_v7  ;;  %v7373_v24 = vld [vmem:[%s16484_s8 + $0xaa8] sm:$0xff]  ;;  %v7372_v29 = vld [vmem:[%s16484_s8 + $0xaa0] sm:$0xff] }
 0x37d   :  { %18396 = vst [vmem:[#allocation73_spill] sm:$0xff] %v13061_v17  ;;  %v18405_v28 = vld [vmem:[#allocation292_spill] sm:$0xff]  ;;  %v18407_v26 = vld [vmem:[#allocation315_spill] sm:$0xff]  ;;  %v18408_v58 = vld [vmem:[#allocation154_spill] sm:$0xff]  ;;  %3723 = vperm.xlu1 %7838, %v7373_v24   ;;  %3718 = vperm.xlu0 %7837, %v7372_v29  }
 0x37e   :  { %18404 = vst [vmem:[#allocation247_spill] sm:$0xff] %v13072_v62  ;;  %v13081_v42 = vadd.f32 %v2213_v49, %v18405_v28  ;;  %v2220_v52 = vmul.f32 %v18408_v58, %v18407_v26  ;;  %v18409_v0 = vld [vmem:[#allocation27_spill] sm:$0xff]  ;;  %v18411_v18 = vld [vmem:[#allocation329_spill] sm:$0xff]  ;;  %v18413_v25 = vld [vmem:[#allocation330_spill] sm:$0xff]  ;;  %v13105_v58 = vpop.permute.xlu1 %3250 }
 0x37f   :  { %v18410_v37 = vld [vmem:[#allocation155_spill] sm:$0xff]  ;;  %v13089_v7 = vmul.f32 %v12759_v41, %v18411_v18  ;;  %v13092_v62 = vadd.f32 %v2216_v40, %v18413_v25  ;;  %v18415_v17 = vld [vmem:[#allocation24_spill] sm:$0xff]  ;;  %v18417_v32 = vld [vmem:[#allocation338_spill] sm:$0xff]  ;;  %18421 = vst [vmem:[#allocation139_spill] sm:$0xff] %v13105_v58 }
 0x380   :  { %18406 = vst [vmem:[#allocation68_spill] sm:$0xff] %v13081_v42  ;;  %v2219_v16 = vmul.f32 %v18410_v37, %v18409_v0  ;;  %v13095_v60 = vadd.f32 %v2215_v1, %v18415_v17  ;;  %v13099_v49 = vmul.f32 %v12759_v41, %v18417_v32  ;;  %v18419_v28 = vld [vmem:[#allocation342_spill] sm:$0xff]  ;;  %v13107_v0 = vpop.permute.xlu0 %3245  ;;  %v18423_v37 = vld [vmem:[#allocation516_spill] sm:$0xff]  ;;  %v18425_v25 = vld [vmem:[#allocation517_spill] sm:$0xff] }
 0x381   :  { %18412 = vst [vmem:[#allocation236_spill] sm:$0xff] %v13089_v7  ;;  %18414 = vst [vmem:[#allocation138_spill] sm:$0xff] %v13092_v62  ;;  %v13103_v26 = vmul.f32 %v12759_v41, %v18419_v28  ;;  %v18424_v18 = vld [vmem:[#allocation156_spill] sm:$0xff]  ;;  %v18426_v40 = vld [vmem:[#allocation157_spill] sm:$0xff] }
 0x382   :  { %18416 = vst [vmem:[#allocation7_spill] sm:$0xff] %v13095_v60  ;;  %18418 = vst [vmem:[#allocation218_spill] sm:$0xff] %v13099_v49  ;;  %v2222_v7 = vmul.f32 %v18424_v18, %v18423_v37  ;;  %v2221_v62 = vmul.f32 %v18426_v40, %v18425_v25  ;;  %v18427_v1 = vld [vmem:[#allocation343_spill] sm:$0xff]  ;;  %v18429_v32 = vld [vmem:[#allocation336_spill] sm:$0xff] }
 0x383   :  { %18420 = vst [vmem:[#allocation76_spill] sm:$0xff] %v13103_v26  ;;  %18422 = vst [vmem:[#allocation282_spill] sm:$0xff] %v13107_v0  ;;  %v13115_v17 = vmul.f32 %v12759_v41, %v18427_v1  ;;  %v13118_v60 = vadd.f32 %v2218_v6, %v18429_v32  ;;  %v18431_v28 = vld [vmem:[#allocation23_spill] sm:$0xff]  ;;  %v18433_v0 = vld [vmem:[#allocation158_spill] sm:$0xff] }
 0x384   :  { %v13121_v26 = vadd.f32 %v2217_v4, %v18431_v28  ;;  %v2224_v58 = vmul.f32 %v18433_v0, %v12293_v38  ;;  %v18434_v49 = vld [vmem:[#allocation354_spill] sm:$0xff]  ;;  %v7375_v37 = vld [vmem:[%s16484_s8 + $0xab8] sm:$0xff]  ;;  %v7374_v24 = vld [vmem:[%s16484_s8 + $0xab0] sm:$0xff] }
 0x385   :  { %18428 = vst [vmem:[#allocation140_spill] sm:$0xff] %v13115_v17  ;;  %18430 = vst [vmem:[#allocation15_spill] sm:$0xff] %v13118_v60  ;;  %v13127_v18 = vmul.f32 %v12759_v41, %v18434_v49  ;;  %v18436_v32 = vld [vmem:[#allocation321_spill] sm:$0xff]  ;;  %v18438_v4 = vld [vmem:[#allocation322_spill] sm:$0xff]  ;;  %3733 = vperm.xlu1 %7838, %v7375_v37   ;;  %3728 = vperm.xlu0 %7837, %v7374_v24  }
 0x386   :  { %18432 = vst [vmem:[#allocation141_spill] sm:$0xff] %v13121_v26  ;;  %v13136_v6 = vadd.f32 %v2220_v52, %v18436_v32  ;;  %v13139_v29 = vadd.f32 %v2219_v16, %v18438_v4  ;;  %v18440_v28 = vld [vmem:[#allocation94_spill] sm:$0xff]  ;;  %v18441_v38 = vld [vmem:[#allocation159_spill] sm:$0xff]  ;;  %v18442_v25 = vld [vmem:[#allocation357_spill] sm:$0xff]  ;;  %v13159_v4 = vpop.permute.xlu1 %3260 }
 0x387   :  { %18435 = vst [vmem:[#allocation72_spill] sm:$0xff] %v13127_v18  ;;  %v2223_v0 = vmul.f32 %v18441_v38, %v18440_v28  ;;  %v13145_v40 = vmul.f32 %v12759_v41, %v18442_v25  ;;  %v18444_v49 = vld [vmem:[#allocation160_spill] sm:$0xff]  ;;  %v18445_v1 = vld [vmem:[#allocation161_spill] sm:$0xff]  ;;  %18450 = vst [vmem:[#allocation143_spill] sm:$0xff] %v13159_v4  ;;  %v13161_v28 = vpop.permute.xlu0 %3255 }
 0x388   :  { %18437 = vst [vmem:[#allocation262_spill] sm:$0xff] %v13136_v6  ;;  %18439 = vst [vmem:[#allocation11_spill] sm:$0xff] %v13139_v29  ;;  %v2226_v18 = vmul.f32 %v18444_v49, %v12345_v8  ;;  %v2225_v26 = vmul.f32 %v18445_v1, %v12349_v34  ;;  %v18446_v60 = vld [vmem:[#allocation360_spill] sm:$0xff]  ;;  %v18452_v38 = vld [vmem:[#allocation26_spill] sm:$0xff]  ;;  %v13172_v1 = vadd.f32 %v2224_v58, %v12330_v12 }
 0x389   :  { %18443 = vst [vmem:[#allocation79_spill] sm:$0xff] %v13145_v40  ;;  %v13153_v52 = vmul.f32 %v12759_v41, %v18446_v60  ;;  %v18448_v32 = vld [vmem:[#allocation368_spill] sm:$0xff]  ;;  %18451 = vst [vmem:[#allocation13_spill] sm:$0xff] %v13161_v28  ;;  %v13164_v25 = vadd.f32 %v2222_v7, %v18452_v38  ;;  %v18454_v29 = vld [vmem:[#allocation331_spill] sm:$0xff] }
 0x38a   :  { %v13157_v16 = vmul.f32 %v12759_v41, %v18448_v32  ;;  %v13167_v8 = vadd.f32 %v2221_v62, %v18454_v29  ;;  %v18456_v34 = vld [vmem:[#allocation164_spill] sm:$0xff]  ;;  %18457 = vst [vmem:[#allocation254_spill] sm:$0xff] %v13172_v1  ;;  %v18458_v32 = vld [vmem:[#allocation165_spill] sm:$0xff]  ;;  %v18459_v4 = vld [vmem:[#allocation386_spill] sm:$0xff] }
 0x38b   :  { %18447 = vst [vmem:[#allocation142_spill] sm:$0xff] %v13153_v52  ;;  %18453 = vst [vmem:[#allocation144_spill] sm:$0xff] %v13164_v25  ;;  %v2228_v49 = vmul.f32 %v18456_v34, %v12363_v22  ;;  %v2227_v60 = vmul.f32 %v18458_v32, %v12367_v9  ;;  %v13178_v28 = vmul.f32 %v12759_v41, %v18459_v4  ;;  %v18461_v7 = vld [vmem:[#allocation387_spill] sm:$0xff]  ;;  %v7438_v12 = vld [vmem:[%s16484_s8 + $0xca0] sm:$0xff] }
 0x38c   :  { %18449 = vst [vmem:[#allocation301_spill] sm:$0xff] %v13157_v16  ;;  %18455 = vst [vmem:[#allocation145_spill] sm:$0xff] %v13167_v8  ;;  %v13182_v38 = vmul.f32 %v12759_v41, %v18461_v7  ;;  %v7439_v22 = vld [vmem:[%s16484_s8 + $0xca8] sm:$0xff]  ;;  %v18463_v62 = vld [vmem:[#allocation97_spill] sm:$0xff]  ;;  %4300 = vperm.xlu0 %7837, %v7438_v12  }
 0x38d   :  { %18460 = vst [vmem:[#allocation269_spill] sm:$0xff] %v13178_v28  ;;  %v13191_v58 = vadd.f32 %v2223_v0, %v18463_v62  ;;  %v18465_v9 = vld [vmem:[#allocation172_spill] sm:$0xff]  ;;  %v18466_v24 = vld [vmem:[#allocation389_spill] sm:$0xff]  ;;  %v18468_v32 = vld [vmem:[#allocation394_spill] sm:$0xff]  ;;  %4305 = vperm.xlu1 %7838, %v7439_v22  }
 0x38e   :  { %18462 = vst [vmem:[#allocation83_spill] sm:$0xff] %v13182_v38  ;;  %v2230_v37 = vmul.f32 %v18465_v9, %v12416_v36  ;;  %v13197_v29 = vmul.f32 %v12759_v41, %v18466_v24  ;;  %v13201_v34 = vmul.f32 %v12759_v41, %v18468_v32  ;;  %v18470_v7 = vld [vmem:[#allocation31_spill] sm:$0xff]  ;;  %v18472_v1 = vld [vmem:[#allocation98_spill] sm:$0xff]  ;;  %v18474_v0 = vld [vmem:[#allocation173_spill] sm:$0xff]  ;;  %v3624_v9 = vpop.permute.xlu1 %3623  ;;  %v3619_v24 = vpop.permute.xlu0 %3618 }
 0x38f   :  { %18464 = vst [vmem:[#allocation146_spill] sm:$0xff] %v13191_v58  ;;  %v13204_v4 = vadd.f32 %v2226_v18, %v18470_v7  ;;  %v13207_v38 = vadd.f32 %v2225_v26, %v18472_v1  ;;  %v2229_v62 = vmul.f32 %v18474_v0, %v12420_v11  ;;  %v18475_v58 = vld [vmem:[#allocation403_spill] sm:$0xff]  ;;  %v18479_v32 = vld [vmem:[#allocation181_spill] sm:$0xff]  ;;  %v18480_v18 = vld [vmem:[#allocation404_spill] sm:$0xff]  ;;  %v13230_v26 = vadd.f32 %v2227_v60, %v12409_v23 }
 0x390   :  { %18467 = vst [vmem:[#allocation283_spill] sm:$0xff] %v13197_v29  ;;  %18469 = vst [vmem:[#allocation147_spill] sm:$0xff] %v13201_v34  ;;  %v13213_v36 = vmul.f32 %v12759_v41, %v18475_v58  ;;  %v18477_v29 = vld [vmem:[#allocation29_spill] sm:$0xff]  ;;  %v2232_v34 = vmul.f32 %v18479_v32, %v12429_v61  ;;  %v13222_v7 = vmul.f32 %v12759_v41, %v18480_v18  ;;  %v13227_v11 = vld [vmem:[%s16479_s3 + $0x6] ss:$0 sm:$0xff] }
 0x391   :  { %18471 = vst [vmem:[#allocation17_spill] sm:$0xff] %v13204_v4  ;;  %18473 = vst [vmem:[#allocation256_spill] sm:$0xff] %v13207_v38  ;;  %v13216_v28 = vadd.f32 %v2228_v49, %v18477_v29  ;;  %v18483_v1 = vld [vmem:[#allocation400_spill] sm:$0xff]  ;;  %v18484_v49 = vld [vmem:[#allocation182_spill] sm:$0xff] }
 0x392   :  { %18476 = vst [vmem:[#allocation302_spill] sm:$0xff] %v13213_v36  ;;  %18481 = vst [vmem:[#allocation82_spill] sm:$0xff] %v13222_v7  ;;  %v2231_v29 = vmul.f32 %v18484_v49, %v18483_v1  ;;  %v18485_v0 = vld [vmem:[#allocation319_spill] sm:$0xff]  ;;  %v18486_v32 = vld [vmem:[#allocation320_spill] sm:$0xff] }
 0x393   :  { %18478 = vst [vmem:[#allocation148_spill] sm:$0xff] %v13216_v28  ;;  %18482 = vst [vmem:[#allocation273_spill] sm:$0xff] %v13230_v26  ;;  %v2772_v61 = vmul.f32 %v18485_v0, %v12797_v63  ;;  %v2771_v18 = vmul.f32 %v18486_v32, %v12815_v47  ;;  %v7441_v58 = vld [vmem:[%s16484_s8 + $0xcb8] sm:$0xff]  ;;  %v7440_v22 = vld [vmem:[%s16484_s8 + $0xcb0] sm:$0xff] }
 0x394   :  { %v18487_v12 = vld [vmem:[#allocation100_spill] sm:$0xff]  ;;  %v18489_v60 = vld [vmem:[#allocation334_spill] sm:$0xff]  ;;  %v18492_v0 = vld [vmem:[#allocation413_spill] sm:$0xff]  ;;  %4315 = vperm.xlu1 %7838, %v7441_v58   ;;  %4310 = vperm.xlu0 %7837, %v7440_v22  }
 0x395   :  { %v13245_v23 = vadd.f32 %v2230_v37, %v18487_v12  ;;  %v2774_v1 = vmul.f32 %v18489_v60, %v12823_v27  ;;  %v18490_v49 = vld [vmem:[#allocation412_spill] sm:$0xff]  ;;  %v13255_v47 = vmul.f32 %v12759_v41, %v18492_v0  ;;  %v13260_v32 = vld [vmem:[%s16479_s3 + $0x8] ss:$0 sm:$0xff]  ;;  %v18496_v37 = vld [vmem:[#allocation335_spill] sm:$0xff]  ;;  %v3634_v0 = vpop.permute.xlu1 %3633 }
 0x396   :  { %v13251_v63 = vmul.f32 %v12759_v41, %v18490_v49  ;;  %v18494_v26 = vld [vmem:[#allocation350_spill] sm:$0xff]  ;;  %v2773_v12 = vmul.f32 %v18496_v37, %v12827_v20  ;;  %v18500_v49 = vld [vmem:[#allocation103_spill] sm:$0xff]  ;;  %v18513_v4 = vld [vmem:[#allocation60_spill] sm:$0xff] }
 0x397   :  { %18488 = vst [vmem:[#allocation86_spill] sm:$0xff] %v13245_v23  ;;  %18493 = vst [vmem:[#allocation22_spill] sm:$0xff] %v13255_v47  ;;  %v13263_v28 = vadd.f32 %v2229_v62, %v18494_v26  ;;  %v18497_v27 = vld [vmem:[#allocation426_spill] sm:$0xff]  ;;  %v18499_v23 = vld [vmem:[#allocation51_spill] sm:$0xff]  ;;  %v3629_v47 = vpop.permute.xlu0 %3628  ;;  %v13274_v7 = vadd.f32 %v2232_v34, %v18500_v49  ;;  %v2836_v34 = vadd.f32 %v2772_v61, %v12806_v55 }
 0x398   :  { %18491 = vst [vmem:[#allocation149_spill] sm:$0xff] %v13251_v63  ;;  %v13269_v60 = vmul.f32 %v12759_v41, %v18497_v27  ;;  %v2905_v63 = vmul.f32 %v13227_v11, %v18499_v23  ;;  %v18502_v36 = vld [vmem:[#allocation427_spill] sm:$0xff]  ;;  %v18504_v62 = vld [vmem:[#allocation473_spill] sm:$0xff]  ;;  %v2835_v49 = vadd.f32 %v2771_v18, %v12809_v19  ;;  %v3487_v19 = vmul.f32 %v13260_v32, %v18281_v13  ;;  %v18509_v18 = vld [vmem:[#allocation270_spill] sm:$0xff] }
 0x399   :  { %18495 = vst [vmem:[#allocation150_spill] sm:$0xff] %v13263_v28  ;;  %18501 = vst [vmem:[#allocation151_spill] sm:$0xff] %v13274_v7  ;;  %v13278_v38 = vmul.f32 %v12759_v41, %v18502_v36  ;;  %v2904_v26 = vmul.f32 %v13227_v11, %v18504_v62  ;;  %v13285_v20 = vld [vmem:[%s16479_s3 + $0x9] ss:$0 sm:$0xff]  ;;  %v3488_v41 = vmul.f32 %v13260_v32, %v18280_v50  ;;  %v7504_v22 = vld [vmem:[%s16484_s8 + $0xea0] sm:$0xff]  ;;  %v4206_v7 = vpop.permute.xlu1 %4205 }
 0x39a   :  { %18498 = vst [vmem:[#allocation89_spill] sm:$0xff] %v13269_v60  ;;  %v18505_v37 = vld [vmem:[#allocation351_spill] sm:$0xff]  ;;  %v2838_v62 = vadd.f32 %v2774_v1, %v12834_v46  ;;  %v18507_v36 = vld [vmem:[#allocation52_spill] sm:$0xff]  ;;  %v2837_v50 = vadd.f32 %v2773_v12, %v12837_v48  ;;  %v3354_v61 = vmul.f32 %v18509_v18, %v2905_v63  ;;  %v13318_v8 = vmul.f32 %v13227_v11, %v18513_v4  ;;  %v18517_v52 = vld [vmem:[#allocation186_spill] sm:$0xff] }
 0x39b   :  { %18503 = vst [vmem:[#allocation308_spill] sm:$0xff] %v13278_v38  ;;  %v13288_v23 = vadd.f32 %v2231_v29, %v18505_v37  ;;  %v7505_v58 = vld [vmem:[%s16484_s8 + $0xea8] sm:$0xff]  ;;  %v2907_v29 = vmul.f32 %v13227_v11, %v18507_v36  ;;  %v4201_v1 = vpop.permute.xlu0 %4200  ;;  %v18514_v13 = vld [vmem:[#allocation184_spill] sm:$0xff]  ;;  %4882 = vperm.xlu0 %7837, %v7504_v22   ;;  %v3937_v18 = vmul.f32 %v3624_v9, %v3488_v41 }
 0x39c   :  { %v18508_v37 = vld [vmem:[#allocation58_spill] sm:$0xff]  ;;  %v18511_v38 = vld [vmem:[#allocation183_spill] sm:$0xff]  ;;  %v4069_v48 = vmul.f32 %v13285_v20, %v18514_v13  ;;  %4887 = vperm.xlu1 %7838, %v7505_v58   ;;  %v7507_v58 = vld [vmem:[%s16484_s8 + $0xeb8] sm:$0xff]  ;;  %v3936_v16 = vmul.f32 %v3619_v24, %v3487_v19  ;;  %v3418_v41 = vadd.f32 %v3354_v61, %v2836_v34 }
 0x39d   :  { %18506 = vst [vmem:[#allocation19_spill] sm:$0xff] %v13288_v23  ;;  %v2906_v55 = vmul.f32 %v13227_v11, %v18508_v37  ;;  %v18510_v23 = vld [vmem:[#allocation59_spill] sm:$0xff]  ;;  %v4070_v46 = vmul.f32 %v13285_v20, %v18511_v38  ;;  %v18516_v13 = vld [vmem:[#allocation78_spill] sm:$0xff]  ;;  %v4216_v40 = vpop.permute.xlu1 %4215 }
 0x39e   :  { %v13311_v27 = vmul.f32 %v13227_v11, %v18510_v23  ;;  %v18512_v60 = vld [vmem:[#allocation75_spill] sm:$0xff]  ;;  %v3356_v25 = vmul.f32 %v18516_v13, %v2907_v29  ;;  %v4518_v15 = vmul.f32 %v4201_v1, %v4069_v48  ;;  %v4001_v19 = vadd.f32 %v3937_v18, %v3418_v41 }
 0x39f   :  { %v3353_v28 = vmul.f32 %v18512_v60, %v2904_v26  ;;  %v13325_v63 = vld [vmem:[%s16479_s3 + $0xa] ss:$0 sm:$0xff]  ;;  %v3490_v60 = vmul.f32 %v13260_v32, %v18286_v5  ;;  %v3489_v26 = vmul.f32 %v13260_v32, %v18292_v56  ;;  %v7506_v22 = vld [vmem:[%s16484_s8 + $0xeb0] sm:$0xff]  ;;  %v4519_v6 = vmul.f32 %v4206_v7, %v4070_v46  ;;  %v4211_v17 = vpop.permute.xlu0 %4210 }
 0x3a0   :  { %v18515_v12 = vld [vmem:[#allocation347_spill] sm:$0xff]  ;;  %v4652_v42 = vmul.f32 %v13325_v63, %v18507_v36  ;;  %4897 = vperm.xlu1 %7838, %v7507_v58   ;;  %4892 = vperm.xlu0 %7837, %v7506_v22   ;;  %v4651_v24 = vmul.f32 %v13325_v63, %v18508_v37  ;;  %v3420_v36 = vadd.f32 %v3356_v25, %v2838_v62  ;;  %v18524_v58 = vld [vmem:[#allocation378_spill] sm:$0xff] }
 0x3a1   :  { %v2776_v38 = vmul.f32 %v18515_v12, %v12841_v14  ;;  %v4072_v14 = vmul.f32 %v13285_v20, %v18517_v52  ;;  %v18518_v9 = vld [vmem:[#allocation187_spill] sm:$0xff]  ;;  %v18519_v12 = vld [vmem:[#allocation286_spill] sm:$0xff]  ;;  %v3417_v31 = vadd.f32 %v3353_v28, %v2835_v49  ;;  %v18520_v52 = vld [vmem:[#allocation348_spill] sm:$0xff]  ;;  %v3939_v34 = vmul.f32 %v3634_v0, %v3490_v60  ;;  %v4788_v1 = vpop.permute.xlu1 %4787 }
 0x3a2   :  { %v4071_v5 = vmul.f32 %v13285_v20, %v18518_v9  ;;  %v3355_v56 = vmul.f32 %v18519_v12, %v2906_v55  ;;  %v2775_v29 = vmul.f32 %v18520_v52, %v12852_v35  ;;  %v3938_v61 = vmul.f32 %v3629_v47, %v3489_v26  ;;  %v7377_v7 = vld [vmem:[%s16484_s8 + $0xac8] sm:$0xff]  ;;  %v7376_v28 = vld [vmem:[%s16484_s8 + $0xac0] sm:$0xff]  ;;  %v7378_v62 = vld [vmem:[%s16484_s8 + $0xad0] sm:$0xff] }
 0x3a3   :  { %v4000_v49 = vadd.f32 %v3936_v16, %v3417_v31  ;;  %v4654_v55 = vmul.f32 %v13325_v63, %v18510_v23  ;;  %v4653_v37 = vmul.f32 %v13325_v63, %v18513_v4  ;;  %v4583_v46 = vadd.f32 %v4519_v6, %v4001_v19  ;;  %v4783_v48 = vpop.permute.xlu0 %4782  ;;  %v13370_v6 = vld [vmem:[%s16477_s1 + $0x2] ss:$0 sm:$0xff]  ;;  %v18528_v19 = vld [vmem:[#allocation503_spill] sm:$0xff] }
 0x3a4   :  { %v3419_v35 = vadd.f32 %v3355_v56, %v2837_v50  ;;  %v4521_v0 = vmul.f32 %v4216_v40, %v4072_v14  ;;  %v4520_v47 = vmul.f32 %v4211_v17, %v4071_v5  ;;  %v5101_v60 = vmul.f32 %v4788_v1, %v4652_v42  ;;  %3743 = vperm.xlu1 %7838, %v7377_v7   ;;  %v18521_v42 = vld [vmem:[#allocation364_spill] sm:$0xff]  ;;  %v18523_v50 = vld [vmem:[#allocation377_spill] sm:$0xff] }
 0x3a5   :  { %v4582_v18 = vadd.f32 %v4518_v15, %v4000_v49  ;;  %v5100_v26 = vmul.f32 %v4783_v48, %v4651_v24  ;;  %3738 = vperm.xlu0 %7837, %v7376_v28   ;;  %v13362_v25 = vadd.f32 %v2776_v38, %v12844_v3  ;;  %v13365_v31 = vadd.f32 %v2775_v29, %v12861_v10  ;;  %v7379_v15 = vld [vmem:[%s16484_s8 + $0xad8] sm:$0xff]  ;;  %v4798_v9 = vpop.permute.xlu1 %4797 }
 0x3a6   :  { %v4003_v16 = vadd.f32 %v3939_v34, %v3420_v36  ;;  %v4002_v23 = vadd.f32 %v3938_v61, %v3419_v35  ;;  %v2778_v17 = vmul.f32 %v18521_v42, %v12869_v30  ;;  %v18522_v3 = vld [vmem:[#allocation365_spill] sm:$0xff]  ;;  %v5165_v4 = vadd.f32 %v5101_v60, %v4583_v46  ;;  %v18525_v56 = vld [vmem:[#allocation392_spill] sm:$0xff]  ;;  %v7443_v61 = vld [vmem:[%s16484_s8 + $0xcc8] sm:$0xff] }
 0x3a7   :  { %v2777_v40 = vmul.f32 %v18522_v3, %v12879_v59  ;;  %v5164_v10 = vadd.f32 %v5100_v26, %v4582_v18  ;;  %v2780_v38 = vmul.f32 %v18523_v50, %v12883_v43  ;;  %v2779_v22 = vmul.f32 %v18524_v58, %v12895_v54  ;;  %v4793_v5 = vpop.permute.xlu0 %4792  ;;  %v18526_v43 = vld [vmem:[#allocation393_spill] sm:$0xff]  ;;  %v18527_v54 = vld [vmem:[#allocation504_spill] sm:$0xff]  ;;  %v18530_v46 = vld [vmem:[#allocation67_spill] sm:$0xff] }
 0x3a8   :  { %v4585_v13 = vadd.f32 %v4521_v0, %v4003_v16  ;;  %v4584_v14 = vadd.f32 %v4520_v47, %v4002_v23  ;;  %v13387_v30 = vadd.f32 %v13370_v6, %v5165_v4  ;;  %v5103_v41 = vmul.f32 %v4798_v9, %v4654_v55  ;;  %3753 = vperm.xlu1 %7838, %v7379_v15   ;;  %v18531_v60 = vld [vmem:[#allocation8_spill] sm:$0xff]  ;;  %v18532_v16 = vld [vmem:[#allocation70_spill] sm:$0xff]  ;;  %v18535_v50 = vld [vmem:[#allocation227_spill] sm:$0xff] }
 0x3a9   :  { %v13390_v59 = vadd.f32 %v13370_v6, %v5164_v10  ;;  %v5102_v12 = vmul.f32 %v4793_v5, %v4653_v37  ;;  %v2782_v24 = vmul.f32 %v18525_v56, %v12907_v21  ;;  %v2781_v52 = vmul.f32 %v18526_v43, %v12925_v45  ;;  %3748 = vperm.xlu0 %7837, %v7378_v62   ;;  %v7442_v21 = vld [vmem:[%s16484_s8 + $0xcc0] sm:$0xff]  ;;  %v18529_v37 = vld [vmem:[#allocation239_spill] sm:$0xff]  ;;  %v3644_v47 = vpop.permute.xlu1 %3643 }
 0x3aa   :  { %v13398_v29 = vmul.f32 %v13227_v11, %v18527_v54  ;;  %v13402_v34 = vmul.f32 %v13227_v11, %v18528_v19  ;;  %v5167_v7 = vadd.f32 %v5103_v41, %v4585_v13  ;;  %v5297_v36 = vmul.f32 %v13387_v30, %v13387_v30  ;;  %v7444_v4 = vld [vmem:[%s16484_s8 + $0xcd0] sm:$0xff]  ;;  %v18533_v10 = vld [vmem:[#allocation10_spill] sm:$0xff] }
 0x3ab   :  { %v5166_v28 = vadd.f32 %v5102_v12, %v4584_v14  ;;  %v5296_v45 = vmul.f32 %v13390_v59, %v13390_v59  ;;  %v13415_v49 = vadd.f32 %v2778_v17, %v12872_v39  ;;  %v13418_v55 = vadd.f32 %v2777_v40, %v12875_v44  ;;  %v3639_v1 = vpop.permute.xlu0 %3638  ;;  %v18537_v13 = vld [vmem:[#allocation407_spill] sm:$0xff]  ;;  %v18538_v41 = vld [vmem:[#allocation222_spill] sm:$0xff] }
 0x3ac   :  { %v13422_v35 = vmul.f32 %v13227_v11, %v18529_v37  ;;  %v13426_v0 = vmul.f32 %v13227_v11, %v18530_v46  ;;  %v13429_v48 = vadd.f32 %v2780_v38, %v12898_v57  ;;  %v13432_v18 = vadd.f32 %v2779_v22, %v12901_v51  ;;  %4325 = vperm.xlu1 %7838, %v7443_v61   ;;  %v7445_v51 = vld [vmem:[%s16484_s8 + $0xcd8] sm:$0xff]  ;;  %v18539_v56 = vld [vmem:[#allocation223_spill] sm:$0xff]  ;;  %v18540_v43 = vld [vmem:[#allocation230_spill] sm:$0xff] }
 0x3ad   :  { %v13435_v39 = vadd.f32 %v13370_v6, %v5167_v7  ;;  %v13438_v44 = vadd.f32 %v13370_v6, %v5166_v28  ;;  %v13442_v26 = vmul.f32 %v13227_v11, %v18531_v60  ;;  %v13446_v23 = vmul.f32 %v13227_v11, %v18532_v16  ;;  %4320 = vperm.xlu0 %7837, %v7442_v21   ;;  %v18541_v28 = vld [vmem:[#allocation237_spill] sm:$0xff] }
 0x3ae   :  { %v5360_v57 = vmul.f32 %v5296_v45, %v13390_v59  ;;  %v5361_v15 = vmul.f32 %v5297_v36, %v13387_v30  ;;  %v13454_v42 = vadd.f32 %v2782_v24, %v12916_v33  ;;  %v13457_v17 = vadd.f32 %v2781_v52, %v12919_v53  ;;  %v3654_v53 = vpop.permute.xlu1 %3653  ;;  %v18542_v45 = vld [vmem:[#allocation200_spill] sm:$0xff] }
 0x3af   :  { %v5299_v3 = vmul.f32 %v13435_v39, %v13435_v39  ;;  %v5298_v40 = vmul.f32 %v13438_v44, %v13438_v44  ;;  %v13468_v62 = vmul.f32 %v13227_v11, %v18533_v10  ;;  %v13472_v33 = vmul.f32 %v13227_v11, %v18535_v50  ;;  %v3649_v38 = vpop.permute.xlu0 %3648 }
 0x3b0   :  { %v5424_v58 = vmul.f32 0.044715, %v5360_v57  ;;  %v5425_v22 = vmul.f32 0.044715, %v5361_v15  ;;  %v13476_v14 = vmul.f32 %v18537_v13, %v12933_v2  ;;  %v3492_v12 = vmul.f32 %v13260_v32, %v18538_v41  ;;  %4335 = vperm.xlu1 %7838, %v7445_v51   ;;  %v7509_v2 = vld [vmem:[%s16484_s8 + $0xec8] sm:$0xff]  ;;  %v7508_v51 = vld [vmem:[%s16484_s8 + $0xec0] sm:$0xff] }
 0x3b1   :  { %18534 = vst [vmem:[#allocation21_spill] sm:$0xff] %v13468_v62  ;;  %18536 = vst [vmem:[#allocation90_spill] sm:$0xff] %v13472_v33  ;;  %v5363_v9 = vmul.f32 %v5299_v3, %v13435_v39  ;;  %v5362_v5 = vmul.f32 %v5298_v40, %v13438_v44  ;;  %v3491_v24 = vmul.f32 %v13260_v32, %v18539_v56  ;;  %4330 = vperm.xlu0 %7837, %v7444_v4   ;;  %v18543_v3 = vld [vmem:[#allocation263_spill] sm:$0xff] }
 0x3b2   :  { %v3494_v52 = vmul.f32 %v13260_v32, %v18540_v43  ;;  %v5488_v61 = vadd.f32 %v5424_v58, %v13390_v59  ;;  %v5489_v7 = vadd.f32 %v5425_v22, %v13387_v30  ;;  %v3493_v21 = vmul.f32 %v13260_v32, %v18541_v28  ;;  %v4226_v4 = vpop.permute.xlu1 %4225  ;;  %v18544_v58 = vld [vmem:[#allocation201_spill] sm:$0xff]  ;;  %v18545_v43 = vld [vmem:[#allocation511_spill] sm:$0xff] }
 0x3b3   :  { %v4074_v36 = vmul.f32 %v13285_v20, %v18542_v45  ;;  %v5426_v57 = vmul.f32 0.044715, %v5362_v5  ;;  %v5427_v15 = vmul.f32 0.044715, %v5363_v9  ;;  %v3358_v40 = vmul.f32 %v18543_v3, %v13311_v27  ;;  %v4221_v13 = vpop.permute.xlu0 %4220  ;;  %v18546_v45 = vld [vmem:[#allocation206_spill] sm:$0xff]  ;;  %v18547_v27 = vld [vmem:[#allocation207_spill] sm:$0xff] }
 0x3b4   :  { %v4073_v22 = vmul.f32 %v13285_v20, %v18544_v58  ;;  %v5552_v41 = vmul.f32 0.7978846, %v5488_v61  ;;  %v5553_v56 = vmul.f32 0.7978846, %v5489_v7  ;;  %v3357_v28 = vmul.f32 %v18545_v43, %v13318_v8  ;;  %4907 = vperm.xlu1 %7838, %v7509_v2   ;;  %v7511_v61 = vld [vmem:[%s16484_s8 + $0xed8] sm:$0xff] }
 0x3b5   :  { %v4076_v33 = vmul.f32 %v13285_v20, %v18546_v45  ;;  %v5490_v5 = vadd.f32 %v5426_v57, %v13438_v44  ;;  %v5491_v9 = vadd.f32 %v5427_v15, %v13435_v39  ;;  %4902 = vperm.xlu0 %7837, %v7508_v51   ;;  %v4075_v3 = vmul.f32 %v13285_v20, %v18547_v27  ;;  %v7510_v51 = vld [vmem:[%s16484_s8 + $0xed0] sm:$0xff]  ;;  %v18549_v27 = vld [vmem:[#allocation85_spill] sm:$0xff] }
 0x3b6   :  { %v4656_v7 = vmul.f32 %v13325_v63, %v18527_v54  ;;  %v4655_v8 = vmul.f32 %v13325_v63, %v18528_v19  ;;  %7855 = vtanh.f32 %v5552_v41  ;;  %v3941_v2 = vmul.f32 %v3644_v47, %v3492_v12  ;;  %v18548_v43 = vld [vmem:[#allocation324_spill] sm:$0xff]  ;;  %v4236_v62 = vpop.permute.xlu1 %4235 }
 0x3b7   :  { %v3940_v58 = vmul.f32 %v3639_v1, %v3491_v24  ;;  %7857 = vtanh.f32 %v5553_v56  ;;  %v5554_v57 = vmul.f32 0.7978846, %v5490_v5  ;;  %v3422_v15 = vadd.f32 %v3358_v40, %v13362_v25  ;;  %v4231_v50 = vpop.permute.xlu0 %4230  ;;  %v18550_v24 = vld [vmem:[#allocation128_spill] sm:$0xff] }
 0x3b8   :  { %v3360_v45 = vmul.f32 %v18548_v43, %v13398_v29  ;;  %v3359_v54 = vmul.f32 %v18549_v27, %v13402_v34  ;;  %v5555_v19 = vmul.f32 0.7978846, %v5491_v9  ;;  %v3421_v47 = vadd.f32 %v3357_v28, %v13365_v31  ;;  %4917 = vperm.xlu1 %7838, %v7511_v61   ;;  %v18551_v41 = vld [vmem:[#allocation408_spill] sm:$0xff]  ;;  %v7381_v29 = vld [vmem:[%s16484_s8 + $0xae8] sm:$0xff]  ;;  %v7380_v31 = vld [vmem:[%s16484_s8 + $0xae0] sm:$0xff] }
 0x3b9   :  { %v4523_v1 = vmul.f32 %v4226_v4, %v4074_v36  ;;  %v4522_v12 = vmul.f32 %v4221_v13, %v4073_v22  ;;  %7859 = vtanh.f32 %v5554_v57  ;;  %v2783_v56 = vmul.f32 %v18551_v41, %v18550_v24  ;;  %4912 = vperm.xlu0 %7837, %v7510_v51   ;;  %v18556_v43 = vld [vmem:[#allocation506_spill] sm:$0xff] }
 0x3ba   :  { %v3943_v5 = vmul.f32 %v3654_v53, %v3494_v52  ;;  %v3942_v25 = vmul.f32 %v3649_v38, %v3493_v21  ;;  %7861 = vtanh.f32 %v5555_v19  ;;  %v4005_v34 = vadd.f32 %v3941_v2, %v3422_v15  ;;  %v4808_v13 = vpop.permute.xlu1 %4807  ;;  %v18559_v19 = vld [vmem:[#allocation422_spill] sm:$0xff] }
 0x3bb   :  { %v4004_v40 = vadd.f32 %v3940_v58, %v3421_v47  ;;  %v4658_v36 = vmul.f32 %v13325_v63, %v18529_v37  ;;  %v4657_v4 = vmul.f32 %v13325_v63, %v18530_v46  ;;  %v3424_v53 = vadd.f32 %v3360_v45, %v13415_v49  ;;  %v4803_v22 = vpop.permute.xlu0 %4802  ;;  %v18552_v58 = vld [vmem:[#allocation64_spill] sm:$0xff]  ;;  %v18553_v37 = vld [vmem:[#allocation129_spill] sm:$0xff] }
 0x3bc   :  { %v3423_v38 = vadd.f32 %v3359_v54, %v13418_v55  ;;  %v4525_v52 = vmul.f32 %v4236_v62, %v4076_v33  ;;  %v4524_v21 = vmul.f32 %v4231_v50, %v4075_v3  ;;  %v4587_v28 = vadd.f32 %v4523_v1, %v4005_v34  ;;  %3763 = vperm.xlu1 %7838, %v7381_v29   ;;  %v7383_v55 = vld [vmem:[%s16484_s8 + $0xaf8] sm:$0xff]  ;;  %v18554_v62 = vld [vmem:[#allocation74_spill] sm:$0xff] }
 0x3bd   :  { %v4586_v9 = vadd.f32 %v4522_v12, %v4004_v40  ;;  %v5105_v61 = vmul.f32 %v4808_v13, %v4656_v7  ;;  %v5104_v2 = vmul.f32 %v4803_v22, %v4655_v8  ;;  %v13542_v51 = vadd.f32 %v13476_v14, %v18552_v58  ;;  %3758 = vperm.xlu0 %7837, %v7380_v31   ;;  %v18555_v33 = vld [vmem:[#allocation264_spill] sm:$0xff]  ;;  %v18557_v45 = vld [vmem:[#allocation421_spill] sm:$0xff]  ;;  %v7447_v40 = vld [vmem:[%s16484_s8 + $0xce8] sm:$0xff] }
 0x3be   :  { %v13545_v57 = vadd.f32 %v2783_v56, %v18553_v37  ;;  %v4007_v46 = vadd.f32 %v3943_v5, %v3424_v53  ;;  %v4006_v49 = vadd.f32 %v3942_v25, %v3423_v38  ;;  %v13552_v50 = vmul.f32 %v13227_v11, %v18554_v62  ;;  %v7382_v8 = vld [vmem:[%s16484_s8 + $0xaf0] sm:$0xff]  ;;  %v18558_v54 = vld [vmem:[#allocation65_spill] sm:$0xff]  ;;  %v4818_v24 = vpop.permute.xlu1 %4817 }
 0x3bf   :  { %v13556_v3 = vmul.f32 %v13227_v11, %v18555_v33  ;;  %v5169_v14 = vadd.f32 %v5105_v61, %v4587_v28  ;;  %v5168_v7 = vadd.f32 %v5104_v2, %v4586_v9  ;;  %v2786_v27 = vmul.f32 %v18557_v45, %v18556_v43  ;;  %v4813_v41 = vpop.permute.xlu0 %4812  ;;  %v7446_v28 = vld [vmem:[%s16484_s8 + $0xce0] sm:$0xff] }
 0x3c0   :  { %v7856_v15 = vpop.eup %7855  ;;  %v2785_v47 = vmul.f32 %v18559_v19, %v18558_v54  ;;  %v4589_v1 = vadd.f32 %v4525_v52, %v4007_v46  ;;  %v4588_v12 = vadd.f32 %v4524_v21, %v4006_v49  ;;  %v5107_v29 = vmul.f32 %v4818_v24, %v4658_v36  ;;  %3773 = vperm.xlu1 %7838, %v7383_v55   ;;  %v18561_v24 = vld [vmem:[#allocation131_spill] sm:$0xff] }
 0x3c1   :  { %v7858_v56 = vpop.eup %7857  ;;  %v13566_v5 = vadd.f32 %v13370_v6, %v5169_v14  ;;  %v13569_v25 = vadd.f32 %v13370_v6, %v5168_v7  ;;  %v5106_v34 = vmul.f32 %v4813_v41, %v4657_v4  ;;  %3768 = vperm.xlu0 %7837, %v7382_v8   ;;  %v5616_v31 = vmul.f32 0.5, %v13390_v59  ;;  %v18560_v7 = vld [vmem:[#allocation130_spill] sm:$0xff] }
 0x3c2   :  { %v5617_v53 = vmul.f32 0.5, %v13387_v30  ;;  %v5744_v38 = vadd.f32 1.0, %v7856_v15  ;;  %v5745_v52 = vadd.f32 1.0, %v7858_v56  ;;  %v5171_v4 = vadd.f32 %v5107_v29, %v4589_v1  ;;  %v13583_v61 = vpop.permute.xlu1 %3663  ;;  %v18562_v56 = vld [vmem:[#allocation88_spill] sm:$0xff] }
 0x3c3   :  { %v7860_v21 = vpop.eup %7859  ;;  %v5301_v13 = vmul.f32 %v13566_v5, %v13566_v5  ;;  %v5300_v36 = vmul.f32 %v13569_v25, %v13569_v25  ;;  %v5170_v22 = vadd.f32 %v5106_v34, %v4588_v12  ;;  %v13585_v59 = vpop.permute.xlu0 %3658  ;;  %v5618_v58 = vmul.f32 0.5, %v13438_v44  ;;  %v7449_v44 = vld [vmem:[%s16484_s8 + $0xcf8] sm:$0xff] }
 0x3c4   :  { %v7862_v9 = vpop.eup %7861  ;;  %v5808_v30 = vmul.f32 %v5744_v38, %v5616_v31  ;;  %v5809_v2 = vmul.f32 %v5745_v52, %v5617_v53  ;;  %v5746_v37 = vadd.f32 1.0, %v7860_v21  ;;  %v13591_v55 = vadd.f32 %v13370_v6, %v5171_v4  ;;  %4345 = vperm.xlu1 %7838, %v7447_v40   ;;  %v18563_v53 = vld [vmem:[#allocation199_spill] sm:$0xff]  ;;  %v18564_v38 = vld [vmem:[#allocation436_spill] sm:$0xff] }
 0x3c5   :  { %v5365_v46 = vmul.f32 %v5301_v13, %v13566_v5  ;;  %v5364_v49 = vmul.f32 %v5300_v36, %v13569_v25  ;;  %v13594_v14 = vadd.f32 %v13370_v6, %v5170_v22  ;;  %v13597_v8 = vadd.f32 %v2786_v27, %v18560_v7  ;;  %4340 = vperm.xlu0 %7837, %v7446_v28   ;;  %v7448_v27 = vld [vmem:[%s16484_s8 + $0xcf0] sm:$0xff]  ;;  %v18565_v36 = vld [vmem:[#allocation238_spill] sm:$0xff] }
 0x3c6   :  { %v5872_v15 = vpack.c.bf16 %v5809_v2, %v5808_v30  ;;  %v5619_v43 = vmul.f32 0.5, %v13435_v39  ;;  %v5747_v45 = vadd.f32 1.0, %v7862_v9  ;;  %v5303_v54 = vmul.f32 %v13591_v55, %v13591_v55  ;;  %v3674_v39 = vpop.permute.xlu1 %3673  ;;  %v18566_v4 = vld [vmem:[#allocation339_spill] sm:$0xff]  ;;  %v18567_v2 = vld [vmem:[#allocation240_spill] sm:$0xff] }
 0x3c7   :  { %v5302_v19 = vmul.f32 %v13594_v14, %v13594_v14  ;;  %v5810_v1 = vmul.f32 %v5746_v37, %v5618_v58  ;;  %v5428_v12 = vmul.f32 0.044715, %v5364_v49  ;;  %v13611_v41 = vadd.f32 %v2785_v47, %v18561_v24  ;;  %v3669_v34 = vpop.permute.xlu0 %3668  ;;  %v7513_v28 = vld [vmem:[%s16484_s8 + $0xee8] sm:$0xff]  ;;  %v18571_v24 = vld [vmem:[#allocation212_spill] sm:$0xff] }
 0x3c8   :  { %v3362_v29 = vmul.f32 %v18562_v56, %v13422_v35  ;;  %7673 = vmatprep.mubr.bf16.mxu0 %v5872_v15  ;;  %v5811_v40 = vmul.f32 %v5747_v45, %v5619_v43  ;;  %v5429_v31 = vmul.f32 0.044715, %v5365_v46  ;;  %v13617_v52 = vmul.f32 %v18564_v38, %v18563_v53  ;;  %4355 = vperm.xlu1 %7838, %v7449_v44   ;;  %v18568_v37 = vld [vmem:[#allocation250_spill] sm:$0xff]  ;;  %v18569_v44 = vld [vmem:[#allocation251_spill] sm:$0xff] }
 0x3c9   :  { %v5367_v21 = vmul.f32 %v5303_v54, %v13591_v55  ;;  %v5366_v13 = vmul.f32 %v5302_v19, %v13594_v14  ;;  %v3496_v47 = vmul.f32 %v13260_v32, %v18565_v36  ;;  %v3361_v35 = vmul.f32 %v18566_v4, %v13426_v0  ;;  %4350 = vperm.xlu0 %7837, %v7448_v27   ;;  %v7512_v0 = vld [vmem:[%s16484_s8 + $0xee0] sm:$0xff]  ;;  %v18573_v38 = vld [vmem:[#allocation515_spill] sm:$0xff] }
 0x3ca   :  { %v5873_v22 = vpack.c.bf16 %v5811_v40, %v5810_v1  ;;  %v5492_v9 = vadd.f32 %v5428_v12, %v13569_v25  ;;  %v5493_v30 = vadd.f32 %v5429_v31, %v13566_v5  ;;  %v3495_v58 = vmul.f32 %v13260_v32, %v18567_v2  ;;  %v4246_v45 = vpop.permute.xlu1 %4245  ;;  %v18570_v1 = vld [vmem:[#allocation211_spill] sm:$0xff] }
 0x3cb   :  { %v3498_v46 = vmul.f32 %v13260_v32, %v18568_v37  ;;  %v5430_v49 = vmul.f32 0.044715, %v5366_v13  ;;  %v5431_v7 = vmul.f32 0.044715, %v5367_v21  ;;  %v3426_v15 = vadd.f32 %v3362_v29, %v13429_v48  ;;  %v4241_v54 = vpop.permute.xlu0 %4240  ;;  %v18572_v29 = vld [vmem:[#allocation91_spill] sm:$0xff]  ;;  %v7515_v13 = vld [vmem:[%s16484_s8 + $0xef8] sm:$0xff] }
 0x3cc   :  { %v3497_v43 = vmul.f32 %v13260_v32, %v18569_v44  ;;  %7674 = vmatmul.mubr.bf16.vlgmr.msra.gmra.mrb[0].mxu0 %v5873_v22  ;;  %v5556_v19 = vmul.f32 0.7978846, %v5492_v9  ;;  %v5557_v27 = vmul.f32 0.7978846, %v5493_v30  ;;  %v4078_v12 = vmul.f32 %v13285_v20, %v18570_v1  ;;  %4927 = vperm.xlu1 %7838, %v7513_v28   ;;  %v18574_v22 = vld [vmem:[#allocation224_spill] sm:$0xff]  ;;  %v18575_v9 = vld [vmem:[#allocation225_spill] sm:$0xff] }
 0x3cd   :  { %v4077_v56 = vmul.f32 %v13285_v20, %v18571_v24  ;;  %v5494_v40 = vadd.f32 %v5430_v49, %v13594_v14  ;;  %v5495_v31 = vadd.f32 %v5431_v7, %v13591_v55  ;;  %v3425_v48 = vadd.f32 %v3361_v35, %v13432_v18  ;;  %4922 = vperm.xlu0 %7837, %v7512_v0   ;;  %v7514_v18 = vld [vmem:[%s16484_s8 + $0xef0] sm:$0xff]  ;;  %v18577_v0 = vld [vmem:[#allocation437_spill] sm:$0xff] }
 0x3ce   :  { %v3364_v53 = vmul.f32 %v18572_v29, %v13442_v26  ;;  %v3363_v21 = vmul.f32 %v18573_v38, %v13446_v23  ;;  %7863 = vtanh.f32 %v5556_v19  ;;  %v3945_v36 = vmul.f32 %v13583_v61, %v3496_v47  ;;  %v4256_v26 = vpop.permute.xlu1 %4255  ;;  %v18576_v37 = vld [vmem:[#allocation56_spill] sm:$0xff]  ;;  %v7385_v19 = vld [vmem:[%s16484_s8 + $0xb08] sm:$0xff] }
 0x3cf   :  { %v3944_v4 = vmul.f32 %v13585_v59, %v3495_v58  ;;  %7865 = vtanh.f32 %v5557_v27  ;;  %v5558_v35 = vmul.f32 0.7978846, %v5494_v40  ;;  %v4080_v23 = vmul.f32 %v13285_v20, %v18574_v22  ;;  %v4251_v28 = vpop.permute.xlu0 %4250 }
 0x3d0   :  { %v4079_v30 = vmul.f32 %v13285_v20, %v18575_v9  ;;  %v4660_v2 = vmul.f32 %v13325_v63, %v18531_v60  ;;  %v5559_v61 = vmul.f32 0.7978846, %v5495_v31  ;;  %v4527_v47 = vmul.f32 %v4246_v45, %v4078_v12  ;;  %4937 = vperm.xlu1 %7838, %v7515_v13   ;;  %v18584_v9 = vld [vmem:[#allocation80_spill] sm:$0xff] }
 0x3d1   :  { %v4526_v59 = vmul.f32 %v4241_v54, %v4077_v56  ;;  %v4659_v58 = vmul.f32 %v13325_v63, %v18532_v16  ;;  %7867 = vtanh.f32 %v5558_v35  ;;  %v2787_v49 = vmul.f32 %v18577_v0, %v18576_v37  ;;  %4932 = vperm.xlu0 %7837, %v7514_v18   ;;  %v7384_v16 = vld [vmem:[%s16484_s8 + $0xb00] sm:$0xff] }
 0x3d2   :  { %v3947_v7 = vmul.f32 %v3674_v39, %v3498_v46  ;;  %v3946_v44 = vmul.f32 %v3669_v34, %v3497_v43  ;;  %7869 = vtanh.f32 %v5559_v61  ;;  %v3428_v60 = vadd.f32 %v3364_v53, %v13454_v42  ;;  %v4828_v39 = vpop.permute.xlu1 %4827  ;;  %v18578_v43 = vld [vmem:[#allocation227_spill] sm:$0xff] }
 0x3d3   :  { %v3427_v45 = vadd.f32 %v3363_v21, %v13457_v17  ;;  %v4009_v54 = vadd.f32 %v3945_v36, %v3426_v15  ;;  %v4008_v27 = vadd.f32 %v3944_v4, %v3425_v48  ;;  %v4529_v1 = vmul.f32 %v4256_v26, %v4080_v23  ;;  %v4823_v34 = vpop.permute.xlu0 %4822  ;;  %v18579_v15 = vld [vmem:[#allocation14_spill] sm:$0xff]  ;;  %v18580_v48 = vld [vmem:[#allocation77_spill] sm:$0xff]  ;;  %v7386_v26 = vld [vmem:[%s16484_s8 + $0xb10] sm:$0xff] }
 0x3d4   :  { %v4528_v12 = vmul.f32 %v4251_v28, %v4079_v30  ;;  %v4662_v46 = vmul.f32 %v13325_v63, %v18533_v10  ;;  %v4661_v24 = vmul.f32 %v13325_v63, %v18578_v43  ;;  %v5109_v40 = vmul.f32 %v4828_v39, %v4660_v2  ;;  %3783 = vperm.xlu1 %7838, %v7385_v19   ;;  %v7387_v10 = vld [vmem:[%s16484_s8 + $0xb18] sm:$0xff]  ;;  %v18581_v21 = vld [vmem:[#allocation202_spill] sm:$0xff]  ;;  %v18583_v23 = vld [vmem:[#allocation287_spill] sm:$0xff] }
 0x3d5   :  { %v4591_v56 = vadd.f32 %v4527_v47, %v4009_v54  ;;  %v4590_v42 = vadd.f32 %v4526_v59, %v4008_v27  ;;  %v5108_v17 = vmul.f32 %v4823_v34, %v4659_v58  ;;  %v13683_v31 = vmul.f32 %v13227_v11, %v18579_v15  ;;  %3778 = vperm.xlu0 %7837, %v7384_v16   ;;  %v18582_v36 = vld [vmem:[#allocation493_spill] sm:$0xff] }
 0x3d6   :  { %v13687_v29 = vmul.f32 %v13227_v11, %v18580_v48  ;;  %v4011_v53 = vadd.f32 %v3947_v7, %v3428_v60  ;;  %v4010_v38 = vadd.f32 %v3946_v44, %v3427_v45  ;;  %v13694_v13 = vadd.f32 %v13617_v52, %v18581_v21  ;;  %v4838_v61 = vpop.permute.xlu1 %4837  ;;  %v7451_v7 = vld [vmem:[%s16484_s8 + $0xd08] sm:$0xff]  ;;  %v7450_v39 = vld [vmem:[%s16484_s8 + $0xd00] sm:$0xff] }
 0x3d7   :  { %v13697_v4 = vadd.f32 %v2787_v49, %v18582_v36  ;;  %v5173_v18 = vadd.f32 %v5109_v40, %v4591_v56  ;;  %v5172_v35 = vadd.f32 %v5108_v17, %v4590_v42  ;;  %v13704_v28 = vmul.f32 %v13227_v11, %v18583_v23  ;;  %v4833_v47 = vpop.permute.xlu0 %4832 }
 0x3d8   :  { %v7864_v22 = vpop.eup %7863  ;;  %v13708_v30 = vmul.f32 %v13227_v11, %v18584_v9  ;;  %v4593_v52 = vadd.f32 %v4529_v1, %v4011_v53  ;;  %v4592_v2 = vadd.f32 %v4528_v12, %v4010_v38  ;;  %v5111_v0 = vmul.f32 %v4838_v61, %v4662_v46  ;;  %3793 = vperm.xlu1 %7838, %v7387_v10   ;;  %v18585_v38 = vld [vmem:[#allocation21_spill] sm:$0xff]  ;;  %v18586_v10 = vld [vmem:[#allocation519_spill] sm:$0xff] }
 0x3d9   :  { %v7866_v59 = vpop.eup %7865  ;;  %v13711_v58 = vadd.f32 %v13370_v6, %v5173_v18  ;;  %v13714_v37 = vadd.f32 %v13370_v6, %v5172_v35  ;;  %v5110_v49 = vmul.f32 %v4833_v47, %v4661_v24  ;;  %3788 = vperm.xlu0 %7837, %v7386_v26   ;;  %v5620_v44 = vmul.f32 0.5, %v13569_v25  ;;  %v18587_v47 = vld [vmem:[#allocation205_spill] sm:$0xff] }
 0x3da   :  { %v5621_v19 = vmul.f32 0.5, %v13566_v5  ;;  %v5748_v60 = vadd.f32 1.0, %v7864_v22  ;;  %v5749_v45 = vadd.f32 1.0, %v7866_v59  ;;  %v5175_v1 = vadd.f32 %v5111_v0, %v4593_v52  ;;  %v13728_v46 = vpop.permute.xlu1 %3683  ;;  %v7452_v52 = vld [vmem:[%s16484_s8 + $0xd10] sm:$0xff]  ;;  %v18588_v59 = vld [vmem:[#allocation453_spill] sm:$0xff] }
 0x3db   :  { %v7868_v54 = vpop.eup %7867  ;;  %v5305_v27 = vmul.f32 %v13711_v58, %v13711_v58  ;;  %v5304_v16 = vmul.f32 %v13714_v37, %v13714_v37  ;;  %v5174_v12 = vadd.f32 %v5110_v49, %v4592_v2  ;;  %v13730_v25 = vpop.permute.xlu0 %3678  ;;  %v5622_v24 = vmul.f32 0.5, %v13594_v14  ;;  %v7453_v14 = vld [vmem:[%s16484_s8 + $0xd18] sm:$0xff]  ;;  %v18589_v49 = vld [vmem:[#allocation90_spill] sm:$0xff] }
 0x3dc   :  { %v7870_v34 = vpop.eup %7869  ;;  %v5812_v5 = vmul.f32 %v5748_v60, %v5620_v44  ;;  %v5813_v43 = vmul.f32 %v5749_v45, %v5621_v19  ;;  %v5750_v56 = vadd.f32 1.0, %v7868_v54  ;;  %v13736_v17 = vadd.f32 %v13370_v6, %v5175_v1  ;;  %4365 = vperm.xlu1 %7838, %v7451_v7   ;;  %v18590_v7 = vld [vmem:[#allocation520_spill] sm:$0xff]  ;;  %v18593_v1 = vld [vmem:[#allocation210_spill] sm:$0xff] }
 0x3dd   :  { %v5369_v42 = vmul.f32 %v5305_v27, %v13711_v58  ;;  %v5368_v40 = vmul.f32 %v5304_v16, %v13714_v37  ;;  %v13739_v53 = vadd.f32 %v13370_v6, %v5174_v12  ;;  %v3366_v21 = vmul.f32 %v18586_v10, %v18585_v38  ;;  %4360 = vperm.xlu0 %7837, %v7450_v39   ;;  %v18591_v54 = vld [vmem:[#allocation132_spill] sm:$0xff]  ;;  %v18592_v27 = vld [vmem:[#allocation454_spill] sm:$0xff] }
 0x3de   :  { %v5874_v36 = vpack.c.bf16 %v5813_v43, %v5812_v5  ;;  %v5623_v18 = vmul.f32 0.5, %v13591_v55  ;;  %v5751_v35 = vadd.f32 1.0, %v7870_v34  ;;  %v5307_v26 = vmul.f32 %v13736_v17, %v13736_v17  ;;  %v3694_v44 = vpop.permute.xlu1 %3693  ;;  %v18594_v12 = vld [vmem:[#allocation466_spill] sm:$0xff] }
 0x3df   :  { %v5306_v22 = vmul.f32 %v13739_v53, %v13739_v53  ;;  %v5814_v2 = vmul.f32 %v5750_v56, %v5622_v24  ;;  %v5432_v61 = vmul.f32 0.044715, %v5368_v40  ;;  %v13756_v0 = vmul.f32 %v18588_v59, %v18587_v47  ;;  %v3689_v19 = vpop.permute.xlu0 %3688  ;;  %v7517_v56 = vld [vmem:[%s16484_s8 + $0xf08] sm:$0xff]  ;;  %v18598_v59 = vld [vmem:[#allocation229_spill] sm:$0xff] }
 0x3e0   :  { %v3365_v55 = vmul.f32 %v18590_v7, %v18589_v49  ;;  %7677 = vmatprep.mubr.bf16.mxu0 %v5874_v36  ;;  %v5815_v60 = vmul.f32 %v5751_v35, %v5623_v18  ;;  %v5433_v45 = vmul.f32 0.044715, %v5369_v42  ;;  %v13762_v16 = vmul.f32 %v18592_v27, %v18591_v54  ;;  %4375 = vperm.xlu1 %7838, %v7453_v14   ;;  %v18595_v38 = vld [vmem:[#allocation258_spill] sm:$0xff]  ;;  %v18596_v36 = vld [vmem:[#allocation272_spill] sm:$0xff]  ;;  %v18599_v7 = vld [vmem:[#allocation231_spill] sm:$0xff] }
 0x3e1   :  { %v13766_v39 = vmul.f32 %v18594_v12, %v18593_v1  ;;  %v5371_v34 = vmul.f32 %v5307_v26, %v13736_v17  ;;  %v5370_v5 = vmul.f32 %v5306_v22, %v13739_v53  ;;  %v3430_v43 = vadd.f32 %v3366_v21, %v13542_v51  ;;  %4370 = vperm.xlu0 %7837, %v7452_v52   ;;  %v7516_v51 = vld [vmem:[%s16484_s8 + $0xf00] sm:$0xff]  ;;  %v18597_v26 = vld [vmem:[#allocation96_spill] sm:$0xff] }
 0x3e2   :  { %v5875_v24 = vpack.c.bf16 %v5815_v60, %v5814_v2  ;;  %v5496_v42 = vadd.f32 %v5432_v61, %v13714_v37  ;;  %v5497_v40 = vadd.f32 %v5433_v45, %v13711_v58  ;;  %v3500_v10 = vmul.f32 %v13260_v32, %v18595_v38  ;;  %v4266_v52 = vpop.permute.xlu1 %4265  ;;  %v18602_v1 = vld [vmem:[#allocation277_spill] sm:$0xff] }
 0x3e3   :  { %v3499_v18 = vmul.f32 %v13260_v32, %v18596_v36  ;;  %v5434_v21 = vmul.f32 0.044715, %v5370_v5  ;;  %v5435_v14 = vmul.f32 0.044715, %v5371_v34  ;;  %v3429_v35 = vadd.f32 %v3365_v55, %v13545_v57  ;;  %v4261_v2 = vpop.permute.xlu0 %4260  ;;  %v18600_v57 = vld [vmem:[#allocation30_spill] sm:$0xff]  ;;  %v7519_v34 = vld [vmem:[%s16484_s8 + $0xf18] sm:$0xff] }
 0x3e4   :  { %v3368_v22 = vmul.f32 %v18597_v26, %v13552_v50  ;;  %7678 = vmatmul.mubr.bf16.gmra.mrb[4].mxu0 %v5875_v24  ;;  %v5560_v61 = vmul.f32 0.7978846, %v5496_v42  ;;  %v5561_v47 = vmul.f32 0.7978846, %v5497_v40  ;;  %v4082_v49 = vmul.f32 %v13285_v20, %v18598_v59  ;;  %4947 = vperm.xlu1 %7838, %v7517_v56   ;;  %v18601_v50 = vld [vmem:[#allocation274_spill] sm:$0xff]  ;;  %v18604_v36 = vld [vmem:[#allocation243_spill] sm:$0xff] }
 0x3e5   :  { %v4081_v60 = vmul.f32 %v13285_v20, %v18599_v7  ;;  %v5498_v45 = vadd.f32 %v5434_v21, %v13739_v53  ;;  %v5499_v54 = vadd.f32 %v5435_v14, %v13736_v17  ;;  %v3367_v55 = vmul.f32 %v18600_v57, %v13556_v3  ;;  %4942 = vperm.xlu0 %7837, %v7516_v51   ;;  %v7518_v3 = vld [vmem:[%s16484_s8 + $0xf10] sm:$0xff]  ;;  %v18603_v40 = vld [vmem:[#allocation242_spill] sm:$0xff] }
 0x3e6   :  { %v3502_v27 = vmul.f32 %v13260_v32, %v18601_v50  ;;  %v3501_v12 = vmul.f32 %v13260_v32, %v18602_v1  ;;  %7871 = vtanh.f32 %v5560_v61  ;;  %v3949_v5 = vmul.f32 %v13728_v46, %v3500_v10  ;;  %v4276_v42 = vpop.permute.xlu1 %4275  ;;  %v18605_v14 = vld [vmem:[#allocation134_spill] sm:$0xff]  ;;  %v18606_v26 = vld [vmem:[#allocation467_spill] sm:$0xff] }
 0x3e7   :  { %v3948_v24 = vmul.f32 %v13730_v25, %v3499_v18  ;;  %7873 = vtanh.f32 %v5561_v47  ;;  %v5562_v56 = vmul.f32 0.7978846, %v5498_v45  ;;  %v4084_v32 = vmul.f32 %v13285_v20, %v18603_v40  ;;  %v4271_v38 = vpop.permute.xlu0 %4270 }
 0x3e8   :  { %v4083_v51 = vmul.f32 %v13285_v20, %v18604_v36  ;;  %v4664_v21 = vmul.f32 %v13325_v63, %v18554_v62  ;;  %v5563_v46 = vmul.f32 0.7978846, %v5499_v54  ;;  %v4531_v10 = vmul.f32 %v4266_v52, %v4082_v49  ;;  %4957 = vperm.xlu1 %7838, %v7519_v34   ;;  %v7389_v20 = vld [vmem:[%s16484_s8 + $0xb28] sm:$0xff] }
 0x3e9   :  { %v4530_v25 = vmul.f32 %v4261_v2, %v4081_v60  ;;  %v4663_v18 = vmul.f32 %v13325_v63, %v18555_v33  ;;  %7875 = vtanh.f32 %v5562_v56  ;;  %v2791_v61 = vmul.f32 %v18606_v26, %v18605_v14  ;;  %4952 = vperm.xlu0 %7837, %v7518_v3   ;;  %v7388_v33 = vld [vmem:[%s16484_s8 + $0xb20] sm:$0xff] }
 0x3ea   :  { %v3951_v47 = vmul.f32 %v3694_v44, %v3502_v27  ;;  %v3950_v59 = vmul.f32 %v3689_v19, %v3501_v12  ;;  %7877 = vtanh.f32 %v5563_v46  ;;  %v3432_v62 = vadd.f32 %v3368_v22, %v13597_v8  ;;  %v4848_v44 = vpop.permute.xlu1 %4847  ;;  %v18610_v12 = vld [vmem:[#allocation18_spill] sm:$0xff]  ;;  %v18611_v3 = vld [vmem:[#allocation505_spill] sm:$0xff] }
 0x3eb   :  { %v3431_v52 = vadd.f32 %v3367_v55, %v13611_v41  ;;  %v4013_v2 = vadd.f32 %v3949_v5, %v3430_v43  ;;  %v4012_v49 = vadd.f32 %v3948_v24, %v3429_v35  ;;  %v4533_v7 = vmul.f32 %v4276_v42, %v4084_v32  ;;  %v4843_v19 = vpop.permute.xlu0 %4842  ;;  %v18607_v43 = vld [vmem:[#allocation69_spill] sm:$0xff]  ;;  %v18612_v42 = vld [vmem:[#allocation216_spill] sm:$0xff] }
 0x3ec   :  { %v4532_v60 = vmul.f32 %v4271_v38, %v4083_v51  ;;  %v4666_v45 = vmul.f32 %v13325_v63, %v18579_v15  ;;  %v4665_v54 = vmul.f32 %v13325_v63, %v18580_v48  ;;  %v5113_v22 = vmul.f32 %v4848_v44, %v4664_v21  ;;  %3803 = vperm.xlu1 %7838, %v7389_v20   ;;  %v18608_v55 = vld [vmem:[#allocation133_spill] sm:$0xff] }
 0x3ed   :  { %v4595_v57 = vadd.f32 %v4531_v10, %v4013_v2  ;;  %v4594_v8 = vadd.f32 %v4530_v25, %v4012_v49  ;;  %v5112_v41 = vmul.f32 %v4843_v19, %v4663_v18  ;;  %v13830_v35 = vadd.f32 %v13756_v0, %v18607_v43  ;;  %3798 = vperm.xlu0 %7837, %v7388_v33   ;;  %v7391_v63 = vld [vmem:[%s16484_s8 + $0xb38] sm:$0xff]  ;;  %v7454_v2 = vld [vmem:[%s16484_s8 + $0xd20] sm:$0xff] }
 0x3ee   :  { %v13834_v50 = vadd.f32 %v13762_v16, %v18608_v55  ;;  %v4015_v27 = vadd.f32 %v3951_v47, %v3432_v62  ;;  %v4014_v1 = vadd.f32 %v3950_v59, %v3431_v52  ;;  %v18609_v15 = vld [vmem:[#allocation81_spill] sm:$0xff]  ;;  %v13845_v34 = vmul.f32 %v13227_v11, %v18610_v12  ;;  %v7390_v16 = vld [vmem:[%s16484_s8 + $0xb30] sm:$0xff]  ;;  %v4858_v36 = vpop.permute.xlu1 %4857 }
 0x3ef   :  { %v13841_v48 = vmul.f32 %v13227_v11, %v18609_v15  ;;  %v5177_v0 = vadd.f32 %v5113_v22, %v4595_v57  ;;  %v5176_v5 = vadd.f32 %v5112_v41, %v4594_v8  ;;  %v13852_v56 = vadd.f32 %v13766_v39, %v18611_v3  ;;  %v4853_v51 = vpop.permute.xlu0 %4852  ;;  %v7455_v39 = vld [vmem:[%s16484_s8 + $0xd28] sm:$0xff] }
 0x3f0   :  { %v7872_v24 = vpop.eup %7871  ;;  %v13855_v40 = vadd.f32 %v2791_v61, %v18612_v42  ;;  %v4597_v32 = vadd.f32 %v4533_v7, %v4015_v27  ;;  %v4596_v38 = vadd.f32 %v4532_v60, %v4014_v1  ;;  %v5115_v10 = vmul.f32 %v4858_v36, %v4666_v45  ;;  %3813 = vperm.xlu1 %7838, %v7391_v63   ;;  %v18613_v8 = vld [vmem:[#allocation375_spill] sm:$0xff]  ;;  %v18616_v36 = vld [vmem:[#allocation6_spill] sm:$0xff] }
 0x3f1   :  { %v7874_v11 = vpop.eup %7873  ;;  %v13858_v21 = vadd.f32 %v13370_v6, %v5177_v0  ;;  %v13861_v46 = vadd.f32 %v13370_v6, %v5176_v5  ;;  %v5114_v25 = vmul.f32 %v4853_v51, %v4665_v54  ;;  %3808 = vperm.xlu0 %7837, %v7390_v16   ;;  %v5624_v18 = vmul.f32 0.5, %v13714_v37  ;;  %v7456_v1 = vld [vmem:[%s16484_s8 + $0xd30] sm:$0xff] }
 0x3f2   :  { %v5625_v14 = vmul.f32 0.5, %v13711_v58  ;;  %v5752_v26 = vadd.f32 1.0, %v7872_v24  ;;  %v5753_v61 = vadd.f32 1.0, %v7874_v11  ;;  %v5179_v62 = vadd.f32 %v5115_v10, %v4597_v32  ;;  %v13875_v33 = vpop.permute.xlu1 %3703  ;;  %v18614_v0 = vld [vmem:[#allocation399_spill] sm:$0xff] }
 0x3f3   :  { %v7876_v47 = vpop.eup %7875  ;;  %v5309_v59 = vmul.f32 %v13858_v21, %v13858_v21  ;;  %v5308_v20 = vmul.f32 %v13861_v46, %v13861_v46  ;;  %v5178_v52 = vadd.f32 %v5114_v25, %v4596_v38  ;;  %v13877_v37 = vpop.permute.xlu0 %3698  ;;  %v5626_v60 = vmul.f32 0.5, %v13739_v53  ;;  %v7457_v53 = vld [vmem:[%s16484_s8 + $0xd38] sm:$0xff]  ;;  %v18615_v16 = vld [vmem:[#allocation271_spill] sm:$0xff] }
 0x3f4   :  { %v7878_v49 = vpop.eup %7877  ;;  %v5816_v58 = vmul.f32 %v5752_v26, %v5624_v18  ;;  %v5817_v7 = vmul.f32 %v5753_v61, %v5625_v14  ;;  %v5754_v44 = vadd.f32 1.0, %v7876_v47  ;;  %v13883_v54 = vadd.f32 %v13370_v6, %v5179_v62  ;;  %4385 = vperm.xlu1 %7838, %v7455_v39   ;;  %v18617_v51 = vld [vmem:[#allocation479_spill] sm:$0xff] }
 0x3f5   :  { %v5373_v19 = vmul.f32 %v5309_v59, %v13858_v21  ;;  %v5372_v45 = vmul.f32 %v5308_v20, %v13861_v46  ;;  %v13886_v57 = vadd.f32 %v13370_v6, %v5178_v52  ;;  %v3370_v22 = vmul.f32 %v18613_v8, %v13683_v31  ;;  %4380 = vperm.xlu0 %7837, %v7454_v2   ;;  %v18618_v10 = vld [vmem:[#allocation307_spill] sm:$0xff]  ;;  %v13931_v59 = vld [vmem:[%s16479_s3 + $0x8] ss:$0 sm:$0xff]  ;;  %v18619_v20 = vld [vmem:[#allocation288_spill] sm:$0xff] }
 0x3f6   :  { %v5876_v41 = vpack.c.bf16 %v5817_v7, %v5816_v58  ;;  %v5627_v43 = vmul.f32 0.5, %v13736_v17  ;;  %v5755_v55 = vadd.f32 1.0, %v7878_v49  ;;  %v5311_v27 = vmul.f32 %v13883_v54, %v13883_v54  ;;  %v13906_v17 = vld [vmem:[%s16479_s3 + $0x6] ss:$0 sm:$0xff]  ;;  %v3714_v3 = vpop.permute.xlu1 %3713  ;;  %v7521_v26 = vld [vmem:[%s16484_s8 + $0xf28] sm:$0xff]  ;;  %v18620_v52 = vld [vmem:[#allocation289_spill] sm:$0xff] }
 0x3f7   :  { %v5310_v6 = vmul.f32 %v13886_v57, %v13886_v57  ;;  %v5818_v31 = vmul.f32 %v5754_v44, %v5626_v60  ;;  %v5436_v63 = vmul.f32 0.044715, %v5372_v45  ;;  %v3369_v5 = vmul.f32 %v18614_v0, %v13687_v29  ;;  %v3709_v42 = vpop.permute.xlu0 %3708  ;;  %v7520_v2 = vld [vmem:[%s16484_s8 + $0xf20] sm:$0xff]  ;;  %v18626_v0 = vld [vmem:[#allocation296_spill] sm:$0xff] }
 0x3f8   :  { %v13910_v24 = vmul.f32 %v13906_v17, %v18615_v16  ;;  %7681 = vmatprep.mubr.bf16.mxu0 %v5876_v41  ;;  %v5819_v32 = vmul.f32 %v5755_v55, %v5627_v43  ;;  %v5437_v38 = vmul.f32 0.044715, %v5373_v19  ;;  %v13914_v11 = vmul.f32 %v18617_v51, %v18616_v36  ;;  %4395 = vperm.xlu1 %7838, %v7457_v53   ;;  %v18621_v60 = vld [vmem:[#allocation101_spill] sm:$0xff]  ;;  %v13946_v41 = vld [vmem:[%s16479_s3 + $0x9] ss:$0 sm:$0xff] }
 0x3f9   :  { %v13918_v29 = vmul.f32 %v13906_v17, %v18618_v10  ;;  %v5375_v25 = vmul.f32 %v5311_v27, %v13883_v54  ;;  %v5374_v39 = vmul.f32 %v5310_v6, %v13886_v57  ;;  %v3434_v18 = vadd.f32 %v3370_v22, %v13694_v13  ;;  %4390 = vperm.xlu0 %7837, %v7456_v1   ;;  %v18622_v53 = vld [vmem:[#allocation257_spill] sm:$0xff]  ;;  %v18623_v55 = vld [vmem:[#allocation259_spill] sm:$0xff]  ;;  %v18624_v6 = vld [vmem:[#allocation34_spill] sm:$0xff] }
 0x3fa   :  { %v5877_v14 = vpack.c.bf16 %v5819_v32, %v5818_v31  ;;  %v5500_v61 = vadd.f32 %v5436_v63, %v13861_v46  ;;  %v5501_v47 = vadd.f32 %v5437_v38, %v13858_v21  ;;  %v3504_v62 = vmul.f32 %v13931_v59, %v18619_v20  ;;  %v4286_v19 = vpop.permute.xlu1 %4285  ;;  %v18625_v31 = vld [vmem:[#allocation295_spill] sm:$0xff]  ;;  %v7523_v32 = vld [vmem:[%s16484_s8 + $0xf38] sm:$0xff] }
 0x3fb   :  { %v3503_v13 = vmul.f32 %v13931_v59, %v18620_v52  ;;  %v5438_v49 = vmul.f32 0.044715, %v5374_v39  ;;  %v5439_v58 = vmul.f32 0.044715, %v5375_v25  ;;  %v3433_v7 = vadd.f32 %v3369_v5, %v13697_v4  ;;  %v4281_v45 = vpop.permute.xlu0 %4280  ;;  %v18627_v39 = vld [vmem:[#allocation265_spill] sm:$0xff] }
 0x3fc   :  { %v3372_v44 = vmul.f32 %v18621_v60, %v13704_v28  ;;  %7682 = vmatmul.mubr.bf16.gmra.mrb[8].mxu0 %v5877_v14  ;;  %v5564_v8 = vmul.f32 0.7978846, %v5500_v61  ;;  %v5565_v22 = vmul.f32 0.7978846, %v5501_v47  ;;  %v4086_v43 = vmul.f32 %v13946_v41, %v18622_v53  ;;  %4967 = vperm.xlu1 %7838, %v7521_v26   ;;  %v18628_v61 = vld [vmem:[#allocation266_spill] sm:$0xff] }
 0x3fd   :  { %v4085_v27 = vmul.f32 %v13946_v41, %v18623_v55  ;;  %v5502_v4 = vadd.f32 %v5438_v49, %v13886_v57  ;;  %v5503_v28 = vadd.f32 %v5439_v58, %v13883_v54  ;;  %v3371_v1 = vmul.f32 %v18624_v6, %v13708_v30  ;;  %4962 = vperm.xlu0 %7837, %v7520_v2   ;;  %v7522_v30 = vld [vmem:[%s16484_s8 + $0xf30] sm:$0xff] }
 0x3fe   :  { %v3506_v63 = vmul.f32 %v13931_v59, %v18625_v31  ;;  %v3505_v5 = vmul.f32 %v13931_v59, %v18626_v0  ;;  %7879 = vtanh.f32 %v5564_v8  ;;  %v3953_v38 = vmul.f32 %v13875_v33, %v3504_v62  ;;  %v4296_v25 = vpop.permute.xlu1 %4295  ;;  %v13975_v33 = vld [vmem:[%s16479_s3 + $0xa] ss:$0 sm:$0xff]  ;;  %v18630_v49 = vld [vmem:[#allocation480_spill] sm:$0xff] }
 0x3ff   :  { %v3952_v36 = vmul.f32 %v13877_v37, %v3503_v13  ;;  %7881 = vtanh.f32 %v5565_v22  ;;  %v5566_v51 = vmul.f32 0.7978846, %v5502_v4  ;;  %v4088_v14 = vmul.f32 %v13946_v41, %v18627_v39  ;;  %v4291_v26 = vpop.permute.xlu0 %4290  ;;  %v18629_v2 = vld [vmem:[#allocation135_spill] sm:$0xff]  ;;  %v18632_v6 = vld [vmem:[#allocation136_spill] sm:$0xff] }
 0x400   :  { %v4087_v47 = vmul.f32 %v13946_v41, %v18628_v61  ;;  %v4668_v37 = vmul.f32 %v13975_v33, %v18583_v23  ;;  %v5567_v20 = vmul.f32 0.7978846, %v5503_v28  ;;  %v4535_v62 = vmul.f32 %v4286_v19, %v4086_v43  ;;  %4977 = vperm.xlu1 %7838, %v7523_v32   ;;  %v7393_v22 = vld [vmem:[%s16484_s8 + $0xb48] sm:$0xff] }
 0x401   :  { %v4534_v52 = vmul.f32 %v4281_v45, %v4085_v27  ;;  %v4667_v13 = vmul.f32 %v13975_v33, %v18584_v9  ;;  %7883 = vtanh.f32 %v5566_v51  ;;  %v2793_v58 = vmul.f32 %v18630_v49, %v18629_v2  ;;  %4972 = vperm.xlu0 %7837, %v7522_v30   ;;  %v7392_v9 = vld [vmem:[%s16484_s8 + $0xb40] sm:$0xff] }
 0x402   :  { %v3955_v60 = vmul.f32 %v3714_v3, %v3506_v63  ;;  %v3954_v8 = vmul.f32 %v3709_v42, %v3505_v5  ;;  %7885 = vtanh.f32 %v5567_v20  ;;  %v3436_v23 = vadd.f32 %v3372_v44, %v13830_v35  ;;  %v4868_v3 = vpop.permute.xlu1 %4867  ;;  %v18634_v5 = vld [vmem:[#allocation512_spill] sm:$0xff]  ;;  %v18635_v51 = vld [vmem:[#allocation73_spill] sm:$0xff] }
 0x403   :  { %v3435_v19 = vadd.f32 %v3371_v1, %v13834_v50  ;;  %v4017_v45 = vadd.f32 %v3953_v38, %v3434_v18  ;;  %v4016_v53 = vadd.f32 %v3952_v36, %v3433_v7  ;;  %v4537_v43 = vmul.f32 %v4296_v25, %v4088_v14  ;;  %v4863_v42 = vpop.permute.xlu0 %4862  ;;  %v18631_v18 = vld [vmem:[#allocation228_spill] sm:$0xff]  ;;  %v18636_v25 = vld [vmem:[#allocation489_spill] sm:$0xff]  ;;  %v18637_v14 = vld [vmem:[#allocation247_spill] sm:$0xff] }
 0x404   :  { %v4536_v55 = vmul.f32 %v4291_v26, %v4087_v47  ;;  %v4670_v27 = vmul.f32 %v13975_v33, %v18609_v15  ;;  %v4669_v4 = vmul.f32 %v13975_v33, %v18610_v12  ;;  %v5117_v44 = vmul.f32 %v4868_v3, %v4668_v37  ;;  %3823 = vperm.xlu1 %7838, %v7393_v22   ;;  %v7395_v15 = vld [vmem:[%s16484_s8 + $0xb58] sm:$0xff]  ;;  %v7394_v36 = vld [vmem:[%s16484_s8 + $0xb50] sm:$0xff]  ;;  %v18638_v26 = vld [vmem:[#allocation490_spill] sm:$0xff] }
 0x405   :  { %v4599_v28 = vadd.f32 %v4535_v62, %v4017_v45  ;;  %v4598_v35 = vadd.f32 %v4534_v52, %v4016_v53  ;;  %v5116_v50 = vmul.f32 %v4863_v42, %v4667_v13  ;;  %v13997_v7 = vadd.f32 %v13914_v11, %v18631_v18  ;;  %3818 = vperm.xlu0 %7837, %v7392_v9   ;;  %v18633_v12 = vld [vmem:[#allocation84_spill] sm:$0xff]  ;;  %v14023_v13 = vld [vmem:[%s16477_s1 + $0x2] ss:$0 sm:$0xff] }
 0x406   :  { %v14000_v1 = vadd.f32 %v2793_v58, %v18632_v6  ;;  %v4019_v31 = vadd.f32 %v3955_v60, %v3436_v23  ;;  %v4018_v63 = vadd.f32 %v3954_v8, %v3435_v19  ;;  %v14007_v0 = vmul.f32 %v13906_v17, %v18633_v12  ;;  %v4878_v20 = vpop.permute.xlu1 %4877  ;;  %v7459_v8 = vld [vmem:[%s16484_s8 + $0xd48] sm:$0xff]  ;;  %v7458_v42 = vld [vmem:[%s16484_s8 + $0xd40] sm:$0xff] }
 0x407   :  { %v14011_v32 = vmul.f32 %v13906_v17, %v18634_v5  ;;  %v5181_v11 = vadd.f32 %v5117_v44, %v4599_v28  ;;  %v5180_v38 = vadd.f32 %v5116_v50, %v4598_v35  ;;  %v2796_v39 = vmul.f32 %v18636_v25, %v18635_v51  ;;  %v4873_v62 = vpop.permute.xlu0 %4872  ;;  %v7460_v25 = vld [vmem:[%s16484_s8 + $0xd50] sm:$0xff] }
 0x408   :  { %v7880_v30 = vpop.eup %7879  ;;  %v2795_v61 = vmul.f32 %v18638_v26, %v18637_v14  ;;  %v4601_v47 = vadd.f32 %v4537_v43, %v4019_v31  ;;  %v4600_v37 = vadd.f32 %v4536_v55, %v4018_v63  ;;  %v5119_v58 = vmul.f32 %v4878_v20, %v4670_v27  ;;  %3833 = vperm.xlu1 %7838, %v7395_v15   ;;  %v18639_v63 = vld [vmem:[#allocation35_spill] sm:$0xff]  ;;  %v18640_v26 = vld [vmem:[#allocation137_spill] sm:$0xff] }
 0x409   :  { %v7882_v52 = vpop.eup %7881  ;;  %v14026_v2 = vadd.f32 %v14023_v13, %v5181_v11  ;;  %v14029_v49 = vadd.f32 %v14023_v13, %v5180_v38  ;;  %v5118_v60 = vmul.f32 %v4873_v62, %v4669_v4  ;;  %3828 = vperm.xlu0 %7837, %v7394_v36   ;;  %v5628_v22 = vmul.f32 0.5, %v13861_v46 }
 0x40a   :  { %v5629_v23 = vmul.f32 0.5, %v13858_v21  ;;  %v5756_v19 = vadd.f32 1.0, %v7880_v30  ;;  %v5757_v45 = vadd.f32 1.0, %v7882_v52  ;;  %v5183_v55 = vadd.f32 %v5119_v58, %v4601_v47  ;;  %v14043_v4 = vpop.permute.xlu1 %3723 }
 0x40b   :  { %v7884_v53 = vpop.eup %7883  ;;  %v5313_v9 = vmul.f32 %v14026_v2, %v14026_v2  ;;  %v5312_v43 = vmul.f32 %v14029_v49, %v14029_v49  ;;  %v5182_v3 = vadd.f32 %v5118_v60, %v4600_v37  ;;  %v14045_v46 = vpop.permute.xlu0 %3718  ;;  %v5630_v35 = vmul.f32 0.5, %v13886_v57  ;;  %v7461_v57 = vld [vmem:[%s16484_s8 + $0xd58] sm:$0xff] }
 0x40c   :  { %v7886_v27 = vpop.eup %7885  ;;  %v5820_v21 = vmul.f32 %v5756_v19, %v5628_v22  ;;  %v5821_v28 = vmul.f32 %v5757_v45, %v5629_v23  ;;  %v5758_v44 = vadd.f32 1.0, %v7884_v53  ;;  %v14051_v6 = vadd.f32 %v14023_v13, %v5183_v55  ;;  %4405 = vperm.xlu1 %7838, %v7459_v8   ;;  %v18641_v37 = vld [vmem:[#allocation380_spill] sm:$0xff]  ;;  %v18644_v23 = vld [vmem:[#allocation498_spill] sm:$0xff] }
 0x40d   :  { %v5377_v50 = vmul.f32 %v5313_v9, %v14026_v2  ;;  %v5376_v18 = vmul.f32 %v5312_v43, %v14029_v49  ;;  %v14054_v31 = vadd.f32 %v14023_v13, %v5182_v3  ;;  %v3374_v15 = vmul.f32 %v18639_v63, %v13841_v48  ;;  %4400 = vperm.xlu0 %7837, %v7458_v42   ;;  %v18642_v60 = vld [vmem:[#allocation68_spill] sm:$0xff]  ;;  %v7525_v9 = vld [vmem:[%s16484_s8 + $0xf48] sm:$0xff] }
 0x40e   :  { %v5878_v11 = vpack.c.bf16 %v5821_v28, %v5820_v21  ;;  %v5631_v38 = vmul.f32 0.5, %v13883_v54  ;;  %v5759_v36 = vadd.f32 1.0, %v7886_v27  ;;  %v5315_v30 = vmul.f32 %v14051_v6, %v14051_v6  ;;  %v3734_v54 = vpop.permute.xlu1 %3733  ;;  %v18643_v22 = vld [vmem:[#allocation236_spill] sm:$0xff]  ;;  %v18645_v55 = vld [vmem:[#allocation310_spill] sm:$0xff] }
 0x40f   :  { %v5314_v51 = vmul.f32 %v14054_v31, %v14054_v31  ;;  %v5822_v48 = vmul.f32 %v5758_v44, %v5630_v35  ;;  %v5440_v14 = vmul.f32 0.044715, %v5376_v18  ;;  %v14070_v47 = vadd.f32 %v2796_v39, %v18640_v26  ;;  %v3729_v62 = vpop.permute.xlu0 %3728  ;;  %v18646_v42 = vld [vmem:[#allocation316_spill] sm:$0xff]  ;;  %v18647_v44 = vld [vmem:[#allocation109_spill] sm:$0xff] }
 0x410   :  { %v3373_v20 = vmul.f32 %v18641_v37, %v13845_v34  ;;  %7685 = vmatprep.mubr.bf16.mxu0 %v5878_v11  ;;  %v5823_v52 = vmul.f32 %v5759_v36, %v5631_v38  ;;  %v5441_v58 = vmul.f32 0.044715, %v5377_v50  ;;  %v14075_v8 = vadd.f32 %v2795_v61, %v18642_v60  ;;  %4415 = vperm.xlu1 %7838, %v7461_v57   ;;  %v18648_v57 = vld [vmem:[#allocation280_spill] sm:$0xff]  ;;  %v18649_v36 = vld [vmem:[#allocation281_spill] sm:$0xff] }
 0x411   :  { %v14079_v19 = vmul.f32 %v18644_v23, %v18643_v22  ;;  %v5379_v45 = vmul.f32 %v5315_v30, %v14051_v6  ;;  %v5378_v39 = vmul.f32 %v5314_v51, %v14054_v31  ;;  %v3438_v53 = vadd.f32 %v3374_v15, %v13852_v56  ;;  %4410 = vperm.xlu0 %7837, %v7460_v25   ;;  %v7524_v56 = vld [vmem:[%s16484_s8 + $0xf40] sm:$0xff] }
 0x412   :  { %v5879_v34 = vpack.c.bf16 %v5823_v52, %v5822_v48  ;;  %v5504_v61 = vadd.f32 %v5440_v14, %v14029_v49  ;;  %v5505_v43 = vadd.f32 %v5441_v58, %v14026_v2  ;;  %v3508_v3 = vmul.f32 %v13931_v59, %v18645_v55  ;;  %v4306_v18 = vpop.permute.xlu1 %4305  ;;  %v18652_v26 = vld [vmem:[#allocation325_spill] sm:$0xff] }
 0x413   :  { %v3507_v27 = vmul.f32 %v13931_v59, %v18646_v42  ;;  %v5442_v21 = vmul.f32 0.044715, %v5378_v39  ;;  %v5443_v28 = vmul.f32 0.044715, %v5379_v45  ;;  %v3437_v35 = vadd.f32 %v3373_v20, %v13855_v40  ;;  %v4301_v63 = vpop.permute.xlu0 %4300  ;;  %v18650_v40 = vld [vmem:[#allocation423_spill] sm:$0xff]  ;;  %v7527_v20 = vld [vmem:[%s16484_s8 + $0xf58] sm:$0xff] }
 0x414   :  { %v3376_v50 = vmul.f32 %v18647_v44, %v13910_v24  ;;  %7686 = vmatmul.mubr.bf16.gmra.mrb[12].mxu0 %v5879_v34  ;;  %v5568_v15 = vmul.f32 0.7978846, %v5504_v61  ;;  %v5569_v11 = vmul.f32 0.7978846, %v5505_v43  ;;  %v4090_v38 = vmul.f32 %v13946_v41, %v18648_v57  ;;  %4987 = vperm.xlu1 %7838, %v7525_v9   ;;  %v18651_v24 = vld [vmem:[#allocation323_spill] sm:$0xff]  ;;  %v18653_v23 = vld [vmem:[#allocation293_spill] sm:$0xff] }
 0x415   :  { %v4089_v30 = vmul.f32 %v13946_v41, %v18649_v36  ;;  %v5506_v51 = vadd.f32 %v5442_v21, %v14054_v31  ;;  %v5507_v25 = vadd.f32 %v5443_v28, %v14051_v6  ;;  %v3375_v48 = vmul.f32 %v18650_v40, %v13918_v29  ;;  %4982 = vperm.xlu0 %7837, %v7524_v56   ;;  %v7526_v29 = vld [vmem:[%s16484_s8 + $0xf50] sm:$0xff]  ;;  %v18654_v34 = vld [vmem:[#allocation294_spill] sm:$0xff]  ;;  %v7333_v28 = vld [vmem:[%s16484_s8 + $0x978] sm:$0xff] }
 0x416   :  { %v3510_v14 = vmul.f32 %v13931_v59, %v18651_v24  ;;  %v3509_v37 = vmul.f32 %v13931_v59, %v18652_v26  ;;  %7887 = vtanh.f32 %v5568_v15  ;;  %v3957_v52 = vmul.f32 %v14043_v4, %v3508_v3  ;;  %v4316_v22 = vpop.permute.xlu1 %4315  ;;  %v18655_v3 = vld [vmem:[#allocation218_spill] sm:$0xff]  ;;  %v18656_v42 = vld [vmem:[#allocation499_spill] sm:$0xff] }
 0x417   :  { %v3956_v58 = vmul.f32 %v14045_v46, %v3507_v27  ;;  %7889 = vtanh.f32 %v5569_v11  ;;  %v5570_v60 = vmul.f32 0.7978846, %v5506_v51  ;;  %v4092_v45 = vmul.f32 %v13946_v41, %v18653_v23  ;;  %v4311_v39 = vpop.permute.xlu0 %4310  ;;  %v18660_v24 = vld [vmem:[#allocation7_spill] sm:$0xff]  ;;  %v18664_v23 = vld [vmem:[#allocation502_spill] sm:$0xff] }
 0x418   :  { %v4091_v9 = vmul.f32 %v13946_v41, %v18654_v34  ;;  %v4672_v61 = vmul.f32 %v13975_v33, %v18615_v16  ;;  %v5571_v4 = vmul.f32 0.7978846, %v5507_v25  ;;  %v4539_v43 = vmul.f32 %v4306_v18, %v4090_v38  ;;  %4997 = vperm.xlu1 %7838, %v7527_v20   ;;  %v7396_v20 = vld [vmem:[%s16484_s8 + $0xb60] sm:$0xff] }
 0x419   :  { %v4538_v46 = vmul.f32 %v4301_v63, %v4089_v30  ;;  %v4671_v55 = vmul.f32 %v13975_v33, %v18618_v10  ;;  %7891 = vtanh.f32 %v5570_v60  ;;  %v2797_v27 = vmul.f32 %v18656_v42, %v18655_v3  ;;  %4992 = vperm.xlu0 %7837, %v7526_v29   ;;  %v7332_v10 = vld [vmem:[%s16484_s8 + $0x970] sm:$0xff]  ;;  %v18658_v30 = vld [vmem:[#allocation309_spill] sm:$0xff] }
 0x41a   :  { %v3959_v56 = vmul.f32 %v3734_v54, %v3510_v14  ;;  %v3958_v21 = vmul.f32 %v3729_v62, %v3509_v37  ;;  %7893 = vtanh.f32 %v5571_v4  ;;  %v3440_v16 = vadd.f32 %v3376_v50, %v13997_v7  ;;  %v18662_v29 = vld [vmem:[#allocation501_spill] sm:$0xff] }
 0x41b   :  { %v3439_v44 = vadd.f32 %v3375_v48, %v14000_v1  ;;  %v4021_v18 = vadd.f32 %v3957_v52, %v3438_v53  ;;  %v4020_v63 = vadd.f32 %v3956_v58, %v3437_v35  ;;  %v4541_v15 = vmul.f32 %v4316_v22, %v4092_v45  ;;  %v4888_v54 = vpop.permute.xlu1 %4887  ;;  %v4883_v62 = vpop.permute.xlu0 %4882  ;;  %v18657_v53 = vld [vmem:[#allocation87_spill] sm:$0xff]  ;;  %v18661_v58 = vld [vmem:[#allocation76_spill] sm:$0xff] }
 0x41c   :  { %v4540_v11 = vmul.f32 %v4311_v39, %v4091_v9  ;;  %v4674_v57 = vmul.f32 %v13975_v33, %v18633_v12  ;;  %v4673_v38 = vmul.f32 %v13975_v33, %v18634_v5  ;;  %v5121_v50 = vmul.f32 %v4888_v54, %v4672_v61  ;;  %3270 = vperm.xlu1 %7838, %v7333_v28   ;;  %v7397_v12 = vld [vmem:[%s16484_s8 + $0xb68] sm:$0xff]  ;;  %v18663_v22 = vld [vmem:[#allocation140_spill] sm:$0xff] }
 0x41d   :  { %v4603_v36 = vadd.f32 %v4539_v43, %v4021_v18  ;;  %v4602_v7 = vadd.f32 %v4538_v46, %v4020_v63  ;;  %v5120_v1 = vmul.f32 %v4883_v62, %v4671_v55  ;;  %v14143_v35 = vmul.f32 %v13906_v17, %v18657_v53  ;;  %3265 = vperm.xlu0 %7837, %v7332_v10   ;;  %v18659_v5 = vld [vmem:[#allocation138_spill] sm:$0xff]  ;;  %v7399_v3 = vld [vmem:[%s16484_s8 + $0xb78] sm:$0xff]  ;;  %v7398_v10 = vld [vmem:[%s16484_s8 + $0xb70] sm:$0xff] }
 0x41e   :  { %v14147_v51 = vmul.f32 %v13906_v17, %v18658_v30  ;;  %v4023_v25 = vadd.f32 %v3959_v56, %v3440_v16  ;;  %v4022_v40 = vadd.f32 %v3958_v21, %v3439_v44  ;;  %v14154_v48 = vadd.f32 %v14079_v19, %v18659_v5 }
 0x41f   :  { %v14157_v14 = vadd.f32 %v2797_v27, %v18660_v24  ;;  %v5185_v26 = vadd.f32 %v5121_v50, %v4603_v36  ;;  %v5184_v37 = vadd.f32 %v5120_v1, %v4602_v7  ;;  %v2800_v60 = vmul.f32 %v18662_v29, %v18661_v58  ;;  %v4898_v19 = vpop.permute.xlu1 %4897  ;;  %v4893_v9 = vpop.permute.xlu0 %4892  ;;  %v18665_v1 = vld [vmem:[#allocation513_spill] sm:$0xff]  ;;  %v18666_v58 = vld [vmem:[#allocation15_spill] sm:$0xff] }
 0x420   :  { %v7888_v52 = vpop.eup %7887  ;;  %v2799_v45 = vmul.f32 %v18664_v23, %v18663_v22  ;;  %v4605_v39 = vadd.f32 %v4541_v15, %v4023_v25  ;;  %v4604_v34 = vadd.f32 %v4540_v11, %v4022_v40  ;;  %v5123_v46 = vmul.f32 %v4898_v19, %v4674_v57  ;;  %3843 = vperm.xlu1 %7838, %v7397_v12   ;;  %v18667_v22 = vld [vmem:[#allocation514_spill] sm:$0xff]  ;;  %v18668_v19 = vld [vmem:[#allocation141_spill] sm:$0xff] }
 0x421   :  { %v7890_v61 = vpop.eup %7889  ;;  %v14167_v4 = vadd.f32 %v14023_v13, %v5185_v26  ;;  %v14170_v43 = vadd.f32 %v14023_v13, %v5184_v37  ;;  %v5122_v55 = vmul.f32 %v4893_v9, %v4673_v38  ;;  %3838 = vperm.xlu0 %7837, %v7396_v20   ;;  %v5632_v42 = vmul.f32 0.5, %v14029_v49  ;;  %v7462_v37 = vld [vmem:[%s16484_s8 + $0xd60] sm:$0xff] }
 0x422   :  { %v5633_v27 = vmul.f32 0.5, %v14026_v2  ;;  %v5760_v56 = vadd.f32 1.0, %v7888_v52  ;;  %v5761_v21 = vadd.f32 1.0, %v7890_v61  ;;  %v5187_v18 = vadd.f32 %v5123_v46, %v4605_v39 }
 0x423   :  { %v7892_v28 = vpop.eup %7891  ;;  %v5317_v16 = vmul.f32 %v14167_v4, %v14167_v4  ;;  %v5316_v44 = vmul.f32 %v14170_v43, %v14170_v43  ;;  %v5186_v63 = vadd.f32 %v5122_v55, %v4604_v34  ;;  %v14184_v11 = vpop.permute.xlu1 %3743  ;;  %v5634_v62 = vmul.f32 0.5, %v14054_v31  ;;  %v7463_v31 = vld [vmem:[%s16484_s8 + $0xd68] sm:$0xff] }
 0x424   :  { %v7894_v15 = vpop.eup %7893  ;;  %v14186_v49 = vpop.permute.xlu0 %3738  ;;  %v5824_v2 = vmul.f32 %v5760_v56, %v5632_v42  ;;  %v5825_v54 = vmul.f32 %v5761_v21, %v5633_v27  ;;  %v5762_v57 = vadd.f32 1.0, %v7892_v28  ;;  %v14192_v7 = vadd.f32 %v14023_v13, %v5187_v18  ;;  %3853 = vperm.xlu1 %7838, %v7399_v3   ;;  %v18669_v3 = vld [vmem:[#allocation410_spill] sm:$0xff]  ;;  %v18670_v27 = vld [vmem:[#allocation416_spill] sm:$0xff] }
 0x425   :  { %v5381_v38 = vmul.f32 %v5317_v16, %v14167_v4  ;;  %v5380_v36 = vmul.f32 %v5316_v44, %v14170_v43  ;;  %v14195_v50 = vadd.f32 %v14023_v13, %v5186_v63  ;;  %v14199_v25 = vmul.f32 %v13906_v17, %v18665_v1  ;;  %3848 = vperm.xlu0 %7837, %v7398_v10   ;;  %v7464_v28 = vld [vmem:[%s16484_s8 + $0xd70] sm:$0xff]  ;;  %v18671_v44 = vld [vmem:[#allocation329_spill] sm:$0xff] }
 0x426   :  { %v5880_v40 = vpack.c.bf16 %v5825_v54, %v5824_v2  ;;  %v5635_v12 = vmul.f32 0.5, %v14051_v6  ;;  %v5763_v5 = vadd.f32 1.0, %v7894_v15  ;;  %v5319_v24 = vmul.f32 %v14192_v7, %v14192_v7  ;;  %v18672_v15 = vld [vmem:[#allocation352_spill] sm:$0xff] }
 0x427   :  { %v5318_v26 = vmul.f32 %v14195_v50, %v14195_v50  ;;  %v5826_v20 = vmul.f32 %v5762_v57, %v5634_v62  ;;  %v5444_v52 = vmul.f32 0.044715, %v5380_v36  ;;  %v14213_v29 = vadd.f32 %v2800_v60, %v18666_v58  ;;  %v14219_v6 = vpop.permute.xlu1 %3753  ;;  %v18673_v2 = vld [vmem:[#allocation92_spill] sm:$0xff]  ;;  %v18674_v62 = vld [vmem:[#allocation338_spill] sm:$0xff] }
 0x428   :  { %v14217_v23 = vmul.f32 %v13906_v17, %v18667_v22  ;;  %7689 = vmatprep.mubr.bf16.mxu0 %v5880_v40  ;;  %v5827_v39 = vmul.f32 %v5763_v5, %v5635_v12  ;;  %v5445_v34 = vmul.f32 0.044715, %v5381_v38  ;;  %v14222_v9 = vadd.f32 %v2799_v45, %v18668_v19  ;;  %v3749_v55 = vpop.permute.xlu0 %3748  ;;  %4425 = vperm.xlu1 %7838, %v7463_v31   ;;  %v7465_v45 = vld [vmem:[%s16484_s8 + $0xd78] sm:$0xff]  ;;  %v7529_v58 = vld [vmem:[%s16484_s8 + $0xf68] sm:$0xff] }
 0x429   :  { %v5383_v61 = vmul.f32 %v5319_v24, %v14192_v7  ;;  %v5382_v46 = vmul.f32 %v5318_v26, %v14195_v50  ;;  %v5508_v60 = vadd.f32 %v5444_v52, %v14170_v43  ;;  %v3378_v42 = vmul.f32 %v18669_v3, %v14007_v0  ;;  %4420 = vperm.xlu0 %7837, %v7462_v37   ;;  %v18675_v40 = vld [vmem:[#allocation297_spill] sm:$0xff]  ;;  %v18679_v3 = vld [vmem:[#allocation522_spill] sm:$0xff] }
 0x42a   :  { %v3377_v56 = vmul.f32 %v18670_v27, %v14011_v32  ;;  %v5881_v21 = vpack.c.bf16 %v5827_v39, %v5826_v20  ;;  %v5509_v16 = vadd.f32 %v5445_v34, %v14167_v4  ;;  %v3512_v18 = vmul.f32 %v13931_v59, %v18671_v44  ;;  %v18676_v20 = vld [vmem:[#allocation298_spill] sm:$0xff] }
 0x42b   :  { %v5572_v63 = vmul.f32 0.7978846, %v5508_v60  ;;  %v5446_v0 = vmul.f32 0.044715, %v5382_v46  ;;  %v5447_v10 = vmul.f32 0.044715, %v5383_v61  ;;  %v14242_v32 = vmul.f32 %v13906_v17, %v18672_v15  ;;  %v4326_v38 = vpop.permute.xlu1 %4325 }
 0x42c   :  { %v14246_v54 = vmul.f32 %v13906_v17, %v18673_v2  ;;  %v3511_v57 = vmul.f32 %v13931_v59, %v18674_v62  ;;  %7690 = vmatmul.mubr.bf16.gmra.mrb[16].mxu0 %v5881_v21  ;;  %v5573_v36 = vmul.f32 0.7978846, %v5509_v16  ;;  %v4094_v31 = vmul.f32 %v13946_v41, %v18675_v40  ;;  %v4321_v12 = vpop.permute.xlu0 %4320  ;;  %4435 = vperm.xlu1 %7838, %v7465_v45   ;;  %v18677_v34 = vld [vmem:[#allocation342_spill] sm:$0xff]  ;;  %v18678_v46 = vld [vmem:[#allocation521_spill] sm:$0xff]  ;;  %v18684_v62 = vld [vmem:[#allocation507_spill] sm:$0xff] }
 0x42d   :  { %7895 = vtanh.f32 %v5572_v63  ;;  %v5510_v5 = vadd.f32 %v5446_v0, %v14195_v50  ;;  %v5511_v24 = vadd.f32 %v5447_v10, %v14192_v7  ;;  %v3442_v26 = vadd.f32 %v3378_v42, %v14070_v47  ;;  %4430 = vperm.xlu0 %7837, %v7464_v28   ;;  %v7528_v47 = vld [vmem:[%s16484_s8 + $0xf60] sm:$0xff]  ;;  %v7531_v0 = vld [vmem:[%s16484_s8 + $0xf78] sm:$0xff] }
 0x42e   :  { %v3441_v37 = vadd.f32 %v3377_v56, %v14075_v8  ;;  %v4093_v52 = vmul.f32 %v13946_v41, %v18676_v20  ;;  %7897 = vtanh.f32 %v5573_v36  ;;  %v3961_v39 = vmul.f32 %v14184_v11, %v3512_v18  ;;  %v18680_v56 = vld [vmem:[#allocation343_spill] sm:$0xff]  ;;  %v18681_v28 = vld [vmem:[#allocation313_spill] sm:$0xff]  ;;  %v18682_v63 = vld [vmem:[#allocation314_spill] sm:$0xff] }
 0x42f   :  { %v3514_v19 = vmul.f32 %v13931_v59, %v18677_v34  ;;  %v5574_v61 = vmul.f32 0.7978846, %v5510_v5  ;;  %v5575_v8 = vmul.f32 0.7978846, %v5511_v24  ;;  %v3380_v60 = vmul.f32 %v18678_v46, %v14143_v35  ;;  %v4336_v21 = vpop.permute.xlu1 %4335  ;;  %v18683_v10 = vld [vmem:[#allocation72_spill] sm:$0xff] }
 0x430   :  { %v3379_v42 = vmul.f32 %v18679_v3, %v14147_v51  ;;  %v3960_v27 = vmul.f32 %v14186_v49, %v3511_v57  ;;  %v3513_v11 = vmul.f32 %v13931_v59, %v18680_v56  ;;  %v4543_v45 = vmul.f32 %v4326_v38, %v4094_v31  ;;  %v4331_v44 = vpop.permute.xlu0 %4330  ;;  %5007 = vperm.xlu1 %7838, %v7529_v58   ;;  %v18685_v38 = vld [vmem:[#allocation79_spill] sm:$0xff]  ;;  %v18686_v36 = vld [vmem:[#allocation508_spill] sm:$0xff] }
 0x431   :  { %v4096_v16 = vmul.f32 %v13946_v41, %v18681_v28  ;;  %v4676_v18 = vmul.f32 %v13975_v33, %v18657_v53  ;;  %7899 = vtanh.f32 %v5574_v61  ;;  %v4542_v35 = vmul.f32 %v4321_v12, %v4093_v52  ;;  %5002 = vperm.xlu0 %7837, %v7528_v47   ;;  %v7530_v12 = vld [vmem:[%s16484_s8 + $0xf70] sm:$0xff] }
 0x432   :  { %v4095_v51 = vmul.f32 %v13946_v41, %v18682_v63  ;;  %v4675_v49 = vmul.f32 %v13975_v33, %v18658_v30  ;;  %7901 = vtanh.f32 %v5575_v8  ;;  %v2802_v57 = vmul.f32 %v18684_v62, %v18683_v10 }
 0x433   :  { %v2801_v53 = vmul.f32 %v18686_v36, %v18685_v38  ;;  %v4025_v40 = vadd.f32 %v3961_v39, %v3442_v26  ;;  %v3963_v31 = vmul.f32 %v14219_v6, %v3514_v19  ;;  %v3444_v30 = vadd.f32 %v3380_v60, %v14154_v48  ;;  %v4908_v52 = vpop.permute.xlu1 %4907  ;;  %v7336_v38 = vld [vmem:[%s16484_s8 + $0x990] sm:$0xff] }
 0x434   :  { %v3443_v5 = vadd.f32 %v3379_v42, %v14157_v14  ;;  %v4024_v24 = vadd.f32 %v3960_v27, %v3441_v37  ;;  %v3962_v20 = vmul.f32 %v3749_v55, %v3513_v11  ;;  %v4545_v34 = vmul.f32 %v4336_v21, %v4096_v16  ;;  %v4903_v61 = vpop.permute.xlu0 %4902  ;;  %5017 = vperm.xlu1 %7838, %v7531_v0   ;;  %v7335_v14 = vld [vmem:[%s16484_s8 + $0x988] sm:$0xff] }
 0x435   :  { %v4607_v58 = vadd.f32 %v4543_v45, %v4025_v40  ;;  %v5125_v47 = vmul.f32 %v4908_v52, %v4676_v18  ;;  %v4678_v26 = vmul.f32 %v13975_v33, %v18665_v1  ;;  %v4544_v39 = vmul.f32 %v4331_v44, %v4095_v51  ;;  %5012 = vperm.xlu0 %7837, %v7530_v12   ;;  %v18687_v37 = vld [vmem:[#allocation262_spill] sm:$0xff]  ;;  %v7337_v51 = vld [vmem:[%s16484_s8 + $0x998] sm:$0xff]  ;;  %v18688_v0 = vld [vmem:[#allocation11_spill] sm:$0xff] }
 0x436   :  { %v4606_v6 = vadd.f32 %v4542_v35, %v4024_v24  ;;  %v5124_v19 = vmul.f32 %v4903_v61, %v4675_v49  ;;  %v4677_v48 = vmul.f32 %v13975_v33, %v18667_v22  ;;  %v14303_v8 = vadd.f32 %v2802_v57, %v18687_v37  ;;  %v7334_v1 = vld [vmem:[%s16484_s8 + $0x980] sm:$0xff] }
 0x437   :  { %v7896_v55 = vpop.eup %7895  ;;  %v4027_v46 = vadd.f32 %v3963_v31, %v3444_v30  ;;  %v5189_v60 = vadd.f32 %v5125_v47, %v4607_v58  ;;  %v5636_v3 = vmul.f32 0.5, %v14170_v43  ;;  %v4026_v27 = vadd.f32 %v3962_v20, %v3443_v5  ;;  %v4918_v22 = vpop.permute.xlu1 %4917  ;;  %v18689_v31 = vld [vmem:[#allocation93_spill] sm:$0xff] }
 0x438   :  { %v7898_v42 = vpop.eup %7897  ;;  %v5188_v56 = vadd.f32 %v5124_v19, %v4606_v6  ;;  %v5637_v11 = vmul.f32 0.5, %v14167_v4  ;;  %v5764_v21 = vadd.f32 1.0, %v7896_v55  ;;  %v5127_v16 = vmul.f32 %v4918_v22, %v4678_v26  ;;  %v4913_v44 = vpop.permute.xlu0 %4912  ;;  %3280 = vperm.xlu1 %7838, %v7335_v14   ;;  %v7401_v6 = vld [vmem:[%s16484_s8 + $0xb88] sm:$0xff] }
 0x439   :  { %v4609_v45 = vadd.f32 %v4545_v34, %v4027_v46  ;;  %v14311_v28 = vadd.f32 %v14023_v13, %v5189_v60  ;;  %v5765_v18 = vadd.f32 1.0, %v7898_v42  ;;  %v4608_v35 = vadd.f32 %v4544_v39, %v4026_v27  ;;  %3275 = vperm.xlu0 %7837, %v7334_v1   ;;  %v18691_v14 = vld [vmem:[#allocation255_spill] sm:$0xff]  ;;  %v18692_v1 = vld [vmem:[#allocation301_spill] sm:$0xff] }
 0x43a   :  { %v14314_v63 = vadd.f32 %v14023_v13, %v5188_v56  ;;  %v5126_v43 = vmul.f32 %v4913_v44, %v4677_v48  ;;  %v5828_v4 = vmul.f32 %v5764_v21, %v5636_v3  ;;  %v14320_v10 = vadd.f32 %v2801_v53, %v18688_v0  ;;  %v18690_v48 = vld [vmem:[#allocation142_spill] sm:$0xff]  ;;  %v18693_v3 = vld [vmem:[#allocation9_spill] sm:$0xff] }
 0x43b   :  { %v7900_v49 = vpop.eup %7899  ;;  %v5321_v62 = vmul.f32 %v14311_v28, %v14311_v28  ;;  %v5191_v57 = vadd.f32 %v5127_v16, %v4609_v45  ;;  %v5829_v36 = vmul.f32 %v5765_v18, %v5637_v11  ;;  %v14329_v12 = vmul.f32 %v13906_v17, %v18689_v31  ;;  %v3764_v53 = vpop.permute.xlu1 %3763  ;;  %v18694_v11 = vld [vmem:[#allocation121_spill] sm:$0xff]  ;;  %v18695_v45 = vld [vmem:[#allocation518_spill] sm:$0xff] }
 0x43c   :  { %v7902_v40 = vpop.eup %7901  ;;  %v5320_v30 = vmul.f32 %v14314_v63, %v14314_v63  ;;  %v5190_v5 = vadd.f32 %v5126_v43, %v4608_v35  ;;  %v5766_v24 = vadd.f32 1.0, %v7900_v49  ;;  %v3759_v58 = vpop.permute.xlu0 %3758  ;;  %3290 = vperm.xlu1 %7838, %v7337_v51   ;;  %v5638_v47 = vmul.f32 0.5, %v14195_v50  ;;  %v7400_v50 = vld [vmem:[%s16484_s8 + $0xb80] sm:$0xff]  ;;  %v18696_v43 = vld [vmem:[#allocation528_spill] sm:$0xff] }
 0x43d   :  { %v5385_v20 = vmul.f32 %v5321_v62, %v14311_v28  ;;  %v14335_v52 = vadd.f32 %v14023_v13, %v5191_v57  ;;  %v5882_v34 = vpack.c.bf16 %v5829_v36, %v5828_v4  ;;  %3285 = vperm.xlu0 %7837, %v7336_v38   ;;  %v5639_v39 = vmul.f32 0.5, %v14192_v7  ;;  %v18697_v62 = vld [vmem:[#allocation144_spill] sm:$0xff]  ;;  %v18698_v38 = vld [vmem:[#allocation354_spill] sm:$0xff] }
 0x43e   :  { %v5384_v61 = vmul.f32 %v5320_v30, %v14314_v63  ;;  %v14340_v26 = vadd.f32 %v14023_v13, %v5190_v5  ;;  %v5767_v19 = vadd.f32 1.0, %v7902_v40  ;;  %v2804_v55 = vmul.f32 %v18691_v14, %v18690_v48  ;;  %v18699_v5 = vld [vmem:[#allocation145_spill] sm:$0xff] }
 0x43f   :  { %v5323_v37 = vmul.f32 %v14335_v52, %v14335_v52  ;;  %7693 = vmatprep.mubr.bf16.mxu0 %v5882_v34  ;;  %v5830_v46 = vmul.f32 %v5766_v24, %v5638_v47  ;;  %v5449_v60 = vmul.f32 0.044715, %v5385_v20  ;;  %v2803_v42 = vmul.f32 %v18693_v3, %v18692_v1  ;;  %v14357_v27 = vpop.permute.xlu1 %3773  ;;  %v18700_v20 = vld [vmem:[#allocation357_spill] sm:$0xff]  ;;  %v18703_v1 = vld [vmem:[#allocation532_spill] sm:$0xff] }
 0x440   :  { %v5322_v7 = vmul.f32 %v14340_v26, %v14340_v26  ;;  %v5831_v56 = vmul.f32 %v5767_v19, %v5639_v39  ;;  %v5448_v22 = vmul.f32 0.044715, %v5384_v61  ;;  %v3382_v21 = vmul.f32 %v18694_v11, %v14199_v25  ;;  %v3769_v18 = vpop.permute.xlu0 %3768  ;;  %3863 = vperm.xlu1 %7838, %v7401_v6   ;;  %v7403_v25 = vld [vmem:[%s16484_s8 + $0xb98] sm:$0xff]  ;;  %v18701_v19 = vld [vmem:[#allocation326_spill] sm:$0xff] }
 0x441   :  { %v14363_v16 = vmul.f32 %v13906_v17, %v18695_v45  ;;  %v5387_v44 = vmul.f32 %v5323_v37, %v14335_v52  ;;  %v5513_v35 = vadd.f32 %v5449_v60, %v14311_v28  ;;  %v3381_v51 = vmul.f32 %v18696_v43, %v14217_v23  ;;  %3858 = vperm.xlu0 %7837, %v7400_v50   ;;  %v7402_v23 = vld [vmem:[%s16484_s8 + $0xb90] sm:$0xff]  ;;  %v7467_v60 = vld [vmem:[%s16484_s8 + $0xd88] sm:$0xff]  ;;  %v18705_v11 = vld [vmem:[#allocation533_spill] sm:$0xff] }
 0x442   :  { %v5386_v4 = vmul.f32 %v5322_v7, %v14340_v26  ;;  %v5883_v49 = vpack.c.bf16 %v5831_v56, %v5830_v46  ;;  %v5512_v0 = vadd.f32 %v5448_v22, %v14314_v63  ;;  %v14375_v57 = vadd.f32 %v2804_v55, %v18697_v62  ;;  %v18702_v50 = vld [vmem:[#allocation327_spill] sm:$0xff]  ;;  %v18704_v7 = vld [vmem:[#allocation360_spill] sm:$0xff] }
 0x443   :  { %v3516_v36 = vmul.f32 %v13931_v59, %v18698_v38  ;;  %v5577_v40 = vmul.f32 0.7978846, %v5513_v35  ;;  %v5451_v30 = vmul.f32 0.044715, %v5387_v44  ;;  %v14383_v24 = vadd.f32 %v2803_v42, %v18699_v5  ;;  %v4346_v47 = vpop.permute.xlu1 %4345  ;;  %v18706_v35 = vld [vmem:[#allocation368_spill] sm:$0xff]  ;;  %v18708_v38 = vld [vmem:[#allocation333_spill] sm:$0xff] }
 0x444   :  { %v3515_v34 = vmul.f32 %v13931_v59, %v18700_v20  ;;  %7694 = vmatmul.mubr.bf16.gmra.mrb[20].mxu0 %v5883_v49  ;;  %v5576_v61 = vmul.f32 0.7978846, %v5512_v0  ;;  %v5450_v6 = vmul.f32 0.044715, %v5386_v4  ;;  %v3446_v39 = vadd.f32 %v3382_v21, %v14213_v29  ;;  %v4341_v14 = vpop.permute.xlu0 %4340  ;;  %3873 = vperm.xlu1 %7838, %v7403_v25  }
 0x445   :  { %v4098_v48 = vmul.f32 %v13946_v41, %v18701_v19  ;;  %7903 = vtanh.f32 %v5577_v40  ;;  %v5515_v55 = vadd.f32 %v5451_v30, %v14335_v52  ;;  %v3445_v37 = vadd.f32 %v3381_v51, %v14222_v9  ;;  %3868 = vperm.xlu0 %7837, %v7402_v23   ;;  %v7466_v9 = vld [vmem:[%s16484_s8 + $0xd80] sm:$0xff]  ;;  %v18710_v40 = vld [vmem:[#allocation95_spill] sm:$0xff] }
 0x446   :  { %v4097_v46 = vmul.f32 %v13946_v41, %v18702_v50  ;;  %7905 = vtanh.f32 %v5576_v61  ;;  %v5514_v29 = vadd.f32 %v5450_v6, %v14340_v26  ;;  %v3384_v3 = vmul.f32 %v18703_v1, %v14242_v32  ;;  %v18707_v32 = vld [vmem:[#allocation332_spill] sm:$0xff] }
 0x447   :  { %v3965_v42 = vmul.f32 %v3764_v53, %v3516_v36  ;;  %v3518_v56 = vmul.f32 %v13931_v59, %v18704_v7  ;;  %v5579_v22 = vmul.f32 0.7978846, %v5515_v55  ;;  %v3383_v21 = vmul.f32 %v18705_v11, %v14246_v54  ;;  %v4356_v51 = vpop.permute.xlu1 %4355  ;;  %v18709_v36 = vld [vmem:[#allocation366_spill] sm:$0xff]  ;;  %v18712_v50 = vld [vmem:[#allocation12_spill] sm:$0xff] }
 0x448   :  { %v3964_v44 = vmul.f32 %v3759_v58, %v3515_v34  ;;  %v3517_v43 = vmul.f32 %v13931_v59, %v18706_v35  ;;  %v5578_v4 = vmul.f32 0.7978846, %v5514_v29  ;;  %v4547_v49 = vmul.f32 %v4346_v47, %v4098_v48  ;;  %v4351_v25 = vpop.permute.xlu0 %4350  ;;  %4445 = vperm.xlu1 %7838, %v7467_v60   ;;  %v7469_v58 = vld [vmem:[%s16484_s8 + $0xd98] sm:$0xff] }
 0x449   :  { %v4100_v53 = vmul.f32 %v13946_v41, %v18707_v32  ;;  %v4680_v0 = vmul.f32 %v13975_v33, %v18672_v15  ;;  %7907 = vtanh.f32 %v5579_v22  ;;  %v4546_v62 = vmul.f32 %v4341_v14, %v4097_v46  ;;  %4440 = vperm.xlu0 %7837, %v7466_v9   ;;  %v18714_v32 = vld [vmem:[#allocation248_spill] sm:$0xff] }
 0x44a   :  { %v4099_v54 = vmul.f32 %v13946_v41, %v18708_v38  ;;  %v4679_v59 = vmul.f32 %v13975_v33, %v18673_v2  ;;  %7909 = vtanh.f32 %v5578_v4  ;;  %v14422_v23 = vmul.f32 %v13906_v17, %v18709_v36  ;;  %v7468_v2 = vld [vmem:[%s16484_s8 + $0xd90] sm:$0xff] }
 0x44b   :  { %v14426_v15 = vmul.f32 %v13906_v17, %v18710_v40  ;;  %v4029_v30 = vadd.f32 %v3965_v42, %v3446_v39  ;;  %v3967_v41 = vmul.f32 %v14357_v27, %v3518_v56  ;;  %v3448_v5 = vadd.f32 %v3384_v3, %v14303_v8  ;;  %v4928_v61 = vpop.permute.xlu1 %4927 }
 0x44c   :  { %v3447_v20 = vadd.f32 %v3383_v21, %v14320_v10  ;;  %v4028_v34 = vadd.f32 %v3964_v44, %v3445_v37  ;;  %v3966_v47 = vmul.f32 %v3769_v18, %v3517_v43  ;;  %v4549_v19 = vmul.f32 %v4356_v51, %v4100_v53  ;;  %v4923_v14 = vpop.permute.xlu0 %4922  ;;  %4455 = vperm.xlu1 %7838, %v7469_v58   ;;  %v7533_v10 = vld [vmem:[%s16484_s8 + $0xf88] sm:$0xff]  ;;  %v18711_v37 = vld [vmem:[#allocation269_spill] sm:$0xff] }
 0x44d   :  { %v4611_v6 = vadd.f32 %v4547_v49, %v4029_v30  ;;  %v5129_v48 = vmul.f32 %v4928_v61, %v4680_v0  ;;  %v4682_v17 = vmul.f32 %v13975_v33, %v18689_v31  ;;  %v4548_v39 = vmul.f32 %v4351_v25, %v4099_v54  ;;  %4450 = vperm.xlu0 %7837, %v7468_v2   ;;  %v7532_v31 = vld [vmem:[%s16484_s8 + $0xf80] sm:$0xff]  ;;  %v7535_v51 = vld [vmem:[%s16484_s8 + $0xf98] sm:$0xff]  ;;  %v18713_v49 = vld [vmem:[#allocation83_spill] sm:$0xff] }
 0x44e   :  { %v4610_v27 = vadd.f32 %v4546_v62, %v4028_v34  ;;  %v5128_v55 = vmul.f32 %v4923_v14, %v4679_v59  ;;  %v4681_v8 = vmul.f32 %v13975_v33, %v18695_v45  ;;  %v2806_v46 = vmul.f32 %v18712_v50, %v18711_v37  ;;  %v7534_v62 = vld [vmem:[%s16484_s8 + $0xf90] sm:$0xff]  ;;  %v18715_v59 = vld [vmem:[#allocation254_spill] sm:$0xff] }
 0x44f   :  { %v7904_v18 = vpop.eup %7903  ;;  %v4031_v60 = vadd.f32 %v3967_v41, %v3448_v5  ;;  %v5193_v29 = vadd.f32 %v5129_v48, %v4611_v6  ;;  %v5641_v1 = vmul.f32 0.5, %v14311_v28  ;;  %v4030_v42 = vadd.f32 %v3966_v47, %v3447_v20  ;;  %v4938_v33 = vpop.permute.xlu1 %4937  ;;  %v7339_v14 = vld [vmem:[%s16484_s8 + $0x9a8] sm:$0xff] }
 0x450   :  { %v7906_v3 = vpop.eup %7905  ;;  %v5192_v7 = vadd.f32 %v5128_v55, %v4610_v27  ;;  %v5640_v45 = vmul.f32 0.5, %v14314_v63  ;;  %v5769_v56 = vadd.f32 1.0, %v7904_v18  ;;  %v5131_v11 = vmul.f32 %v4938_v33, %v4682_v17  ;;  %v4933_v21 = vpop.permute.xlu0 %4932  ;;  %5027 = vperm.xlu1 %7838, %v7533_v10   ;;  %v14497_v18 = vld [vmem:[%s16479_s3 + $0x6] ss:$0 sm:$0xff] }
 0x451   :  { %v4613_v9 = vadd.f32 %v4549_v19, %v4031_v60  ;;  %v14449_v22 = vadd.f32 %v14023_v13, %v5193_v29  ;;  %v5768_v44 = vadd.f32 1.0, %v7906_v3  ;;  %v4612_v35 = vadd.f32 %v4548_v39, %v4030_v42  ;;  %5022 = vperm.xlu0 %7837, %v7532_v31   ;;  %v18716_v39 = vld [vmem:[#allocation146_spill] sm:$0xff]  ;;  %v18718_v31 = vld [vmem:[#allocation127_spill] sm:$0xff]  ;;  %v18719_v3 = vld [vmem:[#allocation341_spill] sm:$0xff] }
 0x452   :  { %v14452_v43 = vadd.f32 %v14023_v13, %v5192_v7  ;;  %v5130_v28 = vmul.f32 %v4933_v21, %v4681_v8  ;;  %v5833_v63 = vmul.f32 %v5769_v56, %v5641_v1  ;;  %v2805_v53 = vmul.f32 %v18714_v32, %v18713_v49  ;;  %v18720_v56 = vld [vmem:[#allocation49_spill] sm:$0xff]  ;;  %v7340_v49 = vld [vmem:[%s16484_s8 + $0x9b0] sm:$0xff] }
 0x453   :  { %v7908_v4 = vpop.eup %7907  ;;  %v5325_v25 = vmul.f32 %v14449_v22, %v14449_v22  ;;  %v5195_v0 = vadd.f32 %v5131_v11, %v4613_v9  ;;  %v5832_v38 = vmul.f32 %v5768_v44, %v5640_v45  ;;  %v14465_v58 = vadd.f32 %v2806_v46, %v18715_v59  ;;  %v14469_v2 = vpop.permute.xlu1 %3783 }
 0x454   :  { %v7910_v54 = vpop.eup %7909  ;;  %v5324_v30 = vmul.f32 %v14452_v43, %v14452_v43  ;;  %v5194_v41 = vadd.f32 %v5130_v28, %v4612_v35  ;;  %v5771_v5 = vadd.f32 1.0, %v7908_v4  ;;  %v14475_v47 = vpop.permute.xlu0 %3778  ;;  %5037 = vperm.xlu1 %7838, %v7535_v51   ;;  %v5643_v6 = vmul.f32 0.5, %v14335_v52  ;;  %v18721_v35 = vld [vmem:[#allocation283_spill] sm:$0xff]  ;;  %v18722_v28 = vld [vmem:[#allocation16_spill] sm:$0xff]  ;;  %v18723_v4 = vld [vmem:[#allocation386_spill] sm:$0xff] }
 0x455   :  { %v5389_v20 = vmul.f32 %v5325_v25, %v14449_v22  ;;  %v14473_v34 = vadd.f32 %v14023_v13, %v5195_v0  ;;  %v5884_v61 = vpack.c.bf16 %v5833_v63, %v5832_v38  ;;  %5032 = vperm.xlu0 %7837, %v7534_v62   ;;  %v5642_v17 = vmul.f32 0.5, %v14340_v26  ;;  %v18717_v26 = vld [vmem:[#allocation353_spill] sm:$0xff]  ;;  %v14529_v63 = vld [vmem:[%s16479_s3 + $0x8] ss:$0 sm:$0xff]  ;;  %v18724_v25 = vld [vmem:[#allocation147_spill] sm:$0xff] }
 0x456   :  { %v5388_v19 = vmul.f32 %v5324_v30, %v14452_v43  ;;  %v14480_v48 = vadd.f32 %v14023_v13, %v5194_v41  ;;  %v5770_v27 = vadd.f32 1.0, %v7910_v54  ;;  %v14487_v55 = vadd.f32 %v2805_v53, %v18716_v39  ;;  %v7338_v13 = vld [vmem:[%s16484_s8 + $0x9a0] sm:$0xff]  ;;  %v18725_v0 = vld [vmem:[#allocation303_spill] sm:$0xff] }
 0x457   :  { %v5327_v8 = vmul.f32 %v14473_v34, %v14473_v34  ;;  %7697 = vmatprep.mubr.bf16.mxu0 %v5884_v61  ;;  %v5835_v52 = vmul.f32 %v5771_v5, %v5643_v6  ;;  %v5453_v10 = vmul.f32 0.044715, %v5389_v20  ;;  %v14501_v37 = vmul.f32 %v14497_v18, %v18717_v26  ;;  %v14505_v46 = vpop.permute.xlu1 %3793  ;;  %v18726_v38 = vld [vmem:[#allocation387_spill] sm:$0xff] }
 0x458   :  { %v5326_v50 = vmul.f32 %v14480_v48, %v14480_v48  ;;  %v5834_v60 = vmul.f32 %v5770_v27, %v5642_v17  ;;  %v5452_v29 = vmul.f32 0.044715, %v5388_v19  ;;  %v3386_v1 = vmul.f32 %v18718_v31, %v14329_v12  ;;  %v14514_v33 = vpop.permute.xlu0 %3788  ;;  %3300 = vperm.xlu1 %7838, %v7339_v14   ;;  %v7341_v12 = vld [vmem:[%s16484_s8 + $0x9b8] sm:$0xff]  ;;  %v14544_v20 = vld [vmem:[%s16479_s3 + $0x9] ss:$0 sm:$0xff]  ;;  %v18728_v27 = vld [vmem:[#allocation358_spill] sm:$0xff] }
 0x459   :  { %v14511_v42 = vmul.f32 %v14497_v18, %v18719_v3  ;;  %v5391_v7 = vmul.f32 %v5327_v8, %v14473_v34  ;;  %v5517_v45 = vadd.f32 %v5453_v10, %v14449_v22  ;;  %v3385_v9 = vmul.f32 %v18720_v56, %v14363_v16  ;;  %3295 = vperm.xlu0 %7837, %v7338_v13   ;;  %v18727_v61 = vld [vmem:[#allocation355_spill] sm:$0xff]  ;;  %v18731_v31 = vld [vmem:[#allocation57_spill] sm:$0xff] }
 0x45a   :  { %v5390_v11 = vmul.f32 %v5326_v50, %v14480_v48  ;;  %v5885_v21 = vpack.c.bf16 %v5835_v52, %v5834_v60  ;;  %v5516_v44 = vadd.f32 %v5452_v29, %v14452_v43  ;;  %v2808_v51 = vmul.f32 %v18722_v28, %v18721_v35  ;;  %v18729_v13 = vld [vmem:[#allocation471_spill] sm:$0xff]  ;;  %v18730_v50 = vld [vmem:[#allocation389_spill] sm:$0xff]  ;;  %v18734_v35 = vld [vmem:[#allocation362_spill] sm:$0xff] }
 0x45b   :  { %v3520_v16 = vmul.f32 %v14529_v63, %v18723_v4  ;;  %v5581_v32 = vmul.f32 0.7978846, %v5517_v45  ;;  %v5455_v53 = vmul.f32 0.044715, %v5391_v7  ;;  %v2807_v62 = vmul.f32 %v18725_v0, %v18724_v25  ;;  %v4366_v59 = vpop.permute.xlu1 %4365  ;;  %v18732_v45 = vld [vmem:[#allocation394_spill] sm:$0xff] }
 0x45c   :  { %v3519_v54 = vmul.f32 %v14529_v63, %v18726_v38  ;;  %7698 = vmatmul.mubr.bf16.gmra.mrb[24].mxu0 %v5885_v21  ;;  %v5580_v30 = vmul.f32 0.7978846, %v5516_v44  ;;  %v5454_v41 = vmul.f32 0.044715, %v5390_v11  ;;  %v3450_v5 = vadd.f32 %v3386_v1, %v14375_v57  ;;  %v4361_v19 = vpop.permute.xlu0 %4360  ;;  %3310 = vperm.xlu1 %7838, %v7341_v12   ;;  %v7405_v57 = vld [vmem:[%s16484_s8 + $0xba8] sm:$0xff]  ;;  %v7406_v38 = vld [vmem:[%s16484_s8 + $0xbb0] sm:$0xff] }
 0x45d   :  { %v4102_v6 = vmul.f32 %v14544_v20, %v18727_v61  ;;  %7911 = vtanh.f32 %v5581_v32  ;;  %v5519_v14 = vadd.f32 %v5455_v53, %v14473_v34  ;;  %v3449_v17 = vadd.f32 %v3385_v9, %v14383_v24  ;;  %3305 = vperm.xlu0 %7837, %v7340_v49   ;;  %v7404_v24 = vld [vmem:[%s16484_s8 + $0xba0] sm:$0xff]  ;;  %v14574_v44 = vld [vmem:[%s16479_s3 + $0xa] ss:$0 sm:$0xff]  ;;  %v18736_v53 = vld [vmem:[#allocation256_spill] sm:$0xff] }
 0x45e   :  { %v4101_v39 = vmul.f32 %v14544_v20, %v18728_v27  ;;  %7913 = vtanh.f32 %v5580_v30  ;;  %v5518_v8 = vadd.f32 %v5454_v41, %v14480_v48  ;;  %v3388_v52 = vmul.f32 %v18729_v13, %v14422_v23  ;;  %v18735_v49 = vld [vmem:[#allocation17_spill] sm:$0xff] }
 0x45f   :  { %v3969_v10 = vmul.f32 %v14469_v2, %v3520_v16  ;;  %v3522_v60 = vmul.f32 %v14529_v63, %v18730_v50  ;;  %v5583_v29 = vmul.f32 0.7978846, %v5519_v14  ;;  %v3387_v1 = vmul.f32 %v18731_v31, %v14426_v15  ;;  %v4376_v9 = vpop.permute.xlu1 %4375  ;;  %v18733_v2 = vld [vmem:[#allocation361_spill] sm:$0xff] }
 0x460   :  { %v3968_v7 = vmul.f32 %v14475_v47, %v3519_v54  ;;  %v3521_v56 = vmul.f32 %v14529_v63, %v18732_v45  ;;  %v5582_v23 = vmul.f32 0.7978846, %v5518_v8  ;;  %v4551_v11 = vmul.f32 %v4366_v59, %v4102_v6  ;;  %v4371_v12 = vpop.permute.xlu0 %4370  ;;  %3883 = vperm.xlu1 %7838, %v7405_v57   ;;  %v7407_v16 = vld [vmem:[%s16484_s8 + $0xbb8] sm:$0xff] }
 0x461   :  { %v4104_v21 = vmul.f32 %v14544_v20, %v18733_v2  ;;  %v4684_v15 = vmul.f32 %v14574_v44, %v18709_v36  ;;  %7915 = vtanh.f32 %v5583_v29  ;;  %v4550_v47 = vmul.f32 %v4361_v19, %v4101_v39  ;;  %3878 = vperm.xlu0 %7837, %v7404_v24   ;;  %v14617_v29 = vld [vmem:[%s16477_s1 + $0x2] ss:$0 sm:$0xff] }
 0x462   :  { %v4103_v28 = vmul.f32 %v14544_v20, %v18734_v35  ;;  %v4683_v4 = vmul.f32 %v14574_v44, %v18710_v40  ;;  %7917 = vtanh.f32 %v5582_v23  ;;  %v14586_v32 = vadd.f32 %v2808_v51, %v18735_v49  ;;  %v18738_v2 = vld [vmem:[#allocation302_spill] sm:$0xff]  ;;  %v7472_v35 = vld [vmem:[%s16484_s8 + $0xdb0] sm:$0xff] }
 0x463   :  { %v14589_v25 = vadd.f32 %v2807_v62, %v18736_v53  ;;  %v4033_v36 = vadd.f32 %v3969_v10, %v3450_v5  ;;  %v3971_v0 = vmul.f32 %v14505_v46, %v3522_v60  ;;  %v3452_v40 = vadd.f32 %v3388_v52, %v14465_v58  ;;  %v4948_v41 = vpop.permute.xlu1 %4947  ;;  %v18741_v49 = vld [vmem:[#allocation328_spill] sm:$0xff] }
 0x464   :  { %v3451_v54 = vadd.f32 %v3387_v1, %v14487_v55  ;;  %v4032_v59 = vadd.f32 %v3968_v7, %v3449_v17  ;;  %v3970_v30 = vmul.f32 %v14514_v33, %v3521_v56  ;;  %v4553_v61 = vmul.f32 %v4376_v9, %v4104_v21  ;;  %v4943_v62 = vpop.permute.xlu0 %4942  ;;  %3893 = vperm.xlu1 %7838, %v7407_v16   ;;  %v7471_v55 = vld [vmem:[%s16484_s8 + $0xda8] sm:$0xff]  ;;  %v18737_v17 = vld [vmem:[#allocation337_spill] sm:$0xff]  ;;  %v18739_v21 = vld [vmem:[#allocation20_spill] sm:$0xff] }
 0x465   :  { %v4615_v51 = vadd.f32 %v4551_v11, %v4033_v36  ;;  %v5133_v6 = vmul.f32 %v4948_v41, %v4684_v15  ;;  %v4686_v46 = vmul.f32 %v14574_v44, %v18717_v26  ;;  %v4552_v19 = vmul.f32 %v4371_v12, %v4103_v28  ;;  %3888 = vperm.xlu0 %7837, %v7406_v38   ;;  %v7470_v26 = vld [vmem:[%s16484_s8 + $0xda0] sm:$0xff] }
 0x466   :  { %v4614_v5 = vadd.f32 %v4550_v47, %v4032_v59  ;;  %v5132_v14 = vmul.f32 %v4943_v62, %v4683_v4  ;;  %v4685_v58 = vmul.f32 %v14574_v44, %v18719_v3  ;;  %v14607_v27 = vmul.f32 %v14497_v18, %v18737_v17  ;;  %v18740_v16 = vld [vmem:[#allocation82_spill] sm:$0xff] }
 0x467   :  { %v7912_v33 = vpop.eup %7911  ;;  %v4035_v39 = vadd.f32 %v3971_v0, %v3452_v40  ;;  %v5197_v57 = vadd.f32 %v5133_v6, %v4615_v51  ;;  %v5645_v8 = vmul.f32 0.5, %v14449_v22  ;;  %v4034_v52 = vadd.f32 %v3970_v30, %v3451_v54  ;;  %v4958_v10 = vpop.permute.xlu1 %4957  ;;  %v7537_v62 = vld [vmem:[%s16484_s8 + $0xfa8] sm:$0xff] }
 0x468   :  { %v7914_v13 = vpop.eup %7913  ;;  %v5196_v3 = vadd.f32 %v5132_v14, %v4614_v5  ;;  %v5644_v50 = vmul.f32 0.5, %v14452_v43  ;;  %v5773_v60 = vadd.f32 1.0, %v7912_v33  ;;  %v5135_v1 = vmul.f32 %v4958_v10, %v4686_v46  ;;  %v4953_v7 = vpop.permute.xlu0 %4952  ;;  %4465 = vperm.xlu1 %7838, %v7471_v55   ;;  %v7473_v43 = vld [vmem:[%s16484_s8 + $0xdb8] sm:$0xff] }
 0x469   :  { %v4617_v24 = vadd.f32 %v4553_v61, %v4035_v39  ;;  %v14620_v31 = vadd.f32 %v14617_v29, %v5197_v57  ;;  %v5772_v22 = vadd.f32 1.0, %v7914_v13  ;;  %v4616_v45 = vadd.f32 %v4552_v19, %v4034_v52  ;;  %4460 = vperm.xlu0 %7837, %v7470_v26   ;;  %v18742_v19 = vld [vmem:[#allocation373_spill] sm:$0xff]  ;;  %v18743_v39 = vld [vmem:[#allocation148_spill] sm:$0xff] }
 0x46a   :  { %v14623_v56 = vadd.f32 %v14617_v29, %v5196_v3  ;;  %v5134_v9 = vmul.f32 %v4953_v7, %v4685_v58  ;;  %v5837_v23 = vmul.f32 %v5773_v60, %v5645_v8  ;;  %v2810_v12 = vmul.f32 %v18739_v21, %v18738_v2  ;;  %v18744_v52 = vld [vmem:[#allocation273_spill] sm:$0xff]  ;;  %v18748_v2 = vld [vmem:[#allocation403_spill] sm:$0xff] }
 0x46b   :  { %v7916_v11 = vpop.eup %7915  ;;  %v5329_v15 = vmul.f32 %v14620_v31, %v14620_v31  ;;  %v5199_v47 = vadd.f32 %v5135_v1, %v4617_v24  ;;  %v5836_v28 = vmul.f32 %v5772_v22, %v5644_v50  ;;  %v2809_v53 = vmul.f32 %v18741_v49, %v18740_v16  ;;  %v3804_v38 = vpop.permute.xlu1 %3803  ;;  %v18745_v10 = vld [vmem:[#allocation53_spill] sm:$0xff] }
 0x46c   :  { %v7918_v4 = vpop.eup %7917  ;;  %v5328_v36 = vmul.f32 %v14623_v56, %v14623_v56  ;;  %v5198_v0 = vadd.f32 %v5134_v9, %v4616_v45  ;;  %v5775_v40 = vadd.f32 1.0, %v7916_v11  ;;  %v3799_v30 = vpop.permute.xlu0 %3798  ;;  %4475 = vperm.xlu1 %7838, %v7473_v43   ;;  %v5647_v51 = vmul.f32 0.5, %v14473_v34  ;;  %v7536_v34 = vld [vmem:[%s16484_s8 + $0xfa0] sm:$0xff]  ;;  %v7539_v43 = vld [vmem:[%s16484_s8 + $0xfb8] sm:$0xff] }
 0x46d   :  { %v5393_v54 = vmul.f32 %v5329_v15, %v14620_v31  ;;  %v14641_v59 = vadd.f32 %v14617_v29, %v5199_v47  ;;  %v5886_v41 = vpack.c.bf16 %v5837_v23, %v5836_v28  ;;  %4470 = vperm.xlu0 %7837, %v7472_v35   ;;  %v5646_v46 = vmul.f32 0.5, %v14480_v48  ;;  %v18746_v7 = vld [vmem:[#allocation481_spill] sm:$0xff]  ;;  %v18749_v47 = vld [vmem:[#allocation32_spill] sm:$0xff] }
 0x46e   :  { %v5392_v61 = vmul.f32 %v5328_v36, %v14623_v56  ;;  %v14646_v6 = vadd.f32 %v14617_v29, %v5198_v0  ;;  %v5774_v5 = vadd.f32 1.0, %v7918_v4  ;;  %v2942_v14 = vmul.f32 %v14497_v18, %v18742_v19  ;;  %v18750_v28 = vld [vmem:[#allocation404_spill] sm:$0xff]  ;;  %v18751_v0 = vld [vmem:[#allocation374_spill] sm:$0xff] }
 0x46f   :  { %v5331_v58 = vmul.f32 %v14641_v59, %v14641_v59  ;;  %7701 = vmatprep.mubr.bf16.mxu0 %v5886_v41  ;;  %v5839_v55 = vmul.f32 %v5775_v40, %v5647_v51  ;;  %v5457_v33 = vmul.f32 0.044715, %v5393_v54  ;;  %v14660_v57 = vadd.f32 %v2810_v12, %v18743_v39  ;;  %v14664_v26 = vpop.permute.xlu1 %3813 }
 0x470   :  { %v5330_v48 = vmul.f32 %v14646_v6, %v14646_v6  ;;  %v5838_v8 = vmul.f32 %v5774_v5, %v5646_v46  ;;  %v5456_v13 = vmul.f32 0.044715, %v5392_v61  ;;  %v14667_v3 = vadd.f32 %v2809_v53, %v18744_v52  ;;  %v3809_v24 = vpop.permute.xlu0 %3808  ;;  %5047 = vperm.xlu1 %7838, %v7537_v62   ;;  %v18752_v61 = vld [vmem:[#allocation376_spill] sm:$0xff]  ;;  %v7343_v46 = vld [vmem:[%s16484_s8 + $0x9c8] sm:$0xff]  ;;  %v18756_v52 = vld [vmem:[#allocation413_spill] sm:$0xff] }
 0x471   :  { %v3390_v50 = vmul.f32 %v18745_v10, %v14501_v37  ;;  %v5395_v60 = vmul.f32 %v5331_v58, %v14641_v59  ;;  %v5521_v1 = vadd.f32 %v5457_v33, %v14620_v31  ;;  %v3389_v22 = vmul.f32 %v18746_v7, %v14511_v42  ;;  %5042 = vperm.xlu0 %7837, %v7536_v34   ;;  %v18747_v37 = vld [vmem:[#allocation99_spill] sm:$0xff] }
 0x472   :  { %v5394_v45 = vmul.f32 %v5330_v48, %v14646_v6  ;;  %v5887_v9 = vpack.c.bf16 %v5839_v55, %v5838_v8  ;;  %v5520_v23 = vadd.f32 %v5456_v13, %v14623_v56  ;;  %v14682_v11 = vmul.f32 %v14497_v18, %v18747_v37  ;;  %v7538_v42 = vld [vmem:[%s16484_s8 + $0xfb0] sm:$0xff]  ;;  %v18755_v48 = vld [vmem:[#allocation249_spill] sm:$0xff] }
 0x473   :  { %v3524_v21 = vmul.f32 %v14529_v63, %v18748_v2  ;;  %v5585_v12 = vmul.f32 0.7978846, %v5521_v1  ;;  %v5459_v15 = vmul.f32 0.044715, %v5395_v60  ;;  %v14691_v35 = vmul.f32 %v14497_v18, %v18749_v47  ;;  %v4386_v16 = vpop.permute.xlu1 %4385  ;;  %v18753_v5 = vld [vmem:[#allocation63_spill] sm:$0xff]  ;;  %v18754_v55 = vld [vmem:[#allocation412_spill] sm:$0xff] }
 0x474   :  { %v3523_v4 = vmul.f32 %v14529_v63, %v18750_v28  ;;  %7702 = vmatmul.mubr.bf16.gmra.mrb[28].mxu0 %v5887_v9  ;;  %v5584_v49 = vmul.f32 0.7978846, %v5520_v23  ;;  %v5458_v53 = vmul.f32 0.044715, %v5394_v45  ;;  %v3454_v36 = vadd.f32 %v3390_v50, %v14586_v32  ;;  %v4381_v54 = vpop.permute.xlu0 %4380  ;;  %5057 = vperm.xlu1 %7838, %v7539_v43   ;;  %v18757_v7 = vld [vmem:[#allocation383_spill] sm:$0xff]  ;;  %v18758_v9 = vld [vmem:[#allocation384_spill] sm:$0xff] }
 0x475   :  { %v4106_v40 = vmul.f32 %v14544_v20, %v18751_v0  ;;  %7919 = vtanh.f32 %v5585_v12  ;;  %v5523_v41 = vadd.f32 %v5459_v15, %v14641_v59  ;;  %v3453_v51 = vadd.f32 %v3389_v22, %v14589_v25  ;;  %5052 = vperm.xlu0 %7837, %v7538_v42   ;;  %v7342_v25 = vld [vmem:[%s16484_s8 + $0x9c0] sm:$0xff]  ;;  %v7345_v43 = vld [vmem:[%s16484_s8 + $0x9d8] sm:$0xff] }
 0x476   :  { %v4105_v62 = vmul.f32 %v14544_v20, %v18752_v61  ;;  %7921 = vtanh.f32 %v5584_v49  ;;  %v5522_v32 = vadd.f32 %v5458_v53, %v14646_v6  ;;  %v3392_v58 = vmul.f32 %v18753_v5, %v14607_v27  ;;  %v18759_v23 = vld [vmem:[#allocation149_spill] sm:$0xff]  ;;  %v18761_v42 = vld [vmem:[#allocation22_spill] sm:$0xff] }
 0x477   :  { %v3973_v34 = vmul.f32 %v3804_v38, %v3524_v21  ;;  %v3526_v33 = vmul.f32 %v14529_v63, %v18754_v55  ;;  %v5587_v39 = vmul.f32 0.7978846, %v5523_v41  ;;  %v3391_v8 = vmul.f32 %v18755_v48, %v2942_v14  ;;  %v4396_v50 = vpop.permute.xlu1 %4395  ;;  %v18760_v2 = vld [vmem:[#allocation349_spill] sm:$0xff] }
 0x478   :  { %v3972_v13 = vmul.f32 %v3799_v30, %v3523_v4  ;;  %v3525_v10 = vmul.f32 %v14529_v63, %v18756_v52  ;;  %v5586_v60 = vmul.f32 0.7978846, %v5522_v32  ;;  %v4555_v1 = vmul.f32 %v4386_v16, %v4106_v40  ;;  %v4391_v38 = vpop.permute.xlu0 %4390  ;;  %3320 = vperm.xlu1 %7838, %v7343_v46   ;;  %v18762_v12 = vld [vmem:[#allocation25_spill] sm:$0xff]  ;;  %v7344_v4 = vld [vmem:[%s16484_s8 + $0x9d0] sm:$0xff] }
 0x479   :  { %v4108_v27 = vmul.f32 %v14544_v20, %v18757_v7  ;;  %v4688_v22 = vmul.f32 %v14574_v44, %v18737_v17  ;;  %7923 = vtanh.f32 %v5587_v39  ;;  %v4554_v45 = vmul.f32 %v4381_v54, %v4105_v62  ;;  %3315 = vperm.xlu0 %7837, %v7342_v25   ;;  %v7411_v7 = vld [vmem:[%s16484_s8 + $0xbd8] sm:$0xff] }
 0x47a   :  { %v4107_v14 = vmul.f32 %v14544_v20, %v18758_v9  ;;  %v4687_v30 = vmul.f32 %v14574_v44, %v18742_v19  ;;  %7925 = vtanh.f32 %v5586_v60  ;;  %v2812_v21 = vmul.f32 %v18760_v2, %v18759_v23  ;;  %v18765_v23 = vld [vmem:[#allocation102_spill] sm:$0xff] }
 0x47b   :  { %v2811_v17 = vmul.f32 %v18762_v12, %v18761_v42  ;;  %v4037_v15 = vadd.f32 %v3973_v34, %v3454_v36  ;;  %v3975_v28 = vmul.f32 %v14664_v26, %v3526_v33  ;;  %v3456_v19 = vadd.f32 %v3392_v58, %v14660_v57  ;;  %v4968_v0 = vpop.permute.xlu1 %4967 }
 0x47c   :  { %v3455_v16 = vadd.f32 %v3391_v8, %v14667_v3  ;;  %v4036_v49 = vadd.f32 %v3972_v13, %v3453_v51  ;;  %v3974_v53 = vmul.f32 %v3809_v24, %v3525_v10  ;;  %v4557_v54 = vmul.f32 %v4396_v50, %v4108_v27  ;;  %v4963_v61 = vpop.permute.xlu0 %4962  ;;  %3330 = vperm.xlu1 %7838, %v7345_v43   ;;  %v7409_v3 = vld [vmem:[%s16484_s8 + $0xbc8] sm:$0xff] }
 0x47d   :  { %v4619_v40 = vadd.f32 %v4555_v1, %v4037_v15  ;;  %v5137_v41 = vmul.f32 %v4968_v0, %v4688_v22  ;;  %v4690_v36 = vmul.f32 %v14574_v44, %v18747_v37  ;;  %v4556_v62 = vmul.f32 %v4391_v38, %v4107_v14  ;;  %3325 = vperm.xlu0 %7837, %v7344_v4   ;;  %v18763_v51 = vld [vmem:[#allocation86_spill] sm:$0xff]  ;;  %v7410_v14 = vld [vmem:[%s16484_s8 + $0xbd0] sm:$0xff] }
 0x47e   :  { %v4618_v26 = vadd.f32 %v4554_v45, %v4036_v49  ;;  %v5136_v46 = vmul.f32 %v4963_v61, %v4687_v30  ;;  %v4689_v57 = vmul.f32 %v14574_v44, %v18749_v47  ;;  %v14745_v32 = vadd.f32 %v2812_v21, %v18763_v51  ;;  %v7408_v37 = vld [vmem:[%s16484_s8 + $0xbc0] sm:$0xff]  ;;  %v7475_v0 = vld [vmem:[%s16484_s8 + $0xdc8] sm:$0xff]  ;;  %v18767_v61 = vld [vmem:[#allocation28_spill] sm:$0xff] }
 0x47f   :  { %v7920_v24 = vpop.eup %7919  ;;  %v4039_v5 = vadd.f32 %v3975_v28, %v3456_v19  ;;  %v5201_v58 = vadd.f32 %v5137_v41, %v4619_v40  ;;  %v5649_v34 = vmul.f32 0.5, %v14620_v31  ;;  %v4038_v33 = vadd.f32 %v3974_v53, %v3455_v16  ;;  %v4978_v47 = vpop.permute.xlu1 %4977  ;;  %v18764_v38 = vld [vmem:[#allocation150_spill] sm:$0xff]  ;;  %v18766_v41 = vld [vmem:[#allocation89_spill] sm:$0xff] }
 0x480   :  { %v7922_v55 = vpop.eup %7921  ;;  %v5200_v25 = vadd.f32 %v5136_v46, %v4618_v26  ;;  %v5648_v39 = vmul.f32 0.5, %v14623_v56  ;;  %v5777_v48 = vadd.f32 1.0, %v7920_v24  ;;  %v5139_v52 = vmul.f32 %v4978_v47, %v4690_v36  ;;  %v4973_v10 = vpop.permute.xlu0 %4972  ;;  %3903 = vperm.xlu1 %7838, %v7409_v3   ;;  %v18769_v3 = vld [vmem:[#allocation369_spill] sm:$0xff] }
 0x481   :  { %v4621_v8 = vadd.f32 %v4557_v54, %v4039_v5  ;;  %v14753_v13 = vadd.f32 %v14617_v29, %v5201_v58  ;;  %v5776_v50 = vadd.f32 1.0, %v7922_v55  ;;  %v4620_v60 = vadd.f32 %v4556_v62, %v4038_v33  ;;  %3898 = vperm.xlu0 %7837, %v7408_v37   ;;  %v7474_v62 = vld [vmem:[%s16484_s8 + $0xdc0] sm:$0xff] }
 0x482   :  { %v14756_v1 = vadd.f32 %v14617_v29, %v5200_v25  ;;  %v5138_v31 = vmul.f32 %v4973_v10, %v4689_v57  ;;  %v5841_v56 = vmul.f32 %v5777_v48, %v5649_v34  ;;  %v14762_v22 = vadd.f32 %v2811_v17, %v18764_v38  ;;  %v18768_v57 = vld [vmem:[#allocation308_spill] sm:$0xff]  ;;  %v18770_v37 = vld [vmem:[#allocation510_spill] sm:$0xff] }
 0x483   :  { %v7924_v27 = vpop.eup %7923  ;;  %v5333_v45 = vmul.f32 %v14753_v13, %v14753_v13  ;;  %v5203_v9 = vadd.f32 %v5139_v52, %v4621_v8  ;;  %v5840_v30 = vmul.f32 %v5776_v50, %v5648_v39  ;;  %v14771_v2 = vmul.f32 %v14497_v18, %v18765_v23  ;;  %v3824_v12 = vpop.permute.xlu1 %3823  ;;  %v18771_v55 = vld [vmem:[#allocation370_spill] sm:$0xff] }
 0x484   :  { %v7926_v43 = vpop.eup %7925  ;;  %v5332_v21 = vmul.f32 %v14756_v1, %v14756_v1  ;;  %v5202_v42 = vadd.f32 %v5138_v31, %v4620_v60  ;;  %v5779_v17 = vadd.f32 1.0, %v7924_v27  ;;  %v3819_v4 = vpop.permute.xlu0 %3818  ;;  %3913 = vperm.xlu1 %7838, %v7411_v7   ;;  %v5651_v16 = vmul.f32 0.5, %v14641_v59  ;;  %v18772_v48 = vld [vmem:[#allocation66_spill] sm:$0xff]  ;;  %v18773_v60 = vld [vmem:[#allocation151_spill] sm:$0xff] }
 0x485   :  { %v5397_v15 = vmul.f32 %v5333_v45, %v14753_v13  ;;  %v14777_v28 = vadd.f32 %v14617_v29, %v5203_v9  ;;  %v5888_v19 = vpack.c.bf16 %v5841_v56, %v5840_v30  ;;  %3908 = vperm.xlu0 %7837, %v7410_v14   ;;  %v5650_v40 = vmul.f32 0.5, %v14646_v6  ;;  %v18774_v56 = vld [vmem:[#allocation426_spill] sm:$0xff]  ;;  %v18775_v45 = vld [vmem:[#allocation19_spill] sm:$0xff] }
 0x486   :  { %v5396_v49 = vmul.f32 %v5332_v21, %v14756_v1  ;;  %v14782_v53 = vadd.f32 %v14617_v29, %v5202_v42  ;;  %v5778_v54 = vadd.f32 1.0, %v7926_v43  ;;  %v2814_v36 = vmul.f32 %v18767_v61, %v18766_v41  ;;  %v18776_v30 = vld [vmem:[#allocation427_spill] sm:$0xff] }
 0x487   :  { %v5461_v26 = vmul.f32 0.044715, %v5397_v15  ;;  %v5335_v59 = vmul.f32 %v14777_v28, %v14777_v28  ;;  %7705 = vmatprep.mubr.bf16.mxu0 %v5888_v19  ;;  %v5843_v46 = vmul.f32 %v5779_v17, %v5651_v16  ;;  %v2813_v24 = vmul.f32 %v18769_v3, %v18768_v57  ;;  %v14799_v5 = vpop.permute.xlu1 %3833  ;;  %v18777_v15 = vld [vmem:[#allocation395_spill] sm:$0xff]  ;;  %v18781_v57 = vld [vmem:[#allocation282_spill] sm:$0xff] }
 0x488   :  { %v5460_v51 = vmul.f32 0.044715, %v5396_v49  ;;  %v5334_v6 = vmul.f32 %v14782_v53, %v14782_v53  ;;  %v5842_v58 = vmul.f32 %v5778_v54, %v5650_v40  ;;  %v3394_v34 = vmul.f32 %v18770_v37, %v14682_v11  ;;  %v14806_v47 = vpop.permute.xlu0 %3828  ;;  %4485 = vperm.xlu1 %7838, %v7475_v0   ;;  %v7477_v11 = vld [vmem:[%s16484_s8 + $0xdd8] sm:$0xff]  ;;  %v7541_v41 = vld [vmem:[%s16484_s8 + $0xfc8] sm:$0xff] }
 0x489   :  { %v2946_v33 = vmul.f32 %v14497_v18, %v18771_v55  ;;  %v5399_v25 = vmul.f32 %v5335_v59, %v14777_v28  ;;  %v5525_v39 = vadd.f32 %v5461_v26, %v14753_v13  ;;  %v3393_v8 = vmul.f32 %v18772_v48, %v14691_v35  ;;  %4480 = vperm.xlu0 %7837, %v7474_v62   ;;  %v7476_v35 = vld [vmem:[%s16484_s8 + $0xdd0] sm:$0xff]  ;;  %v18778_v40 = vld [vmem:[#allocation397_spill] sm:$0xff] }
 0x48a   :  { %v5398_v52 = vmul.f32 %v5334_v6, %v14782_v53  ;;  %v5889_v10 = vpack.c.bf16 %v5843_v46, %v5842_v58  ;;  %v5524_v50 = vadd.f32 %v5460_v51, %v14756_v1  ;;  %v2878_v31 = vadd.f32 %v2814_v36, %v18773_v60  ;;  %v18779_v61 = vld [vmem:[#allocation139_spill] sm:$0xff]  ;;  %v18780_v59 = vld [vmem:[#allocation433_spill] sm:$0xff]  ;;  %v18782_v51 = vld [vmem:[#allocation434_spill] sm:$0xff] }
 0x48b   :  { %v5463_v7 = vmul.f32 0.044715, %v5399_v25  ;;  %v3528_v27 = vmul.f32 %v14529_v63, %v18774_v56  ;;  %v5589_v38 = vmul.f32 0.7978846, %v5525_v39  ;;  %v2877_v9 = vadd.f32 %v2813_v24, %v18775_v45  ;;  %v4406_v21 = vpop.permute.xlu1 %4405  ;;  %v18783_v25 = vld [vmem:[#allocation405_spill] sm:$0xff]  ;;  %v7542_v60 = vld [vmem:[%s16484_s8 + $0xfd0] sm:$0xff] }
 0x48c   :  { %v5462_v14 = vmul.f32 0.044715, %v5398_v52  ;;  %v3527_v43 = vmul.f32 %v14529_v63, %v18776_v30  ;;  %7706 = vmatmul.mubr.bf16.gmra.mrb[32].mxu0 %v5889_v10  ;;  %v5588_v42 = vmul.f32 0.7978846, %v5524_v50  ;;  %v3458_v17 = vadd.f32 %v3394_v34, %v14745_v32  ;;  %v4401_v16 = vpop.permute.xlu0 %4400  ;;  %4495 = vperm.xlu1 %7838, %v7477_v11   ;;  %v7543_v52 = vld [vmem:[%s16484_s8 + $0xfd8] sm:$0xff] }
 0x48d   :  { %v4110_v19 = vmul.f32 %v14544_v20, %v18777_v15  ;;  %7927 = vtanh.f32 %v5589_v38  ;;  %v5527_v49 = vadd.f32 %v5463_v7, %v14777_v28  ;;  %v3457_v0 = vadd.f32 %v3393_v8, %v14762_v22  ;;  %4490 = vperm.xlu0 %7837, %v7476_v35   ;;  %v7540_v22 = vld [vmem:[%s16484_s8 + $0xfc0] sm:$0xff] }
 0x48e   :  { %v4109_v54 = vmul.f32 %v14544_v20, %v18778_v40  ;;  %7929 = vtanh.f32 %v5588_v42  ;;  %v5526_v32 = vadd.f32 %v5462_v14, %v14782_v53  ;;  %v3396_v36 = vmul.f32 %v18779_v61, %v14771_v2  ;;  %v18784_v8 = vld [vmem:[#allocation406_spill] sm:$0xff] }
 0x48f   :  { %v3977_v26 = vmul.f32 %v3824_v12, %v3528_v27  ;;  %v3530_v62 = vmul.f32 %v14529_v63, %v18780_v59  ;;  %v5591_v46 = vmul.f32 0.7978846, %v5527_v49  ;;  %v3395_v3 = vmul.f32 %v18781_v57, %v2946_v33  ;;  %v4416_v58 = vpop.permute.xlu1 %4415  ;;  %v14860_v10 = vld [vmem:[%s16479_s3 + $0x4] ss:$0 sm:$0xff]  ;;  %v18788_v49 = vld [vmem:[#allocation188_spill] sm:$0xff] }
 0x490   :  { %v3976_v24 = vmul.f32 %v3819_v4, %v3527_v43  ;;  %v3529_v6 = vmul.f32 %v14529_v63, %v18782_v51  ;;  %v5590_v37 = vmul.f32 0.7978846, %v5526_v32  ;;  %v4559_v34 = vmul.f32 %v4406_v21, %v4110_v19  ;;  %v4411_v12 = vpop.permute.xlu0 %4410  ;;  %5067 = vperm.xlu1 %7838, %v7541_v41   ;;  %v18785_v21 = vld [vmem:[#allocation33_spill] sm:$0xff] }
 0x491   :  { %v4112_v2 = vmul.f32 %v14544_v20, %v18783_v25  ;;  %v4692_v39 = vmul.f32 %v14574_v44, %v18765_v23  ;;  %7931 = vtanh.f32 %v5591_v46  ;;  %v4558_v48 = vmul.f32 %v4401_v16, %v4109_v54  ;;  %5062 = vperm.xlu0 %7837, %v7540_v22   ;;  %v18786_v19 = vld [vmem:[#allocation409_spill] sm:$0xff]  ;;  %v18787_v16 = vld [vmem:[#allocation379_spill] sm:$0xff]  ;;  %v18789_v25 = vld [vmem:[#allocation104_spill] sm:$0xff] }
 0x492   :  { %v4111_v33 = vmul.f32 %v14544_v20, %v18784_v8  ;;  %v4691_v4 = vmul.f32 %v14574_v44, %v18771_v55  ;;  %7933 = vtanh.f32 %v5590_v37  ;;  %v14864_v23 = vmul.f32 %v14860_v10, %v18780_v59  ;;  %v7346_v41 = vld [vmem:[%s16484_s8 + $0x9e0] sm:$0xff]  ;;  %v7349_v37 = vld [vmem:[%s16484_s8 + $0x9f8] sm:$0xff]  ;;  %v7348_v8 = vld [vmem:[%s16484_s8 + $0x9f0] sm:$0xff] }
 0x493   :  { %v14868_v11 = vmul.f32 %v14860_v10, %v18782_v51  ;;  %v4041_v50 = vadd.f32 %v3977_v26, %v3458_v17  ;;  %v3979_v55 = vmul.f32 %v14799_v5, %v3530_v62  ;;  %v3460_v7 = vadd.f32 %v3396_v36, %v2878_v31  ;;  %v4988_v38 = vpop.permute.xlu1 %4987 }
 0x494   :  { %v3459_v56 = vadd.f32 %v3395_v3, %v2877_v9  ;;  %v4040_v27 = vadd.f32 %v3976_v24, %v3457_v0  ;;  %v3978_v35 = vmul.f32 %v14806_v47, %v3529_v6  ;;  %v4561_v14 = vmul.f32 %v4416_v58, %v4112_v2  ;;  %v4983_v43 = vpop.permute.xlu0 %4982  ;;  %5077 = vperm.xlu1 %7838, %v7543_v52   ;;  %v7347_v47 = vld [vmem:[%s16484_s8 + $0x9e8] sm:$0xff]  ;;  %v18790_v2 = vld [vmem:[#allocation189_spill] sm:$0xff] }
 0x495   :  { %v4623_v45 = vadd.f32 %v4559_v34, %v4041_v50  ;;  %v5141_v30 = vmul.f32 %v4988_v38, %v4692_v39  ;;  %v4694_v42 = vmul.f32 %v14574_v44, %v18785_v21  ;;  %v4560_v5 = vmul.f32 %v4411_v12, %v4111_v33  ;;  %5072 = vperm.xlu0 %7837, %v7542_v60   ;;  %v18791_v52 = vld [vmem:[#allocation401_spill] sm:$0xff] }
 0x496   :  { %v4622_v17 = vadd.f32 %v4558_v48, %v4040_v27  ;;  %v5140_v15 = vmul.f32 %v4983_v43, %v4691_v4  ;;  %v4693_v31 = vmul.f32 %v14574_v44, %v18786_v19  ;;  %v2234_v0 = vmul.f32 %v18788_v49, %v18787_v16  ;;  %v18792_v27 = vld [vmem:[#allocation38_spill] sm:$0xff]  ;;  %v18795_v16 = vld [vmem:[#allocation37_spill] sm:$0xff] }
 0x497   :  { %v7928_v9 = vpop.eup %7927  ;;  %v4043_v40 = vadd.f32 %v3979_v55, %v3460_v7  ;;  %v5205_v54 = vadd.f32 %v5141_v30, %v4623_v45  ;;  %v5653_v32 = vmul.f32 0.5, %v14753_v13  ;;  %v4042_v36 = vadd.f32 %v3978_v35, %v3459_v56  ;;  %v4998_v59 = vpop.permute.xlu1 %4997  ;;  %v18793_v35 = vld [vmem:[#allocation197_spill] sm:$0xff]  ;;  %v18796_v49 = vld [vmem:[#allocation198_spill] sm:$0xff] }
 0x498   :  { %v7930_v61 = vpop.eup %7929  ;;  %v5204_v26 = vadd.f32 %v5140_v15, %v4622_v17  ;;  %v5652_v62 = vmul.f32 0.5, %v14756_v1  ;;  %v5781_v22 = vadd.f32 1.0, %v7928_v9  ;;  %v5143_v3 = vmul.f32 %v4998_v59, %v4694_v42  ;;  %v4993_v24 = vpop.permute.xlu0 %4992  ;;  %3340 = vperm.xlu1 %7838, %v7347_v47   ;;  %v18794_v47 = vld [vmem:[#allocation106_spill] sm:$0xff] }
 0x499   :  { %v4625_v46 = vadd.f32 %v4561_v14, %v4043_v40  ;;  %v14890_v57 = vadd.f32 %v14617_v29, %v5205_v54  ;;  %v5780_v51 = vadd.f32 1.0, %v7930_v61  ;;  %v4624_v6 = vadd.f32 %v4560_v5, %v4042_v36  ;;  %3335 = vperm.xlu0 %7837, %v7346_v41   ;;  %v7413_v5 = vld [vmem:[%s16484_s8 + $0xbe8] sm:$0xff]  ;;  %v7412_v41 = vld [vmem:[%s16484_s8 + $0xbe0] sm:$0xff] }
 0x49a   :  { %v14893_v58 = vadd.f32 %v14617_v29, %v5204_v26  ;;  %v5142_v13 = vmul.f32 %v4993_v24, %v4693_v31  ;;  %v5845_v1 = vmul.f32 %v5781_v22, %v5653_v32  ;;  %v2233_v12 = vmul.f32 %v18790_v2, %v18789_v25  ;;  %v18798_v36 = vld [vmem:[#allocation442_spill] sm:$0xff] }
 0x49b   :  { %v7932_v34 = vpop.eup %7931  ;;  %v5337_v39 = vmul.f32 %v14890_v57, %v14890_v57  ;;  %v5207_v48 = vadd.f32 %v5143_v3, %v4625_v46  ;;  %v5844_v33 = vmul.f32 %v5780_v51, %v5652_v62  ;;  %v2298_v50 = vadd.f32 %v2234_v0, %v18791_v52  ;;  %v14908_v7 = vpop.permute.xlu1 %3270  ;;  %v18801_v25 = vld [vmem:[#allocation450_spill] sm:$0xff] }
 0x49c   :  { %v7934_v4 = vpop.eup %7933  ;;  %v5336_v55 = vmul.f32 %v14893_v58, %v14893_v58  ;;  %v5206_v60 = vadd.f32 %v5142_v13, %v4624_v6  ;;  %v5783_v56 = vadd.f32 1.0, %v7932_v34  ;;  %v2236_v38 = vmul.f32 %v18793_v35, %v18792_v27  ;;  %v14916_v30 = vpop.permute.xlu0 %3265  ;;  %3350 = vperm.xlu1 %7838, %v7349_v37  }
 0x49d   :  { %v5401_v45 = vmul.f32 %v5337_v39, %v14890_v57  ;;  %v14914_v14 = vadd.f32 %v14617_v29, %v5207_v48  ;;  %v5890_v43 = vpack.c.bf16 %v5845_v1, %v5844_v33  ;;  %3345 = vperm.xlu0 %7837, %v7348_v8   ;;  %v5655_v15 = vmul.f32 0.5, %v14777_v28  ;;  %v18797_v28 = vld [vmem:[#allocation356_spill] sm:$0xff]  ;;  %v18800_v1 = vld [vmem:[#allocation367_spill] sm:$0xff]  ;;  %v18802_v8 = vld [vmem:[#allocation417_spill] sm:$0xff] }
 0x49e   :  { %v5400_v42 = vmul.f32 %v5336_v55, %v14893_v58  ;;  %v14920_v17 = vadd.f32 %v14617_v29, %v5206_v60  ;;  %v5782_v31 = vadd.f32 1.0, %v7934_v4  ;;  %v2297_v9 = vadd.f32 %v2233_v12, %v18794_v47  ;;  %v7415_v48 = vld [vmem:[%s16484_s8 + $0xbf8] sm:$0xff]  ;;  %v7414_v60 = vld [vmem:[%s16484_s8 + $0xbf0] sm:$0xff] }
 0x49f   :  { %v2235_v0 = vmul.f32 %v18796_v49, %v18795_v16  ;;  %v5339_v40 = vmul.f32 %v14914_v14, %v14914_v14  ;;  %v14931_v54 = vpop.f32.mrb[0].mxu0  ;;  %7709 = vmatprep.mubr.bf16.mxu0 %v5890_v43  ;;  %v5654_v32 = vmul.f32 0.5, %v14782_v53  ;;  %v2816_v61 = vmul.f32 %v18797_v28, %v14864_v23  ;;  %v3844_v22 = vpop.permute.xlu1 %3843  ;;  %v18799_v23 = vld [vmem:[#allocation107_spill] sm:$0xff]  ;;  %v18803_v4 = vld [vmem:[#allocation472_spill] sm:$0xff]  ;;  %v7478_v28 = vld [vmem:[%s16484_s8 + $0xde0] sm:$0xff] }
 0x4a0   :  { %v2369_v26 = vmul.f32 %v14860_v10, %v18798_v36  ;;  %v5338_v59 = vmul.f32 %v14920_v17, %v14920_v17  ;;  %v14943_v62 = vpop.f32.mrb[1].mxu0  ;;  %v5847_v46 = vmul.f32 %v5783_v56, %v5655_v15  ;;  %v5465_v3 = vmul.f32 0.044715, %v5401_v45  ;;  %v3839_v53 = vpop.permute.xlu0 %3838  ;;  %3923 = vperm.xlu1 %7838, %v7413_v5   ;;  %v18804_v56 = vld [vmem:[#allocation468_spill] sm:$0xff] }
 0x4a1   :  { %v5464_v24 = vmul.f32 0.044715, %v5400_v42  ;;  %v5403_v51 = vmul.f32 %v5339_v40, %v14914_v14  ;;  %v14946_v6 = vpop.f32.mrb[2].mxu0  ;;  %v5846_v13 = vmul.f32 %v5782_v31, %v5654_v32  ;;  %v14949_v37 = vadd.f32 %v2236_v38, %v18799_v23  ;;  %3918 = vperm.xlu0 %7837, %v7412_v41   ;;  %v18805_v42 = vld [vmem:[#allocation108_spill] sm:$0xff]  ;;  %v18807_v41 = vld [vmem:[#allocation143_spill] sm:$0xff] }
 0x4a2   :  { %v2815_v34 = vmul.f32 %v18800_v1, %v14868_v11  ;;  %v2368_v2 = vmul.f32 %v14860_v10, %v18801_v25  ;;  %v5402_v12 = vmul.f32 %v5338_v59, %v14920_v17  ;;  %v14956_v39 = vpop.f32.mrb[3].mxu0  ;;  %v14962_v33 = vadd.f32 %v2235_v0, %v18802_v8  ;;  %v18806_v5 = vld [vmem:[#allocation208_spill] sm:$0xff]  ;;  %v18808_v59 = vld [vmem:[#allocation415_spill] sm:$0xff]  ;;  %v18810_v1 = vld [vmem:[#allocation105_spill] sm:$0xff] }
 0x4a3   :  { %v14966_v52 = vmul.f32 %v14860_v10, %v18803_v4  ;;  %v2949_v11 = vmul.f32 %v14497_v18, %v18785_v21  ;;  %v5467_v55 = vmul.f32 0.044715, %v5403_v51  ;;  %v14975_v27 = vmul.f32 %v14860_v10, %v18804_v56  ;;  %v3854_v43 = vpop.permute.xlu1 %3853 }
 0x4a4   :  { %v2948_v35 = vmul.f32 %v14497_v18, %v18786_v19  ;;  %v5466_v38 = vmul.f32 0.044715, %v5402_v12  ;;  %v5891_v45 = vpack.c.bf16 %v5847_v46, %v5846_v13  ;;  %v14981_v15 = vmul.f32 %v18806_v5, %v18805_v42  ;;  %v3849_v31 = vpop.permute.xlu0 %3848  ;;  %3933 = vperm.xlu1 %7838, %v7415_v48   ;;  %v7479_v19 = vld [vmem:[%s16484_s8 + $0xde8] sm:$0xff] }
 0x4a5   :  { %v2880_v21 = vadd.f32 %v2816_v61, %v2298_v50  ;;  %v5528_v47 = vadd.f32 %v5464_v24, %v14893_v58  ;;  %v5529_v16 = vadd.f32 %v5465_v3, %v14890_v57  ;;  %v2879_v49 = vadd.f32 %v2815_v34, %v2297_v9  ;;  %3928 = vperm.xlu0 %7837, %v7414_v60   ;;  %v18809_v3 = vld [vmem:[#allocation13_spill] sm:$0xff]  ;;  %v18811_v12 = vld [vmem:[#allocation411_spill] sm:$0xff] }
 0x4a6   :  { %7710 = vmatmul.mubr.bf16.gmra.mrb[36].mxu0 %v5891_v45  ;;  %v5530_v0 = vadd.f32 %v5466_v38, %v14920_v17  ;;  %v5531_v40 = vadd.f32 %v5467_v55, %v14914_v14  ;;  %v3398_v32 = vmul.f32 %v18807_v41, %v2949_v11  ;;  %v3532_v50 = vmul.f32 %v14529_v63, %v18798_v36  ;;  %v18812_v11 = vld [vmem:[#allocation36_spill] sm:$0xff] }
 0x4a7   :  { %v5592_v9 = vmul.f32 0.7978846, %v5528_v47  ;;  %v5593_v61 = vmul.f32 0.7978846, %v5529_v16  ;;  %v2818_v46 = vmul.f32 %v18808_v59, %v2369_v26  ;;  %v3397_v24 = vmul.f32 %v18809_v3, %v2948_v35  ;;  %v4426_v13 = vpop.permute.xlu1 %4425  ;;  %v18813_v26 = vld [vmem:[#allocation382_spill] sm:$0xff]  ;;  %v7481_v38 = vld [vmem:[%s16484_s8 + $0xdf8] sm:$0xff] }
 0x4a8   :  { %v3531_v51 = vmul.f32 %v14529_v63, %v18801_v25  ;;  %v5594_v23 = vmul.f32 0.7978846, %v5530_v0  ;;  %v2951_v34 = vmul.f32 %v14497_v18, %v18810_v1  ;;  %v4114_v36 = vmul.f32 %v14544_v20, %v18811_v12  ;;  %v4421_v48 = vpop.permute.xlu0 %4420  ;;  %4505 = vperm.xlu1 %7838, %v7479_v19   ;;  %v18814_v35 = vld [vmem:[#allocation414_spill] sm:$0xff]  ;;  %v18815_v0 = vld [vmem:[#allocation435_spill] sm:$0xff] }
 0x4a9   :  { %7935 = vtanh.f32 %v5592_v9  ;;  %v5595_v8 = vmul.f32 0.7978846, %v5531_v40  ;;  %v2817_v55 = vmul.f32 %v18812_v11, %v2368_v2  ;;  %v2950_v60 = vmul.f32 %v14497_v18, %v18813_v26  ;;  %4500 = vperm.xlu0 %7837, %v7478_v28   ;;  %v7480_v2 = vld [vmem:[%s16484_s8 + $0xdf0] sm:$0xff] }
 0x4aa   :  { %v4113_v25 = vmul.f32 %v14544_v20, %v18814_v35  ;;  %7937 = vtanh.f32 %v5593_v61  ;;  %v3462_v45 = vadd.f32 %v3398_v32, %v2880_v21  ;;  %v3981_v42 = vmul.f32 %v3844_v22, %v3532_v50  ;;  %v18819_v11 = vld [vmem:[#allocation388_spill] sm:$0xff] }
 0x4ab   :  { %v3534_v5 = vmul.f32 %v14529_v63, %v18803_v4  ;;  %7939 = vtanh.f32 %v5594_v23  ;;  %v3461_v18 = vadd.f32 %v3397_v24, %v2879_v49  ;;  %v3980_v47 = vmul.f32 %v3839_v53, %v3531_v51  ;;  %v4436_v19 = vpop.permute.xlu1 %4435  ;;  %v18816_v53 = vld [vmem:[#allocation440_spill] sm:$0xff]  ;;  %v18817_v24 = vld [vmem:[#allocation39_spill] sm:$0xff] }
 0x4ac   :  { %v3533_v16 = vmul.f32 %v14529_v63, %v18804_v56  ;;  %v4116_v40 = vmul.f32 %v14544_v20, %v18815_v0  ;;  %v3400_v21 = vmul.f32 %v14908_v7, %v2951_v34  ;;  %v4563_v22 = vmul.f32 %v4426_v13, %v4114_v36  ;;  %v4431_v41 = vpop.permute.xlu0 %4430  ;;  %4515 = vperm.xlu1 %7838, %v7481_v38   ;;  %v7545_v7 = vld [vmem:[%s16484_s8 + $0xfe8] sm:$0xff]  ;;  %v18818_v13 = vld [vmem:[#allocation424_spill] sm:$0xff] }
 0x4ad   :  { %v4696_v4 = vmul.f32 %v14574_v44, %v18810_v1  ;;  %7941 = vtanh.f32 %v5595_v8  ;;  %v3399_v32 = vmul.f32 %v14916_v30, %v2950_v60  ;;  %v4562_v49 = vmul.f32 %v4421_v48, %v4113_v25  ;;  %4510 = vperm.xlu0 %7837, %v7480_v2   ;;  %v7544_v30 = vld [vmem:[%s16484_s8 + $0xfe0] sm:$0xff]  ;;  %v7546_v35 = vld [vmem:[%s16484_s8 + $0xff0] sm:$0xff] }
 0x4ae   :  { %v4115_v50 = vmul.f32 %v14544_v20, %v18816_v53  ;;  %v4695_v63 = vmul.f32 %v14574_v44, %v18813_v26  ;;  %v2882_v56 = vadd.f32 %v2818_v46, %v14949_v37  ;;  %v2881_v28 = vadd.f32 %v2817_v55, %v14962_v33  ;;  %v18820_v55 = vld [vmem:[#allocation209_spill] sm:$0xff] }
 0x4af   :  { %v4045_v9 = vadd.f32 %v3981_v42, %v3462_v45  ;;  %v3983_v61 = vmul.f32 %v3854_v43, %v3534_v5  ;;  %v4044_v59 = vadd.f32 %v3980_v47, %v3461_v18  ;;  %v3982_v20 = vmul.f32 %v3849_v31, %v3533_v16  ;;  %v5008_v3 = vpop.permute.xlu1 %5007  ;;  %v7547_v31 = vld [vmem:[%s16484_s8 + $0xff8] sm:$0xff] }
 0x4b0   :  { %v4698_v51 = vmul.f32 %v14574_v44, %v18817_v24  ;;  %v4697_v23 = vmul.f32 %v14574_v44, %v18818_v13  ;;  %v3464_v1 = vadd.f32 %v3400_v21, %v2882_v56  ;;  %v4565_v37 = vmul.f32 %v4436_v19, %v4116_v40  ;;  %v5003_v33 = vpop.permute.xlu0 %5002  ;;  %5087 = vperm.xlu1 %7838, %v7545_v7   ;;  %v18823_v56 = vld [vmem:[#allocation111_spill] sm:$0xff] }
 0x4b1   :  { %v4627_v34 = vadd.f32 %v4563_v22, %v4045_v9  ;;  %v5145_v46 = vmul.f32 %v5008_v3, %v4696_v4  ;;  %v3463_v43 = vadd.f32 %v3399_v32, %v2881_v28  ;;  %v4626_v12 = vadd.f32 %v4562_v49, %v4044_v59  ;;  %5082 = vperm.xlu0 %7837, %v7544_v30   ;;  %v18821_v49 = vld [vmem:[#allocation41_spill] sm:$0xff]  ;;  %v18825_v3 = vld [vmem:[#allocation220_spill] sm:$0xff] }
 0x4b2   :  { %v4564_v36 = vmul.f32 %v4431_v41, %v4115_v50  ;;  %v5144_v48 = vmul.f32 %v5003_v33, %v4695_v63  ;;  %v2237_v26 = vmul.f32 %v18820_v55, %v18819_v11  ;;  %v4047_v44 = vadd.f32 %v3983_v61, %v3464_v1  ;;  %v18830_v55 = vld [vmem:[#allocation474_spill] sm:$0xff] }
 0x4b3   :  { %v7936_v8 = vpop.eup %7935  ;;  %v5209_v60 = vadd.f32 %v5145_v46, %v4627_v34  ;;  %v5657_v25 = vmul.f32 0.5, %v14890_v57  ;;  %v4046_v45 = vadd.f32 %v3982_v20, %v3463_v43  ;;  %v5018_v5 = vpop.permute.xlu1 %5017  ;;  %v5656_v2 = vmul.f32 0.5, %v14893_v58  ;;  %v18824_v20 = vld [vmem:[#allocation402_spill] sm:$0xff] }
 0x4b4   :  { %v7938_v38 = vpop.eup %7937  ;;  %v5208_v42 = vadd.f32 %v5144_v48, %v4626_v12  ;;  %v5784_v18 = vadd.f32 1.0, %v7936_v8  ;;  %v4629_v16 = vadd.f32 %v4565_v37, %v4047_v44  ;;  %v5147_v0 = vmul.f32 %v5018_v5, %v4698_v51  ;;  %v5013_v40 = vpop.permute.xlu0 %5012  ;;  %5097 = vperm.xlu1 %7838, %v7547_v31   ;;  %v18828_v31 = vld [vmem:[#allocation418_spill] sm:$0xff]  ;;  %v18829_v8 = vld [vmem:[#allocation221_spill] sm:$0xff] }
 0x4b5   :  { %v7940_v47 = vpop.eup %7939  ;;  %v15052_v19 = vadd.f32 %v14617_v29, %v5209_v60  ;;  %v5785_v21 = vadd.f32 1.0, %v7938_v38  ;;  %v4628_v22 = vadd.f32 %v4564_v36, %v4046_v45  ;;  %v5146_v57 = vmul.f32 %v5013_v40, %v4697_v23  ;;  %5092 = vperm.xlu0 %7837, %v7546_v35   ;;  %v18831_v45 = vld [vmem:[#allocation113_spill] sm:$0xff] }
 0x4b6   :  { %v15055_v41 = vadd.f32 %v14617_v29, %v5208_v42  ;;  %v5848_v4 = vmul.f32 %v5784_v18, %v5656_v2  ;;  %v15059_v58 = vadd.f32 %v14981_v15, %v18821_v49  ;;  %v5211_v50 = vadd.f32 %v5147_v0, %v4629_v16  ;;  %v18832_v42 = vld [vmem:[#allocation234_spill] sm:$0xff]  ;;  %v18833_v2 = vld [vmem:[#allocation445_spill] sm:$0xff]  ;;  %v18834_v18 = vld [vmem:[#allocation235_spill] sm:$0xff] }
 0x4b7   :  { %v7942_v32 = vpop.eup %7941  ;;  %v5341_v53 = vmul.f32 %v15052_v19, %v15052_v19  ;;  %v15063_v63 = vpop.f32.mrb[4].mxu0  ;;  %v5849_v7 = vmul.f32 %v5785_v21, %v5657_v25  ;;  %v15066_v28 = vadd.f32 %v2237_v26, %v18823_v56  ;;  %v5210_v61 = vadd.f32 %v5146_v57, %v4628_v22  ;;  %v18835_v16 = vld [vmem:[#allocation477_spill] sm:$0xff]  ;;  %v18837_v57 = vld [vmem:[#allocation116_spill] sm:$0xff]  ;;  %v18840_v56 = vld [vmem:[#allocation483_spill] sm:$0xff] }
 0x4b8   :  { %18822 = vst [vmem:[#allocation152_spill] sm:$0xff] %v15063_v63  ;;  %v5340_v9 = vmul.f32 %v15055_v41, %v15055_v41  ;;  %v15070_v30 = vpop.f32.mrb[5].mxu0  ;;  %v15072_v59 = vpop.permute.xlu1 %3280  ;;  %v5786_v15 = vadd.f32 1.0, %v7940_v47  ;;  %v2240_v51 = vmul.f32 %v18825_v3, %v18824_v20  ;;  %v15078_v1 = vadd.f32 %v14617_v29, %v5211_v50  ;;  %v18839_v50 = vld [vmem:[#allocation112_spill] sm:$0xff] }
 0x4b9   :  { %v5405_v23 = vmul.f32 %v5341_v53, %v15052_v19  ;;  %v5892_v34 = vpack.c.bf16 %v5849_v7, %v5848_v4  ;;  %v15080_v37 = vpop.f32.mrb[6].mxu0  ;;  %v15082_v46 = vpop.permute.xlu0 %3275  ;;  %v15086_v43 = vadd.f32 %v14617_v29, %v5210_v61  ;;  %v5658_v36 = vmul.f32 0.5, %v14920_v17  ;;  %v18838_v4 = vld [vmem:[#allocation245_spill] sm:$0xff] }
 0x4ba   :  { %18826 = vst [vmem:[#allocation304_spill] sm:$0xff] %v15080_v37  ;;  %v5404_v33 = vmul.f32 %v5340_v9, %v15055_v41  ;;  %v15088_v12 = vpop.f32.mrb[7].mxu0  ;;  %v5787_v48 = vadd.f32 1.0, %v7942_v32  ;;  %v2239_v11 = vmul.f32 %v18829_v8, %v18828_v31  ;;  %v2373_v26 = vmul.f32 %v14860_v10, %v18830_v55  ;;  %v18841_v61 = vld [vmem:[#allocation485_spill] sm:$0xff]  ;;  %v18843_v31 = vld [vmem:[#allocation115_spill] sm:$0xff] }
 0x4bb   :  { %18827 = vst [vmem:[#allocation153_spill] sm:$0xff] %v15088_v12  ;;  %v5343_v44 = vmul.f32 %v15078_v1, %v15078_v1  ;;  %7713 = vmatprep.mubr.bf16.mxu0 %v5892_v34  ;;  %v5659_v60 = vmul.f32 0.5, %v14914_v14  ;;  %v5469_v35 = vmul.f32 0.044715, %v5405_v23  ;;  %v5342_v25 = vmul.f32 %v15086_v43, %v15086_v43  ;;  %v18836_v14 = vld [vmem:[#allocation42_spill] sm:$0xff] }
 0x4bc   :  { %v5468_v29 = vmul.f32 0.044715, %v5404_v33  ;;  %v5850_v38 = vmul.f32 %v5786_v15, %v5658_v36  ;;  %v3291_v17 = vpop.permute.xlu1 %3290  ;;  %v2242_v5 = vmul.f32 %v18832_v42, %v18831_v45  ;;  %v2241_v47 = vmul.f32 %v18834_v18, %v18833_v2  ;;  %v18842_v36 = vld [vmem:[#allocation114_spill] sm:$0xff]  ;;  %v18845_v45 = vld [vmem:[#allocation523_spill] sm:$0xff]  ;;  %v18846_v42 = vld [vmem:[#allocation524_spill] sm:$0xff] }
 0x4bd   :  { %v2372_v0 = vmul.f32 %v14860_v10, %v18835_v16  ;;  %v5407_v40 = vmul.f32 %v5343_v44, %v15078_v1  ;;  %v3286_v21 = vpop.permute.xlu0 %3285  ;;  %v2304_v22 = vadd.f32 %v2240_v51, %v18836_v14  ;;  %v2244_v32 = vmul.f32 %v18838_v4, %v18837_v57  ;;  %v18848_v18 = vld [vmem:[#allocation488_spill] sm:$0xff]  ;;  %v18850_v14 = vld [vmem:[#allocation439_spill] sm:$0xff] }
 0x4be   :  { %v5406_v49 = vmul.f32 %v5342_v25, %v15086_v43  ;;  %v5851_v53 = vmul.f32 %v5787_v48, %v5659_v60  ;;  %v2303_v7 = vadd.f32 %v2239_v11, %v18839_v50  ;;  %v15114_v9 = vmul.f32 %v14860_v10, %v18840_v56  ;;  %v18844_v11 = vld [vmem:[#allocation487_spill] sm:$0xff] }
 0x4bf   :  { %v15118_v15 = vmul.f32 %v14860_v10, %v18841_v61  ;;  %v5532_v20 = vadd.f32 %v5468_v29, %v15055_v41  ;;  %v5471_v3 = vmul.f32 0.044715, %v5407_v40  ;;  %v5533_v33 = vadd.f32 %v5469_v35, %v15052_v19 }
 0x4c0   :  { %v5470_v51 = vmul.f32 0.044715, %v5406_v49  ;;  %v5893_v23 = vpack.c.bf16 %v5851_v53, %v5850_v38  ;;  %v3864_v34 = vpop.permute.xlu1 %3863  ;;  %v15123_v48 = vadd.f32 %v2242_v5, %v18842_v36  ;;  %v15126_v8 = vadd.f32 %v2241_v47, %v18843_v31  ;;  %v18847_v38 = vld [vmem:[#allocation246_spill] sm:$0xff]  ;;  %v18849_v47 = vld [vmem:[#allocation40_spill] sm:$0xff] }
 0x4c1   :  { %v15130_v44 = vmul.f32 %v14860_v10, %v18844_v11  ;;  %v3859_v60 = vpop.permute.xlu0 %3858  ;;  %v5596_v25 = vmul.f32 0.7978846, %v5532_v20  ;;  %v15133_v29 = vadd.f32 %v2244_v32, %v18845_v45  ;;  %v2243_v2 = vmul.f32 %v18847_v38, %v18846_v42  ;;  %v18851_v32 = vld [vmem:[#allocation455_spill] sm:$0xff]  ;;  %v18852_v53 = vld [vmem:[#allocation44_spill] sm:$0xff]  ;;  %v18854_v31 = vld [vmem:[#allocation526_spill] sm:$0xff] }
 0x4c2   :  { %v15139_v35 = vmul.f32 %v14860_v10, %v18848_v18  ;;  %7714 = vmatmul.mubr.bf16.gmra.mrb[40].mxu0 %v5893_v23  ;;  %v5597_v5 = vmul.f32 0.7978846, %v5533_v33  ;;  %v2820_v40 = vmul.f32 %v18849_v47, %v14966_v52  ;;  %v2819_v57 = vmul.f32 %v18850_v14, %v14975_v27  ;;  %v15152_v23 = vld [vmem:[%s16479_s3 + $0x6] ss:$0 sm:$0xff]  ;;  %v18856_v45 = vld [vmem:[#allocation260_spill] sm:$0xff] }
 0x4c3   :  { %7943 = vtanh.f32 %v5596_v25  ;;  %v5534_v4 = vadd.f32 %v5470_v51, %v15086_v43  ;;  %v2822_v49 = vmul.f32 %v18851_v32, %v2373_v26  ;;  %v2821_v50 = vmul.f32 %v18852_v53, %v2372_v0  ;;  %v18853_v51 = vld [vmem:[#allocation110_spill] sm:$0xff] }
 0x4c4   :  { %v3874_v20 = vpop.permute.xlu1 %3873  ;;  %7945 = vtanh.f32 %v5597_v5  ;;  %v5535_v36 = vadd.f32 %v5471_v3, %v15078_v1  ;;  %v2953_v52 = vmul.f32 %v15152_v23, %v18817_v24  ;;  %v2952_v27 = vmul.f32 %v15152_v23, %v18818_v13  ;;  %v18855_v3 = vld [vmem:[#allocation118_spill] sm:$0xff] }
 0x4c5   :  { %v2955_v26 = vmul.f32 %v15152_v23, %v18853_v51  ;;  %v3869_v33 = vpop.permute.xlu0 %3868  ;;  %v5598_v0 = vmul.f32 0.7978846, %v5534_v4  ;;  %v15161_v25 = vadd.f32 %v2243_v2, %v18854_v31  ;;  %v15165_v42 = vmul.f32 %v18856_v45, %v18855_v3  ;;  %v18857_v38 = vld [vmem:[#allocation438_spill] sm:$0xff] }
 0x4c6   :  { %v2954_v5 = vmul.f32 %v15152_v23, %v18857_v38  ;;  %v5599_v47 = vmul.f32 0.7978846, %v5535_v36  ;;  %v2884_v24 = vadd.f32 %v2820_v40, %v15059_v58  ;;  %v2883_v13 = vadd.f32 %v2819_v57, %v15066_v28  ;;  %v15174_v14 = vld [vmem:[%s16479_s3 + $0x8] ss:$0 sm:$0xff]  ;;  %v15185_v57 = vld [vmem:[%s16479_s3 + $0x9] ss:$0 sm:$0xff] }
 0x4c7   :  { %18858 = vst [vmem:[#allocation292_spill] sm:$0xff] %v15174_v14  ;;  %v3536_v2 = vmul.f32 %v15174_v14, %v18830_v55  ;;  %7947 = vtanh.f32 %v5598_v0  ;;  %v2886_v4 = vadd.f32 %v2822_v49, %v2304_v22  ;;  %v2885_v32 = vadd.f32 %v2821_v50, %v2303_v7  ;;  %18859 = vst [vmem:[#allocation315_spill] sm:$0xff] %v15185_v57  ;;  %v18860_v36 = vld [vmem:[#allocation447_spill] sm:$0xff] }
 0x4c8   :  { %v3535_v53 = vmul.f32 %v15174_v14, %v18835_v16  ;;  %v4446_v31 = vpop.permute.xlu1 %4445  ;;  %7949 = vtanh.f32 %v5599_v47  ;;  %v3402_v58 = vmul.f32 %v15072_v59, %v2953_v52  ;;  %v3401_v28 = vmul.f32 %v15082_v46, %v2952_v27  ;;  %v18861_v59 = vld [vmem:[#allocation448_spill] sm:$0xff]  ;;  %v18862_v50 = vld [vmem:[#allocation459_spill] sm:$0xff] }
 0x4c9   :  { %v3404_v40 = vmul.f32 %v3291_v17, %v2955_v26  ;;  %v4118_v55 = vmul.f32 %v15185_v57, %v18860_v36  ;;  %v4441_v22 = vpop.permute.xlu0 %4440  ;;  %v3403_v7 = vmul.f32 %v3286_v21, %v2954_v5  ;;  %v3538_v16 = vmul.f32 %v15174_v14, %v18840_v56  ;;  %v18863_v27 = vld [vmem:[#allocation460_spill] sm:$0xff]  ;;  %v15202_v21 = vld [vmem:[%s16479_s3 + $0xa] ss:$0 sm:$0xff] }
 0x4ca   :  { %v3537_v49 = vmul.f32 %v15174_v14, %v18841_v61  ;;  %v4117_v46 = vmul.f32 %v15185_v57, %v18861_v59  ;;  %v3985_v17 = vmul.f32 %v3864_v34, %v3536_v2  ;;  %v4120_v52 = vmul.f32 %v15185_v57, %v18862_v50  ;;  %18864 = vst [vmem:[#allocation154_spill] sm:$0xff] %v15202_v21  ;;  %v18865_v34 = vld [vmem:[#allocation446_spill] sm:$0xff]  ;;  %v18866_v5 = vld [vmem:[#allocation43_spill] sm:$0xff] }
 0x4cb   :  { %v4119_v26 = vmul.f32 %v15185_v57, %v18863_v27  ;;  %v4700_v56 = vmul.f32 %v15202_v21, %v18853_v51  ;;  %v3984_v0 = vmul.f32 %v3859_v60, %v3535_v53  ;;  %v4699_v3 = vmul.f32 %v15202_v21, %v18857_v38 }
 0x4cc   :  { %v4456_v61 = vpop.permute.xlu1 %4455  ;;  %v4702_v45 = vmul.f32 %v15202_v21, %v18865_v34  ;;  %v4701_v47 = vmul.f32 %v15202_v21, %v18866_v5  ;;  %v3466_v36 = vadd.f32 %v3402_v58, %v2884_v24  ;;  %v3465_v59 = vadd.f32 %v3401_v28, %v2883_v13 }
 0x4cd   :  { %v7944_v2 = vpop.eup %7943  ;;  %v3468_v50 = vadd.f32 %v3404_v40, %v2886_v4  ;;  %v4567_v27 = vmul.f32 %v4446_v31, %v4118_v55  ;;  %v4451_v37 = vpop.permute.xlu0 %4450  ;;  %v3467_v12 = vadd.f32 %v3403_v7, %v2885_v32  ;;  %v4566_v51 = vmul.f32 %v4441_v22, %v4117_v46 }
 0x4ce   :  { %v7946_v57 = vpop.eup %7945  ;;  %v5660_v60 = vmul.f32 0.5, %v15055_v41  ;;  %v5788_v53 = vadd.f32 1.0, %v7944_v2  ;;  %v4049_v63 = vadd.f32 %v3985_v17, %v3466_v36  ;;  %v3987_v38 = vmul.f32 %v3874_v20, %v3538_v16  ;;  %v18869_v36 = vld [vmem:[#allocation261_spill] sm:$0xff] }
 0x4cf   :  { %v15213_v18 = vpop.f32.mrb[8].mxu0  ;;  %v5661_v14 = vmul.f32 0.5, %v15052_v19  ;;  %v5789_v11 = vadd.f32 1.0, %v7946_v57  ;;  %v4048_v21 = vadd.f32 %v3984_v0, %v3465_v59  ;;  %v3986_v5 = vmul.f32 %v3869_v33, %v3537_v49 }
 0x4d0   :  { %v15216_v24 = vpop.f32.mrb[9].mxu0  ;;  %v5028_v13 = vpop.permute.xlu1 %5027  ;;  %v5852_v4 = vmul.f32 %v5788_v53, %v5660_v60  ;;  %v5662_v31 = vmul.f32 0.5, %v15086_v43  ;;  %v4631_v58 = vadd.f32 %v4567_v27, %v4049_v63  ;;  %v4569_v28 = vmul.f32 %v4456_v61, %v4120_v52  ;;  %v15248_v53 = vld [vmem:[%s16477_s1 + $0x3] ss:$0 sm:$0xff] }
 0x4d1   :  { %v7948_v32 = vpop.eup %7947  ;;  %v15219_v41 = vpop.f32.mrb[10].mxu0  ;;  %v5149_v40 = vmul.f32 %v5028_v13, %v4700_v56  ;;  %v5853_v55 = vmul.f32 %v5789_v11, %v5661_v14  ;;  %v4630_v7 = vadd.f32 %v4566_v51, %v4048_v21  ;;  %v4568_v19 = vmul.f32 %v4451_v37, %v4119_v26  ;;  %v18868_v56 = vld [vmem:[#allocation432_spill] sm:$0xff]  ;;  %v15229_v37 = vld [vmem:[%s16477_s1 + $0x2] ss:$0 sm:$0xff] }
 0x4d2   :  { %18867 = vst [vmem:[#allocation27_spill] sm:$0xff] %v15219_v41  ;;  %v5023_v20 = vpop.permute.xlu0 %5022  ;;  %v7950_v22 = vpop.eup %7949  ;;  %v5790_v33 = vadd.f32 1.0, %v7948_v32  ;;  %v4051_v49 = vadd.f32 %v3987_v38, %v3468_v50  ;;  %v5663_v43 = vmul.f32 0.5, %v15078_v1  ;;  %v4050_v0 = vadd.f32 %v3986_v5, %v3467_v12  ;;  %v18870_v50 = vld [vmem:[#allocation491_spill] sm:$0xff]  ;;  %v18871_v51 = vld [vmem:[#allocation494_spill] sm:$0xff] }
 0x4d3   :  { %v5148_v57 = vmul.f32 %v5023_v20, %v4699_v3  ;;  %v15221_v16 = vpop.f32.mrb[11].mxu0  ;;  %v5213_v46 = vadd.f32 %v5149_v40, %v4631_v58  ;;  %v5894_v17 = vpack.c.bf16 %v5853_v55, %v5852_v4  ;;  %v5791_v61 = vadd.f32 1.0, %v7950_v22  ;;  %v18872_v58 = vld [vmem:[#allocation45_spill] sm:$0xff]  ;;  %v18873_v40 = vld [vmem:[#allocation428_spill] sm:$0xff] }
 0x4d4   :  { %v5038_v52 = vpop.permute.xlu1 %5037  ;;  %v5854_v2 = vmul.f32 %v5790_v33, %v5662_v31  ;;  %v2245_v11 = vmul.f32 %v18869_v36, %v18868_v56  ;;  %v4633_v14 = vadd.f32 %v4569_v28, %v4051_v49  ;;  %v4632_v12 = vadd.f32 %v4568_v19, %v4050_v0  ;;  %v18875_v49 = vld [vmem:[#allocation119_spill] sm:$0xff] }
 0x4d5   :  { %v5212_v63 = vadd.f32 %v5148_v57, %v4630_v7  ;;  %v15232_v26 = vadd.f32 %v15229_v37, %v5213_v46  ;;  %7717 = vmatprep.mubr.bf16.mxu0 %v5894_v17  ;;  %v5151_v21 = vmul.f32 %v5038_v52, %v4702_v45  ;;  %v5855_v59 = vmul.f32 %v5791_v61, %v5663_v43  ;;  %v18874_v7 = vld [vmem:[#allocation495_spill] sm:$0xff]  ;;  %v18877_v43 = vld [vmem:[#allocation46_spill] sm:$0xff] }
 0x4d6   :  { %v5033_v1 = vpop.permute.xlu0 %5032  ;;  %v15239_v27 = vmul.f32 %v14860_v10, %v18870_v50  ;;  %v15243_v60 = vmul.f32 %v14860_v10, %v18871_v51  ;;  %v15260_v28 = vadd.f32 %v15165_v42, %v18872_v58  ;;  %v15263_v20 = vadd.f32 %v2245_v11, %v18873_v40  ;;  %v18876_v46 = vld [vmem:[#allocation275_spill] sm:$0xff]  ;;  %v18879_v61 = vld [vmem:[#allocation170_spill] sm:$0xff] }
 0x4d7   :  { %v15235_v3 = vadd.f32 %v15229_v37, %v5212_v63  ;;  %v5150_v5 = vmul.f32 %v5033_v1, %v4701_v47  ;;  %v5345_v45 = vmul.f32 %v15232_v26, %v15232_v26  ;;  %v5215_v38 = vadd.f32 %v5151_v21, %v4633_v14  ;;  %v18878_v52 = vld [vmem:[#allocation47_spill] sm:$0xff]  ;;  %v18881_v14 = vld [vmem:[#allocation458_spill] sm:$0xff] }
 0x4d8   :  { %v6010_v47 = vadd.f32 %v15248_v53, %v14956_v39  ;;  %v5895_v31 = vpack.c.bf16 %v5855_v59, %v5854_v2  ;;  %v15256_v32 = vpop.permute.xlu1 %3300  ;;  %v15273_v19 = vmul.f32 %v14860_v10, %v18874_v7  ;;  %v6007_v57 = vadd.f32 %v15248_v53, %v14943_v62  ;;  %v18883_v59 = vld [vmem:[#allocation276_spill] sm:$0xff] }
 0x4d9   :  { %v5344_v13 = vmul.f32 %v15235_v3, %v15235_v3  ;;  %v5214_v4 = vadd.f32 %v5150_v5, %v4632_v12  ;;  %v5409_v55 = vmul.f32 %v5345_v45, %v15232_v26  ;;  %v15267_v22 = vadd.f32 %v15229_v37, %v5215_v38  ;;  %v18882_v5 = vld [vmem:[#allocation529_spill] sm:$0xff]  ;;  %v18884_v38 = vld [vmem:[#allocation162_spill] sm:$0xff] }
 0x4da   :  { %v15269_v39 = vpop.permute.xlu0 %3295  ;;  %7718 = vmatmul.mubr.bf16.gmra.mrb[44].mxu0 %v5895_v31  ;;  %v15283_v17 = vmul.f32 %v18876_v46, %v18875_v49  ;;  %v2824_v0 = vmul.f32 %v18877_v43, %v15114_v9  ;;  %v2823_v62 = vmul.f32 %v18878_v52, %v15118_v15  ;;  %v15292_v2 = vadd.f32 %v6010_v47, %v18879_v61  ;;  %v18889_v61 = vld [vmem:[#allocation43_spill] sm:$0xff] }
 0x4db   :  { %v5408_v42 = vmul.f32 %v5344_v13, %v15235_v3  ;;  %v15279_v33 = vadd.f32 %v15229_v37, %v5214_v4  ;;  %v5473_v63 = vmul.f32 0.044715, %v5409_v55  ;;  %v5347_v10 = vmul.f32 %v15267_v22, %v15267_v22 }
 0x4dc   :  { %18880 = vst [vmem:[#allocation155_spill] sm:$0xff] %v15292_v2  ;;  %v15296_v11 = vpop.permute.xlu1 %3310  ;;  %v2826_v21 = vmul.f32 %v18881_v14, %v15130_v44  ;;  %v6015_v9 = vadd.f32 %v14931_v54, %v15248_v53  ;;  %v15308_v45 = vmul.f32 %v18883_v59, %v18882_v5  ;;  %v15311_v47 = vadd.f32 %v6007_v57, %v18884_v38  ;;  %v18886_v54 = vld [vmem:[#allocation484_spill] sm:$0xff]  ;;  %v18892_v5 = vld [vmem:[#allocation487_spill] sm:$0xff] }
 0x4dd   :  { %v5472_v56 = vmul.f32 0.044715, %v5408_v42  ;;  %v5346_v36 = vmul.f32 %v15279_v33, %v15279_v33  ;;  %v5411_v1 = vmul.f32 %v5347_v10, %v15267_v22  ;;  %v5537_v15 = vadd.f32 %v5473_v63, %v15232_v26  ;;  %v18887_v63 = vld [vmem:[#allocation175_spill] sm:$0xff]  ;;  %v18893_v59 = vld [vmem:[#allocation292_spill] sm:$0xff] }
 0x4de   :  { %v15303_v12 = vpop.permute.xlu0 %3305  ;;  %18885 = vst [vmem:[#allocation330_spill] sm:$0xff] %v15311_v47  ;;  %v15316_v4 = vadd.f32 %v2824_v0, %v15123_v48  ;;  %v2825_v31 = vmul.f32 %v18886_v54, %v15139_v35  ;;  %v15321_v55 = vadd.f32 %v2823_v62, %v15126_v8  ;;  %v6325_v42 = vadd.f32 %v15292_v2, %v15311_v47  ;;  %v18894_v38 = vld [vmem:[#allocation488_spill] sm:$0xff]  ;;  %v18895_v54 = vld [vmem:[#allocation174_spill] sm:$0xff] }
 0x4df   :  { %v5410_v13 = vmul.f32 %v5346_v36, %v15279_v33  ;;  %v5536_v44 = vadd.f32 %v5472_v56, %v15235_v3  ;;  %v5475_v58 = vmul.f32 0.044715, %v5411_v1  ;;  %v5601_v40 = vmul.f32 0.7978846, %v5537_v15 }
 0x4e0   :  { %v3884_v49 = vpop.permute.xlu1 %3883  ;;  %v15326_v43 = vadd.f32 %v2826_v21, %v15133_v29  ;;  %v15329_v48 = vadd.f32 %v6015_v9, %v18887_v63  ;;  %v6018_v8 = vadd.f32 %v14946_v6, %v15248_v53  ;;  %v6023_v10 = vadd.f32 %v15248_v53, %v15070_v30  ;;  %v18890_v21 = vld [vmem:[#allocation419_spill] sm:$0xff]  ;;  %v18891_v9 = vld [vmem:[#allocation117_spill] sm:$0xff] }
 0x4e1   :  { %v5474_v57 = vmul.f32 0.044715, %v5410_v13  ;;  %v5600_v46 = vmul.f32 0.7978846, %v5536_v44  ;;  %7951 = vtanh.f32 %v5601_v40  ;;  %v5539_v35 = vadd.f32 %v5475_v58, %v15267_v22  ;;  %v18897_v58 = vld [vmem:[#allocation152_spill] sm:$0xff] }
 0x4e2   :  { %18888 = vst [vmem:[#allocation24_spill] sm:$0xff] %v15329_v48  ;;  %v3879_v0 = vpop.permute.xlu0 %3878  ;;  %v2889_v62 = vadd.f32 %v2825_v31, %v15161_v25  ;;  %v2957_v29 = vmul.f32 %v15152_v23, %v18865_v34  ;;  %v2956_v56 = vmul.f32 %v15152_v23, %v18889_v61  ;;  %v6326_v14 = vadd.f32 %v6325_v42, %v15329_v48  ;;  %v18898_v42 = vld [vmem:[#allocation180_spill] sm:$0xff]  ;;  %v18903_v61 = vld [vmem:[#allocation315_spill] sm:$0xff] }
 0x4e3   :  { %7953 = vtanh.f32 %v5600_v46  ;;  %v5538_v52 = vadd.f32 %v5474_v57, %v15279_v33  ;;  %v5603_v36 = vmul.f32 0.7978846, %v5539_v35  ;;  %v2959_v6 = vmul.f32 %v15152_v23, %v18890_v21  ;;  %v18900_v46 = vld [vmem:[#allocation153_spill] sm:$0xff] }
 0x4e4   :  { %v2958_v30 = vmul.f32 %v15152_v23, %v18891_v9  ;;  %v3894_v1 = vpop.permute.xlu1 %3893  ;;  %v3540_v25 = vmul.f32 %v18893_v59, %v18892_v5  ;;  %v3539_v34 = vmul.f32 %v18893_v59, %v18894_v38  ;;  %v3542_v13 = vmul.f32 %v18893_v59, %v18870_v50  ;;  %v18902_v50 = vld [vmem:[#allocation463_spill] sm:$0xff] }
 0x4e5   :  { %v5602_v15 = vmul.f32 0.7978846, %v5538_v52  ;;  %7955 = vtanh.f32 %v5603_v36  ;;  %v15354_v31 = vadd.f32 %v6018_v8, %v18895_v54  ;;  %v6031_v40 = vadd.f32 %v18897_v58, %v15248_v53  ;;  %v18904_v8 = vld [vmem:[#allocation464_spill] sm:$0xff]  ;;  %v18906_v58 = vld [vmem:[#allocation469_spill] sm:$0xff] }
 0x4e6   :  { %v3889_v44 = vpop.permute.xlu0 %3888  ;;  %v15359_v57 = vadd.f32 %v6023_v10, %v18898_v42  ;;  %v6026_v63 = vadd.f32 %v15248_v53, %v18900_v46  ;;  %v3541_v35 = vmul.f32 %v18893_v59, %v18871_v51  ;;  %v4122_v36 = vmul.f32 %v18903_v61, %v18902_v50  ;;  %v18907_v46 = vld [vmem:[#allocation470_spill] sm:$0xff]  ;;  %v18915_v59 = vld [vmem:[#allocation179_spill] sm:$0xff] }
 0x4e7   :  { %18896 = vst [vmem:[#allocation516_spill] sm:$0xff] %v15354_v31  ;;  %7957 = vtanh.f32 %v5602_v15  ;;  %v15365_v52 = vpop.f32.mrb[12].mxu0  ;;  %v4121_v5 = vmul.f32 %v18903_v61, %v18904_v8  ;;  %v6327_v38 = vadd.f32 %v6326_v14, %v15354_v31  ;;  %v3406_v10 = vmul.f32 %v15256_v32, %v2957_v29  ;;  %v18909_v8 = vld [vmem:[#allocation154_spill] sm:$0xff]  ;;  %v18910_v29 = vld [vmem:[#allocation525_spill] sm:$0xff]  ;;  %v18911_v31 = vld [vmem:[#allocation191_spill] sm:$0xff] }
 0x4e8   :  { %18899 = vst [vmem:[#allocation156_spill] sm:$0xff] %v15359_v57  ;;  %18901 = vst [vmem:[#allocation517_spill] sm:$0xff] %v15365_v52  ;;  %v15373_v54 = vpop.f32.mrb[13].mxu0  ;;  %v4466_v15 = vpop.permute.xlu1 %4465  ;;  %v4124_v42 = vmul.f32 %v18903_v61, %v18906_v58  ;;  %v4123_v51 = vmul.f32 %v18903_v61, %v18907_v46  ;;  %v3405_v2 = vmul.f32 %v15269_v39, %v2956_v56  ;;  %v18914_v39 = vld [vmem:[#allocation527_spill] sm:$0xff]  ;;  %v5664_v41 = vmul.f32 0.5, %v15235_v3 }
 0x4e9   :  { %18905 = vst [vmem:[#allocation157_spill] sm:$0xff] %v15373_v54  ;;  %v15380_v47 = vpop.f32.mrb[14].mxu0  ;;  %v4704_v48 = vmul.f32 %v18909_v8, %v18890_v21  ;;  %v4703_v32 = vmul.f32 %v18909_v8, %v18891_v9  ;;  %v4706_v14 = vmul.f32 %v18909_v8, %v18910_v29  ;;  %v15389_v52 = vadd.f32 %v6031_v40, %v18911_v31 }
 0x4ea   :  { %18908 = vst [vmem:[#allocation336_spill] sm:$0xff] %v15380_v47  ;;  %v4461_v50 = vpop.permute.xlu0 %4460  ;;  %v6328_v58 = vadd.f32 %v6327_v38, %v15359_v57  ;;  %v3989_v46 = vmul.f32 %v3884_v49, %v3540_v25  ;;  %v15392_v61 = vpop.f32.mrb[15].mxu0  ;;  %v4705_v56 = vmul.f32 %v18909_v8, %v18914_v39  ;;  %v15397_v21 = vadd.f32 %v6026_v63, %v18915_v59 }
 0x4eb   :  { %18912 = vst [vmem:[#allocation23_spill] sm:$0xff] %v15389_v52  ;;  %18913 = vst [vmem:[#allocation158_spill] sm:$0xff] %v15392_v61  ;;  %v7952_v47 = vpop.eup %7951  ;;  %v3408_v9 = vmul.f32 %v15296_v11, %v2959_v6  ;;  %v3407_v7 = vmul.f32 %v15303_v12, %v2958_v30  ;;  %v5665_v54 = vmul.f32 0.5, %v15232_v26  ;;  %v3470_v40 = vadd.f32 %v3406_v10, %v15316_v4 }
 0x4ec   :  { %18916 = vst [vmem:[#allocation321_spill] sm:$0xff] %v15397_v21  ;;  %v3988_v38 = vmul.f32 %v3879_v0, %v3539_v34  ;;  %v4571_v49 = vmul.f32 %v4466_v15, %v4122_v36  ;;  %v4476_v25 = vpop.permute.xlu1 %4475  ;;  %v5793_v57 = vadd.f32 1.0, %v7952_v47  ;;  %v3469_v61 = vadd.f32 %v3405_v2, %v15321_v55 }
 0x4ed   :  { %v7954_v31 = vpop.eup %7953  ;;  %v5666_v63 = vmul.f32 0.5, %v15279_v33  ;;  %v4053_v11 = vadd.f32 %v3989_v46, %v3470_v40  ;;  %v4570_v6 = vmul.f32 %v4461_v50, %v4121_v5  ;;  %v5667_v26 = vmul.f32 0.5, %v15267_v22 }
 0x4ee   :  { %v4471_v8 = vpop.permute.xlu0 %4470  ;;  %v5792_v59 = vadd.f32 1.0, %v7954_v31  ;;  %v5857_v12 = vmul.f32 %v5793_v57, %v5665_v54  ;;  %v3472_v4 = vadd.f32 %v3408_v9, %v15326_v43  ;;  %v3471_v0 = vadd.f32 %v3407_v7, %v2889_v62  ;;  %v18918_v9 = vld [vmem:[#allocation496_spill] sm:$0xff] }
 0x4ef   :  { %v7956_v30 = vpop.eup %7955  ;;  %v3991_v34 = vmul.f32 %v3894_v1, %v3542_v13  ;;  %v4052_v10 = vadd.f32 %v3988_v38, %v3469_v61  ;;  %v3990_v2 = vmul.f32 %v3889_v44, %v3541_v35  ;;  %v4635_v55 = vadd.f32 %v4571_v49, %v4053_v11  ;;  %v18917_v1 = vld [vmem:[#allocation304_spill] sm:$0xff] }
 0x4f0   :  { %v5856_v36 = vmul.f32 %v5792_v59, %v5664_v41  ;;  %v5048_v15 = vpop.permute.xlu1 %5047  ;;  %v5795_v3 = vadd.f32 1.0, %v7956_v30  ;;  %v4573_v31 = vmul.f32 %v4476_v25, %v4124_v42  ;;  %v4572_v54 = vmul.f32 %v4471_v8, %v4123_v51  ;;  %v18919_v25 = vld [vmem:[#allocation429_spill] sm:$0xff] }
 0x4f1   :  { %v7958_v47 = vpop.eup %7957  ;;  %v5153_v39 = vmul.f32 %v5048_v15, %v4704_v48  ;;  %v4634_v57 = vadd.f32 %v4570_v6, %v4052_v10  ;;  %v6329_v43 = vadd.f32 %v6328_v58, %v15397_v21  ;;  %v4055_v7 = vadd.f32 %v3991_v34, %v3472_v4  ;;  %v18920_v6 = vld [vmem:[#allocation123_spill] sm:$0xff]  ;;  %v18926_v15 = vld [vmem:[#allocation500_spill] sm:$0xff] }
 0x4f2   :  { %v5043_v33 = vpop.permute.xlu0 %5042  ;;  %v5896_v46 = vpack.c.bf16 %v5857_v12, %v5856_v36  ;;  %v5794_v5 = vadd.f32 1.0, %v7958_v47  ;;  %v5859_v50 = vmul.f32 %v5795_v3, %v5667_v26  ;;  %v6034_v13 = vadd.f32 %v18917_v1, %v15248_v53  ;;  %v18921_v26 = vld [vmem:[#allocation190_spill] sm:$0xff] }
 0x4f3   :  { %v5152_v22 = vmul.f32 %v5043_v33, %v4703_v32  ;;  %v5217_v62 = vadd.f32 %v5153_v39, %v4635_v55  ;;  %v6039_v44 = vadd.f32 %v15248_v53, %v15216_v24  ;;  %v4054_v48 = vadd.f32 %v3990_v2, %v3471_v0  ;;  %v15419_v39 = vld [vmem:[%s16479_s3 + $0x4] ss:$0 sm:$0xff]  ;;  %v18925_v2 = vld [vmem:[#allocation497_spill] sm:$0xff] }
 0x4f4   :  { %7721 = vmatprep.mubr.bf16.mxu0 %v5896_v46  ;;  %v5858_v41 = vmul.f32 %v5794_v5, %v5666_v63  ;;  %v5058_v61 = vpop.permute.xlu1 %5057  ;;  %v4637_v42 = vadd.f32 %v4573_v31, %v4055_v7  ;;  %v2380_v40 = vmul.f32 %v15419_v39, %v18918_v9  ;;  %v2312_v59 = vadd.f32 %v15283_v17, %v18919_v25  ;;  %v18923_v17 = vld [vmem:[#allocation196_spill] sm:$0xff]  ;;  %v18936_v25 = vld [vmem:[#allocation291_spill] sm:$0xff] }
 0x4f5   :  { %v5216_v35 = vadd.f32 %v5152_v22, %v4634_v57  ;;  %v15414_v51 = vadd.f32 %v15229_v37, %v5217_v62  ;;  %v5155_v8 = vmul.f32 %v5058_v61, %v4706_v14  ;;  %v4636_v38 = vadd.f32 %v4572_v54, %v4054_v48  ;;  %v18928_v22 = vld [vmem:[#allocation486_spill] sm:$0xff]  ;;  %v18932_v61 = vld [vmem:[#allocation124_spill] sm:$0xff] }
 0x4f6   :  { %v5053_v32 = vpop.permute.xlu0 %5052  ;;  %v5897_v58 = vpack.c.bf16 %v5859_v50, %v5858_v41  ;;  %v6330_v14 = vadd.f32 %v6329_v43, %v15389_v52  ;;  %v2311_v12 = vadd.f32 %v15308_v45, %v18920_v6  ;;  %v15434_v30 = vadd.f32 %v6034_v13, %v18921_v26  ;;  %v18929_v43 = vld [vmem:[#allocation61_spill] sm:$0xff]  ;;  %v18930_v13 = vld [vmem:[#allocation195_spill] sm:$0xff] }
 0x4f7   :  { %v15424_v24 = vadd.f32 %v15229_v37, %v5216_v35  ;;  %v5154_v49 = vmul.f32 %v5053_v32, %v4705_v56  ;;  %v5349_v63 = vmul.f32 %v15414_v51, %v15414_v51  ;;  %v5219_v11 = vadd.f32 %v5155_v8, %v4637_v42  ;;  %v18933_v42 = vld [vmem:[#allocation290_spill] sm:$0xff] }
 0x4f8   :  { %7722 = vmatmul.mubr.bf16.gmra.mrb[48].mxu0 %v5897_v58  ;;  %18922 = vst [vmem:[#allocation322_spill] sm:$0xff] %v15434_v30  ;;  %v15438_v0 = vpop.permute.xlu1 %3320  ;;  %v15441_v34 = vadd.f32 %v6039_v44, %v18923_v17  ;;  %v6042_v36 = vadd.f32 %v15248_v53, %v15221_v16  ;;  %v15453_v55 = vmul.f32 %v15419_v39, %v18925_v2  ;;  %v18927_v16 = vld [vmem:[#allocation55_spill] sm:$0xff]  ;;  %v18934_v8 = vld [vmem:[#allocation62_spill] sm:$0xff] }
 0x4f9   :  { %v5348_v4 = vmul.f32 %v15424_v24, %v15424_v24  ;;  %v5218_v56 = vadd.f32 %v5154_v49, %v4636_v38  ;;  %v5413_v47 = vmul.f32 %v5349_v63, %v15414_v51  ;;  %v15447_v10 = vadd.f32 %v15229_v37, %v5219_v11  ;;  %v18935_v49 = vld [vmem:[#allocation441_spill] sm:$0xff] }
 0x4fa   :  { %18924 = vst [vmem:[#allocation94_spill] sm:$0xff] %v15441_v34  ;;  %v15449_v45 = vpop.permute.xlu0 %3315  ;;  %v15457_v3 = vmul.f32 %v15419_v39, %v18926_v15  ;;  %v2828_v46 = vmul.f32 %v18927_v16, %v15239_v27  ;;  %v6331_v5 = vadd.f32 %v6330_v14, %v15434_v30  ;;  %v2827_v50 = vmul.f32 %v18928_v22, %v15243_v60  ;;  %v18960_v30 = vld [vmem:[#allocation122_spill] sm:$0xff] }
 0x4fb   :  { %v5412_v31 = vmul.f32 %v5348_v4, %v15424_v24  ;;  %v15461_v33 = vadd.f32 %v15229_v37, %v5218_v56  ;;  %v5477_v57 = vmul.f32 0.044715, %v5413_v47  ;;  %v5351_v54 = vmul.f32 %v15447_v10, %v15447_v10 }
 0x4fc   :  { %v2830_v7 = vmul.f32 %v18929_v43, %v15273_v19  ;;  %v15474_v1 = vpop.permute.xlu1 %3330  ;;  %v6332_v27 = vadd.f32 %v6331_v5, %v15441_v34  ;;  %v15478_v44 = vadd.f32 %v6042_v36, %v18930_v13  ;;  %v15486_v19 = vmul.f32 %v18933_v42, %v18932_v61  ;;  %v18941_v43 = vld [vmem:[#allocation27_spill] sm:$0xff]  ;;  %v18944_v13 = vld [vmem:[#allocation530_spill] sm:$0xff]  ;;  %v18946_v61 = vld [vmem:[#allocation292_spill] sm:$0xff] }
 0x4fd   :  { %v5476_v62 = vmul.f32 0.044715, %v5412_v31  ;;  %v5350_v41 = vmul.f32 %v15461_v33, %v15461_v33  ;;  %v5415_v48 = vmul.f32 %v5351_v54, %v15447_v10  ;;  %v5541_v60 = vadd.f32 %v5477_v57, %v15414_v51 }
 0x4fe   :  { %18931 = vst [vmem:[#allocation159_spill] sm:$0xff] %v15478_v44  ;;  %v15481_v35 = vpop.permute.xlu0 %3325  ;;  %v2829_v32 = vmul.f32 %v18934_v8, %v2380_v40  ;;  %v15493_v14 = vmul.f32 %v18936_v25, %v18935_v49  ;;  %v6047_v63 = vadd.f32 %v15213_v18, %v15248_v53  ;;  %v2892_v4 = vadd.f32 %v2828_v46, %v15260_v28 }
 0x4ff   :  { %v5414_v58 = vmul.f32 %v5350_v41, %v15461_v33  ;;  %v5540_v38 = vadd.f32 %v5476_v62, %v15424_v24  ;;  %v5479_v11 = vmul.f32 0.044715, %v5415_v48  ;;  %v15497_v6 = vpop.f32.mrb[16].mxu0  ;;  %v5605_v26 = vmul.f32 0.7978846, %v5541_v60  ;;  %v18942_v62 = vld [vmem:[#allocation157_spill] sm:$0xff] }
 0x500   :  { %v15501_v56 = vadd.f32 %v2827_v50, %v15263_v20  ;;  %v15503_v17 = vpop.f32.mrb[17].mxu0  ;;  %v3904_v36 = vpop.permute.xlu1 %3903  ;;  %v15505_v31 = vadd.f32 %v2830_v7, %v2312_v59  ;;  %v6333_v16 = vadd.f32 %v6332_v27, %v15478_v44  ;;  %v15511_v54 = vadd.f32 %v2829_v32, %v2311_v12  ;;  %v18938_v20 = vld [vmem:[#allocation527_spill] sm:$0xff]  ;;  %v18939_v59 = vld [vmem:[#allocation204_spill] sm:$0xff] }
 0x501   :  { %v5478_v40 = vmul.f32 0.044715, %v5414_v58  ;;  %v5604_v47 = vmul.f32 0.7978846, %v5540_v38  ;;  %v15508_v5 = vpop.f32.mrb[18].mxu0  ;;  %7959 = vtanh.f32 %v5605_v26  ;;  %v5543_v57 = vadd.f32 %v5479_v11, %v15447_v10  ;;  %v18943_v27 = vld [vmem:[#allocation120_spill] sm:$0xff] }
 0x502   :  { %18937 = vst [vmem:[#allocation160_spill] sm:$0xff] %v15508_v5  ;;  %v3899_v18 = vpop.permute.xlu0 %3898  ;;  %v2961_v28 = vmul.f32 %v15152_v23, %v18910_v29  ;;  %v2960_v46 = vmul.f32 %v15152_v23, %v18938_v20  ;;  %v15517_v22 = vpop.f32.mrb[19].mxu0  ;;  %v15520_v50 = vadd.f32 %v6047_v63, %v18939_v59  ;;  %v6050_v7 = vadd.f32 %v18941_v43, %v15248_v53  ;;  %v18945_v60 = vld [vmem:[#allocation495_spill] sm:$0xff]  ;;  %v18947_v11 = vld [vmem:[#allocation517_spill] sm:$0xff]  ;;  %v18952_v43 = vld [vmem:[#allocation214_spill] sm:$0xff] }
 0x503   :  { %7961 = vtanh.f32 %v5604_v47  ;;  %v6055_v41 = vadd.f32 %v15248_v53, %v18942_v62  ;;  %v5542_v12 = vadd.f32 %v5478_v40, %v15461_v33  ;;  %v2963_v29 = vmul.f32 %v15152_v23, %v18943_v27  ;;  %v18948_v47 = vld [vmem:[#allocation475_spill] sm:$0xff] }
 0x504   :  { %18940 = vst [vmem:[#allocation161_spill] sm:$0xff] %v15520_v50  ;;  %v2962_v48 = vmul.f32 %v15152_v23, %v18944_v13  ;;  %v3544_v42 = vmul.f32 %v18946_v61, %v18945_v60  ;;  %v3914_v8 = vpop.permute.xlu1 %3913  ;;  %v5607_v32 = vmul.f32 0.7978846, %v5543_v57  ;;  %v6334_v58 = vadd.f32 %v6333_v16, %v15520_v50  ;;  %v18949_v20 = vld [vmem:[#allocation315_spill] sm:$0xff]  ;;  %v18955_v50 = vld [vmem:[#allocation478_spill] sm:$0xff] }
 0x505   :  { %v3543_v38 = vmul.f32 %v18946_v61, %v18918_v9  ;;  %v3546_v49 = vmul.f32 %v18946_v61, %v18925_v2  ;;  %v5606_v63 = vmul.f32 0.7978846, %v5542_v12  ;;  %v6063_v26 = vadd.f32 %v18947_v11, %v15248_v53  ;;  %v18950_v57 = vld [vmem:[#allocation203_spill] sm:$0xff]  ;;  %v18953_v12 = vld [vmem:[#allocation476_spill] sm:$0xff] }
 0x506   :  { %v3909_v25 = vpop.permute.xlu0 %3908  ;;  %v3545_v40 = vmul.f32 %v18946_v61, %v18926_v15  ;;  %v4126_v59 = vmul.f32 %v18949_v20, %v18948_v47  ;;  %7963 = vtanh.f32 %v5607_v32  ;;  %v15545_v16 = vadd.f32 %v6050_v7, %v18950_v57  ;;  %v18954_v11 = vld [vmem:[#allocation176_spill] sm:$0xff]  ;;  %v18956_v32 = vld [vmem:[#allocation154_spill] sm:$0xff]  ;;  %v18959_v44 = vld [vmem:[#allocation219_spill] sm:$0xff] }
 0x507   :  { %v15548_v9 = vadd.f32 %v6055_v41, %v18952_v43  ;;  %v3410_v2 = vmul.f32 %v15438_v0, %v2961_v28  ;;  %7965 = vtanh.f32 %v5606_v63  ;;  %v4125_v60 = vmul.f32 %v18949_v20, %v18953_v12  ;;  %v18957_v41 = vld [vmem:[#allocation158_spill] sm:$0xff]  ;;  %v18958_v63 = vld [vmem:[#allocation531_spill] sm:$0xff] }
 0x508   :  { %18951 = vst [vmem:[#allocation26_spill] sm:$0xff] %v15545_v16  ;;  %v4486_v62 = vpop.permute.xlu1 %4485  ;;  %v4128_v15 = vmul.f32 %v18949_v20, %v18954_v11  ;;  %v4127_v47 = vmul.f32 %v18949_v20, %v18955_v50  ;;  %v4708_v7 = vmul.f32 %v18956_v32, %v18943_v27  ;;  %v6335_v57 = vadd.f32 %v6334_v58, %v15545_v16 }
 0x509   :  { %v6058_v43 = vadd.f32 %v15248_v53, %v18957_v41  ;;  %v4707_v28 = vmul.f32 %v18956_v32, %v18944_v13  ;;  %v4710_v12 = vmul.f32 %v18956_v32, %v18958_v63  ;;  %v15567_v11 = vadd.f32 %v6063_v26, %v18959_v44 }
 0x50a   :  { %v4481_v0 = vpop.permute.xlu0 %4480  ;;  %v3409_v50 = vmul.f32 %v15449_v45, %v2960_v46  ;;  %v3993_v34 = vmul.f32 %v3904_v36, %v3544_v42  ;;  %v4709_v27 = vmul.f32 %v18956_v32, %v18960_v30  ;;  %v6336_v16 = vadd.f32 %v6335_v57, %v15548_v9  ;;  %v18961_v45 = vld [vmem:[#allocation213_spill] sm:$0xff] }
 0x50b   :  { %v7960_v58 = vpop.eup %7959  ;;  %v3474_v41 = vadd.f32 %v3410_v2, %v2892_v4  ;;  %v3412_v52 = vmul.f32 %v15474_v1, %v2963_v29  ;;  %v5669_v13 = vmul.f32 0.5, %v15414_v51  ;;  %v3411_v20 = vmul.f32 %v15481_v35, %v2962_v48 }
 0x50c   :  { %v3992_v61 = vmul.f32 %v3899_v18, %v3543_v38  ;;  %v4575_v44 = vmul.f32 %v4486_v62, %v4126_v59  ;;  %v4496_v26 = vpop.permute.xlu1 %4495  ;;  %v5797_v5 = vadd.f32 1.0, %v7960_v58  ;;  %v15577_v36 = vadd.f32 %v6058_v43, %v18961_v45 }
 0x50d   :  { %v7962_v21 = vpop.eup %7961  ;;  %v5668_v42 = vmul.f32 0.5, %v15424_v24  ;;  %v5671_v4 = vmul.f32 0.5, %v15447_v10  ;;  %v3473_v1 = vadd.f32 %v3409_v50, %v15501_v56  ;;  %v4057_v29 = vadd.f32 %v3993_v34, %v3474_v41 }
 0x50e   :  { %v4491_v46 = vpop.permute.xlu0 %4490  ;;  %v5796_v32 = vadd.f32 1.0, %v7962_v21  ;;  %v4574_v51 = vmul.f32 %v4481_v0, %v4125_v60  ;;  %v5861_v2 = vmul.f32 %v5797_v5, %v5669_v13  ;;  %v3476_v35 = vadd.f32 %v3412_v52, %v15505_v31 }
 0x50f   :  { %v3995_v18 = vmul.f32 %v3914_v8, %v3546_v49  ;;  %v5670_v38 = vmul.f32 0.5, %v15461_v33  ;;  %v3475_v62 = vadd.f32 %v3411_v20, %v15511_v54  ;;  %v4056_v57 = vadd.f32 %v3992_v61, %v3473_v1  ;;  %v18962_v8 = vld [vmem:[#allocation336_spill] sm:$0xff] }
 0x510   :  { %v5860_v48 = vmul.f32 %v5796_v32, %v5668_v42  ;;  %v7964_v59 = vpop.eup %7963  ;;  %v3994_v43 = vmul.f32 %v3909_v25, %v3545_v40  ;;  %v4639_v24 = vadd.f32 %v4575_v44, %v4057_v29  ;;  %v5068_v21 = vpop.permute.xlu1 %5067  ;;  %v4577_v10 = vmul.f32 %v4496_v26, %v4128_v15 }
 0x511   :  { %v7966_v58 = vpop.eup %7965  ;;  %v5157_v45 = vmul.f32 %v5068_v21, %v4708_v7  ;;  %v5799_v60 = vadd.f32 1.0, %v7964_v59  ;;  %v4638_v5 = vadd.f32 %v4574_v51, %v4056_v57  ;;  %v4576_v0 = vmul.f32 %v4491_v46, %v4127_v47  ;;  %v18967_v59 = vld [vmem:[#allocation217_spill] sm:$0xff] }
 0x512   :  { %v5063_v56 = vpop.permute.xlu0 %5062  ;;  %v5898_v34 = vpack.c.bf16 %v5861_v2, %v5860_v48  ;;  %v5798_v31 = vadd.f32 1.0, %v7966_v58  ;;  %v6066_v33 = vadd.f32 %v18962_v8, %v15248_v53  ;;  %v4059_v49 = vadd.f32 %v3995_v18, %v3476_v35  ;;  %v18968_v58 = vld [vmem:[#allocation233_spill] sm:$0xff] }
 0x513   :  { %v5156_v52 = vmul.f32 %v5063_v56, %v4707_v28  ;;  %v5221_v32 = vadd.f32 %v5157_v45, %v4639_v24  ;;  %v5863_v54 = vmul.f32 %v5799_v60, %v5671_v4  ;;  %v6337_v61 = vadd.f32 %v6336_v16, %v15577_v36  ;;  %v18963_v16 = vld [vmem:[#allocation54_spill] sm:$0xff]  ;;  %v18964_v4 = vld [vmem:[#allocation125_spill] sm:$0xff]  ;;  %v18969_v60 = vld [vmem:[#allocation48_spill] sm:$0xff] }
 0x514   :  { %7725 = vmatprep.mubr.bf16.mxu0 %v5898_v34  ;;  %v4058_v25 = vadd.f32 %v3994_v43, %v3475_v62  ;;  %v5078_v20 = vpop.permute.xlu1 %5077  ;;  %v5862_v15 = vmul.f32 %v5798_v31, %v5670_v38  ;;  %v6071_v7 = vadd.f32 %v15248_v53, %v15503_v17  ;;  %v4641_v50 = vadd.f32 %v4577_v10, %v4059_v49  ;;  %v18972_v31 = vld [vmem:[#allocation306_spill] sm:$0xff] }
 0x515   :  { %v5220_v40 = vadd.f32 %v5156_v52, %v4638_v5  ;;  %v15591_v47 = vadd.f32 %v15229_v37, %v5221_v32  ;;  %v5159_v28 = vmul.f32 %v5078_v20, %v4710_v12  ;;  %v2314_v42 = vadd.f32 %v15486_v19, %v18963_v16  ;;  %v18965_v12 = vld [vmem:[#allocation194_spill] sm:$0xff]  ;;  %v18970_v5 = vld [vmem:[#allocation305_spill] sm:$0xff]  ;;  %v18974_v20 = vld [vmem:[#allocation215_spill] sm:$0xff] }
 0x516   :  { %v5073_v41 = vpop.permute.xlu0 %5072  ;;  %v4640_v13 = vadd.f32 %v4576_v0, %v4058_v25  ;;  %v5899_v46 = vpack.c.bf16 %v5863_v54, %v5862_v15  ;;  %v2313_v1 = vadd.f32 %v15493_v14, %v18964_v4  ;;  %v2385_v2 = vmul.f32 %v15419_v39, %v18965_v12  ;;  %v18966_v14 = vld [vmem:[#allocation192_spill] sm:$0xff]  ;;  %v18971_v52 = vld [vmem:[#allocation482_spill] sm:$0xff]  ;;  %v18973_v32 = vld [vmem:[#allocation509_spill] sm:$0xff] }
 0x517   :  { %v15594_v44 = vadd.f32 %v15229_v37, %v5220_v40  ;;  %v5158_v26 = vmul.f32 %v5073_v41, %v4709_v27  ;;  %v5353_v17 = vmul.f32 %v15591_v47, %v15591_v47  ;;  %v5223_v29 = vadd.f32 %v5159_v28, %v4641_v50  ;;  %v15602_v51 = vpop.f32.mrb[20].mxu0  ;;  %v18976_v28 = vld [vmem:[#allocation71_spill] sm:$0xff] }
 0x518   :  { %v6338_v35 = vadd.f32 %v6337_v61, %v15567_v11  ;;  %v6086_v48 = vpop.f32.mrb[21].mxu0  ;;  %7726 = vmatmul.mubr.bf16.gmra.mrb[52].mxu0 %v5899_v46  ;;  %v15609_v19 = vpop.permute.xlu1 %3340  ;;  %v2384_v38 = vmul.f32 %v15419_v39, %v18966_v14  ;;  %v15614_v62 = vadd.f32 %v6066_v33, %v18967_v59  ;;  %v15625_v10 = vadd.f32 %v6071_v7, %v18968_v58  ;;  %v18975_v7 = vld [vmem:[#allocation226_spill] sm:$0xff] }
 0x519   :  { %v5352_v27 = vmul.f32 %v15594_v44, %v15594_v44  ;;  %v5222_v18 = vadd.f32 %v5158_v26, %v4640_v13  ;;  %v5417_v57 = vmul.f32 %v5353_v17, %v15591_v47  ;;  %v15618_v43 = vadd.f32 %v15229_v37, %v5223_v29  ;;  %v15620_v24 = vpop.f32.mrb[22].mxu0  ;;  %v18978_v29 = vld [vmem:[#allocation126_spill] sm:$0xff] }
 0x51a   :  { %v15622_v21 = vpop.permute.xlu0 %3335  ;;  %v6074_v45 = vadd.f32 %v15248_v53, %v15517_v22  ;;  %v15633_v34 = vpop.f32.mrb[23].mxu0  ;;  %v2252_v0 = vmul.f32 %v18970_v5, %v18969_v60  ;;  %v2251_v8 = vmul.f32 %v18972_v31, %v18971_v52  ;;  %v2832_v22 = vmul.f32 %v18973_v32, %v15453_v55  ;;  %v18977_v55 = vld [vmem:[#allocation232_spill] sm:$0xff] }
 0x51b   :  { %v5416_v39 = vmul.f32 %v5352_v27, %v15594_v44  ;;  %v15631_v56 = vadd.f32 %v15229_v37, %v5222_v18  ;;  %v5481_v33 = vmul.f32 0.044715, %v5417_v57  ;;  %v5355_v49 = vmul.f32 %v15618_v43, %v15618_v43  ;;  %v18979_v27 = vld [vmem:[#allocation492_spill] sm:$0xff] }
 0x51c   :  { %v6339_v54 = vadd.f32 %v6338_v35, %v15614_v62  ;;  %v3351_v40 = vpop.permute.xlu1 %3350  ;;  %v2831_v15 = vmul.f32 %v18974_v20, %v15457_v3  ;;  %v2834_v50 = vmul.f32 %v18975_v7, %v2385_v2  ;;  %v2833_v41 = vmul.f32 %v18976_v28, %v2384_v38 }
 0x51d   :  { %v5480_v61 = vmul.f32 0.044715, %v5416_v39  ;;  %v5354_v25 = vmul.f32 %v15631_v56, %v15631_v56  ;;  %v5419_v13 = vmul.f32 %v5355_v49, %v15618_v43  ;;  %v15653_v16 = vadd.f32 %v6074_v45, %v18977_v55  ;;  %v18985_v55 = vld [vmem:[#allocation193_spill] sm:$0xff] }
 0x51e   :  { %v3346_v26 = vpop.permute.xlu0 %3345  ;;  %v6340_v46 = vadd.f32 %v6339_v54, %v15625_v10  ;;  %v2316_v35 = vadd.f32 %v2252_v0, %v18978_v29  ;;  %v2315_v3 = vadd.f32 %v2251_v8, %v18979_v27  ;;  %v5545_v2 = vadd.f32 %v5481_v33, %v15591_v47  ;;  %v18987_v29 = vld [vmem:[#allocation168_spill] sm:$0xff]  ;;  %v18989_v27 = vld [vmem:[#allocation177_spill] sm:$0xff] }
 0x51f   :  { %v5418_v4 = vmul.f32 %v5354_v25, %v15631_v56  ;;  %v5544_v17 = vadd.f32 %v5480_v61, %v15594_v44  ;;  %v5483_v18 = vmul.f32 0.044715, %v5419_v13  ;;  %v2896_v38 = vadd.f32 %v2832_v22, %v2314_v42  ;;  %v18981_v22 = vld [vmem:[#allocation160_spill] sm:$0xff] }
 0x520   :  { %v6079_v59 = vadd.f32 %v15497_v6, %v15248_v53  ;;  %v3924_v58 = vpop.permute.xlu1 %3923  ;;  %v2895_v45 = vadd.f32 %v2831_v15, %v2313_v1  ;;  %v2898_v60 = vadd.f32 %v2834_v50, %v2316_v35  ;;  %v5609_v52 = vmul.f32 0.7978846, %v5545_v2  ;;  %v18980_v1 = vld [vmem:[#allocation244_spill] sm:$0xff]  ;;  %v18982_v15 = vld [vmem:[#allocation449_spill] sm:$0xff]  ;;  %v18983_v50 = vld [vmem:[#allocation50_spill] sm:$0xff] }
 0x521   :  { %v5482_v57 = vmul.f32 0.044715, %v5418_v4  ;;  %v5608_v39 = vmul.f32 0.7978846, %v5544_v17  ;;  %v5547_v31 = vadd.f32 %v5483_v18, %v15618_v43  ;;  %v2897_v49 = vadd.f32 %v2833_v41, %v2315_v3  ;;  %v18986_v4 = vld [vmem:[#allocation185_spill] sm:$0xff]  ;;  %v18988_v35 = vld [vmem:[#allocation315_spill] sm:$0xff] }
 0x522   :  { %v3919_v5 = vpop.permute.xlu0 %3918  ;;  %v6341_v0 = vadd.f32 %v6340_v46, %v15653_v16  ;;  %v2965_v42 = vmul.f32 %v15152_v23, %v18958_v63  ;;  %v2964_v6 = vmul.f32 %v15152_v23, %v18960_v30  ;;  %v15670_v32 = vadd.f32 %v6079_v59, %v18980_v1  ;;  %v18984_v30 = vld [vmem:[#allocation292_spill] sm:$0xff]  ;;  %v18990_v3 = vld [vmem:[#allocation178_spill] sm:$0xff]  ;;  %v18991_v2 = vld [vmem:[#allocation241_spill] sm:$0xff] }
 0x523   :  { %7967 = vtanh.f32 %v5608_v39  ;;  %v5546_v8 = vadd.f32 %v5482_v57, %v15631_v56  ;;  %v5611_v33 = vmul.f32 0.7978846, %v5547_v31  ;;  %v6082_v54 = vadd.f32 %v18981_v22, %v15248_v53  ;;  %v18993_v1 = vld [vmem:[#allocation167_spill] sm:$0xff] }
 0x524   :  { %7969 = vtanh.f32 %v5609_v52  ;;  %v6087_v61 = vadd.f32 %v15248_v53, %v6086_v48  ;;  %v3934_v25 = vpop.permute.xlu1 %3933  ;;  %v2967_v7 = vmul.f32 %v15152_v23, %v18982_v15  ;;  %v2966_v63 = vmul.f32 %v15152_v23, %v18983_v50 }
 0x525   :  { %v5610_v20 = vmul.f32 0.7978846, %v5546_v8  ;;  %v3548_v28 = vmul.f32 %v18984_v30, %v18965_v12  ;;  %7971 = vtanh.f32 %v5611_v33  ;;  %v6342_v13 = vadd.f32 %v6341_v0, %v15670_v32 }
 0x526   :  { %v3929_v41 = vpop.permute.xlu0 %3928  ;;  %v3547_v46 = vmul.f32 %v18984_v30, %v18966_v14  ;;  %v3550_v48 = vmul.f32 %v18984_v30, %v18985_v55  ;;  %v3549_v17 = vmul.f32 %v18984_v30, %v18986_v4  ;;  %v4130_v23 = vmul.f32 %v18988_v35, %v18987_v29  ;;  %v18992_v14 = vld [vmem:[#allocation253_spill] sm:$0xff] }
 0x527   :  { %7973 = vtanh.f32 %v5610_v20  ;;  %v4129_v12 = vmul.f32 %v18988_v35, %v18989_v27  ;;  %v4132_v18 = vmul.f32 %v18988_v35, %v18990_v3  ;;  %v15695_v59 = vadd.f32 %v6082_v54, %v18991_v2  ;;  %v18994_v20 = vld [vmem:[#allocation154_spill] sm:$0xff] }
 0x528   :  { %v15698_v57 = vadd.f32 %v6087_v61, %v18992_v14  ;;  %v3414_v39 = vmul.f32 %v15609_v19, %v2965_v42  ;;  %v3413_v52 = vmul.f32 %v15622_v21, %v2964_v6  ;;  %v4506_v31 = vpop.permute.xlu1 %4505  ;;  %v6090_v0 = vadd.f32 %v15248_v53, %v15633_v34  ;;  %v18995_v42 = vld [vmem:[#allocation51_spill] sm:$0xff] }
 0x529   :  { %v3416_v8 = vmul.f32 %v3351_v40, %v2967_v7  ;;  %v4131_v22 = vmul.f32 %v18988_v35, %v18993_v1  ;;  %v4712_v54 = vmul.f32 %v18994_v20, %v18982_v15  ;;  %v6343_v30 = vadd.f32 %v6342_v13, %v15695_v59  ;;  %v18996_v7 = vld [vmem:[#allocation473_spill] sm:$0xff] }
 0x52a   :  { %v4501_v33 = vpop.permute.xlu0 %4500  ;;  %v3415_v61 = vmul.f32 %v3346_v26, %v2966_v63  ;;  %v4711_v19 = vmul.f32 %v18994_v20, %v18983_v50  ;;  %v4714_v21 = vmul.f32 %v18994_v20, %v18995_v42  ;;  %v3997_v6 = vmul.f32 %v3924_v58, %v3548_v28  ;;  %v18997_v50 = vld [vmem:[#allocation252_spill] sm:$0xff] }
 0x52b   :  { %v5672_v34 = vmul.f32 0.5, %v15594_v44  ;;  %v5673_v40 = vmul.f32 0.5, %v15591_v47  ;;  %v4713_v55 = vmul.f32 %v18994_v20, %v18996_v7  ;;  %v6344_v15 = vadd.f32 %v6343_v30, %v15698_v57 }
 0x52c   :  { %v3478_v29 = vadd.f32 %v3414_v39, %v2896_v38  ;;  %v3477_v13 = vadd.f32 %v3413_v52, %v2895_v45  ;;  %v3996_v26 = vmul.f32 %v3919_v5, %v3547_v46  ;;  %v4516_v63 = vpop.permute.xlu1 %4515  ;;  %v15719_v27 = vadd.f32 %v6090_v0, %v18997_v50 }
 0x52d   :  { %v7968_v4 = vpop.eup %7967  ;;  %v3480_v3 = vadd.f32 %v3416_v8, %v2898_v60  ;;  %v4579_v58 = vmul.f32 %v4506_v31, %v4130_v23  ;;  %v3479_v2 = vadd.f32 %v3415_v61, %v2897_v49  ;;  %v4578_v47 = vmul.f32 %v4501_v33, %v4129_v12 }
 0x52e   :  { %v7970_v35 = vpop.eup %7969  ;;  %v4511_v28 = vpop.permute.xlu0 %4510  ;;  %v5800_v44 = vadd.f32 1.0, %v7968_v4  ;;  %v5674_v1 = vmul.f32 0.5, %v15631_v56  ;;  %v4061_v42 = vadd.f32 %v3997_v6, %v3478_v29  ;;  %v3999_v30 = vmul.f32 %v3934_v25, %v3550_v48 }
 0x52f   :  { %v5801_v14 = vadd.f32 1.0, %v7970_v35  ;;  %v7972_v20 = vpop.eup %7971  ;;  %v15722_v38 = vpop.f32.mrb[24].mxu0  ;;  %v5675_v5 = vmul.f32 0.5, %v15618_v43  ;;  %v4060_v39 = vadd.f32 %v3996_v26, %v3477_v13  ;;  %v3998_v52 = vmul.f32 %v3929_v41, %v3549_v17 }
 0x530   :  { %v5864_v45 = vmul.f32 %v5800_v44, %v5672_v34  ;;  %v6102_v60 = vpop.f32.mrb[25].mxu0  ;;  %v5088_v23 = vpop.permute.xlu1 %5087  ;;  %v5803_v0 = vadd.f32 1.0, %v7972_v20  ;;  %v4643_v49 = vadd.f32 %v4579_v58, %v4061_v42  ;;  %v4581_v12 = vmul.f32 %v4516_v63, %v4132_v18 }
 0x531   :  { %v7974_v46 = vpop.eup %7973  ;;  %v5865_v31 = vmul.f32 %v5801_v14, %v5673_v40  ;;  %v15725_v8 = vpop.f32.mrb[26].mxu0  ;;  %v5161_v56 = vmul.f32 %v5088_v23, %v4712_v54  ;;  %v4642_v25 = vadd.f32 %v4578_v47, %v4060_v39  ;;  %v4580_v48 = vmul.f32 %v4511_v28, %v4131_v22  ;;  %v18998_v28 = vld [vmem:[#allocation268_spill] sm:$0xff] }
 0x532   :  { %v5083_v33 = vpop.permute.xlu0 %5082  ;;  %v5802_v61 = vadd.f32 1.0, %v7974_v46  ;;  %v6105_v34 = vpop.f32.mrb[27].mxu0  ;;  %v6095_v43 = vadd.f32 %v15602_v51, %v15248_v53  ;;  %v4063_v41 = vadd.f32 %v3999_v30, %v3480_v3  ;;  %v6098_v40 = vadd.f32 %v15620_v24, %v15248_v53 }
 0x533   :  { %v5160_v6 = vmul.f32 %v5083_v33, %v4711_v19  ;;  %v5900_v7 = vpack.c.bf16 %v5865_v31, %v5864_v45  ;;  %v5225_v17 = vadd.f32 %v5161_v56, %v4643_v49  ;;  %v4062_v18 = vadd.f32 %v3998_v52, %v3479_v2 }
 0x534   :  { %v5866_v4 = vmul.f32 %v5802_v61, %v5674_v1  ;;  %v5098_v54 = vpop.permute.xlu1 %5097  ;;  %v5867_v13 = vmul.f32 %v5803_v0, %v5675_v5  ;;  %v6345_v26 = vadd.f32 %v6344_v15, %v15719_v27  ;;  %v4645_v22 = vadd.f32 %v4581_v12, %v4063_v41  ;;  %v19000_v5 = vld [vmem:[#allocation279_spill] sm:$0xff] }
 0x535   :  { %v5224_v29 = vadd.f32 %v5160_v6, %v4642_v25  ;;  %7729 = vmatprep.mubr.bf16.mxu0 %v5900_v7  ;;  %v15733_v19 = vadd.f32 %v15229_v37, %v5225_v17  ;;  %v5163_v63 = vmul.f32 %v5098_v54, %v4714_v21  ;;  %v4644_v51 = vadd.f32 %v4580_v48, %v4062_v18  ;;  %v19001_v25 = vld [vmem:[#allocation278_spill] sm:$0xff] }
 0x536   :  { %v5093_v35 = vpop.permute.xlu0 %5092  ;;  %v5901_v58 = vpack.c.bf16 %v5867_v13, %v5866_v4  ;;  %v15737_v24 = vadd.f32 %v6095_v43, %v18998_v28  ;;  %v6103_v44 = vadd.f32 %v15248_v53, %v6102_v60  ;;  %v6106_v52 = vadd.f32 %v15248_v53, %v6105_v34 }
 0x537   :  { %v5292_v50 = vadd.f32 %v15229_v37, %v5224_v29  ;;  %v5162_v3 = vmul.f32 %v5093_v35, %v4713_v55  ;;  %v5357_v2 = vmul.f32 %v15733_v19, %v15733_v19  ;;  %v5227_v15 = vadd.f32 %v5163_v63, %v4645_v22  ;;  %v18999_v55 = vld [vmem:[#allocation267_spill] sm:$0xff]  ;;  %v19002_v29 = vld [vmem:[#allocation285_spill] sm:$0xff]  ;;  %v19003_v63 = vld [vmem:[#allocation284_spill] sm:$0xff] }
 0x538   :  { %7730 = vmatmul.mubr.bf16.gmra.mrb[56].mxu0 %v5901_v58  ;;  %v6346_v21 = vadd.f32 %v6345_v26, %v15737_v24  ;;  %v15746_v42 = vadd.f32 %v6098_v40, %v18999_v55  ;;  %v15750_v46 = vadd.f32 %v6103_v44, %v19000_v5  ;;  %v6111_v34 = vadd.f32 %v15722_v38, %v15248_v53  ;;  %v15775_v44 = vld [vmem:[%s16477_s1 + $0x3] ss:$0 sm:$0xff] }
 0x539   :  { %v5356_v47 = vmul.f32 %v5292_v50, %v5292_v50  ;;  %v5226_v14 = vadd.f32 %v5162_v3, %v4644_v51  ;;  %v5421_v1 = vmul.f32 %v5357_v2, %v15733_v19  ;;  %v5295_v20 = vadd.f32 %v15229_v37, %v5227_v15  ;;  %v19004_v2 = vld [vmem:[#allocation300_spill] sm:$0xff] }
 0x53a   :  { %v6347_v0 = vadd.f32 %v6346_v21, %v15746_v42  ;;  %v15763_v54 = vadd.f32 %v6111_v34, %v19002_v29  ;;  %v6114_v13 = vadd.f32 %v15725_v8, %v15248_v53 }
 0x53b   :  { %v5420_v30 = vmul.f32 %v5356_v47, %v5292_v50  ;;  %v5294_v45 = vadd.f32 %v15229_v37, %v5226_v14  ;;  %v5485_v39 = vmul.f32 0.044715, %v5421_v1  ;;  %v5359_v60 = vmul.f32 %v5295_v20, %v5295_v20 }
 0x53c   :  { %v6348_v61 = vadd.f32 %v6347_v0, %v15750_v46  ;;  %v15757_v37 = vadd.f32 %v6106_v52, %v19001_v25  ;;  %v15769_v35 = vadd.f32 %v6114_v13, %v19003_v63  ;;  %v5676_v1 = vmul.f32 0.5, %v5292_v50  ;;  %v19006_v0 = vld [vmem:[#allocation312_spill] sm:$0xff]  ;;  %v19007_v25 = vld [vmem:[#allocation311_spill] sm:$0xff] }
 0x53d   :  { %v5484_v23 = vmul.f32 0.044715, %v5420_v30  ;;  %v5358_v31 = vmul.f32 %v5294_v45, %v5294_v45  ;;  %v5423_v49 = vmul.f32 %v5359_v60, %v5295_v20  ;;  %v5549_v12 = vadd.f32 %v5485_v39, %v15733_v19  ;;  %v19005_v39 = vld [vmem:[#allocation299_spill] sm:$0xff] }
 0x53e   :  { %v6349_v4 = vadd.f32 %v6348_v61, %v15757_v37 }
 0x53f   :  { %v5422_v56 = vmul.f32 %v5358_v31, %v5294_v45  ;;  %v5548_v33 = vadd.f32 %v5484_v23, %v5292_v50  ;;  %v5487_v48 = vmul.f32 0.044715, %v5423_v49  ;;  %v5613_v6 = vmul.f32 0.7978846, %v5549_v12 }
 0x540   :  { %v6350_v26 = vadd.f32 %v6349_v4, %v15763_v54 }
 0x541   :  { %v5486_v7 = vmul.f32 0.044715, %v5422_v56  ;;  %v5612_v43 = vmul.f32 0.7978846, %v5548_v33  ;;  %7975 = vtanh.f32 %v5613_v6  ;;  %v5551_v41 = vadd.f32 %v5487_v48, %v5295_v20 }
 0x542   :  { %v6351_v47 = vadd.f32 %v6350_v26, %v15769_v35  ;;  %v5678_v33 = vmul.f32 0.5, %v5294_v45 }
 0x543   :  { %7977 = vtanh.f32 %v5612_v43  ;;  %v5550_v17 = vadd.f32 %v5486_v7, %v5294_v45  ;;  %v5615_v40 = vmul.f32 0.7978846, %v5551_v41 }
 0x545   :  { %v5614_v18 = vmul.f32 0.7978846, %v5550_v17  ;;  %7979 = vtanh.f32 %v5615_v40 }
 0x547   :  { %7981 = vtanh.f32 %v5614_v18  ;;  %v7703_v22 = vpop.f32.mrb[28].mxu0 }
 0x548   :  { %v6118_v38 = vpop.f32.mrb[29].mxu0  ;;  %v6127_v8 = vadd.f32 %v15775_v44, %v7703_v22 }
 0x549   :  { %v6119_v51 = vadd.f32 %v15248_v53, %v6118_v38  ;;  %v7704_v3 = vpop.f32.mrb[30].mxu0  ;;  %v5677_v53 = vmul.f32 0.5, %v15733_v19  ;;  %v5679_v19 = vmul.f32 0.5, %v5295_v20  ;;  %v15801_v38 = vld [vmem:[%s16481_s5] sm:$0x1]  ;;  %s7072_s5 = sshll.u32 %s8102_s18, 4  ;;  %s7073_s5 = int_to_ptr.vmem [resolvable:$true] %s7072_s5 }
 0x54a   :  { %v6121_v58 = vpop.f32.mrb[31].mxu0  ;;  %v6130_v5 = vadd.f32 %v15775_v44, %v7704_v3  ;;  %v15790_v49 = vadd.f32 %v6127_v8, %v19006_v0  ;;  %s8077_s25 = scalar_lea.vmem %s7073_s5, 8192  ;;  %p8082_p1 = scmp.lt.s32.totalorder %s7073_s5, %s7073_s5 }
 0x54b   :  { %v7976_v28 = vpop.eup %7975  ;;  %v15779_v15 = vadd.f32 %v6119_v51, %v19004_v2  ;;  %v6122_v14 = vadd.f32 %v15775_v44, %v6121_v58  ;;  %p8078_p0 = scmp.ne.s32.totalorder %s7073_s5, %s8077_s25  ;;  %p8083_p2 = scmp.lt.s32.totalorder %s8077_s25, %s8077_s25 }
 0x54c   :  { %v5805_v55 = vadd.f32 1.0, %v7976_v28  ;;  %v15794_v48 = vadd.f32 %v6130_v5, %v19007_v25  ;;  %v19009_v25 = vld [vmem:[#allocation318_spill] sm:$0xff] }
 0x54d   :  { %v7978_v21 = vpop.eup %7977  ;;  %v6352_v30 = vadd.f32 %v6351_v47, %v15779_v15  ;;  %v15787_v52 = vadd.f32 %v6122_v14, %v19005_v39  ;;  %p8084_p3 = por %p8083_p2, %p8082_p1 }
 0x54e   :  { %v5804_v60 = vadd.f32 1.0, %v7978_v21  ;;  %v5869_v23 = vmul.f32 %v5805_v55, %v5677_v53 }
 0x54f   :  { %v7980_v31 = vpop.eup %7979  ;;  %v6353_v12 = vadd.f32 %v6352_v30, %v15787_v52  ;;  %p8085_p4 = pnand %p8084_p3, %p8078_p0 }
 0x550   :  { %v5868_v56 = vmul.f32 %v5804_v60, %v5676_v1  ;;  %v5807_v61 = vadd.f32 1.0, %v7980_v31 }
 0x551   :  { %v7982_v50 = vpop.eup %7981  ;;  %v6354_v6 = vadd.f32 %v6353_v12, %v15790_v49 }
 0x552   :  { %v5902_v7 = vpack.c.bf16 %v5869_v23, %v5868_v56  ;;  %v5806_v43 = vadd.f32 1.0, %v7982_v50  ;;  %v5871_v34 = vmul.f32 %v5807_v61, %v5679_v19 }
 0x553   :  { %v6355_v41 = vadd.f32 %v6354_v6, %v15794_v48 }
 0x554   :  { %7733 = vmatprep.mubr.bf16.mxu0 %v5902_v7  ;;  %v5870_v17 = vmul.f32 %v5806_v43, %v5678_v33  ;;  %v19008_v33 = vld [vmem:[#allocation317_spill] sm:$0xff]  ;;  %v19010_v43 = vld [vmem:[#allocation344_spill] sm:$0xff] }
 0x555   :  { %v6356_v4 = vrot.slane %v6355_v41, 4 }
 0x556   :  { %v5903_v40 = vpack.c.bf16 %v5871_v34, %v5870_v17 }
 0x557   :  { %v6357_v18 = vadd.f32 %v6356_v4, %v6355_v41 }
 0x558   :  { %7734 = vmatmul.mubr.bf16.gmra.mrb[60].mxu0 %v5903_v40  ;;  %v19011_v40 = vld [vmem:[#allocation340_spill] sm:$0xff] }
 0x559   :  { %v6358_v29 = vrot.slane %v6357_v18, 2 }
 0x55b   :  { %v6359_v45 = vadd.f32 %v6358_v29, %v6357_v18  ;;  %v19012_v29 = vld [vmem:[#allocation346_spill] sm:$0xff] }
 0x55d   :  { %v6360_v20 = vrot.slane %v6359_v45, 1 }
 0x55f   :  { %v7707_v13 = vpop.f32.mrb[32].mxu0  ;;  %v6361_v26 = vadd.f32 %v6360_v20, %v6359_v45 }
 0x560   :  { %v6134_v22 = vpop.f32.mrb[33].mxu0  ;;  %v6143_v61 = vadd.f32 %v15775_v44, %v7707_v13 }
 0x561   :  { %v7708_v63 = vpop.f32.mrb[34].mxu0  ;;  %v6362_v51 = vmul.f32 0.00390625, %v6361_v26  ;;  %v6135_v12 = vadd.f32 %v15775_v44, %v6134_v22  ;;  %v19013_v22 = vld [vmem:[#allocation345_spill] sm:$0xff] }
 0x562   :  { %v6137_v3 = vpop.f32.mrb[35].mxu0  ;;  %v15821_v34 = vadd.f32 %v6143_v61, %v19010_v43  ;;  %v6146_v41 = vadd.f32 %v15775_v44, %v7708_v63  ;;  %v19016_v61 = vld [vmem:[#allocation372_spill] sm:$0xff] }
 0x563   :  { %v6364_v58 = vmul.f32 %v15801_v38, %v6362_v51  ;;  %v6138_v23 = vadd.f32 %v15775_v44, %v6137_v3  ;;  %v15816_v6 = vadd.f32 %v6135_v12, %v19009_v25  ;;  %v19015_v12 = vld [vmem:[#allocation359_spill] sm:$0xff] }
 0x564   :  { %v15827_v18 = vadd.f32 %v6146_v41, %v19011_v40  ;;  %v19017_v41 = vld [vmem:[#allocation371_spill] sm:$0xff] }
 0x565   :  { %v6366_v28 = vsel %vm6365_vm2, %v6364_v58, 0.0  ;;  %v15812_v19 = vadd.f32 %v6138_v23, %v19008_v33  ;;  %v19014_v58 = vld [vmem:[#allocation363_spill] sm:$0xff] }
 0x566   :  { %6367 = vadd.xlane.f32.xlu0 %v6366_v28 }
 0x567   :  { %v6700_v7 = vadd.f32 %v15812_v19, %v15816_v6 }
 0x569   :  { %v6701_v4 = vadd.f32 %v6700_v7, %v15821_v34 }
 0x56b   :  { %v6702_v13 = vadd.f32 %v6701_v4, %v15827_v18 }
 0x579   :  { %v7711_v8 = vpop.f32.mrb[36].mxu0 }
 0x57a   :  { %v6150_v2 = vpop.f32.mrb[37].mxu0  ;;  %v6159_v63 = vadd.f32 %v15775_v44, %v7711_v8 }
 0x57b   :  { %v7712_v47 = vpop.f32.mrb[38].mxu0  ;;  %v6151_v17 = vadd.f32 %v15775_v44, %v6150_v2 }
 0x57c   :  { %v6153_v14 = vpop.f32.mrb[39].mxu0  ;;  %v15841_v28 = vadd.f32 %v6159_v63, %v19014_v58  ;;  %v6162_v2 = vadd.f32 %v15775_v44, %v7712_v47  ;;  %v15867_v63 = vld [vmem:[#allocation2] sm:$0x1] }
 0x57d   :  { %v15830_v45 = vadd.f32 %v6151_v17, %v19012_v29  ;;  %v6154_v20 = vadd.f32 %v15775_v44, %v6153_v14 }
 0x57e   :  { %v15847_v33 = vadd.f32 %v6162_v2, %v19015_v12  ;;  %v19019_v2 = vld [vmem:[#allocation381_spill] sm:$0xff] }
 0x57f   :  { %v6703_v26 = vadd.f32 %v6702_v13, %v15830_v45  ;;  %v15836_v51 = vadd.f32 %v6154_v20, %v19013_v22  ;;  %v19018_v13 = vld [vmem:[#allocation385_spill] sm:$0xff] }
 0x581   :  { %v6704_v3 = vadd.f32 %v6703_v26, %v15836_v51 }
 0x583   :  { %v6705_v14 = vadd.f32 %v6704_v3, %v15841_v28 }
 0x585   :  { %v6706_v8 = vadd.f32 %v6705_v14, %v15847_v33 }
 0x595   :  { %v7715_v21 = vpop.f32.mrb[40].mxu0 }
 0x596   :  { %v6166_v1 = vpop.f32.mrb[41].mxu0 }
 0x597   :  { %v7716_v53 = vpop.f32.mrb[42].mxu0  ;;  %v6167_v23 = vadd.f32 %v15775_v44, %v6166_v1  ;;  %v6175_v1 = vadd.f32 %v15775_v44, %v7715_v21 }
 0x598   :  { %v6169_v55 = vpop.f32.mrb[43].mxu0 }
 0x599   :  { %v15850_v25 = vadd.f32 %v6167_v23, %v19016_v61  ;;  %v6170_v7 = vadd.f32 %v15775_v44, %v6169_v55  ;;  %v15863_v26 = vadd.f32 %v6175_v1, %v19018_v13  ;;  %v6178_v55 = vadd.f32 %v15775_v44, %v7716_v53  ;;  %v19020_v23 = vld [vmem:[#allocation391_spill] sm:$0xff] }
 0x59b   :  { %v6707_v43 = vadd.f32 %v6706_v8, %v15850_v25  ;;  %v15856_v17 = vadd.f32 %v6170_v7, %v19017_v41  ;;  %v15871_v21 = vadd.f32 %v6178_v55, %v19019_v2  ;;  %v19021_v8 = vld [vmem:[#allocation390_spill] sm:$0xff]  ;;  %v19026_v2 = vld [vmem:[#allocation425_spill] sm:$0xff] }
 0x59d   :  { %v6708_v29 = vadd.f32 %v6707_v43, %v15856_v17 }
 0x59f   :  { %v6709_v3 = vadd.f32 %v6708_v29, %v15863_v26  ;;  %v19022_v29 = vld [vmem:[#allocation398_spill] sm:$0xff] }
 0x5a1   :  { %v6710_v7 = vadd.f32 %v6709_v3, %v15871_v21  ;;  %v19024_v3 = vld [vmem:[#allocation396_spill] sm:$0xff] }
 0x5ad   :  { %v7719_v30 = vpop.f32.mrb[44].mxu0 }
 0x5ae   :  { %v6182_v5 = vpop.f32.mrb[45].mxu0  ;;  %v6191_v41 = vadd.f32 %v15775_v44, %v7719_v30 }
 0x5af   :  { %v7720_v39 = vpop.f32.mrb[46].mxu0  ;;  %v6183_v22 = vadd.f32 %v15775_v44, %v6182_v5 }
 0x5b0   :  { %v6185_v60 = vpop.f32.mrb[47].mxu0  ;;  %v15886_v13 = vadd.f32 %v6191_v41, %v19022_v29  ;;  %v19030_v41 = vld [vmem:[#allocation431_spill] sm:$0xff] }
 0x5b1   :  { %v15874_v14 = vadd.f32 %v6183_v22, %v19020_v23  ;;  %v6186_v12 = vadd.f32 %v15775_v44, %v6185_v60  ;;  %v6194_v60 = vadd.f32 %v15775_v44, %v7720_v39 }
 0x5b2   :  { %19023 = vst [vmem:[#allocation331_spill] sm:$0xff] %v15886_v13 }
 0x5b3   :  { %v6711_v5 = vadd.f32 %v6710_v7, %v15874_v14  ;;  %v15881_v43 = vadd.f32 %v6186_v12, %v19021_v8 }
 0x5b5   :  { %v6712_v1 = vadd.f32 %v6711_v5, %v15881_v43 }
 0x5b7   :  { %v6713_v22 = vadd.f32 %v6712_v1, %v15886_v13 }
 0x5cb   :  { %v15806_v31 = vpop.f32.mrb[48].mxu0 }
 0x5cc   :  { %v6198_v0 = vpop.f32.mrb[49].mxu0 }
 0x5cd   :  { %v15809_v56 = vpop.f32.mrb[50].mxu0  ;;  %v6199_v55 = vadd.f32 %v15775_v44, %v6198_v0  ;;  %v19028_v0 = vld [vmem:[#allocation420_spill] sm:$0xff] }
 0x5ce   :  { %v6201_v50 = vpop.f32.mrb[51].mxu0  ;;  %v6210_v29 = vadd.f32 %v15775_v44, %v15809_v56  ;;  %v19034_v56 = vld [vmem:[#allocation444_spill] sm:$0xff] }
 0x5cf   :  { %v15895_v23 = vadd.f32 %v6199_v55, %v19026_v2  ;;  %v6202_v12 = vadd.f32 %v15775_v44, %v6201_v50  ;;  %v15915_v50 = vld [vmem:[%s16483_s7 + $0x8] sm:$0xff]   ;;  %v15929_v55 = vld [vmem:[%s16483_s7 + $0x10] sm:$0xff]  }
 0x5d1   :  { %19027 = vst [vmem:[#allocation165_spill] sm:$0xff] %v15895_v23  ;;  %v15906_v7 = vadd.f32 %v6202_v12, %v19028_v0  ;;  %v19032_v12 = vld [vmem:[#allocation430_spill] sm:$0xff]  ;;  %v15944_v0 = vld [vmem:[%s16483_s7 + $0x18] sm:$0xff]  }
 0x5d3   :  { %19029 = vst [vmem:[#allocation97_spill] sm:$0xff] %v15906_v7 }
 0x5eb   :  { %v7727_v47 = vpop.f32.mrb[52].mxu0 }
 0x5ec   :  { %v6214_v4 = vpop.f32.mrb[53].mxu0 }
 0x5ed   :  { %v15859_v40 = vpop.f32.mrb[54].mxu0 }
 0x5ee   :  { %v6217_v20 = vpop.f32.mrb[55].mxu0 }
 0x5f3   :  { %v6368_v58 = vpop.xlane.xlu0 %6367 }
 0x5f4   :  { %v6370_v61 = vadd.f32 %v15867_v63, %v6368_v58  ;;  %v15892_v58 = vadd.f32 %v6194_v60, %v19024_v3 }
 0x5f6   :  { %v6371_v53 = vmax.f32 %v6370_v61, 0.0  ;;  %19025 = vst [vmem:[#allocation164_spill] sm:$0xff] %v15892_v58  ;;  %v6714_v30 = vadd.f32 %v6713_v22, %v15892_v58  ;;  %v15902_v61 = vld [vmem:[%s16483_s7] sm:$0xff]  }
 0x5f7   :  { %7737 = vmatprep.subr.bf16.mxu1 %v15902_v61  ;;  %v19049_v58 = vld [vmem:[#allocation465_spill] sm:$0xff] }
 0x5f8   :  { %6375 = vperm.xlu0 %7837, %v6371_v53   ;;  %v6715_v39 = vadd.f32 %v6714_v30, %v15895_v23  ;;  %7738 = vmatpush3.bf16.msra.mxu1 %v15902_v61  ;;  %v6207_v53 = vadd.f32 %v15775_v44, %v15806_v31  ;;  %v6215_v31 = vadd.f32 %v15775_v44, %v6214_v4 }
 0x5f9   :  { %7739 = vmatprep.subr.bf16.mxu1 %v15915_v50  ;;  %v15935_v30 = vadd.f32 %v6210_v29, %v19032_v12  ;;  %v6218_v4 = vadd.f32 %v15775_v44, %v6217_v20  ;;  %v15956_v20 = vld [vmem:[%s16483_s7 + $0x20] sm:$0xff]   ;;  %v15965_v12 = vld [vmem:[%s16483_s7 + $0x28] sm:$0xff]  }
 0x5fa   :  { %v6716_v5 = vadd.f32 %v6715_v39, %v15906_v7  ;;  %v15921_v1 = vadd.f32 %v6207_v53, %v19030_v41  ;;  %v15938_v39 = vadd.f32 %v6215_v31, %v19034_v56  ;;  %v19036_v41 = vld [vmem:[#allocation443_spill] sm:$0xff]  ;;  %v6223_v31 = vadd.f32 %v15775_v44, %v7727_v47  ;;  %v19038_v56 = vld [vmem:[#allocation452_spill] sm:$0xff] }
 0x5fb   :  { %19033 = vst [vmem:[#allocation31_spill] sm:$0xff] %v15935_v30  ;;  %v15951_v29 = vadd.f32 %v6218_v4, %v19036_v41 }
 0x5fc   :  { %7740 = vmatpush3.bf16.msra.mxu1 %v15915_v50  ;;  %19031 = vst [vmem:[#allocation172_spill] sm:$0xff] %v15921_v1  ;;  %v6717_v3 = vadd.f32 %v6716_v5, %v15921_v1  ;;  %19035 = vst [vmem:[#allocation98_spill] sm:$0xff] %v15938_v39  ;;  %v15968_v4 = vadd.f32 %v6223_v31, %v19038_v56  ;;  %v19042_v31 = vld [vmem:[#allocation457_spill] sm:$0xff] }
 0x5fd   :  { %7741 = vmatprep.subr.bf16.mxu1 %v15929_v55  ;;  %19037 = vst [vmem:[#allocation173_spill] sm:$0xff] %v15951_v29 }
 0x5fe   :  { %v6718_v53 = vadd.f32 %v6717_v3, %v15935_v30  ;;  %19039 = vst [vmem:[#allocation29_spill] sm:$0xff] %v15968_v4 }
 0x600   :  { %7742 = vmatpush3.bf16.msra.mxu1 %v15929_v55  ;;  %v6719_v5 = vadd.f32 %v6718_v53, %v15938_v39  ;;  %v6226_v53 = vadd.f32 %v15775_v44, %v15859_v40 }
 0x601   :  { %7743 = vmatprep.subr.bf16.mxu1 %v15944_v0 }
 0x602   :  { %v6720_v3 = vadd.f32 %v6719_v5, %v15951_v29  ;;  %v15979_v5 = vld [vmem:[%s16483_s7 + $0x30] sm:$0xff]  }
 0x603   :  { %v19040_v29 = vld [vmem:[#allocation451_spill] sm:$0xff] }
 0x604   :  { %7744 = vmatpush3.bf16.msra.mxu1 %v15944_v0  ;;  %v6721_v47 = vadd.f32 %v6720_v3, %v15968_v4  ;;  %v15982_v39 = vadd.f32 %v6226_v53, %v19040_v29  ;;  %v19044_v53 = vld [vmem:[#allocation456_spill] sm:$0xff]  ;;  %v19046_v4 = vld [vmem:[#allocation462_spill] sm:$0xff] }
 0x605   :  { %7745 = vmatprep.subr.bf16.mxu1 %v15956_v20 }
 0x606   :  { %19041 = vst [vmem:[#allocation181_spill] sm:$0xff] %v15982_v39  ;;  %v6722_v3 = vadd.f32 %v6721_v47, %v15982_v39 }
 0x608   :  { %7746 = vmatpush3.bf16.msra.mxu1 %v15956_v20 }
 0x609   :  { %7747 = vmatprep.subr.bf16.mxu1 %v15965_v12 }
 0x60b   :  { %v7731_v8 = vpop.f32.mrb[56].mxu0 }
 0x60c   :  { %v6230_v60 = vpop.f32.mrb[57].mxu0  ;;  %7748 = vmatpush3.bf16.msra.mxu1 %v15965_v12 }
 0x60d   :  { %v7732_v22 = vpop.f32.mrb[58].mxu0  ;;  %v6231_v41 = vadd.f32 %v15775_v44, %v6230_v60  ;;  %7749 = vmatprep.subr.bf16.mxu1 %v15979_v5  ;;  %v15993_v60 = vld [vmem:[%s16483_s7 + $0x38] sm:$0xff]  }
 0x60e   :  { %v6233_v2 = vpop.f32.mrb[59].mxu0  ;;  %v6242_v47 = vadd.f32 %v15775_v44, %v7732_v22 }
 0x60f   :  { %v15985_v56 = vadd.f32 %v6231_v41, %v19042_v31  ;;  %v6234_v40 = vadd.f32 %v15775_v44, %v6233_v2  ;;  %v6239_v2 = vadd.f32 %v15775_v44, %v7731_v8 }
 0x610   :  { %7750 = vmatpush3.bf16.msra.mxu1 %v15979_v5 }
 0x611   :  { %19043 = vst [vmem:[#allocation400_spill] sm:$0xff] %v15985_v56  ;;  %7751 = vmatprep.subr.bf16.mxu1 %v15993_v60  ;;  %v6723_v29 = vadd.f32 %v6722_v3, %v15985_v56  ;;  %v15999_v41 = vadd.f32 %v6234_v40, %v19044_v53  ;;  %v16006_v30 = vadd.f32 %v6239_v2, %v19046_v4  ;;  %v19048_v56 = vld [vmem:[#allocation461_spill] sm:$0xff] }
 0x612   :  { %v16011_v40 = vadd.f32 %v6242_v47, %v19048_v56  ;;  %v19053_v47 = vld [vmem:[#allocation169_spill] sm:$0xff] }
 0x613   :  { %19045 = vst [vmem:[#allocation182_spill] sm:$0xff] %v15999_v41  ;;  %v6724_v31 = vadd.f32 %v6723_v29, %v15999_v41  ;;  %19047 = vst [vmem:[#allocation319_spill] sm:$0xff] %v16006_v30 }
 0x614   :  { %7752 = vmatpush3.bf16.msra.mxu1 %v15993_v60 }
 0x615   :  { %7785 = vmatprep.subr.bf16.mxu1 %v15902_v61  ;;  %v6725_v39 = vadd.f32 %v6724_v31, %v16006_v30  ;;  %v19051_v30 = vld [vmem:[#allocation166_spill] sm:$0xff] }
 0x617   :  { %v6726_v4 = vadd.f32 %v6725_v39, %v16011_v40 }
 0x62b   :  { %v7735_v1 = vpop.f32.mrb[60].mxu0 }
 0x62c   :  { %v6246_v3 = vpop.f32.mrb[61].mxu0  ;;  %v6255_v23 = vadd.f32 %v15775_v44, %v7735_v1  ;;  %v19055_v1 = vld [vmem:[#allocation163_spill] sm:$0xff] }
 0x62d   :  { %v6247_v53 = vadd.f32 %v15775_v44, %v6246_v3  ;;  %v7736_v7 = vpop.f32.mrb[62].mxu0 }
 0x62e   :  { %v6249_v8 = vpop.f32.mrb[63].mxu0  ;;  %v6258_v31 = vadd.f32 %v15775_v44, %v7736_v7  ;;  %v16026_v3 = vadd.f32 %v6255_v23, %v19053_v47 }
 0x62f   :  { %v16016_v29 = vadd.f32 %v6247_v53, %v19049_v58  ;;  %v6250_v22 = vadd.f32 %v15775_v44, %v6249_v8 }
 0x630   :  { %19054 = vst [vmem:[#allocation334_spill] sm:$0xff] %v16026_v3  ;;  %v16030_v13 = vadd.f32 %v6258_v31, %v19055_v1 }
 0x631   :  { %19050 = vst [vmem:[#allocation320_spill] sm:$0xff] %v16016_v29  ;;  %v6727_v2 = vadd.f32 %v6726_v4, %v16016_v29  ;;  %v16023_v56 = vadd.f32 %v6250_v22, %v19051_v30 }
 0x632   :  { %19056 = vst [vmem:[#allocation350_spill] sm:$0xff] %v16030_v13 }
 0x633   :  { %19052 = vst [vmem:[#allocation100_spill] sm:$0xff] %v16023_v56  ;;  %v6728_v41 = vadd.f32 %v6727_v2, %v16023_v56  ;;  %v16039_v2 = vld [vmem:[%s16482_s6] sm:$0x1] }
 0x635   :  { %v6729_v58 = vadd.f32 %v6728_v41, %v16026_v3  ;;  %v16044_v41 = vld [vmem:[%s16477_s1 + $0x4] sm:$0x1] }
 0x637   :  { %v6730_v39 = vadd.f32 %v6729_v58, %v16030_v13 }
 0x639   :  { %v6731_v53 = vrot.slane %v6730_v39, 4 }
 0x63b   :  { %v6732_v8 = vadd.f32 %v6731_v53, %v6730_v39  ;;  %v19057_v39 = vld [vmem:[#allocation171_spill] sm:$0xff] }
 0x63c   :  { %v16987_v53 = vsub.s32 0, %v19057_v39 }
 0x63d   :  { %v6733_v4 = vrot.slane %v6732_v8, 2 }
 0x63f   :  { %v6734_v29 = vadd.f32 %v6733_v4, %v6732_v8 }
 0x641   :  { %v6735_v44 = vrot.slane %v6734_v29, 1 }
 0x643   :  { %v6736_v7 = vadd.f32 %v6735_v44, %v6734_v29  ;;  %v19058_v44 = vld [vmem:[#allocation24_spill] sm:$0xff] }
 0x645   :  { %v6737_v30 = vmul.f32 0.00390625, %v6736_v7 }
 0x647   :  { %v6738_v22 = vmul.f32 %v6737_v30, %v15801_v38  ;;  %v19059_v30 = vld [vmem:[#allocation516_spill] sm:$0xff] }
 0x649   :  { %v6739_v23 = vsel %vm6365_vm2, %v6738_v22, 0.0 }
 0x64a   :  { %6740 = vadd.xlane.f32.xlu1 %v6739_v23  ;;  %v19060_v23 = vld [vmem:[#allocation156_spill] sm:$0xff] }
 0x677   :  { %v6376_v31 = vpop.permute.xlu0 %6375 }
 0x678   :  { %v6378_v47 = vmul.f32 %v6376_v31, %v16039_v2 }
 0x67a   :  { %v6380_v29 = vadd.f32 %v6378_v47, %v16044_v41  ;;  %v19061_v47 = vld [vmem:[#allocation321_spill] sm:$0xff] }
 0x67c   :  { %v7558_v1 = vmul.f32 -1.442695, %v6380_v29 }
 0x67e   :  { %7983 = vpow2.f32 %v7558_v1  ;;  %v19062_v1 = vld [vmem:[#allocation330_spill] sm:$0xff] }
 0x688   :  { %v7984_v38 = vpop.eup %7983 }
 0x689   :  { %v6384_v58 = vadd.f32 1.0, %v7984_v38 }
 0x68b   :  { %7985 = vrcp.f32 %v6384_v58  ;;  %v19063_v58 = vld [vmem:[#allocation155_spill] sm:$0xff] }
 0x695   :  { %v7986_v8 = vpop.eup %7985 }
 0x696   :  { %v16051_v4 = vrot.slane %v7986_v8, %v16987_v53 }
 0x698   :  { %v6393_v7 = vmul.f32 %v16051_v4, %v19058_v44  ;;  %v6394_v22 = vmul.f32 %v16051_v4, %v19059_v30  ;;  %v6395_v31 = vmul.f32 %v16051_v4, %v19060_v23  ;;  %v6396_v29 = vmul.f32 %v16051_v4, %v19061_v47  ;;  %v19064_v44 = vld [vmem:[#allocation23_spill] sm:$0xff]  ;;  %v19065_v23 = vld [vmem:[#allocation322_spill] sm:$0xff] }
 0x699   :  { %v6391_v38 = vmul.f32 %v16051_v4, %v19062_v1  ;;  %v6392_v13 = vmul.f32 %v16051_v4, %v19063_v58  ;;  %v6397_v30 = vmul.f32 %v16051_v4, %v19064_v44  ;;  %v6398_v47 = vmul.f32 %v16051_v4, %v19065_v23  ;;  %v19066_v1 = vld [vmem:[#allocation94_spill] sm:$0xff]  ;;  %v19067_v58 = vld [vmem:[#allocation159_spill] sm:$0xff] }
 0x69a   :  { %v6424_v8 = vpack.c.bf16 %v6394_v22, %v6393_v7  ;;  %v6425_v3 = vpack.c.bf16 %v6396_v29, %v6395_v31  ;;  %v6399_v56 = vmul.f32 %v16051_v4, %v19066_v1  ;;  %v19069_v22 = vld [vmem:[#allocation26_spill] sm:$0xff]  ;;  %v6403_v29 = vmul.f32 %v16051_v4, %v15548_v9 }
 0x69b   :  { %v6423_v53 = vpack.c.bf16 %v6392_v13, %v6391_v38  ;;  %v6400_v13 = vmul.f32 %v16051_v4, %v19067_v58  ;;  %v6402_v31 = vmul.f32 %v16051_v4, %v19069_v22  ;;  %v6405_v38 = vmul.f32 %v16051_v4, %v15567_v11 }
 0x69c   :  { %v6407_v9 = vmul.f32 %v16051_v4, %v15625_v10  ;;  %v6409_v11 = vmul.f32 %v16051_v4, %v15670_v32  ;;  %v6411_v10 = vmul.f32 %v16051_v4, %v15698_v57  ;;  %v6413_v32 = vmul.f32 %v16051_v4, %v15737_v24 }
 0x69d   :  { %7753 = vmatprep.mubr.bf16.mxu1 %v6423_v53  ;;  %v6426_v53 = vpack.c.bf16 %v6398_v47, %v6397_v30  ;;  %v6416_v57 = vmul.f32 %v16051_v4, %v15757_v37  ;;  %v6418_v23 = vmul.f32 %v16051_v4, %v15769_v35  ;;  %v6419_v24 = vmul.f32 %v16051_v4, %v15779_v15 }
 0x69e   :  { %7754 = vmatmul.mubr.bf16.vlgmr.msra.gmra.mrb[0].mxu1 %v6424_v8  ;;  %v6406_v8 = vmul.f32 %v16051_v4, %v15614_v62  ;;  %v6410_v62 = vmul.f32 %v16051_v4, %v15695_v59  ;;  %v6414_v59 = vmul.f32 %v16051_v4, %v15746_v42  ;;  %v6420_v42 = vmul.f32 %v16051_v4, %v15787_v52 }
 0x69f   :  { %7757 = vmatprep.mubr.bf16.mxu1 %v6425_v3  ;;  %7786 = vmatpush3.bf16.msra.mxu1 %v15902_v61  ;;  %v6427_v61 = vpack.c.bf16 %v6400_v13, %v6399_v56  ;;  %v19068_v3 = vld [vmem:[#allocation161_spill] sm:$0xff]  ;;  %v6421_v37 = vmul.f32 %v16051_v4, %v15790_v49  ;;  %v6422_v1 = vmul.f32 %v16051_v4, %v15794_v48  ;;  %v16138_v49 = vld [vmem:[%s16477_s1 + $0x5] ss:$0 sm:$0xff] }
 0x6a0   :  { %7787 = vmatprep.subr.bf16.mxu1 %v15915_v50  ;;  %v6401_v7 = vmul.f32 %v16051_v4, %v19068_v3  ;;  %v6434_v30 = vpack.c.bf16 %v6414_v59, %v6413_v32  ;;  %v6437_v47 = vpack.c.bf16 %v6420_v42, %v6419_v24  ;;  %v8019_v42 = vld [vmem:[%s16476_s0 + $0x38] sm:$0xff] }
 0x6a1   :  { %v6438_v13 = vpack.c.bf16 %v6422_v1, %v6421_v37 }
 0x6a2   :  { %v6428_v56 = vpack.c.bf16 %v6402_v31, %v6401_v7 }
 0x6a3   :  { %7788 = vmatpush3.bf16.msra.mxu1 %v15915_v50  ;;  %v6404_v50 = vmul.f32 %v16051_v4, %v15577_v36  ;;  %v6408_v36 = vmul.f32 %v16051_v4, %v15653_v16  ;;  %v6412_v16 = vmul.f32 %v16051_v4, %v15719_v27 }
 0x6a4   :  { %7789 = vmatprep.subr.bf16.mxu1 %v15929_v55 }
 0x6a5   :  { %v6433_v44 = vpack.c.bf16 %v6412_v16, %v6411_v10  ;;  %v8014_v16 = vld [vmem:[%s16476_s0] sm:$0xff] }
 0x6a6   :  { %7758 = vmatmul.mubr.bf16.gmra.mrb[4].mxu1 %v6426_v53 }
 0x6a7   :  { %7761 = vmatprep.mubr.bf16.mxu1 %v6427_v61  ;;  %7790 = vmatpush3.bf16.msra.mxu1 %v15929_v55  ;;  %v6429_v55 = vpack.c.bf16 %v6404_v50, %v6403_v29  ;;  %v19070_v50 = vsub.s32 0, %v19057_v39 }
 0x6a8   :  { %7791 = vmatprep.subr.bf16.mxu1 %v15944_v0 }
 0x6ab   :  { %7792 = vmatpush3.bf16.msra.mxu1 %v15944_v0  ;;  %v6430_v0 = vpack.c.bf16 %v6406_v8, %v6405_v38 }
 0x6ac   :  { %7793 = vmatprep.subr.bf16.mxu1 %v15956_v20 }
 0x6ae   :  { %7762 = vmatmul.mubr.bf16.gmra.mrb[8].mxu1 %v6428_v56 }
 0x6af   :  { %7765 = vmatprep.mubr.bf16.mxu1 %v6429_v55  ;;  %7794 = vmatpush3.bf16.msra.mxu1 %v15956_v20  ;;  %v6431_v20 = vpack.c.bf16 %v6408_v36, %v6407_v9 }
 0x6b0   :  { %7795 = vmatprep.subr.bf16.mxu1 %v15965_v12 }
 0x6b3   :  { %7796 = vmatpush3.bf16.msra.mxu1 %v15965_v12  ;;  %v6432_v12 = vpack.c.bf16 %v6410_v62, %v6409_v11 }
 0x6b4   :  { %7797 = vmatprep.subr.bf16.mxu1 %v15979_v5 }
 0x6b6   :  { %7766 = vmatmul.mubr.bf16.gmra.mrb[12].mxu1 %v6430_v0 }
 0x6b7   :  { %7769 = vmatprep.mubr.bf16.mxu1 %v6431_v20  ;;  %7798 = vmatpush3.bf16.msra.mxu1 %v15979_v5  ;;  %v6415_v5 = vmul.f32 %v16051_v4, %v15750_v46 }
 0x6b8   :  { %7799 = vmatprep.subr.bf16.mxu1 %v15993_v60 }
 0x6b9   :  { %v6435_v27 = vpack.c.bf16 %v6416_v57, %v6415_v5  ;;  %v8016_v5 = vld [vmem:[%s16476_s0 + $0x8] sm:$0xff] }
 0x6bb   :  { %7800 = vmatpush3.bf16.msra.mxu1 %v15993_v60  ;;  %v6417_v60 = vmul.f32 %v16051_v4, %v15763_v54 }
 0x6bd   :  { %v6436_v46 = vpack.c.bf16 %v6418_v23, %v6417_v60  ;;  %v8018_v23 = vld [vmem:[%s16476_s0 + $0x20] sm:$0xff] }
 0x6be   :  { %7770 = vmatmul.mubr.bf16.gmra.mrb[16].mxu1 %v6432_v12 }
 0x6bf   :  { %7773 = vmatprep.mubr.bf16.mxu1 %v6433_v44 }
 0x6c6   :  { %7774 = vmatmul.mubr.bf16.gmra.mrb[20].mxu1 %v6434_v30 }
 0x6c7   :  { %7777 = vmatprep.mubr.bf16.mxu1 %v6435_v27  ;;  %v8017_v27 = vld [vmem:[%s16476_s0 + $0x30] sm:$0xff] }
 0x6ce   :  { %7778 = vmatmul.mubr.bf16.gmra.mrb[24].mxu1 %v6436_v46 }
 0x6cf   :  { %7781 = vmatprep.mubr.bf16.mxu1 %v6437_v47  ;;  %v8020_v47 = vld [vmem:[%s16476_s0 + $0x28] sm:$0xff] }
 0x6d6   :  { %7782 = vmatmul.mubr.bf16.gmra.mrb[28].mxu1 %v6438_v13 }
 0x6d7   :  { %v6741_v54 = vpop.xlane.xlu1 %6740 }
 0x6d8   :  { %v6742_v58 = vadd.f32 %v6741_v54, %v15867_v63 }
 0x6da   :  { %v6743_v35 = vmax.f32 %v6742_v58, 0.0 }
 0x6dc   :  { %6746 = vperm.xlu1 %7838, %v6743_v35  }
 0x75b   :  { %v6747_v15 = vpop.permute.xlu1 %6746 }
 0x75c   :  { %v6749_v52 = vmul.f32 %v6747_v15, %v16039_v2  ;;  %v8013_v2 = vld [vmem:[%s16476_s0 + $0x10] sm:$0xff] }
 0x75e   :  { %v6751_v53 = vadd.f32 %v6749_v52, %v16044_v41 }
 0x760   :  { %v7568_v61 = vmul.f32 -1.442695, %v6751_v53 }
 0x762   :  { %7987 = vpow2.f32 %v7568_v61  ;;  %v8021_v61 = vld [vmem:[%s16476_s0 + $0x50] sm:$0xff] }
 0x76c   :  { %v7988_v3 = vpop.eup %7987 }
 0x76d   :  { %v6755_v7 = vadd.f32 1.0, %v7988_v3 }
 0x76f   :  { %7989 = vrcp.f32 %v6755_v7 }
 0x771   :  { %v7755_v48 = vpop.f32.mrb[0].mxu1 }
 0x772   :  { %v6550_v4 = vadd.f32 %v7755_v48, %v16138_v49  ;;  %v6541_v22 = vpop.f32.mrb[1].mxu1 }
 0x773   :  { %v7756_v31 = vpop.f32.mrb[2].mxu1  ;;  %v6542_v8 = vadd.f32 %v16138_v49, %v6541_v22 }
 0x774   :  { %v6670_v41 = vadd.f32 %v8013_v2, %v6550_v4  ;;  %v6544_v29 = vpop.f32.mrb[3].mxu1  ;;  %v6553_v9 = vadd.f32 %v7756_v31, %v16138_v49  ;;  %v8023_v31 = vld [vmem:[%s16476_s0 + $0x58] sm:$0xff] }
 0x775   :  { %v6668_v12 = vadd.f32 %v8014_v16, %v6542_v8  ;;  %v8027_v16 = vld [vmem:[%s16476_s0 + $0x78] sm:$0xff] }
 0x776   :  { %7005 = vst [vmem:[#allocation3 + $0x10] sm:$0xff] %v6670_v41 }
 0x777   :  { %7003 = vst [vmem:[#allocation3] sm:$0xff] %v6668_v12 }
 0x779   :  { %v7990_v63 = vpop.eup %7989  ;;  %v7759_v36 = vpop.f32.mrb[4].mxu1 }
 0x77a   :  { %v16146_v56 = vrot.slane %v7990_v63, %v19070_v50  ;;  %v6557_v0 = vpop.f32.mrb[5].mxu1  ;;  %v6566_v32 = vadd.f32 %v7759_v36, %v16138_v49 }
 0x77b   :  { %v7760_v11 = vpop.f32.mrb[6].mxu1 }
 0x77c   :  { %v6764_v55 = vmul.f32 %v16146_v56, %v15821_v34  ;;  %v6765_v38 = vmul.f32 %v16146_v56, %v15827_v18  ;;  %v6762_v20 = vmul.f32 %v16146_v56, %v15816_v6  ;;  %v6763_v39 = vmul.f32 %v16146_v56, %v15812_v19  ;;  %v6560_v18 = vpop.f32.mrb[7].mxu1  ;;  %v8015_v6 = vld [vmem:[%s16476_s0 + $0x18] sm:$0xff] }
 0x77d   :  { %v6766_v62 = vmul.f32 %v16146_v56, %v15830_v45  ;;  %v6767_v34 = vmul.f32 %v16146_v56, %v15836_v51  ;;  %v6671_v44 = vadd.f32 %v8015_v6, %v6553_v9  ;;  %v6545_v19 = vadd.f32 %v16138_v49, %v6544_v29 }
 0x77e   :  { %v6795_v10 = vpack.c.bf16 %v6765_v38, %v6764_v55  ;;  %v6558_v45 = vadd.f32 %v16138_v49, %v6557_v0  ;;  %v6569_v51 = vadd.f32 %v7760_v11, %v16138_v49  ;;  %v6561_v59 = vadd.f32 %v16138_v49, %v6560_v18 }
 0x77f   :  { %7006 = vst [vmem:[#allocation3 + $0x18] sm:$0xff] %v6671_v44  ;;  %v6669_v57 = vadd.f32 %v8016_v5, %v6545_v19  ;;  %v6794_v30 = vpack.c.bf16 %v6763_v39, %v6762_v20  ;;  %v6674_v60 = vadd.f32 %v8017_v27, %v6566_v32  ;;  %v6796_v54 = vpack.c.bf16 %v6767_v34, %v6766_v62  ;;  %v8025_v20 = vld [vmem:[%s16476_s0 + $0x70] sm:$0xff] }
 0x780   :  { %v6672_v24 = vadd.f32 %v8018_v23, %v6558_v45  ;;  %v6675_v46 = vadd.f32 %v8019_v42, %v6569_v51  ;;  %v6673_v37 = vadd.f32 %v8020_v47, %v6561_v59  ;;  %v6768_v52 = vmul.f32 %v16146_v56, %v15841_v28  ;;  %v8022_v28 = vld [vmem:[%s16476_s0 + $0x40] sm:$0xff]  ;;  %v19071_v5 = vld [vmem:[#allocation331_spill] sm:$0xff] }
 0x781   :  { %7004 = vst [vmem:[#allocation3 + $0x8] sm:$0xff] %v6669_v57  ;;  %v7763_v1 = vpop.f32.mrb[8].mxu1  ;;  %7801 = vmatprep.mubr.bf16.mxu1 %v6794_v30  ;;  %7009 = vst [vmem:[#allocation3 + $0x30] sm:$0xff] %v6674_v60  ;;  %v6769_v53 = vmul.f32 %v16146_v56, %v15847_v33  ;;  %v6770_v63 = vmul.f32 %v16146_v56, %v15850_v25  ;;  %v6771_v4 = vmul.f32 %v16146_v56, %v15856_v17  ;;  %v8024_v25 = vld [vmem:[%s16476_s0 + $0x48] sm:$0xff]  ;;  %v19072_v30 = vld [vmem:[#allocation164_spill] sm:$0xff] }
 0x782   :  { %7007 = vst [vmem:[#allocation3 + $0x20] sm:$0xff] %v6672_v24  ;;  %7010 = vst [vmem:[#allocation3 + $0x38] sm:$0xff] %v6675_v46  ;;  %v6582_v58 = vadd.f32 %v7763_v1, %v16138_v49  ;;  %v6573_v35 = vpop.f32.mrb[9].mxu1  ;;  %7802 = vmatmul.mubr.bf16.vlgmr.msra.gmra.mrb[32].mxu1 %v6795_v10  ;;  %v6772_v36 = vmul.f32 %v16146_v56, %v15863_v26  ;;  %v6773_v0 = vmul.f32 %v16146_v56, %v15871_v21  ;;  %v8026_v26 = vld [vmem:[%s16476_s0 + $0x60] sm:$0xff]  ;;  %v8029_v60 = vld [vmem:[%s16476_s0 + $0x90] sm:$0xff] }
 0x783   :  { %7008 = vst [vmem:[#allocation3 + $0x28] sm:$0xff] %v6673_v37  ;;  %v6574_v13 = vadd.f32 %v16138_v49, %v6573_v35  ;;  %v7764_v15 = vpop.f32.mrb[10].mxu1  ;;  %7805 = vmatprep.mubr.bf16.mxu1 %v6796_v54  ;;  %v6797_v17 = vpack.c.bf16 %v6769_v53, %v6768_v52  ;;  %v6798_v50 = vpack.c.bf16 %v6771_v4, %v6770_v63  ;;  %v19073_v46 = vld [vmem:[#allocation165_spill] sm:$0xff]  ;;  %v8032_v52 = vld [vmem:[%s16476_s0 + $0x88] sm:$0xff] }
 0x784   :  { %v6678_v3 = vadd.f32 %v8021_v61, %v6582_v58  ;;  %v6585_v7 = vadd.f32 %v7764_v15, %v16138_v49  ;;  %v6576_v48 = vpop.f32.mrb[11].mxu1  ;;  %v6774_v34 = vmul.f32 %v16146_v56, %v15874_v14  ;;  %v6775_v18 = vmul.f32 %v16146_v56, %v15881_v43  ;;  %v8028_v14 = vld [vmem:[%s16476_s0 + $0x68] sm:$0xff]  ;;  %v19074_v37 = vld [vmem:[#allocation97_spill] sm:$0xff] }
 0x785   :  { %v6676_v22 = vadd.f32 %v8022_v28, %v6574_v13  ;;  %v6577_v33 = vadd.f32 %v16138_v49, %v6576_v48  ;;  %v6799_v43 = vpack.c.bf16 %v6773_v0, %v6772_v36  ;;  %v6776_v57 = vmul.f32 %v16146_v56, %v19071_v5  ;;  %v8030_v54 = vld [vmem:[%s16476_s0 + $0x80] sm:$0xff]  ;;  %v8031_v13 = vld [vmem:[%s16476_s0 + $0x98] sm:$0xff] }
 0x786   :  { %7013 = vst [vmem:[#allocation3 + $0x50] sm:$0xff] %v6678_v3  ;;  %v6679_v2 = vadd.f32 %v8023_v31, %v6585_v7  ;;  %v6800_v19 = vpack.c.bf16 %v6775_v18, %v6774_v34  ;;  %v6777_v27 = vmul.f32 %v16146_v56, %v19072_v30  ;;  %v6778_v47 = vmul.f32 %v16146_v56, %v19073_v46  ;;  %v19076_v31 = vld [vmem:[#allocation31_spill] sm:$0xff] }
 0x787   :  { %7011 = vst [vmem:[#allocation3 + $0x40] sm:$0xff] %v6676_v22  ;;  %v6677_v41 = vadd.f32 %v8024_v25, %v6577_v33  ;;  %v6779_v1 = vmul.f32 %v16146_v56, %v19074_v37  ;;  %v19075_v22 = vld [vmem:[#allocation172_spill] sm:$0xff]  ;;  %v8040_v46 = vld [vmem:[%s16476_s0 + $0xc8] sm:$0xff] }
 0x788   :  { %7014 = vst [vmem:[#allocation3 + $0x58] sm:$0xff] %v6679_v2  ;;  %v6801_v61 = vpack.c.bf16 %v6777_v27, %v6776_v57  ;;  %v6780_v33 = vmul.f32 %v16146_v56, %v19075_v22  ;;  %v6781_v2 = vmul.f32 %v16146_v56, %v19076_v31  ;;  %v8033_v25 = vld [vmem:[%s16476_s0 + $0xb0] sm:$0xff]  ;;  %v19082_v57 = vld [vmem:[#allocation182_spill] sm:$0xff] }
 0x789   :  { %7012 = vst [vmem:[#allocation3 + $0x48] sm:$0xff] %v6677_v41  ;;  %v7767_v29 = vpop.f32.mrb[12].mxu1  ;;  %v6802_v7 = vpack.c.bf16 %v6779_v1, %v6778_v47  ;;  %v6787_v30 = vmul.f32 %v16146_v56, %v19082_v57  ;;  %v8038_v27 = vld [vmem:[%s16476_s0 + $0xc0] sm:$0xff]  ;;  %v19085_v22 = vld [vmem:[#allocation100_spill] sm:$0xff] }
 0x78a   :  { %v6598_v55 = vadd.f32 %v7767_v29, %v16138_v49  ;;  %v6589_v38 = vpop.f32.mrb[13].mxu1  ;;  %7806 = vmatmul.mubr.bf16.gmra.mrb[36].mxu1 %v6797_v17  ;;  %v6803_v34 = vpack.c.bf16 %v6781_v2, %v6780_v33  ;;  %v6791_v33 = vmul.f32 %v16146_v56, %v19085_v22  ;;  %v8042_v31 = vld [vmem:[%s16476_s0 + $0xe0] sm:$0xff] }
 0x78b   :  { %v6590_v8 = vadd.f32 %v16138_v49, %v6589_v38  ;;  %v7768_v9 = vpop.f32.mrb[14].mxu1  ;;  %7809 = vmatprep.mubr.bf16.mxu1 %v6798_v50  ;;  %v19077_v50 = vld [vmem:[#allocation98_spill] sm:$0xff]  ;;  %v19078_v38 = vld [vmem:[#allocation173_spill] sm:$0xff] }
 0x78c   :  { %v6682_v39 = vadd.f32 %v8025_v20, %v6598_v55  ;;  %v6601_v11 = vadd.f32 %v7768_v9, %v16138_v49  ;;  %v6592_v62 = vpop.f32.mrb[15].mxu1  ;;  %v6782_v55 = vmul.f32 %v16146_v56, %v19077_v50  ;;  %v8034_v9 = vld [vmem:[%s16476_s0 + $0xa0] sm:$0xff]  ;;  %v8035_v20 = vld [vmem:[%s16476_s0 + $0xb8] sm:$0xff] }
 0x78d   :  { %v6680_v10 = vadd.f32 %v8026_v26, %v6590_v8  ;;  %v6593_v21 = vadd.f32 %v16138_v49, %v6592_v62  ;;  %v6783_v8 = vmul.f32 %v16146_v56, %v19078_v38  ;;  %v19086_v38 = vld [vmem:[#allocation334_spill] sm:$0xff] }
 0x78e   :  { %7017 = vst [vmem:[#allocation3 + $0x70] sm:$0xff] %v6682_v39  ;;  %v6683_v12 = vadd.f32 %v8027_v16, %v6601_v11  ;;  %v8036_v11 = vld [vmem:[%s16476_s0 + $0xa8] sm:$0xff] }
 0x78f   :  { %7015 = vst [vmem:[#allocation3 + $0x60] sm:$0xff] %v6680_v10  ;;  %v6681_v6 = vadd.f32 %v8028_v14, %v6593_v21  ;;  %v6804_v26 = vpack.c.bf16 %v6783_v8, %v6782_v55  ;;  %v19079_v14 = vld [vmem:[#allocation29_spill] sm:$0xff]  ;;  %v6792_v8 = vmul.f32 %v16146_v56, %v19086_v38 }
 0x790   :  { %7018 = vst [vmem:[#allocation3 + $0x78] sm:$0xff] %v6683_v12 }
 0x791   :  { %7016 = vst [vmem:[#allocation3 + $0x68] sm:$0xff] %v6681_v6  ;;  %v7771_v44 = vpop.f32.mrb[16].mxu1  ;;  %v6784_v6 = vmul.f32 %v16146_v56, %v19079_v14  ;;  %v8047_v14 = vld [vmem:[%s16476_s0 + $0x118] sm:$0xff] }
 0x792   :  { %v6614_v32 = vadd.f32 %v7771_v44, %v16138_v49  ;;  %v6605_v45 = vpop.f32.mrb[17].mxu1  ;;  %7810 = vmatmul.mubr.bf16.gmra.mrb[40].mxu1 %v6799_v43  ;;  %v19080_v43 = vld [vmem:[#allocation181_spill] sm:$0xff] }
 0x793   :  { %v6606_v51 = vadd.f32 %v16138_v49, %v6605_v45  ;;  %v7772_v59 = vpop.f32.mrb[18].mxu1  ;;  %7813 = vmatprep.mubr.bf16.mxu1 %v6800_v19  ;;  %v6785_v44 = vmul.f32 %v16146_v56, %v19080_v43  ;;  %v8037_v19 = vld [vmem:[%s16476_s0 + $0xd0] sm:$0xff]  ;;  %v8048_v43 = vld [vmem:[%s16476_s0 + $0x108] sm:$0xff] }
 0x794   :  { %v6686_v23 = vadd.f32 %v8029_v60, %v6614_v32  ;;  %v6617_v24 = vadd.f32 %v7772_v59, %v16138_v49  ;;  %v6608_v42 = vpop.f32.mrb[19].mxu1  ;;  %v19081_v59 = vld [vmem:[#allocation400_spill] sm:$0xff] }
 0x795   :  { %v6684_v58 = vadd.f32 %v8030_v54, %v6606_v51  ;;  %v6609_v35 = vadd.f32 %v16138_v49, %v6608_v42  ;;  %v6786_v5 = vmul.f32 %v16146_v56, %v19081_v59  ;;  %v6805_v37 = vpack.c.bf16 %v6785_v44, %v6784_v6 }
 0x796   :  { %7021 = vst [vmem:[#allocation3 + $0x90] sm:$0xff] %v6686_v23  ;;  %v6687_v15 = vadd.f32 %v8031_v13, %v6617_v24  ;;  %v8039_v24 = vld [vmem:[%s16476_s0 + $0xd8] sm:$0xff] }
 0x797   :  { %7019 = vst [vmem:[#allocation3 + $0x80] sm:$0xff] %v6684_v58  ;;  %v6685_v53 = vadd.f32 %v8032_v52, %v6609_v35  ;;  %v6806_v54 = vpack.c.bf16 %v6787_v30, %v6786_v5  ;;  %v19083_v52 = vld [vmem:[#allocation319_spill] sm:$0xff] }
 0x798   :  { %7022 = vst [vmem:[#allocation3 + $0x98] sm:$0xff] %v6687_v15  ;;  %v8049_v5 = vld [vmem:[%s16476_s0 + $0x130] sm:$0xff] }
 0x799   :  { %7020 = vst [vmem:[#allocation3 + $0x88] sm:$0xff] %v6685_v53  ;;  %v7775_v3 = vpop.f32.mrb[20].mxu1  ;;  %v6788_v53 = vmul.f32 %v16146_v56, %v19083_v52 }
 0x79a   :  { %v6630_v48 = vadd.f32 %v7775_v3, %v16138_v49  ;;  %v6621_v63 = vpop.f32.mrb[21].mxu1  ;;  %7814 = vmatmul.mubr.bf16.gmra.mrb[44].mxu1 %v6801_v61  ;;  %v6789_v61 = vmul.f32 %v16146_v56, %v16011_v40  ;;  %v8041_v3 = vld [vmem:[%s16476_s0 + $0xf0] sm:$0xff] }
 0x79b   :  { %v6622_v4 = vadd.f32 %v16138_v49, %v6621_v63  ;;  %v7776_v28 = vpop.f32.mrb[22].mxu1  ;;  %7817 = vmatprep.mubr.bf16.mxu1 %v6802_v7 }
 0x79c   :  { %v6690_v41 = vadd.f32 %v8033_v25, %v6630_v48  ;;  %v6633_v17 = vadd.f32 %v7776_v28, %v16138_v49  ;;  %v6624_v29 = vpop.f32.mrb[23].mxu1  ;;  %v8043_v25 = vld [vmem:[%s16476_s0 + $0xf8] sm:$0xff]  ;;  %v6807_v50 = vpack.c.bf16 %v6789_v61, %v6788_v53 }
 0x79d   :  { %v6688_v36 = vadd.f32 %v8034_v9, %v6622_v4  ;;  %v6625_v0 = vadd.f32 %v16138_v49, %v6624_v29  ;;  %v19084_v4 = vld [vmem:[#allocation320_spill] sm:$0xff]  ;;  %v19087_v9 = vld [vmem:[#allocation350_spill] sm:$0xff] }
 0x79e   :  { %7025 = vst [vmem:[#allocation3 + $0xb0] sm:$0xff] %v6690_v41  ;;  %v6691_v39 = vadd.f32 %v8035_v20, %v6633_v17  ;;  %v6790_v28 = vmul.f32 %v16146_v56, %v19084_v4  ;;  %v8044_v17 = vld [vmem:[%s16476_s0 + $0xe8] sm:$0xff] }
 0x79f   :  { %7023 = vst [vmem:[#allocation3 + $0xa0] sm:$0xff] %v6688_v36  ;;  %v6689_v62 = vadd.f32 %v8036_v11, %v6625_v0  ;;  %v6793_v36 = vmul.f32 %v16146_v56, %v19087_v9  ;;  %v8046_v56 = vld [vmem:[%s16476_s0 + $0x100] sm:$0xff]  ;;  %v8059_v9 = vld [vmem:[%s16476_s0 + $0x178] sm:$0xff] }
 0x7a0   :  { %7026 = vst [vmem:[#allocation3 + $0xb8] sm:$0xff] %v6691_v39  ;;  %v6808_v55 = vpack.c.bf16 %v6791_v33, %v6790_v28  ;;  %v8056_v28 = vld [vmem:[%s16476_s0 + $0x148] sm:$0xff] }
 0x7a1   :  { %7024 = vst [vmem:[#allocation3 + $0xa8] sm:$0xff] %v6689_v62  ;;  %v7779_v18 = vpop.f32.mrb[24].mxu1  ;;  %v6809_v0 = vpack.c.bf16 %v6793_v36, %v6792_v8 }
 0x7a2   :  { %v6646_v10 = vadd.f32 %v7779_v18, %v16138_v49  ;;  %v6637_v21 = vpop.f32.mrb[25].mxu1  ;;  %7818 = vmatmul.mubr.bf16.gmra.mrb[48].mxu1 %v6803_v34  ;;  %v8045_v18 = vld [vmem:[%s16476_s0 + $0x110] sm:$0xff] }
 0x7a3   :  { %v6638_v16 = vadd.f32 %v16138_v49, %v6637_v21  ;;  %v7780_v12 = vpop.f32.mrb[26].mxu1  ;;  %7821 = vmatprep.mubr.bf16.mxu1 %v6804_v26 }
 0x7a4   :  { %v6694_v32 = vadd.f32 %v8037_v19, %v6646_v10  ;;  %v6649_v45 = vadd.f32 %v7780_v12, %v16138_v49  ;;  %v6640_v51 = vpop.f32.mrb[27].mxu1 }
 0x7a5   :  { %v6692_v60 = vadd.f32 %v8038_v27, %v6638_v16  ;;  %v6641_v23 = vadd.f32 %v16138_v49, %v6640_v51 }
 0x7a6   :  { %7029 = vst [vmem:[#allocation3 + $0xd0] sm:$0xff] %v6694_v32  ;;  %v6695_v42 = vadd.f32 %v8039_v24, %v6649_v45 }
 0x7a7   :  { %7027 = vst [vmem:[#allocation3 + $0xc0] sm:$0xff] %v6692_v60  ;;  %v6693_v47 = vadd.f32 %v8040_v46, %v6641_v23  ;;  %v8050_v60 = vld [vmem:[%s16476_s0 + $0x120] sm:$0xff] }
 0x7a8   :  { %7030 = vst [vmem:[#allocation3 + $0xd8] sm:$0xff] %v6695_v42  ;;  %v8051_v42 = vld [vmem:[%s16476_s0 + $0x138] sm:$0xff] }
 0x7a9   :  { %7028 = vst [vmem:[#allocation3 + $0xc8] sm:$0xff] %v6693_v47  ;;  %v7783_v1 = vpop.f32.mrb[28].mxu1  ;;  %v8052_v47 = vld [vmem:[%s16476_s0 + $0x128] sm:$0xff] }
 0x7aa   :  { %v6662_v58 = vadd.f32 %v7783_v1, %v16138_v49  ;;  %v6653_v35 = vpop.f32.mrb[29].mxu1  ;;  %7822 = vmatmul.mubr.bf16.gmra.mrb[52].mxu1 %v6805_v37 }
 0x7ab   :  { %v6654_v13 = vadd.f32 %v16138_v49, %v6653_v35  ;;  %v7784_v15 = vpop.f32.mrb[30].mxu1  ;;  %7825 = vmatprep.mubr.bf16.mxu1 %v6806_v54 }
 0x7ac   :  { %v6698_v7 = vadd.f32 %v8041_v3, %v6662_v58  ;;  %v6665_v48 = vadd.f32 %v7784_v15, %v16138_v49  ;;  %v6656_v63 = vpop.f32.mrb[31].mxu1  ;;  %v8053_v15 = vld [vmem:[%s16476_s0 + $0x150] sm:$0xff]  ;;  %v8054_v3 = vld [vmem:[%s16476_s0 + $0x140] sm:$0xff] }
 0x7ad   :  { %v6696_v2 = vadd.f32 %v8042_v31, %v6654_v13  ;;  %v6657_v40 = vadd.f32 %v16138_v49, %v6656_v63  ;;  %v8055_v63 = vld [vmem:[%s16476_s0 + $0x158] sm:$0xff] }
 0x7ae   :  { %7033 = vst [vmem:[#allocation3 + $0xf0] sm:$0xff] %v6698_v7  ;;  %v6699_v41 = vadd.f32 %v8043_v25, %v6665_v48 }
 0x7af   :  { %7031 = vst [vmem:[#allocation3 + $0xe0] sm:$0xff] %v6696_v2  ;;  %v6697_v29 = vadd.f32 %v8044_v17, %v6657_v40 }
 0x7b0   :  { %7034 = vst [vmem:[#allocation3 + $0xf8] sm:$0xff] %v6699_v41  ;;  %v8057_v41 = vld [vmem:[%s16476_s0 + $0x170] sm:$0xff] }
 0x7b1   :  { %7032 = vst [vmem:[#allocation3 + $0xe8] sm:$0xff] %v6697_v29 }
 0x7b2   :  { %7826 = vmatmul.mubr.bf16.gmra.mrb[56].mxu1 %v6807_v50 }
 0x7b3   :  { %7829 = vmatprep.mubr.bf16.mxu1 %v6808_v55  ;;  %v8058_v55 = vld [vmem:[%s16476_s0 + $0x160] sm:$0xff] }
 0x7ba   :  { %7830 = vmatmul.mubr.bf16.gmra.mrb[60].mxu1 %v6809_v0  ;;  %v8060_v0 = vld [vmem:[%s16476_s0 + $0x168] sm:$0xff] }
 0x855   :  { %v7803_v20 = vpop.f32.mrb[32].mxu1 }
 0x856   :  { %v6853_v39 = vadd.f32 %v7803_v20, %v16138_v49  ;;  %v6844_v11 = vpop.f32.mrb[33].mxu1 }
 0x857   :  { %v6845_v62 = vadd.f32 %v16138_v49, %v6844_v11  ;;  %v7804_v34 = vpop.f32.mrb[34].mxu1 }
 0x858   :  { %v6973_v26 = vadd.f32 %v8045_v18, %v6853_v39  ;;  %v6856_v10 = vadd.f32 %v7804_v34, %v16138_v49  ;;  %v6847_v21 = vpop.f32.mrb[35].mxu1 }
 0x859   :  { %v6971_v16 = vadd.f32 %v8046_v56, %v6845_v62  ;;  %v6848_v12 = vadd.f32 %v16138_v49, %v6847_v21 }
 0x85a   :  { %7037 = vst [vmem:[#allocation3 + $0x110] sm:$0xff] %v6973_v26  ;;  %v6974_v6 = vadd.f32 %v8047_v14, %v6856_v10  ;;  %v8061_v26 = vld [vmem:[%s16476_s0 + $0x190] sm:$0xff] }
 0x85b   :  { %7035 = vst [vmem:[#allocation3 + $0x100] sm:$0xff] %v6971_v16  ;;  %v6972_v44 = vadd.f32 %v8048_v43, %v6848_v12  ;;  %v8062_v16 = vld [vmem:[%s16476_s0 + $0x180] sm:$0xff] }
 0x85c   :  { %7038 = vst [vmem:[#allocation3 + $0x118] sm:$0xff] %v6974_v6  ;;  %v8063_v6 = vld [vmem:[%s16476_s0 + $0x198] sm:$0xff] }
 0x85d   :  { %7036 = vst [vmem:[#allocation3 + $0x108] sm:$0xff] %v6972_v44  ;;  %v7807_v19 = vpop.f32.mrb[36].mxu1  ;;  %v8064_v44 = vld [vmem:[%s16476_s0 + $0x188] sm:$0xff] }
 0x85e   :  { %v6869_v32 = vadd.f32 %v7807_v19, %v16138_v49  ;;  %v6860_v45 = vpop.f32.mrb[37].mxu1 }
 0x85f   :  { %v6861_v51 = vadd.f32 %v16138_v49, %v6860_v45  ;;  %v7808_v59 = vpop.f32.mrb[38].mxu1 }
 0x860   :  { %v6977_v57 = vadd.f32 %v8049_v5, %v6869_v32  ;;  %v6872_v30 = vadd.f32 %v7808_v59, %v16138_v49  ;;  %v6863_v27 = vpop.f32.mrb[39].mxu1 }
 0x861   :  { %v6975_v23 = vadd.f32 %v8050_v60, %v6861_v51  ;;  %v6864_v24 = vadd.f32 %v16138_v49, %v6863_v27 }
 0x862   :  { %7041 = vst [vmem:[#allocation3 + $0x130] sm:$0xff] %v6977_v57  ;;  %v6978_v46 = vadd.f32 %v8051_v42, %v6872_v30  ;;  %v8065_v57 = vld [vmem:[%s16476_s0 + $0x1b0] sm:$0xff] }
 0x863   :  { %7039 = vst [vmem:[#allocation3 + $0x120] sm:$0xff] %v6975_v23  ;;  %v6976_v37 = vadd.f32 %v8052_v47, %v6864_v24  ;;  %v8066_v23 = vld [vmem:[%s16476_s0 + $0x1a0] sm:$0xff] }
 0x864   :  { %7042 = vst [vmem:[#allocation3 + $0x138] sm:$0xff] %v6978_v46  ;;  %v8067_v46 = vld [vmem:[%s16476_s0 + $0x1b8] sm:$0xff] }
 0x865   :  { %7040 = vst [vmem:[#allocation3 + $0x128] sm:$0xff] %v6976_v37  ;;  %v7811_v1 = vpop.f32.mrb[40].mxu1  ;;  %v8068_v37 = vld [vmem:[%s16476_s0 + $0x1a8] sm:$0xff] }
 0x866   :  { %v6885_v54 = vadd.f32 %v7811_v1, %v16138_v49  ;;  %v6876_v58 = vpop.f32.mrb[41].mxu1 }
 0x867   :  { %v6877_v35 = vadd.f32 %v16138_v49, %v6876_v58  ;;  %v7812_v13 = vpop.f32.mrb[42].mxu1 }
 0x868   :  { %v6981_v52 = vadd.f32 %v8053_v15, %v6885_v54  ;;  %v6888_v53 = vadd.f32 %v7812_v13, %v16138_v49  ;;  %v6879_v61 = vpop.f32.mrb[43].mxu1 }
 0x869   :  { %v6979_v7 = vadd.f32 %v8054_v3, %v6877_v35  ;;  %v6880_v48 = vadd.f32 %v16138_v49, %v6879_v61 }
 0x86a   :  { %7045 = vst [vmem:[#allocation3 + $0x150] sm:$0xff] %v6981_v52  ;;  %v6982_v4 = vadd.f32 %v8055_v63, %v6888_v53  ;;  %v8069_v52 = vld [vmem:[%s16476_s0 + $0x1d0] sm:$0xff] }
 0x86b   :  { %7043 = vst [vmem:[#allocation3 + $0x140] sm:$0xff] %v6979_v7  ;;  %v6980_v22 = vadd.f32 %v8056_v28, %v6880_v48  ;;  %v8070_v7 = vld [vmem:[%s16476_s0 + $0x1c0] sm:$0xff] }
 0x86c   :  { %7046 = vst [vmem:[#allocation3 + $0x158] sm:$0xff] %v6982_v4  ;;  %v8071_v4 = vld [vmem:[%s16476_s0 + $0x1d8] sm:$0xff] }
 0x86d   :  { %7044 = vst [vmem:[#allocation3 + $0x148] sm:$0xff] %v6980_v22  ;;  %v7815_v33 = vpop.f32.mrb[44].mxu1  ;;  %v8072_v22 = vld [vmem:[%s16476_s0 + $0x1c8] sm:$0xff] }
 0x86e   :  { %v6901_v31 = vadd.f32 %v7815_v33, %v16138_v49  ;;  %v6892_v2 = vpop.f32.mrb[45].mxu1 }
 0x86f   :  { %v6893_v40 = vadd.f32 %v16138_v49, %v6892_v2  ;;  %v7816_v25 = vpop.f32.mrb[46].mxu1 }
 0x870   :  { %v6985_v17 = vadd.f32 %v8057_v41, %v6901_v31  ;;  %v6904_v29 = vadd.f32 %v7816_v25, %v16138_v49  ;;  %v6895_v50 = vpop.f32.mrb[47].mxu1 }
 0x871   :  { %v6983_v38 = vadd.f32 %v8058_v55, %v6893_v40  ;;  %v6896_v8 = vadd.f32 %v16138_v49, %v6895_v50 }
 0x872   :  { %7049 = vst [vmem:[#allocation3 + $0x170] sm:$0xff] %v6985_v17  ;;  %v6986_v36 = vadd.f32 %v8059_v9, %v6904_v29  ;;  %v8073_v17 = vld [vmem:[%s16476_s0 + $0x1f0] sm:$0xff] }
 0x873   :  { %7047 = vst [vmem:[#allocation3 + $0x160] sm:$0xff] %v6983_v38  ;;  %v6984_v20 = vadd.f32 %v8060_v0, %v6896_v8  ;;  %v8074_v38 = vld [vmem:[%s16476_s0 + $0x1e0] sm:$0xff] }
 0x874   :  { %7050 = vst [vmem:[#allocation3 + $0x178] sm:$0xff] %v6986_v36  ;;  %v8075_v36 = vld [vmem:[%s16476_s0 + $0x1f8] sm:$0xff] }
 0x875   :  { %7048 = vst [vmem:[#allocation3 + $0x168] sm:$0xff] %v6984_v20  ;;  %v7819_v39 = vpop.f32.mrb[48].mxu1  ;;  %v8076_v20 = vld [vmem:[%s16476_s0 + $0x1e8] sm:$0xff] }
 0x876   :  { %v6917_v11 = vadd.f32 %v7819_v39, %v16138_v49  ;;  %v6908_v62 = vpop.f32.mrb[49].mxu1 }
 0x877   :  { %v6909_v34 = vadd.f32 %v16138_v49, %v6908_v62  ;;  %v7820_v18 = vpop.f32.mrb[50].mxu1 }
 0x878   :  { %v6989_v10 = vadd.f32 %v8061_v26, %v6917_v11  ;;  %v6920_v21 = vadd.f32 %v7820_v18, %v16138_v49  ;;  %v6911_v56 = vpop.f32.mrb[51].mxu1 }
 0x879   :  { %v6987_v12 = vadd.f32 %v8062_v16, %v6909_v34  ;;  %v6912_v14 = vadd.f32 %v16138_v49, %v6911_v56 }
 0x87a   :  { %7053 = vst [vmem:[#allocation3 + $0x190] sm:$0xff] %v6989_v10  ;;  %v6990_v43 = vadd.f32 %v8063_v6, %v6920_v21 }
 0x87b   :  { %7051 = vst [vmem:[#allocation3 + $0x180] sm:$0xff] %v6987_v12  ;;  %v6988_v19 = vadd.f32 %v8064_v44, %v6912_v14 }
 0x87c   :  { %7054 = vst [vmem:[#allocation3 + $0x198] sm:$0xff] %v6990_v43 }
 0x87d   :  { %7052 = vst [vmem:[#allocation3 + $0x188] sm:$0xff] %v6988_v19  ;;  %v7823_v32 = vpop.f32.mrb[52].mxu1 }
 0x87e   :  { %v6933_v45 = vadd.f32 %v7823_v32, %v16138_v49  ;;  %v6924_v51 = vpop.f32.mrb[53].mxu1 }
 0x87f   :  { %v6925_v59 = vadd.f32 %v16138_v49, %v6924_v51  ;;  %v7824_v5 = vpop.f32.mrb[54].mxu1 }
 0x880   :  { %v6993_v30 = vadd.f32 %v8065_v57, %v6933_v45  ;;  %v6936_v27 = vadd.f32 %v7824_v5, %v16138_v49  ;;  %v6927_v60 = vpop.f32.mrb[55].mxu1 }
 0x881   :  { %v6991_v24 = vadd.f32 %v8066_v23, %v6925_v59  ;;  %v6928_v42 = vadd.f32 %v16138_v49, %v6927_v60 }
 0x882   :  { %7057 = vst [vmem:[#allocation3 + $0x1b0] sm:$0xff] %v6993_v30  ;;  %v6994_v47 = vadd.f32 %v8067_v46, %v6936_v27 }
 0x883   :  { %7055 = vst [vmem:[#allocation3 + $0x1a0] sm:$0xff] %v6991_v24  ;;  %v6992_v1 = vadd.f32 %v8068_v37, %v6928_v42 }
 0x884   :  { %7058 = vst [vmem:[#allocation3 + $0x1b8] sm:$0xff] %v6994_v47 }
 0x885   :  { %7056 = vst [vmem:[#allocation3 + $0x1a8] sm:$0xff] %v6992_v1  ;;  %v7827_v54 = vpop.f32.mrb[56].mxu1 }
 0x886   :  { %v6949_v58 = vadd.f32 %v7827_v54, %v16138_v49  ;;  %v6940_v35 = vpop.f32.mrb[57].mxu1 }
 0x887   :  { %v6941_v13 = vadd.f32 %v16138_v49, %v6940_v35  ;;  %v7828_v15 = vpop.f32.mrb[58].mxu1 }
 0x888   :  { %v6997_v53 = vadd.f32 %v8069_v52, %v6949_v58  ;;  %v6952_v61 = vadd.f32 %v7828_v15, %v16138_v49  ;;  %v6943_v3 = vpop.f32.mrb[59].mxu1 }
 0x889   :  { %v6995_v48 = vadd.f32 %v8070_v7, %v6941_v13  ;;  %v6944_v63 = vadd.f32 %v16138_v49, %v6943_v3 }
 0x88a   :  { %7061 = vst [vmem:[#allocation3 + $0x1d0] sm:$0xff] %v6997_v53  ;;  %v6998_v28 = vadd.f32 %v8071_v4, %v6952_v61 }
 0x88b   :  { %7059 = vst [vmem:[#allocation3 + $0x1c0] sm:$0xff] %v6995_v48  ;;  %v6996_v33 = vadd.f32 %v8072_v22, %v6944_v63 }
 0x88c   :  { %7062 = vst [vmem:[#allocation3 + $0x1d8] sm:$0xff] %v6998_v28 }
 0x88d   :  { %7060 = vst [vmem:[#allocation3 + $0x1c8] sm:$0xff] %v6996_v33  ;;  %v7831_v31 = vpop.f32.mrb[60].mxu1 }
 0x88e   :  { %v6965_v2 = vadd.f32 %v7831_v31, %v16138_v49  ;;  %v6956_v40 = vpop.f32.mrb[61].mxu1 }
 0x88f   :  { %v6957_v25 = vadd.f32 %v16138_v49, %v6956_v40  ;;  %v7832_v41 = vpop.f32.mrb[62].mxu1 }
 0x890   :  { %v7001_v29 = vadd.f32 %v8073_v17, %v6965_v2  ;;  %v6968_v50 = vadd.f32 %v7832_v41, %v16138_v49  ;;  %v6959_v55 = vpop.f32.mrb[63].mxu1 }
 0x891   :  { %v6999_v8 = vadd.f32 %v8074_v38, %v6957_v25  ;;  %v6960_v9 = vadd.f32 %v16138_v49, %v6959_v55 }
 0x892   :  { %7065 = vst [vmem:[#allocation3 + $0x1f0] sm:$0xff] %v7001_v29  ;;  %v7002_v0 = vadd.f32 %v8075_v36, %v6968_v50 }
 0x893   :  { %7063 = vst [vmem:[#allocation3 + $0x1e0] sm:$0xff] %v6999_v8  ;;  %v7000_v39 = vadd.f32 %v8076_v20, %v6960_v9 }
 0x894   :  { %7066 = vst [vmem:[#allocation3 + $0x1f8] sm:$0xff] %v7002_v0 }
 0x895   :  { %7064 = vst [vmem:[#allocation3 + $0x1e8] sm:$0xff] %v7000_v39 }
 0x896   :  { %8088 = shalt.err (!%p8085_p4)
}
 0x897   :  { %s8089_s27 = scalar_lea.hbm %s16485_s9, 8192 }
 0x898   :  { %p8090_p5 = scmp.ne.s32.totalorder %s16485_s9, %s8089_s27  ;;  %p8093_p6 = scmp.lt.u32.totalorder %s8089_s27, %s16485_s9 }
 0x89a   :  { %p8095_p7 = pnand %p8093_p6, %p8090_p5 }
 0x89c   :  { %8098 = shalt.err (!%p8095_p7)
}
 0x89d   :  { %s8103_s10 = smov 128   ;;  %s8104_s11 = smov 8  }
 0x89e   :  { %7078 = dma.vmem_to_hbm [thread:$0]  %s7073_s5, 8192, %s16485_s9, [#allocation4], %s8103_s10, %s8103_s10, %s8104_s11  }
 0x89f   :  { %8099 = dma.done.wait [#allocation4], 8192  }
 0x8a0   :  { %8100 = vsyncadd [#allocation4], 4294959104 }
 0x8a1   :  { %7082 = vsyncpa [#allocation4], 1 }

</bundles_post_ra>
